<compile_context>
chip_gen: v6e
topology: v6e:2x2x1
jax: 0.10.0
libtpu: 0.0.40
codegen_flags: <defaults>
</compile_context>

<pallas_src>
import math
import jax
import jax.numpy as jnp
from jax.experimental import pallas as pl
from jax.experimental.pallas import tpu as pltpu

# ---- model config (matches nn module __init__ shapes, small synthetic sizes) ----
VOCAB = 50
VOCAB_PAD = 64        # embedding rows zero-padded to a sublane-friendly size
D_MODEL = 32          # hidden_dim
NUM_HEADS = 4
HEAD_DIM = D_MODEL // NUM_HEADS
NUM_LAYERS = 2
DIM_FF = 64           # dim_feedforward
MAX_LEN = 64
LN_EPS = 1e-5


# ----------------------------- fused Pallas kernel -------------------------------
def fused_encoder_kernel(ids_ref, emb_ref, pe_ref, am_ref, kpm_ref,
                         wq_ref, bq_ref, wk_ref, bk_ref, wv_ref, bv_ref,
                         wo_ref, bo_ref, ln1g_ref, ln1b_ref,
                         w1_ref, b1_ref, w2_ref, b2_ref, ln2g_ref, ln2b_ref,
                         o_ref):
    # ids_ref: [T, 1] int32, rows ordered (s, b).  emb_ref: [VOCAB_PAD, D] f32.
    # pe_ref: [MAX_LEN, D].  am_ref: [B, B] additive.  kpm_ref: [S, B] (0 / -1e9).
    # wq/wk/wv: [L, H, D, Dh] bf16 (1/sqrt(Dh) folded into wq).  wo: [L, H, Dh, D] bf16.
    S, B = kpm_ref.shape
    T = S * B
    VOC, D = emb_ref.shape
    H = NUM_HEADS
    Dh = D // H

    # ---- fused embedding gather (one-hot matmul, f32-exact) + sqrt(d_model) scale ----
    ids = ids_ref[...]                                               # [T, 1] int32
    vocab_iota = jax.lax.broadcasted_iota(jnp.int32, (T, VOC), 1)
    onehot = jnp.where(ids == vocab_iota, math.sqrt(float(D_MODEL)), 0.0)   # [T, VOC]
    x = jnp.dot(onehot, emb_ref[...], preferred_element_type=jnp.float32)   # [T, D]

    # ---- positional encoding (dropout = identity, eval mode) ----
    pe_tok = jnp.broadcast_to(pe_ref[0:S, :][:, None, :], (S, B, D)).reshape(T, D)
    x = x + pe_tok

    # ---- additive attention bias, built & hoisted ONCE (head-independent) ----
    bias3 = am_ref[...][None, :, :] + kpm_ref[...][:, None, :]       # [S, B(l), B(m)]

    for l in range(NUM_LAYERS):                                      # static unroll
        xb = x.astype(jnp.bfloat16)
        attn = jnp.zeros((T, D), jnp.float32)

        for h in range(H):                                           # static head loop
            # per-head projections (scale pre-folded into wq/bq at init)
            qh = jnp.dot(xb, wq_ref[l, h], preferred_element_type=jnp.float32) + bq_ref[l, h]
            kh = jnp.dot(xb, wk_ref[l, h], preferred_element_type=jnp.float32) + bk_ref[l, h]
            vh = jnp.dot(xb, wv_ref[l, h], preferred_element_type=jnp.float32) + bv_ref[l, h]
            q3 = qh.reshape(S, B, Dh).astype(jnp.bfloat16)           # [S, B, Dh]
            k3 = kh.reshape(S, B, Dh).astype(jnp.bfloat16)
            v3 = vh.reshape(S, B, Dh).astype(jnp.bfloat16)

            # scores over the attended axis m (length B), batched over s
            sc = jnp.einsum('sld,smd->slm', q3, k3,
                            preferred_element_type=jnp.float32) + bias3      # [S, B, B]

            # softmax over m, f32 throughout
            sc = sc - jnp.max(sc, axis=2, keepdims=True)
            p = jnp.exp(sc)
            p = p * pl.reciprocal(jnp.sum(p, axis=2, keepdims=True), approx=True)

            # direct P.V contraction (no D-expanded probability tensor)
            ctx = jnp.einsum('slm,smd->sld', p.astype(jnp.bfloat16), v3,
                             preferred_element_type=jnp.float32)             # [S, B, Dh]

            # per-head slice of the output projection: sum_h ctx_h @ Wo[h] == concat @ Wo
            attn = attn + jnp.dot(ctx.reshape(T, Dh).astype(jnp.bfloat16), wo_ref[l, h],
                                  preferred_element_type=jnp.float32)
        attn = attn + bo_ref[l]

        # ---- residual + LayerNorm 1 (post-norm, f32) ----
        x1 = x + attn
        mu1 = jnp.mean(x1, axis=-1, keepdims=True)
        var1 = jnp.mean((x1 - mu1) ** 2, axis=-1, keepdims=True)
        x1n = (x1 - mu1) * jax.lax.rsqrt(var1 + LN_EPS) * ln1g_ref[l] + ln1b_ref[l]

        # ---- feed-forward: linear2(relu(linear1(x))), bf16 MXU operands ----
        h1 = jnp.maximum(
            jnp.dot(x1n.astype(jnp.bfloat16), w1_ref[l],
                    preferred_element_type=jnp.float32) + b1_ref[l], 0.0)
        h2 = jnp.dot(h1.astype(jnp.bfloat16), w2_ref[l],
                     preferred_element_type=jnp.float32) + b2_ref[l]

        # ---- residual + LayerNorm 2 ----
        x2 = x1n + h2
        mu2 = jnp.mean(x2, axis=-1, keepdims=True)
        var2 = jnp.mean((x2 - mu2) ** 2, axis=-1, keepdims=True)
        x = (x2 - mu2) * jax.lax.rsqrt(var2 + LN_EPS) * ln2g_ref[l] + ln2b_ref[l]

    # ---- write output rows in (b, s)-major order: wrapper reshape is then free ----
    x3 = x.reshape(S, B, D)
    for b in range(B):
        o_ref[b * S:(b + 1) * S, :] = x3[:, b, :]


# --------------------------------- wrapper ----------------------------------------
def _cost_estimate(S, B):
    T = S * B
    D, H, Dh, FF, L = D_MODEL, NUM_HEADS, HEAD_DIM, DIM_FF, NUM_LAYERS
    flops = 2 * T * VOCAB_PAD * D                           # one-hot gather matmul
    per_layer = (3 * H * 2 * T * D * Dh                     # per-head Q/K/V projections
                 + 2 * H * 2 * S * B * B * Dh               # QK^T and P.V
                 + H * 2 * T * Dh * D                       # output projection
                 + 2 * T * D * FF + 2 * T * FF * D)         # FFN
    flops += L * per_layer
    transcendentals = L * (H * S * B * B + 2 * T)           # exp + rsqrt
    return flops, transcendentals


def fused_encoder(ids, am, kpm, params):
    S, B = kpm.shape
    T = S * B
    args = (ids, params['emb'], params['pe'], am, kpm,
            params['wq'], params['bq'], params['wk'], params['bk'],
            params['wv'], params['bv'], params['wo'], params['bo'],
            params['ln1g'], params['ln1b'],
            params['w1'], params['b1'], params['w2'], params['b2'],
            params['ln2g'], params['ln2b'])
    vmem = pl.BlockSpec(memory_space=pltpu.MemorySpace.VMEM)
    flops, transcendentals = _cost_estimate(S, B)
    bytes_accessed = int(sum(a.size * a.dtype.itemsize for a in args) + T * D_MODEL * 4)
    return pl.pallas_call(
        fused_encoder_kernel,
        out_shape=jax.ShapeDtypeStruct((T, D_MODEL), jnp.float32),
        in_specs=[vmem] * len(args),
        out_specs=vmem,
        compiler_params=pltpu.CompilerParams(vmem_limit_bytes=32 * 1024 * 1024),
        cost_estimate=pl.CostEstimate(flops=flops, transcendentals=transcendentals,
                                      bytes_accessed=bytes_accessed),
    )(*args)


def make_positional_encoding(max_len, d_model):
    position = jnp.arange(max_len, dtype=jnp.float32)[:, None]
    div_term = jnp.exp(jnp.arange(0, d_model, 2, dtype=jnp.float32)
                       * (-math.log(10000.0) / d_model))
    pe = jnp.zeros((max_len, d_model), jnp.float32)
    pe = pe.at[:, 0::2].set(jnp.sin(position * div_term))
    pe = pe.at[:, 1::2].set(jnp.cos(position * div_term))
    return pe                                                        # [max_len, D]


def init_params(key):
    keys = jax.random.split(key, 1 + NUM_LAYERS)
    H, Dh = NUM_HEADS, HEAD_DIM
    inv_sqrt_dh = 1.0 / math.sqrt(Dh)

    # nn.init.uniform_(embedding.weight, -0.1, 0.1); rows padded with zeros to VOCAB_PAD
    emb = jax.random.uniform(keys[0], (VOCAB, D_MODEL), jnp.float32, -0.1, 0.1)
    params = {
        'emb': jnp.concatenate(
            [emb, jnp.zeros((VOCAB_PAD - VOCAB, D_MODEL), jnp.float32)], axis=0),
        'pe': make_positional_encoding(MAX_LEN, D_MODEL),
    }

    wq, wk, wv, wo, w1, w2, b1, b2 = [], [], [], [], [], [], [], []
    for l in range(NUM_LAYERS):
        k = jax.random.split(keys[1 + l], 6)
        bnd_in = math.sqrt(6.0 / (D_MODEL + 3 * D_MODEL))            # xavier_uniform in_proj
        in_proj = jax.random.uniform(k[0], (3 * D_MODEL, D_MODEL), jnp.float32, -bnd_in, bnd_in)
        wq_full = in_proj[0 * D_MODEL:1 * D_MODEL].T * inv_sqrt_dh   # fold 1/sqrt(Dh) into Wq
        wk_full = in_proj[1 * D_MODEL:2 * D_MODEL].T
        wv_full = in_proj[2 * D_MODEL:3 * D_MODEL].T
        bnd = 1.0 / math.sqrt(D_MODEL)
        bnd_ff = 1.0 / math.sqrt(DIM_FF)
        wo_full = jax.random.uniform(k[1], (D_MODEL, D_MODEL), jnp.float32, -bnd, bnd).T
        # split per head: q/k/v on output features -> [H, D, Dh]; out-proj on inputs -> [H, Dh, D]
        wq.append(jnp.stack([wq_full[:, h * Dh:(h + 1) * Dh] for h in range(H)]))
        wk.append(jnp.stack([wk_full[:, h * Dh:(h + 1) * Dh] for h in range(H)]))
        wv.append(jnp.stack([wv_full[:, h * Dh:(h + 1) * Dh] for h in range(H)]))
        wo.append(jnp.stack([wo_full[h * Dh:(h + 1) * Dh, :] for h in range(H)]))
        w1.append(jax.random.uniform(k[2], (DIM_FF, D_MODEL), jnp.float32, -bnd, bnd).T)
        w2.append(jax.random.uniform(k[3], (D_MODEL, DIM_FF), jnp.float32, -bnd_ff, bnd_ff).T)
        b1.append(jax.random.uniform(k[4], (DIM_FF,), jnp.float32, -bnd, bnd).reshape(1, DIM_FF))
        b2.append(jax.random.uniform(k[5], (D_MODEL,), jnp.float32, -bnd_ff, bnd_ff).reshape(1, D_MODEL))

    # stacked per-layer weights; matmul weights stored bf16 (MXU-native), rest f32
    params['wq'] = jnp.stack(wq).astype(jnp.bfloat16)                # [L, H, D, Dh] (scaled)
    params['wk'] = jnp.stack(wk).astype(jnp.bfloat16)
    params['wv'] = jnp.stack(wv).astype(jnp.bfloat16)
    params['wo'] = jnp.stack(wo).astype(jnp.bfloat16)                # [L, H, Dh, D]
    zeros_head = jnp.zeros((NUM_LAYERS, NUM_HEADS, 1, HEAD_DIM), jnp.float32)
    params['bq'] = zeros_head        # in_proj_bias init = 0 (1/sqrt(Dh) fold is a no-op)
    params['bk'] = zeros_head
    params['bv'] = zeros_head
    params['bo'] = jnp.zeros((NUM_LAYERS, 1, D_MODEL), jnp.float32)
    params['ln1g'] = jnp.ones((NUM_LAYERS, 1, D_MODEL), jnp.float32)
    params['ln1b'] = jnp.zeros((NUM_LAYERS, 1, D_MODEL), jnp.float32)
    params['w1'] = jnp.stack(w1).astype(jnp.bfloat16)                # [L, D, FF]
    params['b1'] = jnp.stack(b1)                                     # [L, 1, FF]
    params['w2'] = jnp.stack(w2).astype(jnp.bfloat16)                # [L, FF, D]
    params['b2'] = jnp.stack(b2)                                     # [L, 1, D]
    params['ln2g'] = jnp.ones((NUM_LAYERS, 1, D_MODEL), jnp.float32)
    params['ln2b'] = jnp.zeros((NUM_LAYERS, 1, D_MODEL), jnp.float32)
    return params


@jax.jit
def transformer_encoder_forward(src_ids, src_mask, src_key_padding_mask, params):
    """src_ids: [S, B] int32; src_mask: additive float [B, B];
    src_key_padding_mask: bool [S, B] (True = ignore key).  Returns [B, S, D]."""
    S, B = src_ids.shape
    ids = src_ids.reshape(S * B, 1).astype(jnp.int32)                 # (s, b)-major rows
    am = src_mask.astype(jnp.float32)                                 # [B, B]
    kpm = jnp.where(src_key_padding_mask, -1e9, 0.0).astype(jnp.float32)   # [S, B]
    out2d = fused_encoder(ids, am, kpm, params)                       # [T, D], (b, s)-major rows
    return out2d.reshape(B, S, D_MODEL)                               # free reshape, no transpose


if __name__ == "__main__":
    key = jax.random.PRNGKey(0)
    pkey, dkey = jax.random.split(key)
    params = init_params(pkey)

    S, B = 8, 2
    src = jax.random.randint(dkey, (S, B), 0, VOCAB, dtype=jnp.int32)
    src_mask = jnp.zeros((B, B), jnp.float32)            # additive mask over attended axis
    src_key_padding_mask = jnp.zeros((S, B), jnp.bool_)  # no padded keys

    out = transformer_encoder_forward(src, src_mask, src_key_padding_mask, params)
    out = jax.block_until_ready(out)
    assert out.shape == (B, S, D_MODEL), out.shape
    assert bool(jnp.all(jnp.isfinite(out)))
    print("KERNEL_OK")
</pallas_src>

<mosaic_0001>
module attributes {stable_mosaic.version = 11 : i64} {
  func.func @fused_encoder_kernel(%arg0: memref<16x1xi32, #tpu.memory_space<vmem>>, %arg1: memref<64x32xf32, #tpu.memory_space<vmem>>, %arg2: memref<64x32xf32, #tpu.memory_space<vmem>>, %arg3: memref<2x2xf32, #tpu.memory_space<vmem>>, %arg4: memref<8x2xf32, #tpu.memory_space<vmem>>, %arg5: memref<2x4x32x8xbf16, #tpu.memory_space<vmem>>, %arg6: memref<2x4x1x8xf32, #tpu.memory_space<vmem>>, %arg7: memref<2x4x32x8xbf16, #tpu.memory_space<vmem>>, %arg8: memref<2x4x1x8xf32, #tpu.memory_space<vmem>>, %arg9: memref<2x4x32x8xbf16, #tpu.memory_space<vmem>>, %arg10: memref<2x4x1x8xf32, #tpu.memory_space<vmem>>, %arg11: memref<2x4x8x32xbf16, #tpu.memory_space<vmem>>, %arg12: memref<2x1x32xf32, #tpu.memory_space<vmem>>, %arg13: memref<2x1x32xf32, #tpu.memory_space<vmem>>, %arg14: memref<2x1x32xf32, #tpu.memory_space<vmem>>, %arg15: memref<2x32x64xbf16, #tpu.memory_space<vmem>>, %arg16: memref<2x1x64xf32, #tpu.memory_space<vmem>>, %arg17: memref<2x64x32xbf16, #tpu.memory_space<vmem>>, %arg18: memref<2x1x32xf32, #tpu.memory_space<vmem>>, %arg19: memref<2x1x32xf32, #tpu.memory_space<vmem>>, %arg20: memref<2x1x32xf32, #tpu.memory_space<vmem>>, %arg21: memref<16x32xf32, #tpu.memory_space<vmem>>) attributes {dimension_semantics = [], scalar_prefetch = 0 : i64, scratch_operands = 0 : i64, tpu.core_type = #tpu.core_type<tc>} {
    %c0 = arith.constant 0 : index
    %c0_0 = arith.constant 0 : index
    %0 = vector.load %arg0[%c0, %c0_0] : memref<16x1xi32, #tpu.memory_space<vmem>>, vector<16x1xi32>
    %1 = tpu.iota {dimensions = array<i32: 1>} : vector<16x64xi32>
    %2 = vector.broadcast %0 : vector<16x1xi32> to vector<16x64xi32>
    %3 = arith.cmpi eq, %2, %1 : vector<16x64xi32>
    %cst = arith.constant 5.65685415 : f32
    %cst_1 = arith.constant 0.000000e+00 : f32
    %4 = vector.broadcast %cst : f32 to vector<16x64xf32>
    %5 = vector.broadcast %cst_1 : f32 to vector<16x64xf32>
    %6 = arith.select %3, %4, %5 : vector<16x64xi1>, vector<16x64xf32>
    %c0_2 = arith.constant 0 : index
    %c0_3 = arith.constant 0 : index
    %7 = vector.load %arg1[%c0_2, %c0_3] : memref<64x32xf32, #tpu.memory_space<vmem>>, vector<64x32xf32>
    %cst_4 = arith.constant dense<0.000000e+00> : vector<16x32xf32>
    %8 = tpu.matmul %6, %7, %cst_4 {dimension_numbers = #tpu.dot_dimension_numbers<[1], [0], [0], [1], [0, 0, 1, 1], [], []>} : vector<16x64xf32>, vector<64x32xf32>, vector<16x32xf32> -> vector<16x32xf32>
    %c0_5 = arith.constant 0 : index
    %c0_6 = arith.constant 0 : index
    %9 = vector.load %arg2[%c0_5, %c0_6] : memref<64x32xf32, #tpu.memory_space<vmem>>, vector<8x32xf32>
    %10 = vector.shape_cast %9 : vector<8x32xf32> to vector<8x1x32xf32>
    %11 = vector.shape_cast %10 : vector<8x1x32xf32> to vector<8x1x32xf32>
    %12 = vector.broadcast %11 : vector<8x1x32xf32> to vector<8x2x32xf32>
    %13 = vector.shape_cast %12 : vector<8x2x32xf32> to vector<16x32xf32>
    %14 = arith.addf %8, %13 : vector<16x32xf32>
    %c0_7 = arith.constant 0 : index
    %c0_8 = arith.constant 0 : index
    %15 = vector.load %arg3[%c0_7, %c0_8] : memref<2x2xf32, #tpu.memory_space<vmem>>, vector<2x2xf32>
    %16 = vector.shape_cast %15 : vector<2x2xf32> to vector<1x2x2xf32>
    %c0_9 = arith.constant 0 : index
    %c0_10 = arith.constant 0 : index
    %17 = vector.load %arg4[%c0_9, %c0_10] : memref<8x2xf32, #tpu.memory_space<vmem>>, vector<8x2xf32>
    %18 = vector.shape_cast %17 : vector<8x2xf32> to vector<8x1x2xf32>
    %19 = vector.broadcast %16 : vector<1x2x2xf32> to vector<8x2x2xf32>
    %20 = vector.broadcast %18 : vector<8x1x2xf32> to vector<8x2x2xf32>
    %21 = arith.addf %19, %20 : vector<8x2x2xf32>
    %22 = arith.truncf %14 : vector<16x32xf32> to vector<16x32xbf16>
    %cst_11 = arith.constant 0.000000e+00 : f32
    %23 = vector.broadcast %cst_11 : f32 to vector<16x32xf32>
    %c0_12 = arith.constant 0 : index
    %c0_13 = arith.constant 0 : index
    %c0_14 = arith.constant 0 : index
    %c0_15 = arith.constant 0 : index
    %24 = vector.load %arg5[%c0_12, %c0_13, %c0_14, %c0_15] : memref<2x4x32x8xbf16, #tpu.memory_space<vmem>>, vector<1x1x32x8xbf16>
    %25 = vector.shape_cast %24 : vector<1x1x32x8xbf16> to vector<32x8xbf16>
    %cst_16 = arith.constant dense<0.000000e+00> : vector<16x8xf32>
    %26 = tpu.matmul %22, %25, %cst_16 {dimension_numbers = #tpu.dot_dimension_numbers<[1], [0], [0], [1], [0, 0, 1, 1], [], []>} : vector<16x32xbf16>, vector<32x8xbf16>, vector<16x8xf32> -> vector<16x8xf32>
    %c0_17 = arith.constant 0 : index
    %c0_18 = arith.constant 0 : index
    %c0_19 = arith.constant 0 : index
    %c0_20 = arith.constant 0 : index
    %27 = vector.load %arg6[%c0_17, %c0_18, %c0_19, %c0_20] : memref<2x4x1x8xf32, #tpu.memory_space<vmem>>, vector<1x1x1x8xf32>
    %28 = vector.shape_cast %27 : vector<1x1x1x8xf32> to vector<1x8xf32>
    %29 = vector.broadcast %28 : vector<1x8xf32> to vector<16x8xf32>
    %30 = arith.addf %26, %29 : vector<16x8xf32>
    %c0_21 = arith.constant 0 : index
    %c0_22 = arith.constant 0 : index
    %c0_23 = arith.constant 0 : index
    %c0_24 = arith.constant 0 : index
    %31 = vector.load %arg7[%c0_21, %c0_22, %c0_23, %c0_24] : memref<2x4x32x8xbf16, #tpu.memory_space<vmem>>, vector<1x1x32x8xbf16>
    %32 = vector.shape_cast %31 : vector<1x1x32x8xbf16> to vector<32x8xbf16>
    %cst_25 = arith.constant dense<0.000000e+00> : vector<16x8xf32>
    %33 = tpu.matmul %22, %32, %cst_25 {dimension_numbers = #tpu.dot_dimension_numbers<[1], [0], [0], [1], [0, 0, 1, 1], [], []>} : vector<16x32xbf16>, vector<32x8xbf16>, vector<16x8xf32> -> vector<16x8xf32>
    %c0_26 = arith.constant 0 : index
    %c0_27 = arith.constant 0 : index
    %c0_28 = arith.constant 0 : index
    %c0_29 = arith.constant 0 : index
    %34 = vector.load %arg8[%c0_26, %c0_27, %c0_28, %c0_29] : memref<2x4x1x8xf32, #tpu.memory_space<vmem>>, vector<1x1x1x8xf32>
    %35 = vector.shape_cast %34 : vector<1x1x1x8xf32> to vector<1x8xf32>
    %36 = vector.broadcast %35 : vector<1x8xf32> to vector<16x8xf32>
    %37 = arith.addf %33, %36 : vector<16x8xf32>
    %c0_30 = arith.constant 0 : index
    %c0_31 = arith.constant 0 : index
    %c0_32 = arith.constant 0 : index
    %c0_33 = arith.constant 0 : index
    %38 = vector.load %arg9[%c0_30, %c0_31, %c0_32, %c0_33] : memref<2x4x32x8xbf16, #tpu.memory_space<vmem>>, vector<1x1x32x8xbf16>
    %39 = vector.shape_cast %38 : vector<1x1x32x8xbf16> to vector<32x8xbf16>
    %cst_34 = arith.constant dense<0.000000e+00> : vector<16x8xf32>
    %40 = tpu.matmul %22, %39, %cst_34 {dimension_numbers = #tpu.dot_dimension_numbers<[1], [0], [0], [1], [0, 0, 1, 1], [], []>} : vector<16x32xbf16>, vector<32x8xbf16>, vector<16x8xf32> -> vector<16x8xf32>
    %c0_35 = arith.constant 0 : index
    %c0_36 = arith.constant 0 : index
    %c0_37 = arith.constant 0 : index
    %c0_38 = arith.constant 0 : index
    %41 = vector.load %arg10[%c0_35, %c0_36, %c0_37, %c0_38] : memref<2x4x1x8xf32, #tpu.memory_space<vmem>>, vector<1x1x1x8xf32>
    %42 = vector.shape_cast %41 : vector<1x1x1x8xf32> to vector<1x8xf32>
    %43 = vector.broadcast %42 : vector<1x8xf32> to vector<16x8xf32>
    %44 = arith.addf %40, %43 : vector<16x8xf32>
    %45 = vector.shape_cast %30 : vector<16x8xf32> to vector<8x2x8xf32>
    %46 = arith.truncf %45 : vector<8x2x8xf32> to vector<8x2x8xbf16>
    %47 = vector.shape_cast %37 : vector<16x8xf32> to vector<8x2x8xf32>
    %48 = arith.truncf %47 : vector<8x2x8xf32> to vector<8x2x8xbf16>
    %49 = vector.shape_cast %44 : vector<16x8xf32> to vector<8x2x8xf32>
    %50 = arith.truncf %49 : vector<8x2x8xf32> to vector<8x2x8xbf16>
    "tpu.trace_start"() <{level = 10 : i32, message = "sld,smd->slm"}> : () -> ()
    %cst_39 = arith.constant dense<0.000000e+00> : vector<8x2x2xf32>
    %51 = tpu.matmul %46, %48, %cst_39 {dimension_numbers = #tpu.dot_dimension_numbers<[2], [2], [1], [1], [0, 0, 0, 1, 1, 1], [0], [0]>} : vector<8x2x8xbf16>, vector<8x2x8xbf16>, vector<8x2x2xf32> -> vector<8x2x2xf32>
    "tpu.trace_stop"() : () -> ()
    %52 = arith.addf %51, %21 : vector<8x2x2xf32>
    %cst_40 = arith.constant dense<0xFF800000> : vector<8x2xf32>
    %53 = vector.multi_reduction <maximumf>, %52, %cst_40 [2] : vector<8x2x2xf32> to vector<8x2xf32>
    %54 = vector.shape_cast %53 : vector<8x2xf32> to vector<8x2x1xf32>
    %55 = vector.broadcast %54 : vector<8x2x1xf32> to vector<8x2x2xf32>
    %56 = arith.subf %52, %55 : vector<8x2x2xf32>
    %57 = math.exp %56 : vector<8x2x2xf32>
    %cst_41 = arith.constant dense<0.000000e+00> : vector<8x2xf32>
    %58 = vector.multi_reduction <add>, %57, %cst_41 [2] : vector<8x2x2xf32> to vector<8x2xf32>
    %59 = vector.shape_cast %58 : vector<8x2xf32> to vector<8x2x1xf32>
    %60 = tpu.reciprocal %59 {approx = true} : vector<8x2x1xf32> -> vector<8x2x1xf32>
    %61 = vector.broadcast %60 : vector<8x2x1xf32> to vector<8x2x2xf32>
    %62 = arith.mulf %57, %61 : vector<8x2x2xf32>
    %63 = arith.truncf %62 : vector<8x2x2xf32> to vector<8x2x2xbf16>
    "tpu.trace_start"() <{level = 10 : i32, message = "slm,smd->sld"}> : () -> ()
    %cst_42 = arith.constant dense<0.000000e+00> : vector<8x2x8xf32>
    %64 = tpu.matmul %63, %50, %cst_42 {dimension_numbers = #tpu.dot_dimension_numbers<[2], [1], [1], [2], [0, 0, 0, 1, 1, 2], [0], [0]>} : vector<8x2x2xbf16>, vector<8x2x8xbf16>, vector<8x2x8xf32> -> vector<8x2x8xf32>
    "tpu.trace_stop"() : () -> ()
    %65 = vector.shape_cast %64 : vector<8x2x8xf32> to vector<16x8xf32>
    %66 = arith.truncf %65 : vector<16x8xf32> to vector<16x8xbf16>
    %c0_43 = arith.constant 0 : index
    %c0_44 = arith.constant 0 : index
    %c0_45 = arith.constant 0 : index
    %c0_46 = arith.constant 0 : index
    %67 = vector.load %arg11[%c0_43, %c0_44, %c0_45, %c0_46] : memref<2x4x8x32xbf16, #tpu.memory_space<vmem>>, vector<1x1x8x32xbf16>
    %68 = vector.shape_cast %67 : vector<1x1x8x32xbf16> to vector<8x32xbf16>
    %cst_47 = arith.constant dense<0.000000e+00> : vector<16x32xf32>
    %69 = tpu.matmul %66, %68, %cst_47 {dimension_numbers = #tpu.dot_dimension_numbers<[1], [0], [0], [1], [0, 0, 1, 1], [], []>} : vector<16x8xbf16>, vector<8x32xbf16>, vector<16x32xf32> -> vector<16x32xf32>
    %70 = arith.addf %23, %69 : vector<16x32xf32>
    %c0_48 = arith.constant 0 : index
    %c1 = arith.constant 1 : index
    %c0_49 = arith.constant 0 : index
    %c0_50 = arith.constant 0 : index
    %71 = vector.load %arg5[%c0_48, %c1, %c0_49, %c0_50] : memref<2x4x32x8xbf16, #tpu.memory_space<vmem>>, vector<1x1x32x8xbf16>
    %72 = vector.shape_cast %71 : vector<1x1x32x8xbf16> to vector<32x8xbf16>
    %cst_51 = arith.constant dense<0.000000e+00> : vector<16x8xf32>
    %73 = tpu.matmul %22, %72, %cst_51 {dimension_numbers = #tpu.dot_dimension_numbers<[1], [0], [0], [1], [0, 0, 1, 1], [], []>} : vector<16x32xbf16>, vector<32x8xbf16>, vector<16x8xf32> -> vector<16x8xf32>
    %c0_52 = arith.constant 0 : index
    %c1_53 = arith.constant 1 : index
    %c0_54 = arith.constant 0 : index
    %c0_55 = arith.constant 0 : index
    %74 = vector.load %arg6[%c0_52, %c1_53, %c0_54, %c0_55] : memref<2x4x1x8xf32, #tpu.memory_space<vmem>>, vector<1x1x1x8xf32>
    %75 = vector.shape_cast %74 : vector<1x1x1x8xf32> to vector<1x8xf32>
    %76 = vector.broadcast %75 : vector<1x8xf32> to vector<16x8xf32>
    %77 = arith.addf %73, %76 : vector<16x8xf32>
    %c0_56 = arith.constant 0 : index
    %c1_57 = arith.constant 1 : index
    %c0_58 = arith.constant 0 : index
    %c0_59 = arith.constant 0 : index
    %78 = vector.load %arg7[%c0_56, %c1_57, %c0_58, %c0_59] : memref<2x4x32x8xbf16, #tpu.memory_space<vmem>>, vector<1x1x32x8xbf16>
    %79 = vector.shape_cast %78 : vector<1x1x32x8xbf16> to vector<32x8xbf16>
    %cst_60 = arith.constant dense<0.000000e+00> : vector<16x8xf32>
    %80 = tpu.matmul %22, %79, %cst_60 {dimension_numbers = #tpu.dot_dimension_numbers<[1], [0], [0], [1], [0, 0, 1, 1], [], []>} : vector<16x32xbf16>, vector<32x8xbf16>, vector<16x8xf32> -> vector<16x8xf32>
    %c0_61 = arith.constant 0 : index
    %c1_62 = arith.constant 1 : index
    %c0_63 = arith.constant 0 : index
    %c0_64 = arith.constant 0 : index
    %81 = vector.load %arg8[%c0_61, %c1_62, %c0_63, %c0_64] : memref<2x4x1x8xf32, #tpu.memory_space<vmem>>, vector<1x1x1x8xf32>
    %82 = vector.shape_cast %81 : vector<1x1x1x8xf32> to vector<1x8xf32>
    %83 = vector.broadcast %82 : vector<1x8xf32> to vector<16x8xf32>
    %84 = arith.addf %80, %83 : vector<16x8xf32>
    %c0_65 = arith.constant 0 : index
    %c1_66 = arith.constant 1 : index
    %c0_67 = arith.constant 0 : index
    %c0_68 = arith.constant 0 : index
    %85 = vector.load %arg9[%c0_65, %c1_66, %c0_67, %c0_68] : memref<2x4x32x8xbf16, #tpu.memory_space<vmem>>, vector<1x1x32x8xbf16>
    %86 = vector.shape_cast %85 : vector<1x1x32x8xbf16> to vector<32x8xbf16>
    %cst_69 = arith.constant dense<0.000000e+00> : vector<16x8xf32>
    %87 = tpu.matmul %22, %86, %cst_69 {dimension_numbers = #tpu.dot_dimension_numbers<[1], [0], [0], [1], [0, 0, 1, 1], [], []>} : vector<16x32xbf16>, vector<32x8xbf16>, vector<16x8xf32> -> vector<16x8xf32>
    %c0_70 = arith.constant 0 : index
    %c1_71 = arith.constant 1 : index
    %c0_72 = arith.constant 0 : index
    %c0_73 = arith.constant 0 : index
    %88 = vector.load %arg10[%c0_70, %c1_71, %c0_72, %c0_73] : memref<2x4x1x8xf32, #tpu.memory_space<vmem>>, vector<1x1x1x8xf32>
    %89 = vector.shape_cast %88 : vector<1x1x1x8xf32> to vector<1x8xf32>
    %90 = vector.broadcast %89 : vector<1x8xf32> to vector<16x8xf32>
    %91 = arith.addf %87, %90 : vector<16x8xf32>
    %92 = vector.shape_cast %77 : vector<16x8xf32> to vector<8x2x8xf32>
    %93 = arith.truncf %92 : vector<8x2x8xf32> to vector<8x2x8xbf16>
    %94 = vector.shape_cast %84 : vector<16x8xf32> to vector<8x2x8xf32>
    %95 = arith.truncf %94 : vector<8x2x8xf32> to vector<8x2x8xbf16>
    %96 = vector.shape_cast %91 : vector<16x8xf32> to vector<8x2x8xf32>
    %97 = arith.truncf %96 : vector<8x2x8xf32> to vector<8x2x8xbf16>
    "tpu.trace_start"() <{level = 10 : i32, message = "sld,smd->slm"}> : () -> ()
    %cst_74 = arith.constant dense<0.000000e+00> : vector<8x2x2xf32>
    %98 = tpu.matmul %93, %95, %cst_74 {dimension_numbers = #tpu.dot_dimension_numbers<[2], [2], [1], [1], [0, 0, 0, 1, 1, 1], [0], [0]>} : vector<8x2x8xbf16>, vector<8x2x8xbf16>, vector<8x2x2xf32> -> vector<8x2x2xf32>
    "tpu.trace_stop"() : () -> ()
    %99 = arith.addf %98, %21 : vector<8x2x2xf32>
    %cst_75 = arith.constant dense<0xFF800000> : vector<8x2xf32>
    %100 = vector.multi_reduction <maximumf>, %99, %cst_75 [2] : vector<8x2x2xf32> to vector<8x2xf32>
    %101 = vector.shape_cast %100 : vector<8x2xf32> to vector<8x2x1xf32>
    %102 = vector.broadcast %101 : vector<8x2x1xf32> to vector<8x2x2xf32>
    %103 = arith.subf %99, %102 : vector<8x2x2xf32>
    %104 = math.exp %103 : vector<8x2x2xf32>
    %cst_76 = arith.constant dense<0.000000e+00> : vector<8x2xf32>
    %105 = vector.multi_reduction <add>, %104, %cst_76 [2] : vector<8x2x2xf32> to vector<8x2xf32>
    %106 = vector.shape_cast %105 : vector<8x2xf32> to vector<8x2x1xf32>
    %107 = tpu.reciprocal %106 {approx = true} : vector<8x2x1xf32> -> vector<8x2x1xf32>
    %108 = vector.broadcast %107 : vector<8x2x1xf32> to vector<8x2x2xf32>
    %109 = arith.mulf %104, %108 : vector<8x2x2xf32>
    %110 = arith.truncf %109 : vector<8x2x2xf32> to vector<8x2x2xbf16>
    "tpu.trace_start"() <{level = 10 : i32, message = "slm,smd->sld"}> : () -> ()
    %cst_77 = arith.constant dense<0.000000e+00> : vector<8x2x8xf32>
    %111 = tpu.matmul %110, %97, %cst_77 {dimension_numbers = #tpu.dot_dimension_numbers<[2], [1], [1], [2], [0, 0, 0, 1, 1, 2], [0], [0]>} : vector<8x2x2xbf16>, vector<8x2x8xbf16>, vector<8x2x8xf32> -> vector<8x2x8xf32>
    "tpu.trace_stop"() : () -> ()
    %112 = vector.shape_cast %111 : vector<8x2x8xf32> to vector<16x8xf32>
    %113 = arith.truncf %112 : vector<16x8xf32> to vector<16x8xbf16>
    %c0_78 = arith.constant 0 : index
    %c1_79 = arith.constant 1 : index
    %c0_80 = arith.constant 0 : index
    %c0_81 = arith.constant 0 : index
    %114 = vector.load %arg11[%c0_78, %c1_79, %c0_80, %c0_81] : memref<2x4x8x32xbf16, #tpu.memory_space<vmem>>, vector<1x1x8x32xbf16>
    %115 = vector.shape_cast %114 : vector<1x1x8x32xbf16> to vector<8x32xbf16>
    %cst_82 = arith.constant dense<0.000000e+00> : vector<16x32xf32>
    %116 = tpu.matmul %113, %115, %cst_82 {dimension_numbers = #tpu.dot_dimension_numbers<[1], [0], [0], [1], [0, 0, 1, 1], [], []>} : vector<16x8xbf16>, vector<8x32xbf16>, vector<16x32xf32> -> vector<16x32xf32>
    %117 = arith.addf %70, %116 : vector<16x32xf32>
    %c0_83 = arith.constant 0 : index
    %c2 = arith.constant 2 : index
    %c0_84 = arith.constant 0 : index
    %c0_85 = arith.constant 0 : index
    %118 = vector.load %arg5[%c0_83, %c2, %c0_84, %c0_85] : memref<2x4x32x8xbf16, #tpu.memory_space<vmem>>, vector<1x1x32x8xbf16>
    %119 = vector.shape_cast %118 : vector<1x1x32x8xbf16> to vector<32x8xbf16>
    %cst_86 = arith.constant dense<0.000000e+00> : vector<16x8xf32>
    %120 = tpu.matmul %22, %119, %cst_86 {dimension_numbers = #tpu.dot_dimension_numbers<[1], [0], [0], [1], [0, 0, 1, 1], [], []>} : vector<16x32xbf16>, vector<32x8xbf16>, vector<16x8xf32> -> vector<16x8xf32>
    %c0_87 = arith.constant 0 : index
    %c2_88 = arith.constant 2 : index
    %c0_89 = arith.constant 0 : index
    %c0_90 = arith.constant 0 : index
    %121 = vector.load %arg6[%c0_87, %c2_88, %c0_89, %c0_90] : memref<2x4x1x8xf32, #tpu.memory_space<vmem>>, vector<1x1x1x8xf32>
    %122 = vector.shape_cast %121 : vector<1x1x1x8xf32> to vector<1x8xf32>
    %123 = vector.broadcast %122 : vector<1x8xf32> to vector<16x8xf32>
    %124 = arith.addf %120, %123 : vector<16x8xf32>
    %c0_91 = arith.constant 0 : index
    %c2_92 = arith.constant 2 : index
    %c0_93 = arith.constant 0 : index
    %c0_94 = arith.constant 0 : index
    %125 = vector.load %arg7[%c0_91, %c2_92, %c0_93, %c0_94] : memref<2x4x32x8xbf16, #tpu.memory_space<vmem>>, vector<1x1x32x8xbf16>
    %126 = vector.shape_cast %125 : vector<1x1x32x8xbf16> to vector<32x8xbf16>
    %cst_95 = arith.constant dense<0.000000e+00> : vector<16x8xf32>
    %127 = tpu.matmul %22, %126, %cst_95 {dimension_numbers = #tpu.dot_dimension_numbers<[1], [0], [0], [1], [0, 0, 1, 1], [], []>} : vector<16x32xbf16>, vector<32x8xbf16>, vector<16x8xf32> -> vector<16x8xf32>
    %c0_96 = arith.constant 0 : index
    %c2_97 = arith.constant 2 : index
    %c0_98 = arith.constant 0 : index
    %c0_99 = arith.constant 0 : index
    %128 = vector.load %arg8[%c0_96, %c2_97, %c0_98, %c0_99] : memref<2x4x1x8xf32, #tpu.memory_space<vmem>>, vector<1x1x1x8xf32>
    %129 = vector.shape_cast %128 : vector<1x1x1x8xf32> to vector<1x8xf32>
    %130 = vector.broadcast %129 : vector<1x8xf32> to vector<16x8xf32>
    %131 = arith.addf %127, %130 : vector<16x8xf32>
    %c0_100 = arith.constant 0 : index
    %c2_101 = arith.constant 2 : index
    %c0_102 = arith.constant 0 : index
    %c0_103 = arith.constant 0 : index
    %132 = vector.load %arg9[%c0_100, %c2_101, %c0_102, %c0_103] : memref<2x4x32x8xbf16, #tpu.memory_space<vmem>>, vector<1x1x32x8xbf16>
    %133 = vector.shape_cast %132 : vector<1x1x32x8xbf16> to vector<32x8xbf16>
    %cst_104 = arith.constant dense<0.000000e+00> : vector<16x8xf32>
    %134 = tpu.matmul %22, %133, %cst_104 {dimension_numbers = #tpu.dot_dimension_numbers<[1], [0], [0], [1], [0, 0, 1, 1], [], []>} : vector<16x32xbf16>, vector<32x8xbf16>, vector<16x8xf32> -> vector<16x8xf32>
    %c0_105 = arith.constant 0 : index
    %c2_106 = arith.constant 2 : index
    %c0_107 = arith.constant 0 : index
    %c0_108 = arith.constant 0 : index
    %135 = vector.load %arg10[%c0_105, %c2_106, %c0_107, %c0_108] : memref<2x4x1x8xf32, #tpu.memory_space<vmem>>, vector<1x1x1x8xf32>
    %136 = vector.shape_cast %135 : vector<1x1x1x8xf32> to vector<1x8xf32>
    %137 = vector.broadcast %136 : vector<1x8xf32> to vector<16x8xf32>
    %138 = arith.addf %134, %137 : vector<16x8xf32>
    %139 = vector.shape_cast %124 : vector<16x8xf32> to vector<8x2x8xf32>
    %140 = arith.truncf %139 : vector<8x2x8xf32> to vector<8x2x8xbf16>
    %141 = vector.shape_cast %131 : vector<16x8xf32> to vector<8x2x8xf32>
    %142 = arith.truncf %141 : vector<8x2x8xf32> to vector<8x2x8xbf16>
    %143 = vector.shape_cast %138 : vector<16x8xf32> to vector<8x2x8xf32>
    %144 = arith.truncf %143 : vector<8x2x8xf32> to vector<8x2x8xbf16>
    "tpu.trace_start"() <{level = 10 : i32, message = "sld,smd->slm"}> : () -> ()
    %cst_109 = arith.constant dense<0.000000e+00> : vector<8x2x2xf32>
    %145 = tpu.matmul %140, %142, %cst_109 {dimension_numbers = #tpu.dot_dimension_numbers<[2], [2], [1], [1], [0, 0, 0, 1, 1, 1], [0], [0]>} : vector<8x2x8xbf16>, vector<8x2x8xbf16>, vector<8x2x2xf32> -> vector<8x2x2xf32>
    "tpu.trace_stop"() : () -> ()
    %146 = arith.addf %145, %21 : vector<8x2x2xf32>
    %cst_110 = arith.constant dense<0xFF800000> : vector<8x2xf32>
    %147 = vector.multi_reduction <maximumf>, %146, %cst_110 [2] : vector<8x2x2xf32> to vector<8x2xf32>
    %148 = vector.shape_cast %147 : vector<8x2xf32> to vector<8x2x1xf32>
    %149 = vector.broadcast %148 : vector<8x2x1xf32> to vector<8x2x2xf32>
    %150 = arith.subf %146, %149 : vector<8x2x2xf32>
    %151 = math.exp %150 : vector<8x2x2xf32>
    %cst_111 = arith.constant dense<0.000000e+00> : vector<8x2xf32>
    %152 = vector.multi_reduction <add>, %151, %cst_111 [2] : vector<8x2x2xf32> to vector<8x2xf32>
    %153 = vector.shape_cast %152 : vector<8x2xf32> to vector<8x2x1xf32>
    %154 = tpu.reciprocal %153 {approx = true} : vector<8x2x1xf32> -> vector<8x2x1xf32>
    %155 = vector.broadcast %154 : vector<8x2x1xf32> to vector<8x2x2xf32>
    %156 = arith.mulf %151, %155 : vector<8x2x2xf32>
    %157 = arith.truncf %156 : vector<8x2x2xf32> to vector<8x2x2xbf16>
    "tpu.trace_start"() <{level = 10 : i32, message = "slm,smd->sld"}> : () -> ()
    %cst_112 = arith.constant dense<0.000000e+00> : vector<8x2x8xf32>
    %158 = tpu.matmul %157, %144, %cst_112 {dimension_numbers = #tpu.dot_dimension_numbers<[2], [1], [1], [2], [0, 0, 0, 1, 1, 2], [0], [0]>} : vector<8x2x2xbf16>, vector<8x2x8xbf16>, vector<8x2x8xf32> -> vector<8x2x8xf32>
    "tpu.trace_stop"() : () -> ()
    %159 = vector.shape_cast %158 : vector<8x2x8xf32> to vector<16x8xf32>
    %160 = arith.truncf %159 : vector<16x8xf32> to vector<16x8xbf16>
    %c0_113 = arith.constant 0 : index
    %c2_114 = arith.constant 2 : index
    %c0_115 = arith.constant 0 : index
    %c0_116 = arith.constant 0 : index
    %161 = vector.load %arg11[%c0_113, %c2_114, %c0_115, %c0_116] : memref<2x4x8x32xbf16, #tpu.memory_space<vmem>>, vector<1x1x8x32xbf16>
    %162 = vector.shape_cast %161 : vector<1x1x8x32xbf16> to vector<8x32xbf16>
    %cst_117 = arith.constant dense<0.000000e+00> : vector<16x32xf32>
    %163 = tpu.matmul %160, %162, %cst_117 {dimension_numbers = #tpu.dot_dimension_numbers<[1], [0], [0], [1], [0, 0, 1, 1], [], []>} : vector<16x8xbf16>, vector<8x32xbf16>, vector<16x32xf32> -> vector<16x32xf32>
    %164 = arith.addf %117, %163 : vector<16x32xf32>
    %c0_118 = arith.constant 0 : index
    %c3 = arith.constant 3 : index
    %c0_119 = arith.constant 0 : index
    %c0_120 = arith.constant 0 : index
    %165 = vector.load %arg5[%c0_118, %c3, %c0_119, %c0_120] : memref<2x4x32x8xbf16, #tpu.memory_space<vmem>>, vector<1x1x32x8xbf16>
    %166 = vector.shape_cast %165 : vector<1x1x32x8xbf16> to vector<32x8xbf16>
    %cst_121 = arith.constant dense<0.000000e+00> : vector<16x8xf32>
    %167 = tpu.matmul %22, %166, %cst_121 {dimension_numbers = #tpu.dot_dimension_numbers<[1], [0], [0], [1], [0, 0, 1, 1], [], []>} : vector<16x32xbf16>, vector<32x8xbf16>, vector<16x8xf32> -> vector<16x8xf32>
    %c0_122 = arith.constant 0 : index
    %c3_123 = arith.constant 3 : index
    %c0_124 = arith.constant 0 : index
    %c0_125 = arith.constant 0 : index
    %168 = vector.load %arg6[%c0_122, %c3_123, %c0_124, %c0_125] : memref<2x4x1x8xf32, #tpu.memory_space<vmem>>, vector<1x1x1x8xf32>
    %169 = vector.shape_cast %168 : vector<1x1x1x8xf32> to vector<1x8xf32>
    %170 = vector.broadcast %169 : vector<1x8xf32> to vector<16x8xf32>
    %171 = arith.addf %167, %170 : vector<16x8xf32>
    %c0_126 = arith.constant 0 : index
    %c3_127 = arith.constant 3 : index
    %c0_128 = arith.constant 0 : index
    %c0_129 = arith.constant 0 : index
    %172 = vector.load %arg7[%c0_126, %c3_127, %c0_128, %c0_129] : memref<2x4x32x8xbf16, #tpu.memory_space<vmem>>, vector<1x1x32x8xbf16>
    %173 = vector.shape_cast %172 : vector<1x1x32x8xbf16> to vector<32x8xbf16>
    %cst_130 = arith.constant dense<0.000000e+00> : vector<16x8xf32>
    %174 = tpu.matmul %22, %173, %cst_130 {dimension_numbers = #tpu.dot_dimension_numbers<[1], [0], [0], [1], [0, 0, 1, 1], [], []>} : vector<16x32xbf16>, vector<32x8xbf16>, vector<16x8xf32> -> vector<16x8xf32>
    %c0_131 = arith.constant 0 : index
    %c3_132 = arith.constant 3 : index
    %c0_133 = arith.constant 0 : index
    %c0_134 = arith.constant 0 : index
    %175 = vector.load %arg8[%c0_131, %c3_132, %c0_133, %c0_134] : memref<2x4x1x8xf32, #tpu.memory_space<vmem>>, vector<1x1x1x8xf32>
    %176 = vector.shape_cast %175 : vector<1x1x1x8xf32> to vector<1x8xf32>
    %177 = vector.broadcast %176 : vector<1x8xf32> to vector<16x8xf32>
    %178 = arith.addf %174, %177 : vector<16x8xf32>
    %c0_135 = arith.constant 0 : index
    %c3_136 = arith.constant 3 : index
    %c0_137 = arith.constant 0 : index
    %c0_138 = arith.constant 0 : index
    %179 = vector.load %arg9[%c0_135, %c3_136, %c0_137, %c0_138] : memref<2x4x32x8xbf16, #tpu.memory_space<vmem>>, vector<1x1x32x8xbf16>
    %180 = vector.shape_cast %179 : vector<1x1x32x8xbf16> to vector<32x8xbf16>
    %cst_139 = arith.constant dense<0.000000e+00> : vector<16x8xf32>
    %181 = tpu.matmul %22, %180, %cst_139 {dimension_numbers = #tpu.dot_dimension_numbers<[1], [0], [0], [1], [0, 0, 1, 1], [], []>} : vector<16x32xbf16>, vector<32x8xbf16>, vector<16x8xf32> -> vector<16x8xf32>
    %c0_140 = arith.constant 0 : index
    %c3_141 = arith.constant 3 : index
    %c0_142 = arith.constant 0 : index
    %c0_143 = arith.constant 0 : index
    %182 = vector.load %arg10[%c0_140, %c3_141, %c0_142, %c0_143] : memref<2x4x1x8xf32, #tpu.memory_space<vmem>>, vector<1x1x1x8xf32>
    %183 = vector.shape_cast %182 : vector<1x1x1x8xf32> to vector<1x8xf32>
    %184 = vector.broadcast %183 : vector<1x8xf32> to vector<16x8xf32>
    %185 = arith.addf %181, %184 : vector<16x8xf32>
    %186 = vector.shape_cast %171 : vector<16x8xf32> to vector<8x2x8xf32>
    %187 = arith.truncf %186 : vector<8x2x8xf32> to vector<8x2x8xbf16>
    %188 = vector.shape_cast %178 : vector<16x8xf32> to vector<8x2x8xf32>
    %189 = arith.truncf %188 : vector<8x2x8xf32> to vector<8x2x8xbf16>
    %190 = vector.shape_cast %185 : vector<16x8xf32> to vector<8x2x8xf32>
    %191 = arith.truncf %190 : vector<8x2x8xf32> to vector<8x2x8xbf16>
    "tpu.trace_start"() <{level = 10 : i32, message = "sld,smd->slm"}> : () -> ()
    %cst_144 = arith.constant dense<0.000000e+00> : vector<8x2x2xf32>
    %192 = tpu.matmul %187, %189, %cst_144 {dimension_numbers = #tpu.dot_dimension_numbers<[2], [2], [1], [1], [0, 0, 0, 1, 1, 1], [0], [0]>} : vector<8x2x8xbf16>, vector<8x2x8xbf16>, vector<8x2x2xf32> -> vector<8x2x2xf32>
    "tpu.trace_stop"() : () -> ()
    %193 = arith.addf %192, %21 : vector<8x2x2xf32>
    %cst_145 = arith.constant dense<0xFF800000> : vector<8x2xf32>
    %194 = vector.multi_reduction <maximumf>, %193, %cst_145 [2] : vector<8x2x2xf32> to vector<8x2xf32>
    %195 = vector.shape_cast %194 : vector<8x2xf32> to vector<8x2x1xf32>
    %196 = vector.broadcast %195 : vector<8x2x1xf32> to vector<8x2x2xf32>
    %197 = arith.subf %193, %196 : vector<8x2x2xf32>
    %198 = math.exp %197 : vector<8x2x2xf32>
    %cst_146 = arith.constant dense<0.000000e+00> : vector<8x2xf32>
    %199 = vector.multi_reduction <add>, %198, %cst_146 [2] : vector<8x2x2xf32> to vector<8x2xf32>
    %200 = vector.shape_cast %199 : vector<8x2xf32> to vector<8x2x1xf32>
    %201 = tpu.reciprocal %200 {approx = true} : vector<8x2x1xf32> -> vector<8x2x1xf32>
    %202 = vector.broadcast %201 : vector<8x2x1xf32> to vector<8x2x2xf32>
    %203 = arith.mulf %198, %202 : vector<8x2x2xf32>
    %204 = arith.truncf %203 : vector<8x2x2xf32> to vector<8x2x2xbf16>
    "tpu.trace_start"() <{level = 10 : i32, message = "slm,smd->sld"}> : () -> ()
    %cst_147 = arith.constant dense<0.000000e+00> : vector<8x2x8xf32>
    %205 = tpu.matmul %204, %191, %cst_147 {dimension_numbers = #tpu.dot_dimension_numbers<[2], [1], [1], [2], [0, 0, 0, 1, 1, 2], [0], [0]>} : vector<8x2x2xbf16>, vector<8x2x8xbf16>, vector<8x2x8xf32> -> vector<8x2x8xf32>
    "tpu.trace_stop"() : () -> ()
    %206 = vector.shape_cast %205 : vector<8x2x8xf32> to vector<16x8xf32>
    %207 = arith.truncf %206 : vector<16x8xf32> to vector<16x8xbf16>
    %c0_148 = arith.constant 0 : index
    %c3_149 = arith.constant 3 : index
    %c0_150 = arith.constant 0 : index
    %c0_151 = arith.constant 0 : index
    %208 = vector.load %arg11[%c0_148, %c3_149, %c0_150, %c0_151] : memref<2x4x8x32xbf16, #tpu.memory_space<vmem>>, vector<1x1x8x32xbf16>
    %209 = vector.shape_cast %208 : vector<1x1x8x32xbf16> to vector<8x32xbf16>
    %cst_152 = arith.constant dense<0.000000e+00> : vector<16x32xf32>
    %210 = tpu.matmul %207, %209, %cst_152 {dimension_numbers = #tpu.dot_dimension_numbers<[1], [0], [0], [1], [0, 0, 1, 1], [], []>} : vector<16x8xbf16>, vector<8x32xbf16>, vector<16x32xf32> -> vector<16x32xf32>
    %211 = arith.addf %164, %210 : vector<16x32xf32>
    %c0_153 = arith.constant 0 : index
    %c0_154 = arith.constant 0 : index
    %c0_155 = arith.constant 0 : index
    %212 = vector.load %arg12[%c0_153, %c0_154, %c0_155] : memref<2x1x32xf32, #tpu.memory_space<vmem>>, vector<1x1x32xf32>
    %213 = vector.shape_cast %212 : vector<1x1x32xf32> to vector<1x32xf32>
    %214 = vector.broadcast %213 : vector<1x32xf32> to vector<16x32xf32>
    %215 = arith.addf %211, %214 : vector<16x32xf32>
    %216 = arith.addf %14, %215 : vector<16x32xf32>
    %cst_156 = arith.constant dense<0.000000e+00> : vector<16xf32>
    %217 = vector.multi_reduction <add>, %216, %cst_156 [1] : vector<16x32xf32> to vector<16xf32>
    %218 = vector.shape_cast %217 : vector<16xf32> to vector<16x1xf32>
    %cst_157 = arith.constant 3.200000e+01 : f32
    %219 = vector.broadcast %cst_157 : f32 to vector<16x1xf32>
    %220 = arith.divf %218, %219 : vector<16x1xf32>
    %221 = vector.broadcast %220 : vector<16x1xf32> to vector<16x32xf32>
    %222 = arith.subf %216, %221 : vector<16x32xf32>
    %223 = arith.mulf %222, %222 : vector<16x32xf32>
    %cst_158 = arith.constant dense<0.000000e+00> : vector<16xf32>
    %224 = vector.multi_reduction <add>, %223, %cst_158 [1] : vector<16x32xf32> to vector<16xf32>
    %225 = vector.shape_cast %224 : vector<16xf32> to vector<16x1xf32>
    %cst_159 = arith.constant 3.200000e+01 : f32
    %226 = vector.broadcast %cst_159 : f32 to vector<16x1xf32>
    %227 = arith.divf %225, %226 : vector<16x1xf32>
    %228 = vector.broadcast %220 : vector<16x1xf32> to vector<16x32xf32>
    %229 = arith.subf %216, %228 : vector<16x32xf32>
    %cst_160 = arith.constant 9.99999974E-6 : f32
    %230 = vector.broadcast %cst_160 : f32 to vector<16x1xf32>
    %231 = arith.addf %227, %230 : vector<16x1xf32>
    %232 = math.rsqrt %231 : vector<16x1xf32>
    %233 = vector.broadcast %232 : vector<16x1xf32> to vector<16x32xf32>
    %234 = arith.mulf %229, %233 : vector<16x32xf32>
    %c0_161 = arith.constant 0 : index
    %c0_162 = arith.constant 0 : index
    %c0_163 = arith.constant 0 : index
    %235 = vector.load %arg13[%c0_161, %c0_162, %c0_163] : memref<2x1x32xf32, #tpu.memory_space<vmem>>, vector<1x1x32xf32>
    %236 = vector.shape_cast %235 : vector<1x1x32xf32> to vector<1x32xf32>
    %237 = vector.broadcast %236 : vector<1x32xf32> to vector<16x32xf32>
    %238 = arith.mulf %234, %237 : vector<16x32xf32>
    %c0_164 = arith.constant 0 : index
    %c0_165 = arith.constant 0 : index
    %c0_166 = arith.constant 0 : index
    %239 = vector.load %arg14[%c0_164, %c0_165, %c0_166] : memref<2x1x32xf32, #tpu.memory_space<vmem>>, vector<1x1x32xf32>
    %240 = vector.shape_cast %239 : vector<1x1x32xf32> to vector<1x32xf32>
    %241 = vector.broadcast %240 : vector<1x32xf32> to vector<16x32xf32>
    %242 = arith.addf %238, %241 : vector<16x32xf32>
    %243 = arith.truncf %242 : vector<16x32xf32> to vector<16x32xbf16>
    %c0_167 = arith.constant 0 : index
    %c0_168 = arith.constant 0 : index
    %c0_169 = arith.constant 0 : index
    %244 = vector.load %arg15[%c0_167, %c0_168, %c0_169] : memref<2x32x64xbf16, #tpu.memory_space<vmem>>, vector<1x32x64xbf16>
    %245 = vector.shape_cast %244 : vector<1x32x64xbf16> to vector<32x64xbf16>
    %cst_170 = arith.constant dense<0.000000e+00> : vector<16x64xf32>
    %246 = tpu.matmul %243, %245, %cst_170 {dimension_numbers = #tpu.dot_dimension_numbers<[1], [0], [0], [1], [0, 0, 1, 1], [], []>} : vector<16x32xbf16>, vector<32x64xbf16>, vector<16x64xf32> -> vector<16x64xf32>
    %c0_171 = arith.constant 0 : index
    %c0_172 = arith.constant 0 : index
    %c0_173 = arith.constant 0 : index
    %247 = vector.load %arg16[%c0_171, %c0_172, %c0_173] : memref<2x1x64xf32, #tpu.memory_space<vmem>>, vector<1x1x64xf32>
    %248 = vector.shape_cast %247 : vector<1x1x64xf32> to vector<1x64xf32>
    %249 = vector.broadcast %248 : vector<1x64xf32> to vector<16x64xf32>
    %250 = arith.addf %246, %249 : vector<16x64xf32>
    %cst_174 = arith.constant 0.000000e+00 : f32
    %251 = vector.broadcast %cst_174 : f32 to vector<16x64xf32>
    %252 = arith.maximumf %250, %251 : vector<16x64xf32>
    %253 = arith.truncf %252 : vector<16x64xf32> to vector<16x64xbf16>
    %c0_175 = arith.constant 0 : index
    %c0_176 = arith.constant 0 : index
    %c0_177 = arith.constant 0 : index
    %254 = vector.load %arg17[%c0_175, %c0_176, %c0_177] : memref<2x64x32xbf16, #tpu.memory_space<vmem>>, vector<1x64x32xbf16>
    %255 = vector.shape_cast %254 : vector<1x64x32xbf16> to vector<64x32xbf16>
    %cst_178 = arith.constant dense<0.000000e+00> : vector<16x32xf32>
    %256 = tpu.matmul %253, %255, %cst_178 {dimension_numbers = #tpu.dot_dimension_numbers<[1], [0], [0], [1], [0, 0, 1, 1], [], []>} : vector<16x64xbf16>, vector<64x32xbf16>, vector<16x32xf32> -> vector<16x32xf32>
    %c0_179 = arith.constant 0 : index
    %c0_180 = arith.constant 0 : index
    %c0_181 = arith.constant 0 : index
    %257 = vector.load %arg18[%c0_179, %c0_180, %c0_181] : memref<2x1x32xf32, #tpu.memory_space<vmem>>, vector<1x1x32xf32>
    %258 = vector.shape_cast %257 : vector<1x1x32xf32> to vector<1x32xf32>
    %259 = vector.broadcast %258 : vector<1x32xf32> to vector<16x32xf32>
    %260 = arith.addf %256, %259 : vector<16x32xf32>
    %261 = arith.addf %242, %260 : vector<16x32xf32>
    %cst_182 = arith.constant dense<0.000000e+00> : vector<16xf32>
    %262 = vector.multi_reduction <add>, %261, %cst_182 [1] : vector<16x32xf32> to vector<16xf32>
    %263 = vector.shape_cast %262 : vector<16xf32> to vector<16x1xf32>
    %cst_183 = arith.constant 3.200000e+01 : f32
    %264 = vector.broadcast %cst_183 : f32 to vector<16x1xf32>
    %265 = arith.divf %263, %264 : vector<16x1xf32>
    %266 = vector.broadcast %265 : vector<16x1xf32> to vector<16x32xf32>
    %267 = arith.subf %261, %266 : vector<16x32xf32>
    %268 = arith.mulf %267, %267 : vector<16x32xf32>
    %cst_184 = arith.constant dense<0.000000e+00> : vector<16xf32>
    %269 = vector.multi_reduction <add>, %268, %cst_184 [1] : vector<16x32xf32> to vector<16xf32>
    %270 = vector.shape_cast %269 : vector<16xf32> to vector<16x1xf32>
    %cst_185 = arith.constant 3.200000e+01 : f32
    %271 = vector.broadcast %cst_185 : f32 to vector<16x1xf32>
    %272 = arith.divf %270, %271 : vector<16x1xf32>
    %273 = vector.broadcast %265 : vector<16x1xf32> to vector<16x32xf32>
    %274 = arith.subf %261, %273 : vector<16x32xf32>
    %cst_186 = arith.constant 9.99999974E-6 : f32
    %275 = vector.broadcast %cst_186 : f32 to vector<16x1xf32>
    %276 = arith.addf %272, %275 : vector<16x1xf32>
    %277 = math.rsqrt %276 : vector<16x1xf32>
    %278 = vector.broadcast %277 : vector<16x1xf32> to vector<16x32xf32>
    %279 = arith.mulf %274, %278 : vector<16x32xf32>
    %c0_187 = arith.constant 0 : index
    %c0_188 = arith.constant 0 : index
    %c0_189 = arith.constant 0 : index
    %280 = vector.load %arg19[%c0_187, %c0_188, %c0_189] : memref<2x1x32xf32, #tpu.memory_space<vmem>>, vector<1x1x32xf32>
    %281 = vector.shape_cast %280 : vector<1x1x32xf32> to vector<1x32xf32>
    %282 = vector.broadcast %281 : vector<1x32xf32> to vector<16x32xf32>
    %283 = arith.mulf %279, %282 : vector<16x32xf32>
    %c0_190 = arith.constant 0 : index
    %c0_191 = arith.constant 0 : index
    %c0_192 = arith.constant 0 : index
    %284 = vector.load %arg20[%c0_190, %c0_191, %c0_192] : memref<2x1x32xf32, #tpu.memory_space<vmem>>, vector<1x1x32xf32>
    %285 = vector.shape_cast %284 : vector<1x1x32xf32> to vector<1x32xf32>
    %286 = vector.broadcast %285 : vector<1x32xf32> to vector<16x32xf32>
    %287 = arith.addf %283, %286 : vector<16x32xf32>
    %288 = arith.truncf %287 : vector<16x32xf32> to vector<16x32xbf16>
    %cst_193 = arith.constant 0.000000e+00 : f32
    %289 = vector.broadcast %cst_193 : f32 to vector<16x32xf32>
    %c1_194 = arith.constant 1 : index
    %c0_195 = arith.constant 0 : index
    %c0_196 = arith.constant 0 : index
    %c0_197 = arith.constant 0 : index
    %290 = vector.load %arg5[%c1_194, %c0_195, %c0_196, %c0_197] : memref<2x4x32x8xbf16, #tpu.memory_space<vmem>>, vector<1x1x32x8xbf16>
    %291 = vector.shape_cast %290 : vector<1x1x32x8xbf16> to vector<32x8xbf16>
    %cst_198 = arith.constant dense<0.000000e+00> : vector<16x8xf32>
    %292 = tpu.matmul %288, %291, %cst_198 {dimension_numbers = #tpu.dot_dimension_numbers<[1], [0], [0], [1], [0, 0, 1, 1], [], []>} : vector<16x32xbf16>, vector<32x8xbf16>, vector<16x8xf32> -> vector<16x8xf32>
    %c1_199 = arith.constant 1 : index
    %c0_200 = arith.constant 0 : index
    %c0_201 = arith.constant 0 : index
    %c0_202 = arith.constant 0 : index
    %293 = vector.load %arg6[%c1_199, %c0_200, %c0_201, %c0_202] : memref<2x4x1x8xf32, #tpu.memory_space<vmem>>, vector<1x1x1x8xf32>
    %294 = vector.shape_cast %293 : vector<1x1x1x8xf32> to vector<1x8xf32>
    %295 = vector.broadcast %294 : vector<1x8xf32> to vector<16x8xf32>
    %296 = arith.addf %292, %295 : vector<16x8xf32>
    %c1_203 = arith.constant 1 : index
    %c0_204 = arith.constant 0 : index
    %c0_205 = arith.constant 0 : index
    %c0_206 = arith.constant 0 : index
    %297 = vector.load %arg7[%c1_203, %c0_204, %c0_205, %c0_206] : memref<2x4x32x8xbf16, #tpu.memory_space<vmem>>, vector<1x1x32x8xbf16>
    %298 = vector.shape_cast %297 : vector<1x1x32x8xbf16> to vector<32x8xbf16>
    %cst_207 = arith.constant dense<0.000000e+00> : vector<16x8xf32>
    %299 = tpu.matmul %288, %298, %cst_207 {dimension_numbers = #tpu.dot_dimension_numbers<[1], [0], [0], [1], [0, 0, 1, 1], [], []>} : vector<16x32xbf16>, vector<32x8xbf16>, vector<16x8xf32> -> vector<16x8xf32>
    %c1_208 = arith.constant 1 : index
    %c0_209 = arith.constant 0 : index
    %c0_210 = arith.constant 0 : index
    %c0_211 = arith.constant 0 : index
    %300 = vector.load %arg8[%c1_208, %c0_209, %c0_210, %c0_211] : memref<2x4x1x8xf32, #tpu.memory_space<vmem>>, vector<1x1x1x8xf32>
    %301 = vector.shape_cast %300 : vector<1x1x1x8xf32> to vector<1x8xf32>
    %302 = vector.broadcast %301 : vector<1x8xf32> to vector<16x8xf32>
    %303 = arith.addf %299, %302 : vector<16x8xf32>
    %c1_212 = arith.constant 1 : index
    %c0_213 = arith.constant 0 : index
    %c0_214 = arith.constant 0 : index
    %c0_215 = arith.constant 0 : index
    %304 = vector.load %arg9[%c1_212, %c0_213, %c0_214, %c0_215] : memref<2x4x32x8xbf16, #tpu.memory_space<vmem>>, vector<1x1x32x8xbf16>
    %305 = vector.shape_cast %304 : vector<1x1x32x8xbf16> to vector<32x8xbf16>
    %cst_216 = arith.constant dense<0.000000e+00> : vector<16x8xf32>
    %306 = tpu.matmul %288, %305, %cst_216 {dimension_numbers = #tpu.dot_dimension_numbers<[1], [0], [0], [1], [0, 0, 1, 1], [], []>} : vector<16x32xbf16>, vector<32x8xbf16>, vector<16x8xf32> -> vector<16x8xf32>
    %c1_217 = arith.constant 1 : index
    %c0_218 = arith.constant 0 : index
    %c0_219 = arith.constant 0 : index
    %c0_220 = arith.constant 0 : index
    %307 = vector.load %arg10[%c1_217, %c0_218, %c0_219, %c0_220] : memref<2x4x1x8xf32, #tpu.memory_space<vmem>>, vector<1x1x1x8xf32>
    %308 = vector.shape_cast %307 : vector<1x1x1x8xf32> to vector<1x8xf32>
    %309 = vector.broadcast %308 : vector<1x8xf32> to vector<16x8xf32>
    %310 = arith.addf %306, %309 : vector<16x8xf32>
    %311 = vector.shape_cast %296 : vector<16x8xf32> to vector<8x2x8xf32>
    %312 = arith.truncf %311 : vector<8x2x8xf32> to vector<8x2x8xbf16>
    %313 = vector.shape_cast %303 : vector<16x8xf32> to vector<8x2x8xf32>
    %314 = arith.truncf %313 : vector<8x2x8xf32> to vector<8x2x8xbf16>
    %315 = vector.shape_cast %310 : vector<16x8xf32> to vector<8x2x8xf32>
    %316 = arith.truncf %315 : vector<8x2x8xf32> to vector<8x2x8xbf16>
    "tpu.trace_start"() <{level = 10 : i32, message = "sld,smd->slm"}> : () -> ()
    %cst_221 = arith.constant dense<0.000000e+00> : vector<8x2x2xf32>
    %317 = tpu.matmul %312, %314, %cst_221 {dimension_numbers = #tpu.dot_dimension_numbers<[2], [2], [1], [1], [0, 0, 0, 1, 1, 1], [0], [0]>} : vector<8x2x8xbf16>, vector<8x2x8xbf16>, vector<8x2x2xf32> -> vector<8x2x2xf32>
    "tpu.trace_stop"() : () -> ()
    %318 = arith.addf %317, %21 : vector<8x2x2xf32>
    %cst_222 = arith.constant dense<0xFF800000> : vector<8x2xf32>
    %319 = vector.multi_reduction <maximumf>, %318, %cst_222 [2] : vector<8x2x2xf32> to vector<8x2xf32>
    %320 = vector.shape_cast %319 : vector<8x2xf32> to vector<8x2x1xf32>
    %321 = vector.broadcast %320 : vector<8x2x1xf32> to vector<8x2x2xf32>
    %322 = arith.subf %318, %321 : vector<8x2x2xf32>
    %323 = math.exp %322 : vector<8x2x2xf32>
    %cst_223 = arith.constant dense<0.000000e+00> : vector<8x2xf32>
    %324 = vector.multi_reduction <add>, %323, %cst_223 [2] : vector<8x2x2xf32> to vector<8x2xf32>
    %325 = vector.shape_cast %324 : vector<8x2xf32> to vector<8x2x1xf32>
    %326 = tpu.reciprocal %325 {approx = true} : vector<8x2x1xf32> -> vector<8x2x1xf32>
    %327 = vector.broadcast %326 : vector<8x2x1xf32> to vector<8x2x2xf32>
    %328 = arith.mulf %323, %327 : vector<8x2x2xf32>
    %329 = arith.truncf %328 : vector<8x2x2xf32> to vector<8x2x2xbf16>
    "tpu.trace_start"() <{level = 10 : i32, message = "slm,smd->sld"}> : () -> ()
    %cst_224 = arith.constant dense<0.000000e+00> : vector<8x2x8xf32>
    %330 = tpu.matmul %329, %316, %cst_224 {dimension_numbers = #tpu.dot_dimension_numbers<[2], [1], [1], [2], [0, 0, 0, 1, 1, 2], [0], [0]>} : vector<8x2x2xbf16>, vector<8x2x8xbf16>, vector<8x2x8xf32> -> vector<8x2x8xf32>
    "tpu.trace_stop"() : () -> ()
    %331 = vector.shape_cast %330 : vector<8x2x8xf32> to vector<16x8xf32>
    %332 = arith.truncf %331 : vector<16x8xf32> to vector<16x8xbf16>
    %c1_225 = arith.constant 1 : index
    %c0_226 = arith.constant 0 : index
    %c0_227 = arith.constant 0 : index
    %c0_228 = arith.constant 0 : index
    %333 = vector.load %arg11[%c1_225, %c0_226, %c0_227, %c0_228] : memref<2x4x8x32xbf16, #tpu.memory_space<vmem>>, vector<1x1x8x32xbf16>
    %334 = vector.shape_cast %333 : vector<1x1x8x32xbf16> to vector<8x32xbf16>
    %cst_229 = arith.constant dense<0.000000e+00> : vector<16x32xf32>
    %335 = tpu.matmul %332, %334, %cst_229 {dimension_numbers = #tpu.dot_dimension_numbers<[1], [0], [0], [1], [0, 0, 1, 1], [], []>} : vector<16x8xbf16>, vector<8x32xbf16>, vector<16x32xf32> -> vector<16x32xf32>
    %336 = arith.addf %289, %335 : vector<16x32xf32>
    %c1_230 = arith.constant 1 : index
    %c1_231 = arith.constant 1 : index
    %c0_232 = arith.constant 0 : index
    %c0_233 = arith.constant 0 : index
    %337 = vector.load %arg5[%c1_230, %c1_231, %c0_232, %c0_233] : memref<2x4x32x8xbf16, #tpu.memory_space<vmem>>, vector<1x1x32x8xbf16>
    %338 = vector.shape_cast %337 : vector<1x1x32x8xbf16> to vector<32x8xbf16>
    %cst_234 = arith.constant dense<0.000000e+00> : vector<16x8xf32>
    %339 = tpu.matmul %288, %338, %cst_234 {dimension_numbers = #tpu.dot_dimension_numbers<[1], [0], [0], [1], [0, 0, 1, 1], [], []>} : vector<16x32xbf16>, vector<32x8xbf16>, vector<16x8xf32> -> vector<16x8xf32>
    %c1_235 = arith.constant 1 : index
    %c1_236 = arith.constant 1 : index
    %c0_237 = arith.constant 0 : index
    %c0_238 = arith.constant 0 : index
    %340 = vector.load %arg6[%c1_235, %c1_236, %c0_237, %c0_238] : memref<2x4x1x8xf32, #tpu.memory_space<vmem>>, vector<1x1x1x8xf32>
    %341 = vector.shape_cast %340 : vector<1x1x1x8xf32> to vector<1x8xf32>
    %342 = vector.broadcast %341 : vector<1x8xf32> to vector<16x8xf32>
    %343 = arith.addf %339, %342 : vector<16x8xf32>
    %c1_239 = arith.constant 1 : index
    %c1_240 = arith.constant 1 : index
    %c0_241 = arith.constant 0 : index
    %c0_242 = arith.constant 0 : index
    %344 = vector.load %arg7[%c1_239, %c1_240, %c0_241, %c0_242] : memref<2x4x32x8xbf16, #tpu.memory_space<vmem>>, vector<1x1x32x8xbf16>
    %345 = vector.shape_cast %344 : vector<1x1x32x8xbf16> to vector<32x8xbf16>
    %cst_243 = arith.constant dense<0.000000e+00> : vector<16x8xf32>
    %346 = tpu.matmul %288, %345, %cst_243 {dimension_numbers = #tpu.dot_dimension_numbers<[1], [0], [0], [1], [0, 0, 1, 1], [], []>} : vector<16x32xbf16>, vector<32x8xbf16>, vector<16x8xf32> -> vector<16x8xf32>
    %c1_244 = arith.constant 1 : index
    %c1_245 = arith.constant 1 : index
    %c0_246 = arith.constant 0 : index
    %c0_247 = arith.constant 0 : index
    %347 = vector.load %arg8[%c1_244, %c1_245, %c0_246, %c0_247] : memref<2x4x1x8xf32, #tpu.memory_space<vmem>>, vector<1x1x1x8xf32>
    %348 = vector.shape_cast %347 : vector<1x1x1x8xf32> to vector<1x8xf32>
    %349 = vector.broadcast %348 : vector<1x8xf32> to vector<16x8xf32>
    %350 = arith.addf %346, %349 : vector<16x8xf32>
    %c1_248 = arith.constant 1 : index
    %c1_249 = arith.constant 1 : index
    %c0_250 = arith.constant 0 : index
    %c0_251 = arith.constant 0 : index
    %351 = vector.load %arg9[%c1_248, %c1_249, %c0_250, %c0_251] : memref<2x4x32x8xbf16, #tpu.memory_space<vmem>>, vector<1x1x32x8xbf16>
    %352 = vector.shape_cast %351 : vector<1x1x32x8xbf16> to vector<32x8xbf16>
    %cst_252 = arith.constant dense<0.000000e+00> : vector<16x8xf32>
    %353 = tpu.matmul %288, %352, %cst_252 {dimension_numbers = #tpu.dot_dimension_numbers<[1], [0], [0], [1], [0, 0, 1, 1], [], []>} : vector<16x32xbf16>, vector<32x8xbf16>, vector<16x8xf32> -> vector<16x8xf32>
    %c1_253 = arith.constant 1 : index
    %c1_254 = arith.constant 1 : index
    %c0_255 = arith.constant 0 : index
    %c0_256 = arith.constant 0 : index
    %354 = vector.load %arg10[%c1_253, %c1_254, %c0_255, %c0_256] : memref<2x4x1x8xf32, #tpu.memory_space<vmem>>, vector<1x1x1x8xf32>
    %355 = vector.shape_cast %354 : vector<1x1x1x8xf32> to vector<1x8xf32>
    %356 = vector.broadcast %355 : vector<1x8xf32> to vector<16x8xf32>
    %357 = arith.addf %353, %356 : vector<16x8xf32>
    %358 = vector.shape_cast %343 : vector<16x8xf32> to vector<8x2x8xf32>
    %359 = arith.truncf %358 : vector<8x2x8xf32> to vector<8x2x8xbf16>
    %360 = vector.shape_cast %350 : vector<16x8xf32> to vector<8x2x8xf32>
    %361 = arith.truncf %360 : vector<8x2x8xf32> to vector<8x2x8xbf16>
    %362 = vector.shape_cast %357 : vector<16x8xf32> to vector<8x2x8xf32>
    %363 = arith.truncf %362 : vector<8x2x8xf32> to vector<8x2x8xbf16>
    "tpu.trace_start"() <{level = 10 : i32, message = "sld,smd->slm"}> : () -> ()
    %cst_257 = arith.constant dense<0.000000e+00> : vector<8x2x2xf32>
    %364 = tpu.matmul %359, %361, %cst_257 {dimension_numbers = #tpu.dot_dimension_numbers<[2], [2], [1], [1], [0, 0, 0, 1, 1, 1], [0], [0]>} : vector<8x2x8xbf16>, vector<8x2x8xbf16>, vector<8x2x2xf32> -> vector<8x2x2xf32>
    "tpu.trace_stop"() : () -> ()
    %365 = arith.addf %364, %21 : vector<8x2x2xf32>
    %cst_258 = arith.constant dense<0xFF800000> : vector<8x2xf32>
    %366 = vector.multi_reduction <maximumf>, %365, %cst_258 [2] : vector<8x2x2xf32> to vector<8x2xf32>
    %367 = vector.shape_cast %366 : vector<8x2xf32> to vector<8x2x1xf32>
    %368 = vector.broadcast %367 : vector<8x2x1xf32> to vector<8x2x2xf32>
    %369 = arith.subf %365, %368 : vector<8x2x2xf32>
    %370 = math.exp %369 : vector<8x2x2xf32>
    %cst_259 = arith.constant dense<0.000000e+00> : vector<8x2xf32>
    %371 = vector.multi_reduction <add>, %370, %cst_259 [2] : vector<8x2x2xf32> to vector<8x2xf32>
    %372 = vector.shape_cast %371 : vector<8x2xf32> to vector<8x2x1xf32>
    %373 = tpu.reciprocal %372 {approx = true} : vector<8x2x1xf32> -> vector<8x2x1xf32>
    %374 = vector.broadcast %373 : vector<8x2x1xf32> to vector<8x2x2xf32>
    %375 = arith.mulf %370, %374 : vector<8x2x2xf32>
    %376 = arith.truncf %375 : vector<8x2x2xf32> to vector<8x2x2xbf16>
    "tpu.trace_start"() <{level = 10 : i32, message = "slm,smd->sld"}> : () -> ()
    %cst_260 = arith.constant dense<0.000000e+00> : vector<8x2x8xf32>
    %377 = tpu.matmul %376, %363, %cst_260 {dimension_numbers = #tpu.dot_dimension_numbers<[2], [1], [1], [2], [0, 0, 0, 1, 1, 2], [0], [0]>} : vector<8x2x2xbf16>, vector<8x2x8xbf16>, vector<8x2x8xf32> -> vector<8x2x8xf32>
    "tpu.trace_stop"() : () -> ()
    %378 = vector.shape_cast %377 : vector<8x2x8xf32> to vector<16x8xf32>
    %379 = arith.truncf %378 : vector<16x8xf32> to vector<16x8xbf16>
    %c1_261 = arith.constant 1 : index
    %c1_262 = arith.constant 1 : index
    %c0_263 = arith.constant 0 : index
    %c0_264 = arith.constant 0 : index
    %380 = vector.load %arg11[%c1_261, %c1_262, %c0_263, %c0_264] : memref<2x4x8x32xbf16, #tpu.memory_space<vmem>>, vector<1x1x8x32xbf16>
    %381 = vector.shape_cast %380 : vector<1x1x8x32xbf16> to vector<8x32xbf16>
    %cst_265 = arith.constant dense<0.000000e+00> : vector<16x32xf32>
    %382 = tpu.matmul %379, %381, %cst_265 {dimension_numbers = #tpu.dot_dimension_numbers<[1], [0], [0], [1], [0, 0, 1, 1], [], []>} : vector<16x8xbf16>, vector<8x32xbf16>, vector<16x32xf32> -> vector<16x32xf32>
    %383 = arith.addf %336, %382 : vector<16x32xf32>
    %c1_266 = arith.constant 1 : index
    %c2_267 = arith.constant 2 : index
    %c0_268 = arith.constant 0 : index
    %c0_269 = arith.constant 0 : index
    %384 = vector.load %arg5[%c1_266, %c2_267, %c0_268, %c0_269] : memref<2x4x32x8xbf16, #tpu.memory_space<vmem>>, vector<1x1x32x8xbf16>
    %385 = vector.shape_cast %384 : vector<1x1x32x8xbf16> to vector<32x8xbf16>
    %cst_270 = arith.constant dense<0.000000e+00> : vector<16x8xf32>
    %386 = tpu.matmul %288, %385, %cst_270 {dimension_numbers = #tpu.dot_dimension_numbers<[1], [0], [0], [1], [0, 0, 1, 1], [], []>} : vector<16x32xbf16>, vector<32x8xbf16>, vector<16x8xf32> -> vector<16x8xf32>
    %c1_271 = arith.constant 1 : index
    %c2_272 = arith.constant 2 : index
    %c0_273 = arith.constant 0 : index
    %c0_274 = arith.constant 0 : index
    %387 = vector.load %arg6[%c1_271, %c2_272, %c0_273, %c0_274] : memref<2x4x1x8xf32, #tpu.memory_space<vmem>>, vector<1x1x1x8xf32>
    %388 = vector.shape_cast %387 : vector<1x1x1x8xf32> to vector<1x8xf32>
    %389 = vector.broadcast %388 : vector<1x8xf32> to vector<16x8xf32>
    %390 = arith.addf %386, %389 : vector<16x8xf32>
    %c1_275 = arith.constant 1 : index
    %c2_276 = arith.constant 2 : index
    %c0_277 = arith.constant 0 : index
    %c0_278 = arith.constant 0 : index
    %391 = vector.load %arg7[%c1_275, %c2_276, %c0_277, %c0_278] : memref<2x4x32x8xbf16, #tpu.memory_space<vmem>>, vector<1x1x32x8xbf16>
    %392 = vector.shape_cast %391 : vector<1x1x32x8xbf16> to vector<32x8xbf16>
    %cst_279 = arith.constant dense<0.000000e+00> : vector<16x8xf32>
    %393 = tpu.matmul %288, %392, %cst_279 {dimension_numbers = #tpu.dot_dimension_numbers<[1], [0], [0], [1], [0, 0, 1, 1], [], []>} : vector<16x32xbf16>, vector<32x8xbf16>, vector<16x8xf32> -> vector<16x8xf32>
    %c1_280 = arith.constant 1 : index
    %c2_281 = arith.constant 2 : index
    %c0_282 = arith.constant 0 : index
    %c0_283 = arith.constant 0 : index
    %394 = vector.load %arg8[%c1_280, %c2_281, %c0_282, %c0_283] : memref<2x4x1x8xf32, #tpu.memory_space<vmem>>, vector<1x1x1x8xf32>
    %395 = vector.shape_cast %394 : vector<1x1x1x8xf32> to vector<1x8xf32>
    %396 = vector.broadcast %395 : vector<1x8xf32> to vector<16x8xf32>
    %397 = arith.addf %393, %396 : vector<16x8xf32>
    %c1_284 = arith.constant 1 : index
    %c2_285 = arith.constant 2 : index
    %c0_286 = arith.constant 0 : index
    %c0_287 = arith.constant 0 : index
    %398 = vector.load %arg9[%c1_284, %c2_285, %c0_286, %c0_287] : memref<2x4x32x8xbf16, #tpu.memory_space<vmem>>, vector<1x1x32x8xbf16>
    %399 = vector.shape_cast %398 : vector<1x1x32x8xbf16> to vector<32x8xbf16>
    %cst_288 = arith.constant dense<0.000000e+00> : vector<16x8xf32>
    %400 = tpu.matmul %288, %399, %cst_288 {dimension_numbers = #tpu.dot_dimension_numbers<[1], [0], [0], [1], [0, 0, 1, 1], [], []>} : vector<16x32xbf16>, vector<32x8xbf16>, vector<16x8xf32> -> vector<16x8xf32>
    %c1_289 = arith.constant 1 : index
    %c2_290 = arith.constant 2 : index
    %c0_291 = arith.constant 0 : index
    %c0_292 = arith.constant 0 : index
    %401 = vector.load %arg10[%c1_289, %c2_290, %c0_291, %c0_292] : memref<2x4x1x8xf32, #tpu.memory_space<vmem>>, vector<1x1x1x8xf32>
    %402 = vector.shape_cast %401 : vector<1x1x1x8xf32> to vector<1x8xf32>
    %403 = vector.broadcast %402 : vector<1x8xf32> to vector<16x8xf32>
    %404 = arith.addf %400, %403 : vector<16x8xf32>
    %405 = vector.shape_cast %390 : vector<16x8xf32> to vector<8x2x8xf32>
    %406 = arith.truncf %405 : vector<8x2x8xf32> to vector<8x2x8xbf16>
    %407 = vector.shape_cast %397 : vector<16x8xf32> to vector<8x2x8xf32>
    %408 = arith.truncf %407 : vector<8x2x8xf32> to vector<8x2x8xbf16>
    %409 = vector.shape_cast %404 : vector<16x8xf32> to vector<8x2x8xf32>
    %410 = arith.truncf %409 : vector<8x2x8xf32> to vector<8x2x8xbf16>
    "tpu.trace_start"() <{level = 10 : i32, message = "sld,smd->slm"}> : () -> ()
    %cst_293 = arith.constant dense<0.000000e+00> : vector<8x2x2xf32>
    %411 = tpu.matmul %406, %408, %cst_293 {dimension_numbers = #tpu.dot_dimension_numbers<[2], [2], [1], [1], [0, 0, 0, 1, 1, 1], [0], [0]>} : vector<8x2x8xbf16>, vector<8x2x8xbf16>, vector<8x2x2xf32> -> vector<8x2x2xf32>
    "tpu.trace_stop"() : () -> ()
    %412 = arith.addf %411, %21 : vector<8x2x2xf32>
    %cst_294 = arith.constant dense<0xFF800000> : vector<8x2xf32>
    %413 = vector.multi_reduction <maximumf>, %412, %cst_294 [2] : vector<8x2x2xf32> to vector<8x2xf32>
    %414 = vector.shape_cast %413 : vector<8x2xf32> to vector<8x2x1xf32>
    %415 = vector.broadcast %414 : vector<8x2x1xf32> to vector<8x2x2xf32>
    %416 = arith.subf %412, %415 : vector<8x2x2xf32>
    %417 = math.exp %416 : vector<8x2x2xf32>
    %cst_295 = arith.constant dense<0.000000e+00> : vector<8x2xf32>
    %418 = vector.multi_reduction <add>, %417, %cst_295 [2] : vector<8x2x2xf32> to vector<8x2xf32>
    %419 = vector.shape_cast %418 : vector<8x2xf32> to vector<8x2x1xf32>
    %420 = tpu.reciprocal %419 {approx = true} : vector<8x2x1xf32> -> vector<8x2x1xf32>
    %421 = vector.broadcast %420 : vector<8x2x1xf32> to vector<8x2x2xf32>
    %422 = arith.mulf %417, %421 : vector<8x2x2xf32>
    %423 = arith.truncf %422 : vector<8x2x2xf32> to vector<8x2x2xbf16>
    "tpu.trace_start"() <{level = 10 : i32, message = "slm,smd->sld"}> : () -> ()
    %cst_296 = arith.constant dense<0.000000e+00> : vector<8x2x8xf32>
    %424 = tpu.matmul %423, %410, %cst_296 {dimension_numbers = #tpu.dot_dimension_numbers<[2], [1], [1], [2], [0, 0, 0, 1, 1, 2], [0], [0]>} : vector<8x2x2xbf16>, vector<8x2x8xbf16>, vector<8x2x8xf32> -> vector<8x2x8xf32>
    "tpu.trace_stop"() : () -> ()
    %425 = vector.shape_cast %424 : vector<8x2x8xf32> to vector<16x8xf32>
    %426 = arith.truncf %425 : vector<16x8xf32> to vector<16x8xbf16>
    %c1_297 = arith.constant 1 : index
    %c2_298 = arith.constant 2 : index
    %c0_299 = arith.constant 0 : index
    %c0_300 = arith.constant 0 : index
    %427 = vector.load %arg11[%c1_297, %c2_298, %c0_299, %c0_300] : memref<2x4x8x32xbf16, #tpu.memory_space<vmem>>, vector<1x1x8x32xbf16>
    %428 = vector.shape_cast %427 : vector<1x1x8x32xbf16> to vector<8x32xbf16>
    %cst_301 = arith.constant dense<0.000000e+00> : vector<16x32xf32>
    %429 = tpu.matmul %426, %428, %cst_301 {dimension_numbers = #tpu.dot_dimension_numbers<[1], [0], [0], [1], [0, 0, 1, 1], [], []>} : vector<16x8xbf16>, vector<8x32xbf16>, vector<16x32xf32> -> vector<16x32xf32>
    %430 = arith.addf %383, %429 : vector<16x32xf32>
    %c1_302 = arith.constant 1 : index
    %c3_303 = arith.constant 3 : index
    %c0_304 = arith.constant 0 : index
    %c0_305 = arith.constant 0 : index
    %431 = vector.load %arg5[%c1_302, %c3_303, %c0_304, %c0_305] : memref<2x4x32x8xbf16, #tpu.memory_space<vmem>>, vector<1x1x32x8xbf16>
    %432 = vector.shape_cast %431 : vector<1x1x32x8xbf16> to vector<32x8xbf16>
    %cst_306 = arith.constant dense<0.000000e+00> : vector<16x8xf32>
    %433 = tpu.matmul %288, %432, %cst_306 {dimension_numbers = #tpu.dot_dimension_numbers<[1], [0], [0], [1], [0, 0, 1, 1], [], []>} : vector<16x32xbf16>, vector<32x8xbf16>, vector<16x8xf32> -> vector<16x8xf32>
    %c1_307 = arith.constant 1 : index
    %c3_308 = arith.constant 3 : index
    %c0_309 = arith.constant 0 : index
    %c0_310 = arith.constant 0 : index
    %434 = vector.load %arg6[%c1_307, %c3_308, %c0_309, %c0_310] : memref<2x4x1x8xf32, #tpu.memory_space<vmem>>, vector<1x1x1x8xf32>
    %435 = vector.shape_cast %434 : vector<1x1x1x8xf32> to vector<1x8xf32>
    %436 = vector.broadcast %435 : vector<1x8xf32> to vector<16x8xf32>
    %437 = arith.addf %433, %436 : vector<16x8xf32>
    %c1_311 = arith.constant 1 : index
    %c3_312 = arith.constant 3 : index
    %c0_313 = arith.constant 0 : index
    %c0_314 = arith.constant 0 : index
    %438 = vector.load %arg7[%c1_311, %c3_312, %c0_313, %c0_314] : memref<2x4x32x8xbf16, #tpu.memory_space<vmem>>, vector<1x1x32x8xbf16>
    %439 = vector.shape_cast %438 : vector<1x1x32x8xbf16> to vector<32x8xbf16>
    %cst_315 = arith.constant dense<0.000000e+00> : vector<16x8xf32>
    %440 = tpu.matmul %288, %439, %cst_315 {dimension_numbers = #tpu.dot_dimension_numbers<[1], [0], [0], [1], [0, 0, 1, 1], [], []>} : vector<16x32xbf16>, vector<32x8xbf16>, vector<16x8xf32> -> vector<16x8xf32>
    %c1_316 = arith.constant 1 : index
    %c3_317 = arith.constant 3 : index
    %c0_318 = arith.constant 0 : index
    %c0_319 = arith.constant 0 : index
    %441 = vector.load %arg8[%c1_316, %c3_317, %c0_318, %c0_319] : memref<2x4x1x8xf32, #tpu.memory_space<vmem>>, vector<1x1x1x8xf32>
    %442 = vector.shape_cast %441 : vector<1x1x1x8xf32> to vector<1x8xf32>
    %443 = vector.broadcast %442 : vector<1x8xf32> to vector<16x8xf32>
    %444 = arith.addf %440, %443 : vector<16x8xf32>
    %c1_320 = arith.constant 1 : index
    %c3_321 = arith.constant 3 : index
    %c0_322 = arith.constant 0 : index
    %c0_323 = arith.constant 0 : index
    %445 = vector.load %arg9[%c1_320, %c3_321, %c0_322, %c0_323] : memref<2x4x32x8xbf16, #tpu.memory_space<vmem>>, vector<1x1x32x8xbf16>
    %446 = vector.shape_cast %445 : vector<1x1x32x8xbf16> to vector<32x8xbf16>
    %cst_324 = arith.constant dense<0.000000e+00> : vector<16x8xf32>
    %447 = tpu.matmul %288, %446, %cst_324 {dimension_numbers = #tpu.dot_dimension_numbers<[1], [0], [0], [1], [0, 0, 1, 1], [], []>} : vector<16x32xbf16>, vector<32x8xbf16>, vector<16x8xf32> -> vector<16x8xf32>
    %c1_325 = arith.constant 1 : index
    %c3_326 = arith.constant 3 : index
    %c0_327 = arith.constant 0 : index
    %c0_328 = arith.constant 0 : index
    %448 = vector.load %arg10[%c1_325, %c3_326, %c0_327, %c0_328] : memref<2x4x1x8xf32, #tpu.memory_space<vmem>>, vector<1x1x1x8xf32>
    %449 = vector.shape_cast %448 : vector<1x1x1x8xf32> to vector<1x8xf32>
    %450 = vector.broadcast %449 : vector<1x8xf32> to vector<16x8xf32>
    %451 = arith.addf %447, %450 : vector<16x8xf32>
    %452 = vector.shape_cast %437 : vector<16x8xf32> to vector<8x2x8xf32>
    %453 = arith.truncf %452 : vector<8x2x8xf32> to vector<8x2x8xbf16>
    %454 = vector.shape_cast %444 : vector<16x8xf32> to vector<8x2x8xf32>
    %455 = arith.truncf %454 : vector<8x2x8xf32> to vector<8x2x8xbf16>
    %456 = vector.shape_cast %451 : vector<16x8xf32> to vector<8x2x8xf32>
    %457 = arith.truncf %456 : vector<8x2x8xf32> to vector<8x2x8xbf16>
    "tpu.trace_start"() <{level = 10 : i32, message = "sld,smd->slm"}> : () -> ()
    %cst_329 = arith.constant dense<0.000000e+00> : vector<8x2x2xf32>
    %458 = tpu.matmul %453, %455, %cst_329 {dimension_numbers = #tpu.dot_dimension_numbers<[2], [2], [1], [1], [0, 0, 0, 1, 1, 1], [0], [0]>} : vector<8x2x8xbf16>, vector<8x2x8xbf16>, vector<8x2x2xf32> -> vector<8x2x2xf32>
    "tpu.trace_stop"() : () -> ()
    %459 = arith.addf %458, %21 : vector<8x2x2xf32>
    %cst_330 = arith.constant dense<0xFF800000> : vector<8x2xf32>
    %460 = vector.multi_reduction <maximumf>, %459, %cst_330 [2] : vector<8x2x2xf32> to vector<8x2xf32>
    %461 = vector.shape_cast %460 : vector<8x2xf32> to vector<8x2x1xf32>
    %462 = vector.broadcast %461 : vector<8x2x1xf32> to vector<8x2x2xf32>
    %463 = arith.subf %459, %462 : vector<8x2x2xf32>
    %464 = math.exp %463 : vector<8x2x2xf32>
    %cst_331 = arith.constant dense<0.000000e+00> : vector<8x2xf32>
    %465 = vector.multi_reduction <add>, %464, %cst_331 [2] : vector<8x2x2xf32> to vector<8x2xf32>
    %466 = vector.shape_cast %465 : vector<8x2xf32> to vector<8x2x1xf32>
    %467 = tpu.reciprocal %466 {approx = true} : vector<8x2x1xf32> -> vector<8x2x1xf32>
    %468 = vector.broadcast %467 : vector<8x2x1xf32> to vector<8x2x2xf32>
    %469 = arith.mulf %464, %468 : vector<8x2x2xf32>
    %470 = arith.truncf %469 : vector<8x2x2xf32> to vector<8x2x2xbf16>
    "tpu.trace_start"() <{level = 10 : i32, message = "slm,smd->sld"}> : () -> ()
    %cst_332 = arith.constant dense<0.000000e+00> : vector<8x2x8xf32>
    %471 = tpu.matmul %470, %457, %cst_332 {dimension_numbers = #tpu.dot_dimension_numbers<[2], [1], [1], [2], [0, 0, 0, 1, 1, 2], [0], [0]>} : vector<8x2x2xbf16>, vector<8x2x8xbf16>, vector<8x2x8xf32> -> vector<8x2x8xf32>
    "tpu.trace_stop"() : () -> ()
    %472 = vector.shape_cast %471 : vector<8x2x8xf32> to vector<16x8xf32>
    %473 = arith.truncf %472 : vector<16x8xf32> to vector<16x8xbf16>
    %c1_333 = arith.constant 1 : index
    %c3_334 = arith.constant 3 : index
    %c0_335 = arith.constant 0 : index
    %c0_336 = arith.constant 0 : index
    %474 = vector.load %arg11[%c1_333, %c3_334, %c0_335, %c0_336] : memref<2x4x8x32xbf16, #tpu.memory_space<vmem>>, vector<1x1x8x32xbf16>
    %475 = vector.shape_cast %474 : vector<1x1x8x32xbf16> to vector<8x32xbf16>
    %cst_337 = arith.constant dense<0.000000e+00> : vector<16x32xf32>
    %476 = tpu.matmul %473, %475, %cst_337 {dimension_numbers = #tpu.dot_dimension_numbers<[1], [0], [0], [1], [0, 0, 1, 1], [], []>} : vector<16x8xbf16>, vector<8x32xbf16>, vector<16x32xf32> -> vector<16x32xf32>
    %477 = arith.addf %430, %476 : vector<16x32xf32>
    %c1_338 = arith.constant 1 : index
    %c0_339 = arith.constant 0 : index
    %c0_340 = arith.constant 0 : index
    %478 = vector.load %arg12[%c1_338, %c0_339, %c0_340] : memref<2x1x32xf32, #tpu.memory_space<vmem>>, vector<1x1x32xf32>
    %479 = vector.shape_cast %478 : vector<1x1x32xf32> to vector<1x32xf32>
    %480 = vector.broadcast %479 : vector<1x32xf32> to vector<16x32xf32>
    %481 = arith.addf %477, %480 : vector<16x32xf32>
    %482 = arith.addf %287, %481 : vector<16x32xf32>
    %cst_341 = arith.constant dense<0.000000e+00> : vector<16xf32>
    %483 = vector.multi_reduction <add>, %482, %cst_341 [1] : vector<16x32xf32> to vector<16xf32>
    %484 = vector.shape_cast %483 : vector<16xf32> to vector<16x1xf32>
    %cst_342 = arith.constant 3.200000e+01 : f32
    %485 = vector.broadcast %cst_342 : f32 to vector<16x1xf32>
    %486 = arith.divf %484, %485 : vector<16x1xf32>
    %487 = vector.broadcast %486 : vector<16x1xf32> to vector<16x32xf32>
    %488 = arith.subf %482, %487 : vector<16x32xf32>
    %489 = arith.mulf %488, %488 : vector<16x32xf32>
    %cst_343 = arith.constant dense<0.000000e+00> : vector<16xf32>
    %490 = vector.multi_reduction <add>, %489, %cst_343 [1] : vector<16x32xf32> to vector<16xf32>
    %491 = vector.shape_cast %490 : vector<16xf32> to vector<16x1xf32>
    %cst_344 = arith.constant 3.200000e+01 : f32
    %492 = vector.broadcast %cst_344 : f32 to vector<16x1xf32>
    %493 = arith.divf %491, %492 : vector<16x1xf32>
    %494 = vector.broadcast %486 : vector<16x1xf32> to vector<16x32xf32>
    %495 = arith.subf %482, %494 : vector<16x32xf32>
    %cst_345 = arith.constant 9.99999974E-6 : f32
    %496 = vector.broadcast %cst_345 : f32 to vector<16x1xf32>
    %497 = arith.addf %493, %496 : vector<16x1xf32>
    %498 = math.rsqrt %497 : vector<16x1xf32>
    %499 = vector.broadcast %498 : vector<16x1xf32> to vector<16x32xf32>
    %500 = arith.mulf %495, %499 : vector<16x32xf32>
    %c1_346 = arith.constant 1 : index
    %c0_347 = arith.constant 0 : index
    %c0_348 = arith.constant 0 : index
    %501 = vector.load %arg13[%c1_346, %c0_347, %c0_348] : memref<2x1x32xf32, #tpu.memory_space<vmem>>, vector<1x1x32xf32>
    %502 = vector.shape_cast %501 : vector<1x1x32xf32> to vector<1x32xf32>
    %503 = vector.broadcast %502 : vector<1x32xf32> to vector<16x32xf32>
    %504 = arith.mulf %500, %503 : vector<16x32xf32>
    %c1_349 = arith.constant 1 : index
    %c0_350 = arith.constant 0 : index
    %c0_351 = arith.constant 0 : index
    %505 = vector.load %arg14[%c1_349, %c0_350, %c0_351] : memref<2x1x32xf32, #tpu.memory_space<vmem>>, vector<1x1x32xf32>
    %506 = vector.shape_cast %505 : vector<1x1x32xf32> to vector<1x32xf32>
    %507 = vector.broadcast %506 : vector<1x32xf32> to vector<16x32xf32>
    %508 = arith.addf %504, %507 : vector<16x32xf32>
    %509 = arith.truncf %508 : vector<16x32xf32> to vector<16x32xbf16>
    %c1_352 = arith.constant 1 : index
    %c0_353 = arith.constant 0 : index
    %c0_354 = arith.constant 0 : index
    %510 = vector.load %arg15[%c1_352, %c0_353, %c0_354] : memref<2x32x64xbf16, #tpu.memory_space<vmem>>, vector<1x32x64xbf16>
    %511 = vector.shape_cast %510 : vector<1x32x64xbf16> to vector<32x64xbf16>
    %cst_355 = arith.constant dense<0.000000e+00> : vector<16x64xf32>
    %512 = tpu.matmul %509, %511, %cst_355 {dimension_numbers = #tpu.dot_dimension_numbers<[1], [0], [0], [1], [0, 0, 1, 1], [], []>} : vector<16x32xbf16>, vector<32x64xbf16>, vector<16x64xf32> -> vector<16x64xf32>
    %c1_356 = arith.constant 1 : index
    %c0_357 = arith.constant 0 : index
    %c0_358 = arith.constant 0 : index
    %513 = vector.load %arg16[%c1_356, %c0_357, %c0_358] : memref<2x1x64xf32, #tpu.memory_space<vmem>>, vector<1x1x64xf32>
    %514 = vector.shape_cast %513 : vector<1x1x64xf32> to vector<1x64xf32>
    %515 = vector.broadcast %514 : vector<1x64xf32> to vector<16x64xf32>
    %516 = arith.addf %512, %515 : vector<16x64xf32>
    %cst_359 = arith.constant 0.000000e+00 : f32
    %517 = vector.broadcast %cst_359 : f32 to vector<16x64xf32>
    %518 = arith.maximumf %516, %517 : vector<16x64xf32>
    %519 = arith.truncf %518 : vector<16x64xf32> to vector<16x64xbf16>
    %c1_360 = arith.constant 1 : index
    %c0_361 = arith.constant 0 : index
    %c0_362 = arith.constant 0 : index
    %520 = vector.load %arg17[%c1_360, %c0_361, %c0_362] : memref<2x64x32xbf16, #tpu.memory_space<vmem>>, vector<1x64x32xbf16>
    %521 = vector.shape_cast %520 : vector<1x64x32xbf16> to vector<64x32xbf16>
    %cst_363 = arith.constant dense<0.000000e+00> : vector<16x32xf32>
    %522 = tpu.matmul %519, %521, %cst_363 {dimension_numbers = #tpu.dot_dimension_numbers<[1], [0], [0], [1], [0, 0, 1, 1], [], []>} : vector<16x64xbf16>, vector<64x32xbf16>, vector<16x32xf32> -> vector<16x32xf32>
    %c1_364 = arith.constant 1 : index
    %c0_365 = arith.constant 0 : index
    %c0_366 = arith.constant 0 : index
    %523 = vector.load %arg18[%c1_364, %c0_365, %c0_366] : memref<2x1x32xf32, #tpu.memory_space<vmem>>, vector<1x1x32xf32>
    %524 = vector.shape_cast %523 : vector<1x1x32xf32> to vector<1x32xf32>
    %525 = vector.broadcast %524 : vector<1x32xf32> to vector<16x32xf32>
    %526 = arith.addf %522, %525 : vector<16x32xf32>
    %527 = arith.addf %508, %526 : vector<16x32xf32>
    %cst_367 = arith.constant dense<0.000000e+00> : vector<16xf32>
    %528 = vector.multi_reduction <add>, %527, %cst_367 [1] : vector<16x32xf32> to vector<16xf32>
    %529 = vector.shape_cast %528 : vector<16xf32> to vector<16x1xf32>
    %cst_368 = arith.constant 3.200000e+01 : f32
    %530 = vector.broadcast %cst_368 : f32 to vector<16x1xf32>
    %531 = arith.divf %529, %530 : vector<16x1xf32>
    %532 = vector.broadcast %531 : vector<16x1xf32> to vector<16x32xf32>
    %533 = arith.subf %527, %532 : vector<16x32xf32>
    %534 = arith.mulf %533, %533 : vector<16x32xf32>
    %cst_369 = arith.constant dense<0.000000e+00> : vector<16xf32>
    %535 = vector.multi_reduction <add>, %534, %cst_369 [1] : vector<16x32xf32> to vector<16xf32>
    %536 = vector.shape_cast %535 : vector<16xf32> to vector<16x1xf32>
    %cst_370 = arith.constant 3.200000e+01 : f32
    %537 = vector.broadcast %cst_370 : f32 to vector<16x1xf32>
    %538 = arith.divf %536, %537 : vector<16x1xf32>
    %539 = vector.broadcast %531 : vector<16x1xf32> to vector<16x32xf32>
    %540 = arith.subf %527, %539 : vector<16x32xf32>
    %cst_371 = arith.constant 9.99999974E-6 : f32
    %541 = vector.broadcast %cst_371 : f32 to vector<16x1xf32>
    %542 = arith.addf %538, %541 : vector<16x1xf32>
    %543 = math.rsqrt %542 : vector<16x1xf32>
    %544 = vector.broadcast %543 : vector<16x1xf32> to vector<16x32xf32>
    %545 = arith.mulf %540, %544 : vector<16x32xf32>
    %c1_372 = arith.constant 1 : index
    %c0_373 = arith.constant 0 : index
    %c0_374 = arith.constant 0 : index
    %546 = vector.load %arg19[%c1_372, %c0_373, %c0_374] : memref<2x1x32xf32, #tpu.memory_space<vmem>>, vector<1x1x32xf32>
    %547 = vector.shape_cast %546 : vector<1x1x32xf32> to vector<1x32xf32>
    %548 = vector.broadcast %547 : vector<1x32xf32> to vector<16x32xf32>
    %549 = arith.mulf %545, %548 : vector<16x32xf32>
    %c1_375 = arith.constant 1 : index
    %c0_376 = arith.constant 0 : index
    %c0_377 = arith.constant 0 : index
    %550 = vector.load %arg20[%c1_375, %c0_376, %c0_377] : memref<2x1x32xf32, #tpu.memory_space<vmem>>, vector<1x1x32xf32>
    %551 = vector.shape_cast %550 : vector<1x1x32xf32> to vector<1x32xf32>
    %552 = vector.broadcast %551 : vector<1x32xf32> to vector<16x32xf32>
    %553 = arith.addf %549, %552 : vector<16x32xf32>
    %554 = vector.shape_cast %553 : vector<16x32xf32> to vector<8x2x32xf32>
    %555 = vector.extract_strided_slice %554 {offsets = [0, 0, 0], sizes = [8, 1, 32], strides = [1, 1, 1]} : vector<8x2x32xf32> to vector<8x1x32xf32>
    %556 = vector.shape_cast %555 : vector<8x1x32xf32> to vector<8x32xf32>
    %c0_378 = arith.constant 0 : index
    %c0_379 = arith.constant 0 : index
    %557 = vector.load %arg21[%c0_378, %c0_379] : memref<16x32xf32, #tpu.memory_space<vmem>>, vector<8x32xf32>
    tpu.vector_store %arg21[%c0_378, %c0_379], %556 {strides = array<i32>} : memref<16x32xf32, #tpu.memory_space<vmem>>, vector<8x32xf32>,
    %558 = vector.extract_strided_slice %554 {offsets = [0, 1, 0], sizes = [8, 1, 32], strides = [1, 1, 1]} : vector<8x2x32xf32> to vector<8x1x32xf32>
    %559 = vector.shape_cast %558 : vector<8x1x32xf32> to vector<8x32xf32>
    %c8 = arith.constant 8 : index
    %c0_380 = arith.constant 0 : index
    %560 = vector.load %arg21[%c8, %c0_380] : memref<16x32xf32, #tpu.memory_space<vmem>>, vector<8x32xf32>
    tpu.vector_store %arg21[%c8, %c0_380], %559 {strides = array<i32>} : memref<16x32xf32, #tpu.memory_space<vmem>>, vector<8x32xf32>,
    return
  }
}

</mosaic_0001>

<bundles_post_ra>
// kernel: transformer_encoder_forward.1
= control target key start
LH: loop header
LB: loop body
LE: loop exit
PB: predicated region body
PF: predicated region fallthrough
CT: control target
= control target key end

     0   :  { %s15609_s0 = inlined_call_operand.vmem [shape: s32[16,1], index: 0, kind: input, shape index: {}]   ;;  %s15610_s1 = inlined_call_operand.vmem [shape: f32[64,32], index: 1, kind: input, shape index: {}]   ;;  %s15611_s2 = inlined_call_operand.vmem [shape: f32[64,32], index: 2, kind: input, shape index: {}]   ;;  %s15612_s3 = inlined_call_operand.vmem [shape: f32[2,2], index: 3, kind: input, shape index: {}]   ;;  %s15613_s4 = inlined_call_operand.vmem [shape: f32[8,2], index: 4, kind: input, shape index: {}]   ;;  %s15614_s5 = inlined_call_operand.vmem [shape: bf16[2,4,32,8], index: 5, kind: input, shape index: {}]   ;;  %s15615_s6 = inlined_call_operand.vmem [shape: f32[2,4,1,8], index: 6, kind: input, shape index: {}]   ;;  %s15616_s7 = inlined_call_operand.vmem [shape: bf16[2,4,32,8], index: 7, kind: input, shape index: {}]   ;;  %s15617_s8 = inlined_call_operand.vmem [shape: f32[2,4,1,8], index: 8, kind: input, shape index: {}]   ;;  %s15618_s9 = inlined_call_operand.vmem [shape: bf16[2,4,32,8], index: 9, kind: input, shape index: {}]   ;;  %s15619_s10 = inlined_call_operand.vmem [shape: f32[2,4,1,8], index: 10, kind: input, shape index: {}]   ;;  %s15620_s11 = inlined_call_operand.vmem [shape: bf16[2,4,8,32], index: 11, kind: input, shape index: {}]   ;;  %s15621_s12 = inlined_call_operand.vmem [shape: f32[2,1,32], index: 12, kind: input, shape index: {}]   ;;  %s15622_s13 = inlined_call_operand.vmem [shape: f32[2,1,32], index: 13, kind: input, shape index: {}]   ;;  %s15623_s14 = inlined_call_operand.vmem [shape: f32[2,1,32], index: 14, kind: input, shape index: {}]   ;;  %s15624_s15 = inlined_call_operand.vmem [shape: bf16[2,32,64], index: 15, kind: input, shape index: {}]   ;;  %s15625_s16 = inlined_call_operand.vmem [shape: f32[2,1,64], index: 16, kind: input, shape index: {}]   ;;  %s15626_s17 = inlined_call_operand.vmem [shape: bf16[2,64,32], index: 17, kind: input, shape index: {}]   ;;  %s15627_s18 = inlined_call_operand.vmem [shape: f32[2,1,32], index: 18, kind: input, shape index: {}]   ;;  %s15628_s19 = inlined_call_operand.vmem [shape: f32[2,1,32], index: 19, kind: input, shape index: {}]   ;;  %s15629_s20 = inlined_call_operand.vmem [shape: f32[2,1,32], index: 20, kind: input, shape index: {}]   ;;  %s15630_s21 = inlined_call_operand.hbm [shape: f32[16,32], index: 21, kind: output, shape index: {}]  }
   0x1   :  { %15635 = sst [smem:[#allocation5_spill]] %s15609_s0 }
   0x2   :  { %15636 = sst [smem:[#allocation6_spill]] %s15610_s1 }
   0x3   :  { %15637 = sst [smem:[#allocation7_spill]] %s15611_s2 }
   0x4   :  { %15638 = sst [smem:[#allocation8_spill]] %s15612_s3 }
   0x5   :  { %15639 = sst [smem:[#allocation9_spill]] %s15613_s4 }
   0x6   :  { %15640 = sst [smem:[#allocation10_spill]] %s15614_s5 }
   0x7   :  { %15641 = sst [smem:[#allocation11_spill]] %s15625_s16 }
   0x8   :  { %s15642_s26 = sld [smem:[#allocation5_spill]]  ;;  %v13509_v2 = vmov 0   ;;  %v13510_v6 = vmov 0.0  }
   0x9   :  { %s15643_s16 = sld [smem:[#allocation6_spill]]  ;;  %13152 = vset.pattern.permute.xlu0 %v13509_v2  ;;  %12096 = vmatprep.subr.bf16.mxu1 %v13510_v6 }
   0xe   :  { %v70_v0 = vld [vmem:[%s15642_s26] sm:$0xff]  ;;  %v71_v5 = vld [vmem:[%s15642_s26 + $0x8] sm:$0xff] }
   0xf   :  { %v91_v1 = vld [vmem:[%s15643_s16 + $0x38] sm:$0xff]  ;;  %v90_v3 = vld [vmem:[%s15643_s16 + $0x30] sm:$0xff]  ;;  %75 = vperm.xlu0 %13152, %v70_v0   ;;  %v89_v4 = vld [vmem:[%s15643_s16 + $0x28] sm:$0xff] }
  0x10   :  { %12077 = vmatprep.subr.mxu0 %v91_v1  ;;  %v88_v7 = vld [vmem:[%s15643_s16 + $0x20] sm:$0xff]  ;;  %v87_v8 = vld [vmem:[%s15643_s16 + $0x18] sm:$0xff]  ;;  %v86_v9 = vld [vmem:[%s15643_s16 + $0x10] sm:$0xff] }
  0x11   :  { %12078 = vmatpush3.msra.mxu0 %v91_v1  ;;  %v85_v10 = vld [vmem:[%s15643_s16 + $0x8] sm:$0xff]  ;;  %v84_v11 = vld [vmem:[%s15643_s16] sm:$0xff] }
  0x12   :  { %12079 = vmatprep.subr.mxu0 %v90_v3 }
  0x13   :  { %12080 = vmatpush3.msra.mxu0 %v90_v3  ;;  %78 = vperm.xlu0 %13152, %v71_v5  }
  0x14   :  { %12081 = vmatprep.subr.mxu0 %v89_v4 }
  0x15   :  { %12082 = vmatpush3.msra.mxu0 %v89_v4 }
  0x16   :  { %12083 = vmatprep.subr.mxu0 %v88_v7 }
  0x17   :  { %12084 = vmatpush3.msra.mxu0 %v88_v7 }
  0x18   :  { %12085 = vmatprep.subr.mxu0 %v87_v8 }
  0x19   :  { %12086 = vmatpush3.msra.mxu0 %v87_v8 }
  0x1a   :  { %12087 = vmatprep.subr.mxu0 %v86_v9 }
  0x1b   :  { %12088 = vmatpush3.msra.mxu0 %v86_v9 }
  0x1c   :  { %12089 = vmatprep.subr.mxu0 %v85_v10 }
  0x1d   :  { %12090 = vmatpush3.msra.mxu0 %v85_v10 }
  0x1e   :  { %12091 = vmatprep.subr.mxu0 %v84_v11 }
  0x1f   :  { %12092 = vmatpush3.msra.mxu0 %v84_v11 }
  0x20   :  { %12126 = vmatprep.subr.bf16.mxu0 %v13510_v6 }
  0x21   :  { %26 = vsyncpa [#allocation3], 0  ;;  %v72_v12 = vlaneseq  ;;  %vm211_vm0 = vcmask 523264   ;;  %s15644_s0 = sld [smem:[#allocation10_spill]]  ;;  %vm13511_vm3 = vmmov 0   ;;  %vm417_vm4 = vcmask 261120  }
  0x22   :  { %12100 = vmatprep.mubr.msk.bf16.mxu1 %vm13511_vm3, %v13510_v6  ;;  %v13512_v20 = vmov 1966171168   ;;  %s15645_s23 = sld [smem:[#allocation7_spill]]  ;;  %v13513_v35 = vmov 1983009808   ;;  %v13156_v2 = vld [vmem:[%s15616_s7 + $0x8] sm:$0xff]  }
  0x23   :  { %v73_v13 = vand.u32 127, %v72_v12  ;;  %v96_v21 = vunpack.c.l.s4 %v13512_v20  ;;  %v13675_v23 = vshrl.u32 %v72_v12, 7  ;;  %v178_v36 = vunpack.c.l.s4 %v13513_v35  ;;  %v13157_v4 = vld [vmem:[%s15616_s7] sm:$0xff]   ;;  %v13158_v5 = vld [vmem:[%s15618_s9 + $0x8] sm:$0xff]   ;;  %s15646_s24 = sld [smem:[#allocation9_spill]] }
  0x24   :  { %v13159_v7 = vld [vmem:[%s15618_s9] sm:$0xff]   ;;  %vm746_vm5 = vcmask 64512   ;;  %vm1216_vm6 = vcmask 1040384   ;;  %s15647_s26 = sld [smem:[#allocation8_spill]]  ;;  %vm1115_vm7 = vcmask 9216   ;;  %vm1212_vm8 = vcmask 15360  }
  0x25   :  { %v97_v22 = vunpack.c.0.s8 %v96_v21  ;;  %v13690_v37 = vsub.s32 0, %v13675_v23  ;;  %v179_v42 = vunpack.c.0.s8 %v178_v36  ;;  %v11318_v12 = vld [vmem:[%s15617_s8] ss:$0 sm:$0xff]  ;;  %vm2864_vm9 = vcmask 1043456   ;;  %s15648_s5 = sld [smem:[#allocation11_spill]] }
  0x26   :  { %vm11236_vm10 = vcmask 1041409   ;;  %vm11238_vm11 = vcmask 1042434   ;;  %vm11240_vm12 = vcmask 1043459   ;;  %vm11242_vm13 = vcmask 1044484  }
  0x27   :  { %v13154_v18 = vld [vmem:[%s15644_s0 + $0x8] sm:$0xff]   ;;  %v13155_v19 = vld [vmem:[%s15644_s0] sm:$0xff]   ;;  %v13681_v25 = vsub.s32 %v97_v22, %v13675_v23  ;;  %v13701_v51 = vsub.s32 %v179_v42, %v13675_v23  ;;  %vm11244_vm14 = vcmask 1045509   ;;  %vm11246_vm15 = vcmask 1046534  }
  0x28   :  { %12097 = vmatpush3.bf16.msra.mxu1 %v13154_v18  ;;  %v92_v24 = vld [vmem:[%s15645_s23] sm:$0xff] }
  0x29   :  { %12098 = vmatprep.subr.bf16.mxu1 %v13510_v6  ;;  %v94_v26 = vcombine.high %v92_v24, %v92_v24  ;;  %v101_v28 = vrot.slane %v92_v24, %v13681_v25 }
  0x2b   :  { %v108_v27 = vrot.slane %v94_v26, %v13681_v25  ;;  %v109_v30 = vcombine.high %v101_v28, %v101_v28  ;;  %v117_v33 = vrot.slane %v101_v28, %v13681_v25 }
  0x2c   :  { %12099 = vmatpush3.bf16.msra.mxu1 %v13155_v19 }
  0x2d   :  { %12104 = vmatprep.subr.bf16.mxu1 %v13510_v6  ;;  %v110_v29 = vcombine.high %v108_v27, %v108_v27  ;;  %v124_v31 = vrot.slane %v108_v27, %v13681_v25  ;;  %v131_v34 = vrot.slane %v109_v30, %v13681_v25  ;;  %v139_v40 = vcombine.high %v117_v33, %v117_v33 }
  0x2e   :  { %v146_v47 = vrot.slane %v117_v33, %v13690_v37 }
  0x2f   :  { %v138_v32 = vrot.slane %v110_v29, %v13681_v25  ;;  %v140_v38 = vcombine.high %v124_v31, %v124_v31  ;;  %v141_v41 = vcombine.high %v131_v34, %v131_v34  ;;  %v162_v43 = vrot.slane %v124_v31, %v13690_v37 }
  0x30   :  { %v150_v48 = vrot.slane %v131_v34, %v13690_v37  ;;  %v154_v49 = vrot.slane %v139_v40, %v13690_v37 }
  0x31   :  { %v142_v39 = vcombine.high %v138_v32, %v138_v32  ;;  %v166_v44 = vrot.slane %v138_v32, %v13690_v37  ;;  %v170_v45 = vrot.slane %v140_v38, %v13690_v37  ;;  %v158_v50 = vrot.slane %v141_v41, %v13690_v37 }
  0x32   :  { %v175_v54 = vcombine.low %v146_v47, %v150_v48 }
  0x33   :  { %v174_v46 = vrot.slane %v142_v39, %v13690_v37  ;;  %v192_v52 = vcombine.low %v162_v43, %v166_v44  ;;  %v176_v55 = vcombine.low %v154_v49, %v158_v50  ;;  %v11322_v39 = vld [vmem:[%s15619_s10] ss:$0 sm:$0xff] }
  0x34   :  { %v183_v58 = vrot.slane %v175_v54, %v13701_v51 }
  0x35   :  { %v193_v53 = vcombine.low %v170_v45, %v174_v46  ;;  %v200_v56 = vrot.slane %v192_v52, %v13701_v51  ;;  %v190_v59 = vrot.slane %v176_v55, %v13701_v51 }
  0x37   :  { %v207_v57 = vrot.slane %v193_v53, %v13701_v51  ;;  %v191_v61 = vcombine.low %v183_v58, %v190_v59 }
  0x39   :  { %v208_v60 = vcombine.low %v200_v56, %v207_v57 }
  0x8a   :  { %v76_v14 = vpop.permute.xlu0 %75 }
  0x8b   :  { %vm80_vm1 = vcmp.eq.s32.totalorder %v76_v14, %v73_v13 }
  0x8c   :  { %v82_v15 = vsel %vm80_vm1, 5.656854, %v13510_v6  ;;  %vm11292_vm1 = vcmask 261121  }
  0x8d   :  { %12093 = vmatprep.mubr.msk.f32.mxu0 %vm211_vm0, %v82_v15 }
  0x8e   :  { %v79_v16 = vpop.permute.xlu0 %78 }
  0x8f   :  { %vm81_vm2 = vcmp.eq.s32.totalorder %v79_v16, %v73_v13  ;;  %v11314_v13 = vld [vmem:[%s15615_s6] ss:$0 sm:$0xff] }
  0x90   :  { %v83_v17 = vsel %vm81_vm2, 5.656854, %v13510_v6  ;;  %vm11294_vm2 = vcmask 253952  }
  0x91   :  { %12094 = vmatmul.mubr.msk.f32.vlgmr.msra.gmra.mxu0 %vm211_vm0, %v83_v17 }
  0x92   :  { %12128 = vmatprep.mubr.msk.bf16.mxu0 %vm13511_vm3, %v13510_v6 }
 0x151   :  { %v12095_v62 = vpop.f32.mrf.mxu0 }
 0x152   :  { %v13707_v0 = vadd.f32 %v12095_v62, %v208_v60 }
 0x153   :  { %v284_v63 = vpop.f32.mrf.mxu0 }
 0x154   :  { %v13709_v1 = vadd.f32 %v284_v63, %v191_v61 }
 0x156   :  { %v13716_v3 = vpack.c.bf16 %v13707_v0, %v13709_v1 }
 0x158   :  { %12101 = vmatmul.mubr.msk.bf16.vlgmr.msra.gmra.mxu1 %vm417_vm4, %v13716_v3 }
 0x159   :  { %12105 = vmatpush3.bf16.msra.mxu1 %v13156_v2  ;;  %12108 = vmatprep.mubr.msk.bf16.mxu1 %vm13511_vm3, %v13510_v6 }
 0x15a   :  { %12106 = vmatprep.subr.bf16.mxu1 %v13510_v6 }
 0x15d   :  { %12107 = vmatpush3.bf16.msra.mxu1 %v13157_v4 }
 0x15e   :  { %12112 = vmatprep.subr.bf16.mxu1 %v13510_v6 }
 0x160   :  { %12109 = vmatmul.mubr.msk.bf16.vlgmr.msra.gmra.mxu1 %vm417_vm4, %v13716_v3 }
 0x161   :  { %12113 = vmatpush3.bf16.msra.mxu1 %v13158_v5  ;;  %12116 = vmatprep.mubr.msk.bf16.mxu1 %vm13511_vm3, %v13510_v6 }
 0x162   :  { %12114 = vmatprep.subr.bf16.mxu1 %v13510_v6 }
 0x165   :  { %12115 = vmatpush3.bf16.msra.mxu1 %v13159_v7 }
 0x166   :  { %12120 = vmatprep.subr.bf16.mxu1 %v13510_v6 }
 0x168   :  { %12117 = vmatmul.mubr.msk.bf16.vlgmr.msra.gmra.mxu1 %vm417_vm4, %v13716_v3 }
 0x169   :  { %12122 = vmatprep.mubr.msk.bf16.mxu1 %vm13511_vm3, %v13510_v6 }
 0x218   :  { %v455_v8 = vpop.f32.mrf.mxu1 }
 0x219   :  { %v456_v17 = vadd.f32 %v11314_v13, %v455_v8 }
 0x21a   :  { %v12102_v9 = vpop.f32.mrf.mxu1 }
 0x21b   :  { %v599_v27 = vrot.slane %v456_v17, %v13701_v51  ;;  %v592_v35 = vcombine.high %v456_v17, %v456_v17 }
 0x21c   :  { %v458_v10 = vpop.f32.mrf.mxu1 }
 0x21d   :  { %v607_v36 = vcombine.high %v599_v27, %v599_v27  ;;  %v634_v41 = vpack.c.bf16 %v599_v27, %v599_v27  ;;  %v606_v46 = vrot.slane %v592_v35, %v13701_v51  ;;  %v459_v54 = vadd.f32 %v11314_v13, %v458_v10 }
 0x21e   :  { %v12103_v11 = vpop.f32.mrf.mxu1 }
 0x21f   :  { %v635_v47 = vpack.c.bf16 %v607_v36, %v607_v36  ;;  %v608_v53 = vcombine.high %v606_v46, %v606_v46  ;;  %v636_v56 = vpack.c.bf16 %v606_v46, %v606_v46  ;;  %v616_v60 = vrot.slane %v459_v54, %v13701_v51 }
 0x220   :  { %v519_v14 = vpop.f32.mrf.mxu1  ;;  %v609_v4 = vcombine.high %v459_v54, %v459_v54 }
 0x221   :  { %v520_v15 = vadd.f32 %v11318_v12, %v519_v14  ;;  %v637_v59 = vpack.c.bf16 %v608_v53, %v608_v53  ;;  %v624_v5 = vcombine.high %v616_v60, %v616_v60  ;;  %v638_v8 = vpack.c.bf16 %v616_v60, %v616_v60 }
 0x222   :  { %v12110_v16 = vpop.f32.mrf.mxu1  ;;  %v623_v11 = vrot.slane %v609_v4, %v13701_v51 }
 0x223   :  { %v644_v18 = vcombine.high %v520_v15, %v520_v15  ;;  %v651_v19 = vrot.slane %v520_v15, %v13701_v51 }
 0x224   :  { %v522_v20 = vpop.f32.mrf.mxu1  ;;  %v625_v16 = vcombine.high %v623_v11, %v623_v11 }
 0x225   :  { %v658_v21 = vrot.slane %v644_v18, %v13701_v51  ;;  %v659_v22 = vcombine.high %v651_v19, %v651_v19  ;;  %v686_v24 = vpack.c.bf16 %v651_v19, %v651_v19  ;;  %v523_v31 = vadd.f32 %v11318_v12, %v522_v20 }
 0x226   :  { %v12111_v26 = vpop.f32.mrf.mxu1  ;;  %v639_v12 = vpack.c.bf16 %v624_v5, %v624_v5  ;;  %v640_v18 = vpack.c.bf16 %v623_v11, %v623_v11  ;;  %v641_v20 = vpack.c.bf16 %v625_v16, %v625_v16 }
 0x227   :  { %v687_v28 = vpack.c.bf16 %v659_v22, %v659_v22  ;;  %v751_v29 = vsel %vm746_vm5, %v686_v24, 0  ;;  %v660_v33 = vcombine.high %v658_v21, %v658_v21  ;;  %v688_v38 = vpack.c.bf16 %v658_v21, %v658_v21  ;;  %v294_v24 = vld [vmem:[%s15646_s24] sm:$0xff] }
 0x228   :  { %v583_v30 = vpop.f32.mrf.mxu1  ;;  %12121 = vmatpush3.bf16.xpose.msra.mxu1 %v751_v29  ;;  %v668_v42 = vrot.slane %v523_v31, %v13701_v51  ;;  %v661_v49 = vcombine.high %v523_v31, %v523_v31  ;;  %v303_v26 = vrot.slane %v294_v24, %v13681_v25  ;;  %v296_v31 = vcombine.high %v294_v24, %v294_v24 }
 0x229   :  { %v797_v32 = vsel %vm746_vm5, %v687_v28, 0  ;;  %12132 = vmatprep.subr.bf16.mxu1 %v13510_v6  ;;  %v689_v44 = vpack.c.bf16 %v660_v33, %v660_v33  ;;  %v843_v48 = vsel %vm746_vm5, %v688_v38, 0  ;;  %v13779_v62 = vadd.f32 %v11322_v39, %v583_v30 }
 0x22a   :  { %v12118_v34 = vpop.f32.mrf.mxu1  ;;  %12127 = vmatpush3.bf16.xpose.msra.mxu0 %v797_v32  ;;  %v676_v50 = vcombine.high %v668_v42, %v668_v42  ;;  %v690_v55 = vpack.c.bf16 %v668_v42, %v668_v42  ;;  %v675_v57 = vrot.slane %v661_v49, %v13701_v51  ;;  %v311_v27 = vcombine.high %v303_v26, %v303_v26 }
 0x22b   :  { %12138 = vmatprep.subr.bf16.mxu0 %v13510_v6  ;;  %v889_v52 = vsel %vm746_vm5, %v689_v44, 0  ;;  %v703_v9 = vrot.slane %v13779_v62, %v13701_v51  ;;  %v319_v29 = vrot.slane %v303_v26, %v13681_v25  ;;  %v13821_v34 = vld [vmem:[%s15647_s26] sm:$0x3]  ;;  %v310_v38 = vrot.slane %v296_v31, %v13681_v25 }
 0x22c   :  { %v586_v40 = vpop.f32.mrf.mxu1  ;;  %v691_v58 = vpack.c.bf16 %v676_v50, %v676_v50  ;;  %v935_v61 = vsel %vm746_vm5, %v690_v55, 0  ;;  %v677_v2 = vcombine.high %v675_v57, %v675_v57  ;;  %v692_v7 = vpack.c.bf16 %v675_v57, %v675_v57 }
 0x22d   :  { %v13760_v43 = vadd.f32 %v11322_v39, %v586_v40  ;;  %v711_v14 = vcombine.high %v703_v9, %v703_v9  ;;  %v738_v17 = vpack.c.bf16 %v703_v9, %v703_v9  ;;  %v333_v28 = vrot.slane %v311_v27, %v13681_v25 }
 0x22e   :  { %v12119_v45 = vpop.f32.mrf.mxu1  ;;  %v981_v63 = vsel %vm746_vm5, %v691_v58, 0  ;;  %v693_v10 = vpack.c.bf16 %v677_v2, %v677_v2  ;;  %v1027_v13 = vsel %vm746_vm5, %v692_v7, 0  ;;  %v348_v32 = vrot.slane %v319_v29, %v13690_v37 }
 0x22f   :  { %12123 = vmatmul.mubr.msk.bf16.vlgmr.msra.gmra.mxu1 %vm746_vm5, %v634_v41  ;;  %v739_v19 = vpack.c.bf16 %v711_v14, %v711_v14  ;;  %v1218_v21 = vsel %vm1216_vm6, %v738_v17, 0  ;;  %v352_v30 = vrot.slane %v333_v28, %v13690_v37  ;;  %v341_v33 = vcombine.high %v319_v29, %v319_v29 }
 0x230   :  { %12133 = vmatpush3.bf16.xpose.msra.mxu1 %v843_v48  ;;  %12134 = vmatprep.mubr.msk.bf16.mxu1 %vm13511_vm3, %v13510_v6  ;;  %v1073_v15 = vsel %vm746_vm5, %v693_v10, 0  ;;  %v343_v36 = vcombine.high %v333_v28, %v333_v28  ;;  %v13828_v40 = vadd.f32 %v348_v32, %v13821_v34 }
 0x231   :  { %12129 = vmatmul.mubr.msk.bf16.vlgmr.msra.gmra.mxu0 %vm746_vm5, %v635_v47  ;;  %12144 = vmatprep.subr.bf16.mxu1 %v13510_v6  ;;  %v1264_v22 = vsel %vm1216_vm6, %v739_v19, 0  ;;  %v13824_v35 = vadd.f32 %v352_v30, %v13821_v34  ;;  %v356_v41 = vrot.slane %v341_v33, %v13690_v37  ;;  %v312_v47 = vcombine.high %v310_v38, %v310_v38 }
 0x232   :  { %12139 = vmatpush3.bf16.xpose.msra.mxu0 %v889_v52  ;;  %12140 = vmatprep.mubr.msk.bf16.mxu0 %vm13511_vm3, %v13510_v6  ;;  %v360_v46 = vrot.slane %v343_v36, %v13690_v37 }
 0x233   :  { %12150 = vmatprep.subr.bf16.mxu0 %v13510_v6  ;;  %v13841_v53 = vadd.f32 %v356_v41, %v13821_v34  ;;  %v340_v57 = vrot.slane %v312_v47, %v13681_v25 }
 0x235   :  { %v368_v7 = vrot.slane %v340_v57, %v13690_v37 }
 0x237   :  { %12135 = vmatmul.mubr.msk.bf16.vlgmr.msra.gmra.mxu1 %vm746_vm5, %v636_v56  ;;  %v13844_v56 = vadd.f32 %v360_v46, %v13821_v34  ;;  %v13860_v14 = vadd.f32 %v368_v7, %v13821_v34 }
 0x238   :  { %12145 = vmatpush3.bf16.xpose.msra.mxu1 %v935_v61  ;;  %12146 = vmatprep.mubr.msk.bf16.mxu1 %vm13511_vm3, %v13510_v6 }
 0x239   :  { %12141 = vmatmul.mubr.msk.bf16.vlgmr.msra.gmra.mxu0 %vm746_vm5, %v637_v59  ;;  %12156 = vmatprep.subr.bf16.mxu1 %v13510_v6 }
 0x23a   :  { %12151 = vmatpush3.bf16.xpose.msra.mxu0 %v981_v63  ;;  %12152 = vmatprep.mubr.msk.bf16.mxu0 %vm13511_vm3, %v13510_v6  ;;  %v326_v63 = vrot.slane %v310_v38, %v13681_v25 }
 0x23b   :  { %12162 = vmatprep.subr.bf16.mxu0 %v13510_v6 }
 0x23c   :  { %v342_v19 = vcombine.high %v326_v63, %v326_v63 }
 0x23e   :  { %v372_v30 = vrot.slane %v342_v19, %v13690_v37 }
 0x23f   :  { %12147 = vmatmul.mubr.msk.bf16.vlgmr.msra.gmra.mxu1 %vm746_vm5, %v638_v8 }
 0x240   :  { %12157 = vmatpush3.bf16.xpose.msra.mxu1 %v1027_v13  ;;  %12158 = vmatprep.mubr.msk.bf16.mxu1 %vm13511_vm3, %v13510_v6 }
 0x241   :  { %12153 = vmatmul.mubr.msk.bf16.vlgmr.msra.gmra.mxu0 %vm746_vm5, %v639_v12  ;;  %12168 = vmatprep.subr.bf16.mxu1 %v13510_v6  ;;  %v364_v12 = vrot.slane %v326_v63, %v13690_v37 }
 0x242   :  { %12163 = vmatpush3.bf16.xpose.msra.mxu0 %v1073_v15  ;;  %12164 = vmatprep.mubr.msk.bf16.mxu0 %vm13511_vm3, %v13510_v6  ;;  %v344_v15 = vcombine.high %v340_v57, %v340_v57 }
 0x243   :  { %12174 = vmatprep.subr.bf16.mxu0 %v13510_v6 }
 0x244   :  { %v376_v24 = vrot.slane %v344_v15, %v13690_v37 }
 0x246   :  { %v13871_v33 = vadd.f32 %v376_v24, %v13821_v34 }
 0x247   :  { %12159 = vmatmul.mubr.msk.bf16.vlgmr.msra.gmra.mxu1 %vm746_vm5, %v640_v18  ;;  %v13863_v18 = vadd.f32 %v364_v12, %v13821_v34 }
 0x248   :  { %12169 = vmatpush3.bf16.msra.mxu1 %v1218_v21  ;;  %12170 = vmatprep.mubr.msk.bf16.mxu1 %vm13511_vm3, %v13510_v6 }
 0x249   :  { %12165 = vmatmul.mubr.msk.bf16.vlgmr.msra.gmra.mxu0 %vm746_vm5, %v641_v20  ;;  %12180 = vmatprep.subr.bf16.mxu1 %v13510_v6 }
 0x24a   :  { %12175 = vmatpush3.bf16.msra.mxu0 %v1264_v22  ;;  %12176 = vmatprep.mubr.msk.bf16.mxu0 %vm13511_vm3, %v13510_v6 }
 0x24b   :  { %12186 = vmatprep.subr.bf16.mxu0 %v13510_v6 }
 0x2ef   :  { %v787_v39 = vpop.f32.mrf.mxu1 }
 0x2f0   :  { %v13836_v50 = vadd.f32 %v787_v39, %v13828_v40  ;;  %v13874_v39 = vadd.f32 %v372_v30, %v13821_v34 }
 0x2f1   :  { %v12124_v42 = vpop.f32.mrf.mxu1  ;;  %v833_v44 = vpop.f32.mrf.mxu0 }
 0x2f2   :  { %v13832_v45 = vadd.f32 %v833_v44, %v13824_v35  ;;  %v1116_v61 = vsel %vm1115_vm7, %v13836_v50, -inf }
 0x2f3   :  { %v790_v48 = vpop.f32.mrf.mxu1  ;;  %v12130_v49 = vpop.f32.mrf.mxu0 }
 0x2f4   :  { %v1119_v52 = vsel %vm1115_vm7, %v13832_v45, -inf }
 0x2f5   :  { %1120 = vmax.xlane.f32.xlu1 %v1119_v52  ;;  %v12125_v54 = vpop.f32.mrf.mxu1  ;;  %v836_v55 = vpop.f32.mrf.mxu0 }
 0x2f7   :  { %v12131_v58 = vpop.f32.mrf.mxu0  ;;  %v879_v59 = vpop.f32.mrf.mxu1 }
 0x2f8   :  { %v13848_v60 = vadd.f32 %v879_v59, %v13841_v53 }
 0x2f9   :  { %v925_v2 = vpop.f32.mrf.mxu0  ;;  %1117 = vmax.xlane.f32.xlu1 %v1116_v61  ;;  %v12136_v4 = vpop.f32.mrf.mxu1 }
 0x2fa   :  { %v926_v5 = vadd.f32 %v925_v2, %v13844_v56  ;;  %v1122_v11 = vsel %vm1115_vm7, %v13848_v60, -inf }
 0x2fb   :  { %v882_v8 = vpop.f32.mrf.mxu1  ;;  %v12142_v9 = vpop.f32.mrf.mxu0 }
 0x2fc   :  { %v1125_v10 = vsel %vm1115_vm7, %v926_v5, -inf }
 0x2fd   :  { %1126 = vmax.xlane.f32.xlu0 %v1125_v10  ;;  %v928_v13 = vpop.f32.mrf.mxu0  ;;  %1123 = vmax.xlane.f32.xlu1 %v1122_v11  ;;  %v12137_v25 = vpop.f32.mrf.mxu1 }
 0x2ff   :  { %v12143_v16 = vpop.f32.mrf.mxu0  ;;  %v971_v17 = vpop.f32.mrf.mxu1 }
 0x300   :  { %v972_v28 = vadd.f32 %v971_v17, %v13863_v18 }
 0x301   :  { %v12148_v20 = vpop.f32.mrf.mxu1  ;;  %v1017_v21 = vpop.f32.mrf.mxu0 }
 0x302   :  { %v1018_v22 = vadd.f32 %v1017_v21, %v13860_v14  ;;  %v1128_v41 = vsel %vm1115_vm7, %v972_v28, -inf }
 0x303   :  { %v974_v26 = vpop.f32.mrf.mxu1  ;;  %v12154_v27 = vpop.f32.mrf.mxu0 }
 0x304   :  { %v1131_v29 = vsel %vm1115_vm7, %v1018_v22, -inf }
 0x305   :  { %v1020_v31 = vpop.f32.mrf.mxu0  ;;  %1132 = vmax.xlane.f32.xlu1 %v1131_v29  ;;  %v12149_v32 = vpop.f32.mrf.mxu1 }
 0x307   :  { %v12155_v36 = vpop.f32.mrf.mxu0  ;;  %v1063_v38 = vpop.f32.mrf.mxu1 }
 0x308   :  { %v1064_v49 = vadd.f32 %v1063_v38, %v13874_v39 }
 0x309   :  { %v1109_v42 = vpop.f32.mrf.mxu0  ;;  %1129 = vmax.xlane.f32.xlu1 %v1128_v41  ;;  %v12160_v44 = vpop.f32.mrf.mxu1 }
 0x30a   :  { %v1110_v46 = vadd.f32 %v1109_v42, %v13871_v33  ;;  %v1134_v34 = vsel %vm1115_vm7, %v1064_v49, -inf }
 0x30b   :  { %v1066_v47 = vpop.f32.mrf.mxu1  ;;  %v12166_v48 = vpop.f32.mrf.mxu0 }
 0x30c   :  { %v1137_v52 = vsel %vm1115_vm7, %v1110_v46, -inf }
 0x30d   :  { %v1112_v54 = vpop.f32.mrf.mxu0  ;;  %1138 = vmax.xlane.f32.xlu1 %v1137_v52  ;;  %v12161_v55 = vpop.f32.mrf.mxu1 }
 0x30f   :  { %v12167_v57 = vpop.f32.mrf.mxu0 }
 0x311   :  { %1135 = vmax.xlane.f32.xlu1 %v1134_v34 }
 0x37e   :  { %v1121_v58 = vpop.xlane.xlu1 %1120 }
 0x37f   :  { %v1141_v59 = vsub.f32 %v13832_v45, %v1121_v58 }
 0x381   :  { %v1150_v61 = vmul.f32 1.442695, %v1141_v59  ;;  %v720_v59 = vrot.slane %v13760_v43, %v13701_v51 }
 0x382   :  { %v1118_v63 = vpop.xlane.xlu1 %1117 }
 0x383   :  { %13215 = vpow2.f32 %v1150_v61  ;;  %v1140_v2 = vsub.f32 %v13836_v50, %v1118_v63 }
 0x385   :  { %v1148_v4 = vmul.f32 1.442695, %v1140_v2 }
 0x386   :  { %v1127_v7 = vpop.xlane.xlu0 %1126  ;;  %v1124_v8 = vpop.xlane.xlu1 %1123 }
 0x387   :  { %13217 = vpow2.f32 %v1148_v4  ;;  %v1143_v9 = vsub.f32 %v926_v5, %v1127_v7  ;;  %v1142_v10 = vsub.f32 %v13848_v60, %v1124_v8  ;;  %v713_v7 = vcombine.high %v13760_v43, %v13760_v43 }
 0x388   :  { %v728_v8 = vcombine.high %v720_v59, %v720_v59 }
 0x389   :  { %v1154_v11 = vmul.f32 1.442695, %v1143_v9  ;;  %v1152_v12 = vmul.f32 1.442695, %v1142_v10  ;;  %v727_v43 = vrot.slane %v713_v7, %v13701_v51 }
 0x38b   :  { %13219 = vpow2.f32 %v1154_v11 }
 0x38c   :  { %13221 = vpow2.f32 %v1152_v12 }
 0x38e   :  { %v1133_v13 = vpop.xlane.xlu1 %1132 }
 0x38f   :  { %v1145_v25 = vsub.f32 %v1018_v22, %v1133_v13 }
 0x390   :  { %v13216_v15 = vpop.eup %13215 }
 0x391   :  { %v1158_v45 = vmul.f32 1.442695, %v1145_v25  ;;  %v1167_v16 = vsel %vm1115_vm7, %v13216_v15, 0.0 }
 0x392   :  { %v1130_v17 = vpop.xlane.xlu1 %1129  ;;  %1168 = vadd.xlane.f32.xlu1 %v1167_v16 }
 0x393   :  { %13223 = vpow2.f32 %v1158_v45  ;;  %v1144_v50 = vsub.f32 %v972_v28, %v1130_v17  ;;  %v743_v45 = vpack.c.bf16 %v728_v8, %v728_v8 }
 0x394   :  { %v13218_v19 = vpop.eup %13217 }
 0x395   :  { %v1156_v20 = vmul.f32 1.442695, %v1144_v50  ;;  %v1164_v5 = vsel %vm1115_vm7, %v13218_v19, 0.0 }
 0x396   :  { %v1139_v21 = vpop.xlane.xlu1 %1138  ;;  %1165 = vadd.xlane.f32.xlu1 %v1164_v5  ;;  %v742_v5 = vpack.c.bf16 %v720_v59, %v720_v59  ;;  %v13166_v59 = vld [vmem:[%s15618_s9 + $0x10] sm:$0xff]  }
 0x397   :  { %13225 = vpow2.f32 %v1156_v20  ;;  %v1147_v60 = vsub.f32 %v1110_v46, %v1139_v21  ;;  %v1448_v21 = vsel %vm1216_vm6, %v743_v45, 0 }
 0x398   :  { %v13220_v24 = vpop.eup %13219 }
 0x399   :  { %v13886_v26 = vpop.eup %13221  ;;  %v1162_v22 = vmul.f32 1.442695, %v1147_v60  ;;  %v1173_v27 = vsel %vm1115_vm7, %v13220_v24, 0.0  ;;  %v729_v60 = vcombine.high %v727_v43, %v727_v43 }
 0x39a   :  { %v1170_v29 = vsel %vm1115_vm7, %v13886_v26, 0.0  ;;  %1174 = vadd.xlane.f32.xlu1 %v1173_v27  ;;  %v1136_v30 = vpop.xlane.xlu1 %1135 }
 0x39b   :  { %13227 = vpow2.f32 %v1162_v22  ;;  %1171 = vadd.xlane.f32.xlu0 %v1170_v29  ;;  %v1146_v28 = vsub.f32 %v1064_v49, %v1136_v30  ;;  %v696_v49 = vcombine.high %v13779_v62, %v13779_v62  ;;  %v745_v30 = vpack.c.bf16 %v729_v60, %v729_v60 }
 0x39d   :  { %v1160_v31 = vmul.f32 1.442695, %v1146_v28  ;;  %v710_v54 = vrot.slane %v696_v49, %v13701_v51 }
 0x39f   :  { %13229 = vpow2.f32 %v1160_v31  ;;  %v712_v34 = vcombine.high %v710_v54, %v710_v54  ;;  %v740_v11 = vpack.c.bf16 %v710_v54, %v710_v54 }
 0x3a0   :  { %v13891_v32 = vpop.eup %13223 }
 0x3a1   :  { %v1179_v36 = vsel %vm1115_vm7, %v13891_v32, 0.0  ;;  %v741_v63 = vpack.c.bf16 %v712_v34, %v712_v34  ;;  %v1310_v16 = vsel %vm1216_vm6, %v740_v11, 0 }
 0x3a2   :  { %1180 = vadd.xlane.f32.xlu1 %v1179_v36  ;;  %v1540_v36 = vsel %vm1216_vm6, %v745_v30, 0 }
 0x3a3   :  { %v1356_v9 = vsel %vm1216_vm6, %v741_v63, 0 }
 0x3a4   :  { %v13895_v38 = vpop.eup %13225 }
 0x3a5   :  { %v1176_v41 = vsel %vm1115_vm7, %v13895_v38, 0.0 }
 0x3a6   :  { %1177 = vadd.xlane.f32.xlu0 %v1176_v41 }
 0x3a8   :  { %v13899_v42 = vpop.eup %13227 }
 0x3a9   :  { %v1185_v44 = vsel %vm1115_vm7, %v13899_v42, 0.0 }
 0x3aa   :  { %1186 = vadd.xlane.f32.xlu1 %v1185_v44  ;;  %v744_v44 = vpack.c.bf16 %v727_v43, %v727_v43 }
 0x3ac   :  { %v13903_v46 = vpop.eup %13229 }
 0x3ad   :  { %v1182_v47 = vsel %vm1115_vm7, %v13903_v46, 0.0 }
 0x3ae   :  { %1183 = vadd.xlane.f32.xlu0 %v1182_v47 }
 0x41b   :  { %v1169_v48 = vpop.xlane.xlu1 %1168 }
 0x41c   :  { %13231 = vrcp.f32 %v1169_v48  ;;  %v1494_v48 = vsel %vm1216_vm6, %v744_v44, 0 }
 0x41f   :  { %v1166_v52 = vpop.xlane.xlu1 %1165 }
 0x420   :  { %13233 = vrcp.f32 %v1166_v52 }
 0x423   :  { %v1175_v55 = vpop.xlane.xlu1 %1174 }
 0x424   :  { %v1172_v57 = vpop.xlane.xlu0 %1171  ;;  %13235 = vrcp.f32 %v1175_v55 }
 0x425   :  { %13237 = vrcp.f32 %v1172_v57  ;;  %v13163_v57 = vld [vmem:[%s15616_s7 + $0x10] sm:$0xff]  }
 0x429   :  { %v13232_v58 = vpop.eup %13231 }
 0x42a   :  { %v1197_v61 = vmul.f32 %v13232_v58, %v13216_v15  ;;  %v13165_v58 = vld [vmem:[%s15618_s9 + $0x18] sm:$0xff]  }
 0x42b   :  { %v1181_v2 = vpop.xlane.xlu1 %1180 }
 0x42c   :  { %13239 = vrcp.f32 %v1181_v2  ;;  %v1205_v4 = vpack.c.bf16 %v1197_v61, %v1197_v61 }
 0x42d   :  { %v13234_v62 = vpop.eup %13233 }
 0x42e   :  { %12177 = vmatmul.mubr.msk.bf16.vlgmr.msra.gmra.mxu0 %vm1212_vm8, %v1205_v4  ;;  %v1196_v10 = vmul.f32 %v13234_v62, %v13218_v19 }
 0x42f   :  { %12187 = vmatpush3.bf16.msra.mxu0 %v1356_v9  ;;  %v1178_v12 = vpop.xlane.xlu0 %1177  ;;  %12188 = vmatprep.mubr.msk.bf16.mxu0 %vm13511_vm3, %v13510_v6 }
 0x430   :  { %13241 = vrcp.f32 %v1178_v12  ;;  %v1204_v13 = vpack.c.bf16 %v1196_v10, %v1196_v10  ;;  %12198 = vmatprep.subr.bf16.mxu0 %v13510_v6 }
 0x431   :  { %v13236_v25 = vpop.eup %13235 }
 0x432   :  { %v13238_v15 = vpop.eup %13237  ;;  %12171 = vmatmul.mubr.msk.bf16.vlgmr.msra.gmra.mxu1 %vm1212_vm8, %v1204_v13  ;;  %v1199_v17 = vmul.f32 %v13236_v25, %v13220_v24 }
 0x433   :  { %12181 = vmatpush3.bf16.msra.mxu1 %v1310_v16  ;;  %v1187_v50 = vpop.xlane.xlu1 %1186  ;;  %12182 = vmatprep.mubr.msk.bf16.mxu1 %vm13511_vm3, %v13510_v6  ;;  %v1198_v20 = vmul.f32 %v13238_v15, %v13886_v26  ;;  %v1402_v26 = vsel %vm1216_vm6, %v742_v5, 0 }
 0x434   :  { %13243 = vrcp.f32 %v1187_v50  ;;  %v1207_v19 = vpack.c.bf16 %v1199_v17, %v1199_v17  ;;  %12192 = vmatprep.subr.bf16.mxu1 %v13510_v6 }
 0x435   :  { %v1206_v24 = vpack.c.bf16 %v1198_v20, %v1198_v20 }
 0x436   :  { %12189 = vmatmul.mubr.msk.bf16.vlgmr.msra.gmra.mxu0 %vm1212_vm8, %v1207_v19 }
 0x437   :  { %12199 = vmatpush3.bf16.msra.mxu0 %v1448_v21  ;;  %v1184_v22 = vpop.xlane.xlu0 %1183  ;;  %12200 = vmatprep.mubr.msk.bf16.mxu0 %vm13511_vm3, %v13510_v6 }
 0x438   :  { %13245 = vrcp.f32 %v1184_v22  ;;  %12210 = vmatprep.subr.bf16.mxu0 %v13510_v6 }
 0x439   :  { %v13240_v27 = vpop.eup %13239 }
 0x43a   :  { %12183 = vmatmul.mubr.msk.bf16.vlgmr.msra.gmra.mxu1 %vm1212_vm8, %v1206_v24  ;;  %v1201_v29 = vmul.f32 %v13240_v27, %v13891_v32 }
 0x43b   :  { %12193 = vmatpush3.bf16.msra.mxu1 %v1402_v26  ;;  %12194 = vmatprep.mubr.msk.bf16.mxu1 %vm13511_vm3, %v13510_v6 }
 0x43c   :  { %v1209_v28 = vpack.c.bf16 %v1201_v29, %v1201_v29  ;;  %12204 = vmatprep.subr.bf16.mxu1 %v13510_v6 }
 0x43d   :  { %v13242_v31 = vpop.eup %13241 }
 0x43e   :  { %12201 = vmatmul.mubr.msk.bf16.vlgmr.msra.gmra.mxu0 %vm1212_vm8, %v1209_v28  ;;  %v1200_v41 = vmul.f32 %v13242_v31, %v13895_v38  ;;  %v13161_v38 = vld [vmem:[%s15616_s7 + $0x18] sm:$0xff]  }
 0x43f   :  { %12211 = vmatpush3.bf16.msra.mxu0 %v1540_v36  ;;  %12212 = vmatprep.mubr.msk.bf16.mxu0 %vm13511_vm3, %v13510_v6 }
 0x440   :  { %v1208_v32 = vpack.c.bf16 %v1200_v41, %v1200_v41  ;;  %12224 = vmatprep.subr.bf16.mxu0 %v13510_v6 }
 0x441   :  { %v13244_v47 = vpop.eup %13243 }
 0x442   :  { %12195 = vmatmul.mubr.msk.bf16.vlgmr.msra.gmra.mxu1 %vm1212_vm8, %v1208_v32  ;;  %v1203_v49 = vmul.f32 %v13244_v47, %v13899_v42  ;;  %v13162_v42 = vld [vmem:[%s15644_s0 + $0x18] sm:$0xff]  }
 0x443   :  { %12205 = vmatpush3.bf16.msra.mxu1 %v1494_v48  ;;  %12206 = vmatprep.mubr.msk.bf16.mxu1 %vm13511_vm3, %v13510_v6  ;;  %v11356_v48 = vld [vmem:[%s15617_s8 + $0x1] ss:$0 sm:$0xff] }
 0x444   :  { %v1211_v52 = vpack.c.bf16 %v1203_v49, %v1203_v49  ;;  %12216 = vmatprep.subr.bf16.mxu1 %v13510_v6 }
 0x445   :  { %v13246_v54 = vpop.eup %13245 }
 0x446   :  { %12213 = vmatmul.mubr.msk.bf16.vlgmr.msra.gmra.mxu0 %vm1212_vm8, %v1211_v52  ;;  %v1202_v55 = vmul.f32 %v13246_v54, %v13903_v46  ;;  %v13164_v46 = vld [vmem:[%s15644_s0 + $0x10] sm:$0xff]  }
 0x447   :  { %12225 = vmatpush3.bf16.msra.mxu0 %v13161_v38  ;;  %12228 = vmatprep.mubr.msk.bf16.mxu0 %vm13511_vm3, %v13510_v6 }
 0x448   :  { %v1210_v34 = vpack.c.bf16 %v1202_v55, %v1202_v55  ;;  %12226 = vmatprep.subr.bf16.mxu0 %v13510_v6 }
 0x44a   :  { %12207 = vmatmul.mubr.msk.bf16.vlgmr.msra.gmra.mxu1 %vm1212_vm8, %v1210_v34 }
 0x44b   :  { %12217 = vmatpush3.bf16.msra.mxu1 %v13162_v42  ;;  %12227 = vmatpush3.bf16.msra.mxu0 %v13163_v57 }
 0x44c   :  { %12218 = vmatprep.subr.bf16.mxu1 %v13510_v6  ;;  %12220 = vmatprep.mubr.msk.bf16.mxu1 %vm13511_vm3, %v13510_v6 }
 0x44d   :  { %12240 = vmatprep.subr.bf16.mxu0 %v13510_v6 }
 0x44e   :  { %12229 = vmatmul.mubr.msk.bf16.vlgmr.msra.gmra.mxu0 %vm417_vm4, %v13716_v3 }
 0x44f   :  { %12219 = vmatpush3.bf16.msra.mxu1 %v13164_v46  ;;  %12242 = vmatprep.mubr.msk.bf16.mxu0 %vm13511_vm3, %v13510_v6  ;;  %v11347_v46 = vld [vmem:[%s15615_s6 + $0x1] ss:$0 sm:$0xff] }
 0x450   :  { %12232 = vmatprep.subr.bf16.mxu1 %v13510_v6 }
 0x452   :  { %12221 = vmatmul.mubr.msk.bf16.vlgmr.msra.gmra.mxu1 %vm417_vm4, %v13716_v3 }
 0x453   :  { %12233 = vmatpush3.bf16.msra.mxu1 %v13165_v58  ;;  %12236 = vmatprep.mubr.msk.bf16.mxu1 %vm13511_vm3, %v13510_v6 }
 0x454   :  { %12234 = vmatprep.subr.bf16.mxu1 %v13510_v6 }
 0x457   :  { %12235 = vmatpush3.bf16.msra.mxu1 %v13166_v59 }
 0x458   :  { %12246 = vmatprep.subr.bf16.mxu1 %v13510_v6 }
 0x45a   :  { %12237 = vmatmul.mubr.msk.bf16.vlgmr.msra.gmra.mxu1 %vm417_vm4, %v13716_v3 }
 0x45b   :  { %12248 = vmatprep.mubr.msk.bf16.mxu1 %vm13511_vm3, %v13510_v6 }
 0x4ee   :  { %v1300_v61 = vpop.f32.mrf.mxu0 }
 0x4f0   :  { %v12178_v63 = vpop.f32.mrf.mxu0 }
 0x4f2   :  { %v1254_v2 = vpop.f32.mrf.mxu1  ;;  %v1303_v4 = vpop.f32.mrf.mxu0 }
 0x4f3   :  { %v1590_v62 = vcombine.low %v1254_v2, %v1300_v61 }
 0x4f4   :  { %v12172_v7 = vpop.f32.mrf.mxu1  ;;  %v12179_v8 = vpop.f32.mrf.mxu0 }
 0x4f5   :  { %v1598_v16 = vrot.slane %v1590_v62, %v13701_v51 }
 0x4f6   :  { %v1257_v9 = vpop.f32.mrf.mxu1  ;;  %v1392_v10 = vpop.f32.mrf.mxu0 }
 0x4f8   :  { %v12173_v11 = vpop.f32.mrf.mxu1  ;;  %v12190_v12 = vpop.f32.mrf.mxu0 }
 0x4fa   :  { %v1346_v13 = vpop.f32.mrf.mxu1  ;;  %v1395_v25 = vpop.f32.mrf.mxu0 }
 0x4fb   :  { %v1591_v15 = vcombine.low %v1346_v13, %v1392_v10 }
 0x4fc   :  { %v12184_v43 = vpop.f32.mrf.mxu1  ;;  %v12191_v45 = vpop.f32.mrf.mxu0 }
 0x4fd   :  { %v1605_v17 = vrot.slane %v1591_v15, %v13701_v51 }
 0x4fe   :  { %v1349_v50 = vpop.f32.mrf.mxu1  ;;  %v1484_v19 = vpop.f32.mrf.mxu0 }
 0x4ff   :  { %v1606_v20 = vcombine.low %v1598_v16, %v1605_v17 }
 0x500   :  { %v12185_v5 = vpop.f32.mrf.mxu1  ;;  %v12202_v21 = vpop.f32.mrf.mxu0 }
 0x502   :  { %v1438_v60 = vpop.f32.mrf.mxu1  ;;  %v1487_v22 = vpop.f32.mrf.mxu0 }
 0x503   :  { %v1607_v24 = vcombine.low %v1438_v60, %v1484_v19 }
 0x504   :  { %v12196_v27 = vpop.f32.mrf.mxu1  ;;  %v12203_v26 = vpop.f32.mrf.mxu0 }
 0x505   :  { %v1615_v49 = vrot.slane %v1607_v24, %v13701_v51 }
 0x506   :  { %v1441_v29 = vpop.f32.mrf.mxu1  ;;  %v1576_v30 = vpop.f32.mrf.mxu0 }
 0x508   :  { %v12197_v28 = vpop.f32.mrf.mxu1  ;;  %v12214_v31 = vpop.f32.mrf.mxu0 }
 0x50a   :  { %v1530_v36 = vpop.f32.mrf.mxu1  ;;  %v1579_v41 = vpop.f32.mrf.mxu0 }
 0x50b   :  { %v1608_v44 = vcombine.low %v1530_v36, %v1576_v30  ;;  %v11365_v30 = vld [vmem:[%s15619_s10 + $0x1] ss:$0 sm:$0xff] }
 0x50c   :  { %v12208_v32 = vpop.f32.mrf.mxu1  ;;  %v12215_v47 = vpop.f32.mrf.mxu0 }
 0x50d   :  { %v1622_v38 = vrot.slane %v1608_v44, %v13701_v51 }
 0x50e   :  { %v1533_v52 = vpop.f32.mrf.mxu1  ;;  %v1753_v54 = vpop.f32.mrf.mxu0 }
 0x50f   :  { %v1623_v55 = vcombine.low %v1615_v49, %v1622_v38  ;;  %v1754_v42 = vadd.f32 %v11356_v48, %v1753_v54 }
 0x510   :  { %v12209_v57 = vpop.f32.mrf.mxu1  ;;  %v12230_v34 = vpop.f32.mrf.mxu0 }
 0x511   :  { %v14002_v58 = vpack.c.bf16 %v1623_v55, %v1606_v20  ;;  %v1880_v59 = vcombine.high %v1754_v42, %v1754_v42  ;;  %v1887_v61 = vrot.slane %v1754_v42, %v13701_v51 }
 0x512   :  { %v1687_v63 = vpop.f32.mrf.mxu1  ;;  %v1756_v2 = vpop.f32.mrf.mxu0 }
 0x513   :  { %v1895_v4 = vcombine.high %v1887_v61, %v1887_v61  ;;  %v1922_v62 = vpack.c.bf16 %v1887_v61, %v1887_v61  ;;  %v1688_v7 = vadd.f32 %v11347_v46, %v1687_v63  ;;  %v1894_v8 = vrot.slane %v1880_v59, %v13701_v51 }
 0x514   :  { %v12222_v9 = vpop.f32.mrf.mxu1  ;;  %v12231_v10 = vpop.f32.mrf.mxu0  ;;  %v1757_v15 = vadd.f32 %v11356_v48, %v1756_v2 }
 0x515   :  { %v1923_v11 = vpack.c.bf16 %v1895_v4, %v1895_v4  ;;  %v1986_v12 = vsel %vm746_vm5, %v1922_v62, 0  ;;  %v1835_v13 = vrot.slane %v1688_v7, %v13701_v51  ;;  %v1896_v16 = vcombine.high %v1894_v8, %v1894_v8 }
 0x516   :  { %v1690_v25 = vpop.f32.mrf.mxu1  ;;  %12241 = vmatpush3.bf16.xpose.msra.mxu0 %v1986_v12  ;;  %v1924_v17 = vpack.c.bf16 %v1894_v8, %v1894_v8  ;;  %v1828_v50 = vcombine.high %v1688_v7, %v1688_v7  ;;  %v1904_v21 = vrot.slane %v1757_v15, %v13701_v51  ;;  %v1897_v28 = vcombine.high %v1757_v15, %v1757_v15 }
 0x517   :  { %12252 = vmatprep.subr.bf16.mxu0 %v13510_v6  ;;  %v2032_v45 = vsel %vm746_vm5, %v1923_v11, 0  ;;  %v1843_v19 = vcombine.high %v1835_v13, %v1835_v13  ;;  %v1870_v5 = vpack.c.bf16 %v1835_v13, %v1835_v13  ;;  %v1925_v22 = vpack.c.bf16 %v1896_v16, %v1896_v16 }
 0x518   :  { %v12223_v43 = vpop.f32.mrf.mxu1  ;;  %12247 = vmatpush3.bf16.xpose.msra.mxu1 %v2032_v45  ;;  %v2078_v24 = vsel %vm746_vm5, %v1924_v17, 0  ;;  %v1842_v27 = vrot.slane %v1828_v50, %v13701_v51  ;;  %v1912_v31 = vcombine.high %v1904_v21, %v1904_v21  ;;  %v1926_v32 = vpack.c.bf16 %v1904_v21, %v1904_v21 }
 0x519   :  { %12258 = vmatprep.subr.bf16.mxu1 %v13510_v6  ;;  %v1871_v26 = vpack.c.bf16 %v1843_v19, %v1843_v19  ;;  %v2124_v44 = vsel %vm746_vm5, %v1925_v22, 0  ;;  %v1691_v48 = vadd.f32 %v11347_v46, %v1690_v25  ;;  %v1911_v38 = vrot.slane %v1897_v28, %v13701_v51 }
 0x51a   :  { %v1819_v20 = vpop.f32.mrf.mxu1  ;;  %v1844_v47 = vcombine.high %v1842_v27, %v1842_v27  ;;  %v1872_v49 = vpack.c.bf16 %v1842_v27, %v1842_v27  ;;  %v1927_v52 = vpack.c.bf16 %v1912_v31, %v1912_v31  ;;  %v2170_v54 = vsel %vm746_vm5, %v1926_v32, 0 }
 0x51b   :  { %v1852_v42 = vrot.slane %v1691_v48, %v13701_v51  ;;  %v14035_v57 = vadd.f32 %v11365_v30, %v1819_v20  ;;  %v1913_v46 = vcombine.high %v1911_v38, %v1911_v38  ;;  %v1928_v59 = vpack.c.bf16 %v1911_v38, %v1911_v38 }
 0x51c   :  { %v12238_v60 = vpop.f32.mrf.mxu1  ;;  %v1873_v55 = vpack.c.bf16 %v1844_v47, %v1844_v47  ;;  %v2216_v34 = vsel %vm746_vm5, %v1927_v52, 0  ;;  %v1845_v61 = vcombine.high %v1691_v48, %v1691_v48 }
 0x51d   :  { %12243 = vmatmul.mubr.msk.bf16.vlgmr.msra.gmra.mxu0 %vm746_vm5, %v1870_v5  ;;  %v1860_v63 = vcombine.high %v1852_v42, %v1852_v42  ;;  %v1874_v2 = vpack.c.bf16 %v1852_v42, %v1852_v42  ;;  %v1939_v4 = vrot.slane %v14035_v57, %v13701_v51  ;;  %v1929_v62 = vpack.c.bf16 %v1913_v46, %v1913_v46 }
 0x51e   :  { %v1822_v29 = vpop.f32.mrf.mxu1  ;;  %12253 = vmatpush3.bf16.xpose.msra.mxu0 %v2078_v24  ;;  %12254 = vmatprep.mubr.msk.bf16.mxu0 %vm13511_vm3, %v13510_v6  ;;  %v2262_v7 = vsel %vm746_vm5, %v1928_v59, 0  ;;  %v1859_v8 = vrot.slane %v1845_v61, %v13701_v51 }
 0x51f   :  { %12264 = vmatprep.subr.bf16.mxu0 %v13510_v6  ;;  %v14021_v36 = vadd.f32 %v11365_v30, %v1822_v29  ;;  %12249 = vmatmul.mubr.msk.bf16.vlgmr.msra.gmra.mxu1 %vm746_vm5, %v1871_v26  ;;  %v1875_v9 = vpack.c.bf16 %v1860_v63, %v1860_v63  ;;  %v1947_v10 = vcombine.high %v1939_v4, %v1939_v4  ;;  %v2308_v11 = vsel %vm746_vm5, %v1929_v62, 0 }
 0x520   :  { %v12239_v41 = vpop.f32.mrf.mxu1  ;;  %12259 = vmatpush3.bf16.xpose.msra.mxu1 %v2124_v44  ;;  %12260 = vmatprep.mubr.msk.bf16.mxu1 %vm13511_vm3, %v13510_v6  ;;  %v1974_v12 = vpack.c.bf16 %v1939_v4, %v1939_v4  ;;  %v1861_v13 = vcombine.high %v1859_v8, %v1859_v8  ;;  %v1876_v25 = vpack.c.bf16 %v1859_v8, %v1859_v8 }
 0x521   :  { %12270 = vmatprep.subr.bf16.mxu1 %v13510_v6  ;;  %v1975_v15 = vpack.c.bf16 %v1947_v10, %v1947_v10 }
 0x522   :  { %v2450_v43 = vsel %vm1216_vm6, %v1974_v12, 0  ;;  %v1877_v45 = vpack.c.bf16 %v1861_v13, %v1861_v13 }
 0x523   :  { %v2496_v16 = vsel %vm1216_vm6, %v1975_v15, 0 }
 0x525   :  { %12255 = vmatmul.mubr.msk.bf16.vlgmr.msra.gmra.mxu0 %vm746_vm5, %v1872_v49 }
 0x526   :  { %12265 = vmatpush3.bf16.xpose.msra.mxu0 %v2170_v54  ;;  %12266 = vmatprep.mubr.msk.bf16.mxu0 %vm13511_vm3, %v13510_v6 }
 0x527   :  { %12276 = vmatprep.subr.bf16.mxu0 %v13510_v6  ;;  %12261 = vmatmul.mubr.msk.bf16.vlgmr.msra.gmra.mxu1 %vm746_vm5, %v1873_v55 }
 0x528   :  { %12271 = vmatpush3.bf16.xpose.msra.mxu1 %v2216_v34  ;;  %12272 = vmatprep.mubr.msk.bf16.mxu1 %vm13511_vm3, %v13510_v6 }
 0x529   :  { %12282 = vmatprep.subr.bf16.mxu1 %v13510_v6 }
 0x52d   :  { %12267 = vmatmul.mubr.msk.bf16.vlgmr.msra.gmra.mxu0 %vm746_vm5, %v1874_v2 }
 0x52e   :  { %12277 = vmatpush3.bf16.xpose.msra.mxu0 %v2262_v7  ;;  %12278 = vmatprep.mubr.msk.bf16.mxu0 %vm13511_vm3, %v13510_v6 }
 0x52f   :  { %12288 = vmatprep.subr.bf16.mxu0 %v13510_v6  ;;  %12273 = vmatmul.mubr.msk.bf16.vlgmr.msra.gmra.mxu1 %vm746_vm5, %v1875_v9 }
 0x530   :  { %12283 = vmatpush3.bf16.xpose.msra.mxu1 %v2308_v11  ;;  %12284 = vmatprep.mubr.msk.bf16.mxu1 %vm13511_vm3, %v13510_v6 }
 0x531   :  { %12294 = vmatprep.subr.bf16.mxu1 %v13510_v6 }
 0x535   :  { %12279 = vmatmul.mubr.msk.bf16.vlgmr.msra.gmra.mxu0 %vm746_vm5, %v1876_v25 }
 0x536   :  { %12289 = vmatpush3.bf16.msra.mxu0 %v2450_v43  ;;  %12290 = vmatprep.mubr.msk.bf16.mxu0 %vm13511_vm3, %v13510_v6 }
 0x537   :  { %12300 = vmatprep.subr.bf16.mxu0 %v13510_v6  ;;  %12285 = vmatmul.mubr.msk.bf16.vlgmr.msra.gmra.mxu1 %vm746_vm5, %v1877_v45 }
 0x538   :  { %12295 = vmatpush3.bf16.msra.mxu1 %v2496_v16  ;;  %12296 = vmatprep.mubr.msk.bf16.mxu1 %vm13511_vm3, %v13510_v6 }
 0x539   :  { %12306 = vmatprep.subr.bf16.mxu1 %v13510_v6 }
 0x5dd   :  { %v2022_v17 = vpop.f32.mrf.mxu0 }
 0x5de   :  { %v2023_v50 = vadd.f32 %v2022_v17, %v13828_v40 }
 0x5df   :  { %v12244_v19 = vpop.f32.mrf.mxu0  ;;  %v2068_v20 = vpop.f32.mrf.mxu1 }
 0x5e0   :  { %v2350_v5 = vsel %vm1115_vm7, %v2023_v50, -inf  ;;  %v2069_v21 = vadd.f32 %v2068_v20, %v13824_v35 }
 0x5e1   :  { %2351 = vmax.xlane.f32.xlu1 %v2350_v5  ;;  %v2025_v60 = vpop.f32.mrf.mxu0  ;;  %v12250_v22 = vpop.f32.mrf.mxu1 }
 0x5e2   :  { %v2353_v27 = vsel %vm1115_vm7, %v2069_v21, -inf }
 0x5e3   :  { %v12245_v24 = vpop.f32.mrf.mxu0  ;;  %2354 = vmax.xlane.f32.xlu0 %v2353_v27  ;;  %v2071_v26 = vpop.f32.mrf.mxu1 }
 0x5e5   :  { %v2114_v29 = vpop.f32.mrf.mxu0  ;;  %v12251_v30 = vpop.f32.mrf.mxu1 }
 0x5e6   :  { %v2115_v28 = vadd.f32 %v2114_v29, %v13841_v53 }
 0x5e7   :  { %v12256_v31 = vpop.f32.mrf.mxu0  ;;  %v2160_v41 = vpop.f32.mrf.mxu1 }
 0x5e8   :  { %v2356_v44 = vsel %vm1115_vm7, %v2115_v28, -inf  ;;  %v2161_v32 = vadd.f32 %v2160_v41, %v13844_v56 }
 0x5e9   :  { %2357 = vmax.xlane.f32.xlu1 %v2356_v44  ;;  %v2117_v47 = vpop.f32.mrf.mxu0  ;;  %v12262_v48 = vpop.f32.mrf.mxu1 }
 0x5ea   :  { %v2359_v38 = vsel %vm1115_vm7, %v2161_v32, -inf }
 0x5eb   :  { %v12257_v49 = vpop.f32.mrf.mxu0  ;;  %2360 = vmax.xlane.f32.xlu0 %v2359_v38  ;;  %v2163_v52 = vpop.f32.mrf.mxu1 }
 0x5ed   :  { %v2206_v54 = vpop.f32.mrf.mxu0  ;;  %v12263_v55 = vpop.f32.mrf.mxu1 }
 0x5ee   :  { %v2207_v42 = vadd.f32 %v2206_v54, %v13863_v18 }
 0x5ef   :  { %v12268_v34 = vpop.f32.mrf.mxu0  ;;  %v2252_v46 = vpop.f32.mrf.mxu1 }
 0x5f0   :  { %v2362_v59 = vsel %vm1115_vm7, %v2207_v42, -inf  ;;  %v2253_v61 = vadd.f32 %v2252_v46, %v13860_v14 }
 0x5f1   :  { %2363 = vmax.xlane.f32.xlu1 %v2362_v59  ;;  %v2209_v63 = vpop.f32.mrf.mxu0  ;;  %v12274_v2 = vpop.f32.mrf.mxu1 }
 0x5f2   :  { %v2365_v62 = vsel %vm1115_vm7, %v2253_v61, -inf }
 0x5f3   :  { %v12269_v4 = vpop.f32.mrf.mxu0  ;;  %2366 = vmax.xlane.f32.xlu0 %v2365_v62  ;;  %v2255_v7 = vpop.f32.mrf.mxu1 }
 0x5f5   :  { %v2298_v8 = vpop.f32.mrf.mxu0  ;;  %v12275_v9 = vpop.f32.mrf.mxu1 }
 0x5f6   :  { %v2299_v10 = vadd.f32 %v2298_v8, %v13874_v39 }
 0x5f7   :  { %v12280_v11 = vpop.f32.mrf.mxu0  ;;  %v2344_v12 = vpop.f32.mrf.mxu1 }
 0x5f8   :  { %v2368_v13 = vsel %vm1115_vm7, %v2299_v10, -inf  ;;  %v2345_v25 = vadd.f32 %v2344_v12, %v13871_v33 }
 0x5f9   :  { %2369 = vmax.xlane.f32.xlu1 %v2368_v13  ;;  %v2301_v15 = vpop.f32.mrf.mxu0  ;;  %v12286_v43 = vpop.f32.mrf.mxu1 }
 0x5fa   :  { %v2371_v16 = vsel %vm1115_vm7, %v2345_v25, -inf }
 0x5fb   :  { %v12281_v45 = vpop.f32.mrf.mxu0  ;;  %2372 = vmax.xlane.f32.xlu0 %v2371_v16  ;;  %v2347_v17 = vpop.f32.mrf.mxu1 }
 0x5fc   :  { %v1932_v45 = vcombine.high %v14035_v57, %v14035_v57 }
 0x5fd   :  { %v12287_v19 = vpop.f32.mrf.mxu1 }
 0x5fe   :  { %v1946_v17 = vrot.slane %v1932_v45, %v13701_v51 }
 0x66a   :  { %v2352_v20 = vpop.xlane.xlu1 %2351 }
 0x66b   :  { %v2374_v5 = vsub.f32 %v2023_v50, %v2352_v20 }
 0x66c   :  { %v2355_v22 = vpop.xlane.xlu0 %2354 }
 0x66d   :  { %v2382_v60 = vmul.f32 1.442695, %v2374_v5  ;;  %v2375_v24 = vsub.f32 %v2069_v21, %v2355_v22  ;;  %v1948_v5 = vcombine.high %v1946_v17, %v1946_v17  ;;  %v1976_v22 = vpack.c.bf16 %v1946_v17, %v1946_v17  ;;  %v1627_v17 = vld [vmem:[%s15620_s11] sm:$0xf] }
 0x66f   :  { %13247 = vpow2.f32 %v2382_v60  ;;  %v2384_v27 = vmul.f32 1.442695, %v2375_v24 }
 0x671   :  { %13249 = vpow2.f32 %v2384_v27 }
 0x672   :  { %v2358_v26 = vpop.xlane.xlu1 %2357 }
 0x673   :  { %v2376_v29 = vsub.f32 %v2115_v28, %v2358_v26 }
 0x674   :  { %v2361_v31 = vpop.xlane.xlu0 %2360 }
 0x675   :  { %v2386_v30 = vmul.f32 1.442695, %v2376_v29  ;;  %v2377_v41 = vsub.f32 %v2161_v32, %v2361_v31  ;;  %v1956_v29 = vrot.slane %v14021_v36, %v13701_v51  ;;  %v1977_v31 = vpack.c.bf16 %v1948_v5, %v1948_v5 }
 0x676   :  { %v2913_v5 = vsel %vm2864_vm9, %v1627_v17, 0 }
 0x677   :  { %13251 = vpow2.f32 %v2386_v30  ;;  %v2388_v44 = vmul.f32 1.442695, %v2377_v41  ;;  %v2542_v41 = vsel %vm1216_vm6, %v1976_v22, 0 }
 0x679   :  { %13253 = vpow2.f32 %v2388_v44 }
 0x67a   :  { %v2364_v47 = vpop.xlane.xlu1 %2363 }
 0x67b   :  { %v2378_v48 = vsub.f32 %v2207_v42, %v2364_v47 }
 0x67c   :  { %v13248_v49 = vpop.eup %13247  ;;  %v2367_v52 = vpop.xlane.xlu0 %2366 }
 0x67d   :  { %v2390_v38 = vmul.f32 1.442695, %v2378_v48  ;;  %v2398_v50 = vsel %vm1115_vm7, %v13248_v49, 0.0  ;;  %v2379_v54 = vsub.f32 %v2253_v61, %v2367_v52  ;;  %v1949_v48 = vcombine.high %v14021_v36, %v14021_v36 }
 0x67e   :  { %2399 = vadd.xlane.f32.xlu1 %v2398_v50  ;;  %v13250_v21 = vpop.eup %13249  ;;  %v1978_v52 = vpack.c.bf16 %v1956_v29, %v1956_v29 }
 0x67f   :  { %13255 = vpow2.f32 %v2390_v38  ;;  %v2392_v55 = vmul.f32 1.442695, %v2379_v54  ;;  %v2401_v28 = vsel %vm1115_vm7, %v13250_v21, 0.0  ;;  %v2588_v38 = vsel %vm1216_vm6, %v1977_v31, 0 }
 0x680   :  { %2402 = vadd.xlane.f32.xlu0 %v2401_v28  ;;  %v1963_v28 = vrot.slane %v1949_v48, %v13701_v51 }
 0x681   :  { %13257 = vpow2.f32 %v2392_v55 }
 0x682   :  { %v2370_v32 = vpop.xlane.xlu1 %2369 }
 0x683   :  { %v2380_v34 = vsub.f32 %v2299_v10, %v2370_v32 }
 0x684   :  { %v13252_v46 = vpop.eup %13251  ;;  %v2373_v63 = vpop.xlane.xlu0 %2372 }
 0x685   :  { %v2394_v59 = vmul.f32 1.442695, %v2380_v34  ;;  %v2404_v42 = vsel %vm1115_vm7, %v13252_v46, 0.0  ;;  %v2381_v2 = vsub.f32 %v2345_v25, %v2373_v63 }
 0x686   :  { %2405 = vadd.xlane.f32.xlu1 %v2404_v42  ;;  %v14084_v4 = vpop.eup %13253 }
 0x687   :  { %13259 = vpow2.f32 %v2394_v59  ;;  %v2396_v61 = vmul.f32 1.442695, %v2381_v2  ;;  %v2407_v62 = vsel %vm1115_vm7, %v14084_v4, 0.0  ;;  %v2634_v59 = vsel %vm1216_vm6, %v1978_v52, 0 }
 0x688   :  { %2408 = vadd.xlane.f32.xlu0 %v2407_v62  ;;  %v1965_v2 = vcombine.high %v1963_v28, %v1963_v28 }
 0x689   :  { %13261 = vpow2.f32 %v2396_v61  ;;  %v1980_v61 = vpack.c.bf16 %v1963_v28, %v1963_v28 }
 0x68c   :  { %v14088_v7 = vpop.eup %13255 }
 0x68d   :  { %v2410_v8 = vsel %vm1115_vm7, %v14088_v7, 0.0 }
 0x68e   :  { %2411 = vadd.xlane.f32.xlu1 %v2410_v8  ;;  %v14092_v9 = vpop.eup %13257 }
 0x68f   :  { %v2413_v10 = vsel %vm1115_vm7, %v14092_v9, 0.0 }
 0x690   :  { %2414 = vadd.xlane.f32.xlu0 %v2413_v10 }
 0x694   :  { %v14096_v11 = vpop.eup %13259 }
 0x695   :  { %v2416_v12 = vsel %vm1115_vm7, %v14096_v11, 0.0 }
 0x696   :  { %2417 = vadd.xlane.f32.xlu1 %v2416_v12  ;;  %v14100_v13 = vpop.eup %13261  ;;  %v1981_v12 = vpack.c.bf16 %v1965_v2, %v1965_v2 }
 0x697   :  { %v2419_v25 = vsel %vm1115_vm7, %v14100_v13, 0.0 }
 0x698   :  { %2420 = vadd.xlane.f32.xlu0 %v2419_v25  ;;  %v2726_v25 = vsel %vm1216_vm6, %v1980_v61, 0 }
 0x707   :  { %v2400_v15 = vpop.xlane.xlu1 %2399 }
 0x708   :  { %13263 = vrcp.f32 %v2400_v15 }
 0x709   :  { %v2403_v43 = vpop.xlane.xlu0 %2402 }
 0x70a   :  { %13265 = vrcp.f32 %v2403_v43  ;;  %v2772_v43 = vsel %vm1216_vm6, %v1981_v12, 0 }
 0x70f   :  { %v2406_v16 = vpop.xlane.xlu1 %2405 }
 0x710   :  { %13267 = vrcp.f32 %v2406_v16 }
 0x711   :  { %v2409_v19 = vpop.xlane.xlu0 %2408 }
 0x712   :  { %13269 = vrcp.f32 %v2409_v19 }
 0x715   :  { %v13264_v20 = vpop.eup %13263 }
 0x716   :  { %v2430_v60 = vmul.f32 %v13264_v20, %v13248_v49  ;;  %v1964_v49 = vcombine.high %v1956_v29, %v1956_v29 }
 0x717   :  { %v2412_v24 = vpop.xlane.xlu1 %2411  ;;  %v13266_v27 = vpop.eup %13265 }
 0x718   :  { %13271 = vrcp.f32 %v2412_v24  ;;  %v2438_v26 = vpack.c.bf16 %v2430_v60, %v2430_v60  ;;  %v2431_v30 = vmul.f32 %v13266_v27, %v13250_v21  ;;  %v1979_v36 = vpack.c.bf16 %v1964_v49, %v1964_v49 }
 0x719   :  { %v2415_v57 = vpop.xlane.xlu0 %2414 }
 0x71a   :  { %12291 = vmatmul.mubr.msk.bf16.vlgmr.msra.gmra.mxu0 %vm1212_vm8, %v2438_v26  ;;  %13273 = vrcp.f32 %v2415_v57  ;;  %v2439_v44 = vpack.c.bf16 %v2431_v30, %v2431_v30  ;;  %v2680_v42 = vsel %vm1216_vm6, %v1979_v36, 0 }
 0x71b   :  { %12301 = vmatpush3.bf16.msra.mxu0 %v2542_v41  ;;  %12302 = vmatprep.mubr.msk.bf16.mxu0 %vm13511_vm3, %v13510_v6 }
 0x71c   :  { %12312 = vmatprep.subr.bf16.mxu0 %v13510_v6  ;;  %12297 = vmatmul.mubr.msk.bf16.vlgmr.msra.gmra.mxu1 %vm1212_vm8, %v2439_v44 }
 0x71d   :  { %v13268_v47 = vpop.eup %13267  ;;  %12307 = vmatpush3.bf16.msra.mxu1 %v2588_v38  ;;  %12308 = vmatprep.mubr.msk.bf16.mxu1 %vm13511_vm3, %v13510_v6 }
 0x71e   :  { %v2432_v50 = vmul.f32 %v13268_v47, %v13252_v46  ;;  %12318 = vmatprep.subr.bf16.mxu1 %v13510_v6 }
 0x71f   :  { %v2418_v54 = vpop.xlane.xlu1 %2417  ;;  %v13270_v21 = vpop.eup %13269 }
 0x720   :  { %13275 = vrcp.f32 %v2418_v54  ;;  %v2440_v55 = vpack.c.bf16 %v2432_v50, %v2432_v50  ;;  %v2433_v32 = vmul.f32 %v13270_v21, %v14084_v4 }
 0x721   :  { %v2421_v34 = vpop.xlane.xlu0 %2420 }
 0x722   :  { %12303 = vmatmul.mubr.msk.bf16.vlgmr.msra.gmra.mxu0 %vm1212_vm8, %v2440_v55  ;;  %13277 = vrcp.f32 %v2421_v34  ;;  %v2441_v46 = vpack.c.bf16 %v2433_v32, %v2433_v32 }
 0x723   :  { %12313 = vmatpush3.bf16.msra.mxu0 %v2634_v59  ;;  %12314 = vmatprep.mubr.msk.bf16.mxu0 %vm13511_vm3, %v13510_v6 }
 0x724   :  { %12324 = vmatprep.subr.bf16.mxu0 %v13510_v6  ;;  %12309 = vmatmul.mubr.msk.bf16.vlgmr.msra.gmra.mxu1 %vm1212_vm8, %v2441_v46 }
 0x725   :  { %v13272_v63 = vpop.eup %13271  ;;  %12319 = vmatpush3.bf16.msra.mxu1 %v2680_v42  ;;  %12320 = vmatprep.mubr.msk.bf16.mxu1 %vm13511_vm3, %v13510_v6 }
 0x726   :  { %v2434_v4 = vmul.f32 %v13272_v63, %v14088_v7  ;;  %12330 = vmatprep.subr.bf16.mxu1 %v13510_v6 }
 0x727   :  { %v13274_v62 = vpop.eup %13273 }
 0x728   :  { %v2442_v8 = vpack.c.bf16 %v2434_v4, %v2434_v4  ;;  %v2435_v10 = vmul.f32 %v13274_v62, %v14092_v9 }
 0x72a   :  { %12315 = vmatmul.mubr.msk.bf16.vlgmr.msra.gmra.mxu0 %vm1212_vm8, %v2442_v8  ;;  %v2443_v15 = vpack.c.bf16 %v2435_v10, %v2435_v10 }
 0x72b   :  { %12325 = vmatpush3.bf16.msra.mxu0 %v2726_v25  ;;  %12326 = vmatprep.mubr.msk.bf16.mxu0 %vm13511_vm3, %v13510_v6 }
 0x72c   :  { %12336 = vmatprep.subr.bf16.mxu0 %v13510_v6  ;;  %12321 = vmatmul.mubr.msk.bf16.vlgmr.msra.gmra.mxu1 %vm1212_vm8, %v2443_v15 }
 0x72d   :  { %v13276_v7 = vpop.eup %13275  ;;  %12331 = vmatpush3.bf16.msra.mxu1 %v2772_v43  ;;  %12332 = vmatprep.mubr.msk.bf16.mxu1 %vm13511_vm3, %v13510_v6 }
 0x72e   :  { %v2436_v9 = vmul.f32 %v13276_v7, %v14096_v11  ;;  %12342 = vmatprep.subr.bf16.mxu1 %v13510_v6  ;;  %v13167_v11 = vld [vmem:[%s15616_s7 + $0x28] sm:$0xff]  }
 0x72f   :  { %v13278_v45 = vpop.eup %13277 }
 0x730   :  { %v2444_v16 = vpack.c.bf16 %v2436_v9, %v2436_v9  ;;  %v2437_v19 = vmul.f32 %v13278_v45, %v14100_v13  ;;  %v13168_v13 = vld [vmem:[%s15616_s7 + $0x20] sm:$0xff]  }
 0x732   :  { %12327 = vmatmul.mubr.msk.bf16.vlgmr.msra.gmra.mxu0 %vm1212_vm8, %v2444_v16  ;;  %v2445_v20 = vpack.c.bf16 %v2437_v19, %v2437_v19  ;;  %v13169_v19 = vld [vmem:[%s15644_s0 + $0x28] sm:$0xff]  }
 0x733   :  { %12338 = vmatprep.mubr.msk.bf16.mxu0 %vm13511_vm3, %v13510_v6 }
 0x734   :  { %12333 = vmatmul.mubr.msk.bf16.vlgmr.msra.gmra.mxu1 %vm1212_vm8, %v2445_v20 }
 0x735   :  { %12343 = vmatpush3.bf16.msra.mxu1 %v2913_v5  ;;  %12344 = vmatprep.mubr.msk.bf16.mxu1 %vm13511_vm3, %v13510_v6 }
 0x736   :  { %12356 = vmatprep.subr.bf16.mxu1 %v13510_v6 }
 0x73c   :  { %12345 = vmatmul.mubr.msk.bf16.vlgmr.msra.gmra.mxu1 %vm746_vm5, %v14002_v58  ;;  %v11385_v58 = vld [vmem:[%s15620_s11 + $0x4] sm:$0xf] }
 0x73d   :  { %12357 = vmatpush3.bf16.msra.mxu1 %v13167_v11  ;;  %12360 = vmatprep.mubr.msk.bf16.mxu1 %vm13511_vm3, %v13510_v6  ;;  %v2866_v60 = vsel %vm2864_vm9, %v11385_v58, 0 }
 0x73e   :  { %12358 = vmatprep.subr.bf16.mxu1 %v13510_v6  ;;  %12337 = vmatpush3.bf16.msra.mxu0 %v2866_v60 }
 0x73f   :  { %12348 = vmatprep.subr.bf16.mxu0 %v13510_v6 }
 0x741   :  { %12359 = vmatpush3.bf16.msra.mxu1 %v13168_v13  ;;  %v13170_v13 = vld [vmem:[%s15644_s0 + $0x20] sm:$0xff]  }
 0x742   :  { %12372 = vmatprep.subr.bf16.mxu1 %v13510_v6 }
 0x744   :  { %12361 = vmatmul.mubr.msk.bf16.vlgmr.msra.gmra.mxu1 %vm417_vm4, %v13716_v3 }
 0x745   :  { %12374 = vmatprep.mubr.msk.bf16.mxu1 %vm13511_vm3, %v13510_v6 }
 0x7da   :  { %v2486_v22 = vpop.f32.mrf.mxu0 }
 0x7dc   :  { %v12292_v24 = vpop.f32.mrf.mxu0  ;;  %v2532_v27 = vpop.f32.mrf.mxu1 }
 0x7dd   :  { %v2822_v42 = vcombine.low %v2486_v22, %v2532_v27  ;;  %v11402_v22 = vld [vmem:[%s15617_s8 + $0x2] ss:$0 sm:$0xff]  ;;  %v13171_v24 = vld [vmem:[%s15618_s9 + $0x28] sm:$0xff]  }
 0x7de   :  { %v2489_v26 = vpop.f32.mrf.mxu0  ;;  %v12298_v29 = vpop.f32.mrf.mxu1 }
 0x7df   :  { %v2830_v25 = vrot.slane %v2822_v42, %v13701_v51 }
 0x7e0   :  { %v12293_v30 = vpop.f32.mrf.mxu0  ;;  %v2535_v31 = vpop.f32.mrf.mxu1 }
 0x7e1   :  { %v13172_v30 = vld [vmem:[%s15618_s9 + $0x20] sm:$0xff]  }
 0x7e2   :  { %v2578_v57 = vpop.f32.mrf.mxu0  ;;  %v12299_v41 = vpop.f32.mrf.mxu1 }
 0x7e4   :  { %v12304_v44 = vpop.f32.mrf.mxu0  ;;  %v2624_v47 = vpop.f32.mrf.mxu1 }
 0x7e5   :  { %v2823_v59 = vcombine.low %v2578_v57, %v2624_v47 }
 0x7e6   :  { %v2581_v48 = vpop.f32.mrf.mxu0  ;;  %v12310_v49 = vpop.f32.mrf.mxu1 }
 0x7e7   :  { %v2837_v62 = vrot.slane %v2823_v59, %v13701_v51 }
 0x7e8   :  { %v12305_v38 = vpop.f32.mrf.mxu0  ;;  %v2627_v52 = vpop.f32.mrf.mxu1 }
 0x7e9   :  { %v2838_v45 = vcombine.low %v2830_v25, %v2837_v62 }
 0x7ea   :  { %v2670_v50 = vpop.f32.mrf.mxu0  ;;  %v12311_v54 = vpop.f32.mrf.mxu1 }
 0x7ec   :  { %v12316_v21 = vpop.f32.mrf.mxu0  ;;  %v2716_v55 = vpop.f32.mrf.mxu1 }
 0x7ed   :  { %v2839_v2 = vcombine.low %v2670_v50, %v2716_v55 }
 0x7ee   :  { %v2673_v28 = vpop.f32.mrf.mxu0  ;;  %v12322_v36 = vpop.f32.mrf.mxu1 }
 0x7ef   :  { %v2847_v15 = vrot.slane %v2839_v2, %v13701_v51 }
 0x7f0   :  { %v12317_v32 = vpop.f32.mrf.mxu0  ;;  %v2719_v34 = vpop.f32.mrf.mxu1 }
 0x7f1   :  { %v11393_v32 = vld [vmem:[%s15615_s6 + $0x2] ss:$0 sm:$0xff] }
 0x7f2   :  { %v2762_v46 = vpop.f32.mrf.mxu0  ;;  %v12323_v63 = vpop.f32.mrf.mxu1 }
 0x7f4   :  { %v12328_v4 = vpop.f32.mrf.mxu0  ;;  %v2808_v61 = vpop.f32.mrf.mxu1 }
 0x7f5   :  { %v2840_v8 = vcombine.low %v2762_v46, %v2808_v61 }
 0x7f6   :  { %v2765_v10 = vpop.f32.mrf.mxu0  ;;  %v12334_v12 = vpop.f32.mrf.mxu1 }
 0x7f7   :  { %v2854_v7 = vrot.slane %v2840_v8, %v13701_v51 }
 0x7f8   :  { %v12329_v43 = vpop.f32.mrf.mxu0  ;;  %v2811_v9 = vpop.f32.mrf.mxu1 }
 0x7f9   :  { %v2855_v16 = vcombine.low %v2847_v15, %v2854_v7 }
 0x7fa   :  { %v12335_v17 = vpop.f32.mrf.mxu1 }
 0x7fb   :  { %v2858_v20 = vpack.c.bf16 %v2855_v16, %v2838_v45 }
 0x7fc   :  { %v14186_v5 = vpop.f32.mrf.mxu1 }
 0x7fd   :  { %12339 = vmatmul.mubr.msk.bf16.vlgmr.msra.gmra.mxu0 %vm746_vm5, %v2858_v20 }
 0x7fe   :  { %v12346_v11 = vpop.f32.mrf.mxu1  ;;  %12349 = vmatpush3.bf16.msra.mxu0 %v13169_v19  ;;  %12352 = vmatprep.mubr.msk.bf16.mxu0 %vm13511_vm3, %v13510_v6 }
 0x7ff   :  { %12350 = vmatprep.subr.bf16.mxu0 %v13510_v6 }
 0x800   :  { %v14195_v58 = vpop.f32.mrf.mxu1 }
 0x802   :  { %v12347_v60 = vpop.f32.mrf.mxu1  ;;  %12351 = vmatpush3.bf16.msra.mxu0 %v13170_v13 }
 0x803   :  { %12364 = vmatprep.subr.bf16.mxu0 %v13510_v6 }
 0x804   :  { %v3081_v27 = vpop.f32.mrf.mxu1 }
 0x805   :  { %v3082_v26 = vadd.f32 %v11402_v22, %v3081_v27  ;;  %12353 = vmatmul.mubr.msk.bf16.vlgmr.msra.gmra.mxu0 %vm417_vm4, %v13716_v3 }
 0x806   :  { %v12362_v29 = vpop.f32.mrf.mxu1  ;;  %12365 = vmatpush3.bf16.msra.mxu0 %v13171_v24  ;;  %12368 = vmatprep.mubr.msk.bf16.mxu0 %vm13511_vm3, %v13510_v6 }
 0x807   :  { %v3215_v31 = vrot.slane %v3082_v26, %v13701_v51  ;;  %12366 = vmatprep.subr.bf16.mxu0 %v13510_v6  ;;  %v3208_v54 = vcombine.high %v3082_v26, %v3082_v26  ;;  %v11411_v26 = vld [vmem:[%s15619_s10 + $0x2] ss:$0 sm:$0xff] }
 0x808   :  { %v3084_v57 = vpop.f32.mrf.mxu1 }
 0x809   :  { %v3223_v41 = vcombine.high %v3215_v31, %v3215_v31  ;;  %v3250_v44 = vpack.c.bf16 %v3215_v31, %v3215_v31  ;;  %v3085_v47 = vadd.f32 %v11402_v22, %v3084_v57  ;;  %v3222_v28 = vrot.slane %v3208_v54, %v13701_v51 }
 0x80a   :  { %v12363_v48 = vpop.f32.mrf.mxu1  ;;  %12367 = vmatpush3.bf16.msra.mxu0 %v13172_v30 }
 0x80b   :  { %v3251_v49 = vpack.c.bf16 %v3223_v41, %v3223_v41  ;;  %v3314_v38 = vsel %vm746_vm5, %v3250_v44, 0  ;;  %12378 = vmatprep.subr.bf16.mxu0 %v13510_v6  ;;  %v3224_v46 = vcombine.high %v3222_v28, %v3222_v28  ;;  %v3252_v4 = vpack.c.bf16 %v3222_v28, %v3222_v28 }
 0x80c   :  { %12373 = vmatpush3.bf16.xpose.msra.mxu1 %v3314_v38  ;;  %v3232_v62 = vrot.slane %v3085_v47, %v13701_v51  ;;  %v3225_v45 = vcombine.high %v3085_v47, %v3085_v47 }
 0x80d   :  { %12369 = vmatmul.mubr.msk.bf16.vlgmr.msra.gmra.mxu0 %vm417_vm4, %v13716_v3  ;;  %v3360_v52 = vsel %vm746_vm5, %v3251_v49, 0  ;;  %12384 = vmatprep.subr.bf16.mxu1 %v13510_v6  ;;  %v3253_v12 = vpack.c.bf16 %v3224_v46, %v3224_v46  ;;  %v3406_v43 = vsel %vm746_vm5, %v3252_v4, 0 }
 0x80e   :  { %12379 = vmatpush3.bf16.xpose.msra.mxu0 %v3360_v52  ;;  %12380 = vmatprep.mubr.msk.bf16.mxu0 %vm13511_vm3, %v13510_v6  ;;  %v3240_v16 = vcombine.high %v3232_v62, %v3232_v62  ;;  %v3254_v20 = vpack.c.bf16 %v3232_v62, %v3232_v62  ;;  %v3239_v22 = vrot.slane %v3225_v45, %v13701_v51 }
 0x80f   :  { %12390 = vmatprep.subr.bf16.mxu0 %v13510_v6  ;;  %v3452_v17 = vsel %vm746_vm5, %v3253_v12, 0 }
 0x810   :  { %v3255_v24 = vpack.c.bf16 %v3240_v16, %v3240_v16  ;;  %v3498_v41 = vsel %vm746_vm5, %v3254_v20, 0  ;;  %v3241_v48 = vcombine.high %v3239_v22, %v3239_v22  ;;  %v3256_v52 = vpack.c.bf16 %v3239_v22, %v3239_v22 }
 0x812   :  { %v3544_v47 = vsel %vm746_vm5, %v3255_v24, 0  ;;  %v3257_v28 = vpack.c.bf16 %v3241_v48, %v3241_v48 }
 0x814   :  { %v3636_v46 = vsel %vm746_vm5, %v3257_v28, 0 }
 0x8bd   :  { %v14222_v50 = vpop.f32.mrf.mxu0 }
 0x8bf   :  { %v12340_v21 = vpop.f32.mrf.mxu0 }
 0x8c1   :  { %v14224_v55 = vpop.f32.mrf.mxu0 }
 0x8c3   :  { %v12341_v36 = vpop.f32.mrf.mxu0 }
 0x8c5   :  { %v3015_v34 = vpop.f32.mrf.mxu0 }
 0x8c6   :  { %v3016_v59 = vadd.f32 %v11393_v32, %v3015_v34  ;;  %v3590_v34 = vsel %vm746_vm5, %v3256_v52, 0 }
 0x8c7   :  { %v12354_v63 = vpop.f32.mrf.mxu0 }
 0x8c8   :  { %v3156_v42 = vcombine.high %v3016_v59, %v3016_v59  ;;  %v3163_v2 = vrot.slane %v3016_v59, %v13701_v51 }
 0x8c9   :  { %v3018_v61 = vpop.f32.mrf.mxu0 }
 0x8ca   :  { %v3171_v8 = vcombine.high %v3163_v2, %v3163_v2  ;;  %v3198_v10 = vpack.c.bf16 %v3163_v2, %v3163_v2  ;;  %v3170_v15 = vrot.slane %v3156_v42, %v13701_v51  ;;  %v3019_v13 = vadd.f32 %v11393_v32, %v3018_v61 }
 0x8cb   :  { %v12355_v25 = vpop.f32.mrf.mxu0 }
 0x8cc   :  { %v3199_v7 = vpack.c.bf16 %v3171_v8, %v3171_v8  ;;  %12375 = vmatmul.mubr.msk.bf16.vlgmr.msra.gmra.mxu1 %vm746_vm5, %v3198_v10  ;;  %v3172_v11 = vcombine.high %v3170_v15, %v3170_v15  ;;  %v3200_v27 = vpack.c.bf16 %v3170_v15, %v3170_v15  ;;  %v3180_v57 = vrot.slane %v3019_v13, %v13701_v51 }
 0x8cd   :  { %12385 = vmatpush3.bf16.xpose.msra.mxu1 %v3406_v43  ;;  %v3147_v9 = vpop.f32.mrf.mxu0  ;;  %12386 = vmatprep.mubr.msk.bf16.mxu1 %vm13511_vm3, %v13510_v6  ;;  %v3173_v49 = vcombine.high %v3019_v13, %v3019_v13 }
 0x8ce   :  { %12381 = vmatmul.mubr.msk.bf16.vlgmr.msra.gmra.mxu0 %vm746_vm5, %v3199_v7  ;;  %12396 = vmatprep.subr.bf16.mxu1 %v13510_v6  ;;  %v3201_v31 = vpack.c.bf16 %v3172_v11, %v3172_v11  ;;  %v14254_v44 = vadd.f32 %v11411_v26, %v3147_v9  ;;  %v3188_v38 = vcombine.high %v3180_v57, %v3180_v57 }
 0x8cf   :  { %12391 = vmatpush3.bf16.xpose.msra.mxu0 %v3452_v17  ;;  %v12370_v19 = vpop.f32.mrf.mxu0  ;;  %12392 = vmatprep.mubr.msk.bf16.mxu0 %vm13511_vm3, %v13510_v6  ;;  %v3202_v54 = vpack.c.bf16 %v3180_v57, %v3180_v57  ;;  %v3187_v36 = vrot.slane %v3173_v49, %v13701_v51 }
 0x8d0   :  { %12402 = vmatprep.subr.bf16.mxu0 %v13510_v6  ;;  %v3267_v21 = vrot.slane %v14254_v44, %v13701_v51  ;;  %v3203_v32 = vpack.c.bf16 %v3188_v38, %v3188_v38 }
 0x8d1   :  { %v3150_v60 = vpop.f32.mrf.mxu0  ;;  %v3189_v63 = vcombine.high %v3187_v36, %v3187_v36  ;;  %v3204_v2 = vpack.c.bf16 %v3187_v36, %v3187_v36 }
 0x8d2   :  { %v14247_v29 = vadd.f32 %v11411_v26, %v3150_v60  ;;  %v3275_v59 = vcombine.high %v3267_v21, %v3267_v21  ;;  %v3302_v42 = vpack.c.bf16 %v3267_v21, %v3267_v21 }
 0x8d3   :  { %v12371_v30 = vpop.f32.mrf.mxu0  ;;  %v3205_v61 = vpack.c.bf16 %v3189_v63, %v3189_v63 }
 0x8d4   :  { %12387 = vmatmul.mubr.msk.bf16.vlgmr.msra.gmra.mxu1 %vm746_vm5, %v3200_v27  ;;  %v3303_v4 = vpack.c.bf16 %v3275_v59, %v3275_v59  ;;  %v3778_v62 = vsel %vm1216_vm6, %v3302_v42, 0 }
 0x8d5   :  { %12397 = vmatpush3.bf16.xpose.msra.mxu1 %v3498_v41  ;;  %12398 = vmatprep.mubr.msk.bf16.mxu1 %vm13511_vm3, %v13510_v6 }
 0x8d6   :  { %12393 = vmatmul.mubr.msk.bf16.vlgmr.msra.gmra.mxu0 %vm746_vm5, %v3201_v31  ;;  %12408 = vmatprep.subr.bf16.mxu1 %v13510_v6  ;;  %v3824_v8 = vsel %vm1216_vm6, %v3303_v4, 0 }
 0x8d7   :  { %12403 = vmatpush3.bf16.xpose.msra.mxu0 %v3544_v47  ;;  %12404 = vmatprep.mubr.msk.bf16.mxu0 %vm13511_vm3, %v13510_v6 }
 0x8d8   :  { %12414 = vmatprep.subr.bf16.mxu0 %v13510_v6 }
 0x8dc   :  { %12399 = vmatmul.mubr.msk.bf16.vlgmr.msra.gmra.mxu1 %vm746_vm5, %v3202_v54 }
 0x8dd   :  { %12409 = vmatpush3.bf16.xpose.msra.mxu1 %v3590_v34  ;;  %12410 = vmatprep.mubr.msk.bf16.mxu1 %vm13511_vm3, %v13510_v6 }
 0x8de   :  { %12405 = vmatmul.mubr.msk.bf16.vlgmr.msra.gmra.mxu0 %vm746_vm5, %v3203_v32  ;;  %12420 = vmatprep.subr.bf16.mxu1 %v13510_v6 }
 0x8df   :  { %12415 = vmatpush3.bf16.xpose.msra.mxu0 %v3636_v46  ;;  %12416 = vmatprep.mubr.msk.bf16.mxu0 %vm13511_vm3, %v13510_v6 }
 0x8e0   :  { %12426 = vmatprep.subr.bf16.mxu0 %v13510_v6 }
 0x8e4   :  { %12411 = vmatmul.mubr.msk.bf16.vlgmr.msra.gmra.mxu1 %vm746_vm5, %v3204_v2 }
 0x8e5   :  { %12421 = vmatpush3.bf16.msra.mxu1 %v3778_v62  ;;  %12422 = vmatprep.mubr.msk.bf16.mxu1 %vm13511_vm3, %v13510_v6 }
 0x8e6   :  { %12417 = vmatmul.mubr.msk.bf16.vlgmr.msra.gmra.mxu0 %vm746_vm5, %v3205_v61  ;;  %12432 = vmatprep.subr.bf16.mxu1 %v13510_v6 }
 0x8e7   :  { %12427 = vmatpush3.bf16.msra.mxu0 %v3824_v8  ;;  %12428 = vmatprep.mubr.msk.bf16.mxu0 %vm13511_vm3, %v13510_v6 }
 0x8e8   :  { %12438 = vmatprep.subr.bf16.mxu0 %v13510_v6 }
 0x98c   :  { %v3350_v10 = vpop.f32.mrf.mxu1 }
 0x98d   :  { %v3351_v12 = vadd.f32 %v3350_v10, %v13828_v40 }
 0x98e   :  { %v12376_v25 = vpop.f32.mrf.mxu1  ;;  %v3396_v15 = vpop.f32.mrf.mxu0 }
 0x98f   :  { %v3397_v7 = vadd.f32 %v3396_v15, %v13824_v35  ;;  %v3678_v43 = vsel %vm1115_vm7, %v3351_v12, -inf }
 0x990   :  { %v12382_v9 = vpop.f32.mrf.mxu0  ;;  %3679 = vmax.xlane.f32.xlu1 %v3678_v43  ;;  %v3353_v45 = vpop.f32.mrf.mxu1 }
 0x991   :  { %v3681_v16 = vsel %vm1115_vm7, %v3397_v7, -inf }
 0x992   :  { %3682 = vmax.xlane.f32.xlu0 %v3681_v16  ;;  %v12377_v17 = vpop.f32.mrf.mxu1  ;;  %v3399_v19 = vpop.f32.mrf.mxu0 }
 0x994   :  { %v12383_v20 = vpop.f32.mrf.mxu0  ;;  %v3442_v11 = vpop.f32.mrf.mxu1 }
 0x995   :  { %v3443_v13 = vadd.f32 %v3442_v11, %v13841_v53 }
 0x996   :  { %v12388_v60 = vpop.f32.mrf.mxu1  ;;  %v3488_v22 = vpop.f32.mrf.mxu0 }
 0x997   :  { %v3489_v24 = vadd.f32 %v3488_v22, %v13844_v56  ;;  %v3684_v27 = vsel %vm1115_vm7, %v3443_v13, -inf }
 0x998   :  { %v12394_v26 = vpop.f32.mrf.mxu0  ;;  %3685 = vmax.xlane.f32.xlu1 %v3684_v27  ;;  %v3445_v30 = vpop.f32.mrf.mxu1 }
 0x999   :  { %v3687_v31 = vsel %vm1115_vm7, %v3489_v24, -inf }
 0x99a   :  { %3688 = vmax.xlane.f32.xlu0 %v3687_v31  ;;  %v12389_v57 = vpop.f32.mrf.mxu1  ;;  %v3491_v41 = vpop.f32.mrf.mxu0 }
 0x99c   :  { %v12395_v47 = vpop.f32.mrf.mxu0  ;;  %v3534_v48 = vpop.f32.mrf.mxu1 }
 0x99d   :  { %v3535_v49 = vadd.f32 %v3534_v48, %v13863_v18 }
 0x99e   :  { %v12400_v38 = vpop.f32.mrf.mxu1  ;;  %v3580_v52 = vpop.f32.mrf.mxu0 }
 0x99f   :  { %v3581_v54 = vadd.f32 %v3580_v52, %v13860_v14  ;;  %v3690_v21 = vsel %vm1115_vm7, %v3535_v49, -inf }
 0x9a0   :  { %v12406_v28 = vpop.f32.mrf.mxu0  ;;  %3691 = vmax.xlane.f32.xlu1 %v3690_v21  ;;  %v3537_v36 = vpop.f32.mrf.mxu1 }
 0x9a1   :  { %v3693_v32 = vsel %vm1115_vm7, %v3581_v54, -inf }
 0x9a2   :  { %3694 = vmax.xlane.f32.xlu0 %v3693_v32  ;;  %v12401_v34 = vpop.f32.mrf.mxu1  ;;  %v3583_v59 = vpop.f32.mrf.mxu0 }
 0x9a4   :  { %v12407_v46 = vpop.f32.mrf.mxu0  ;;  %v3626_v63 = vpop.f32.mrf.mxu1 }
 0x9a5   :  { %v3627_v42 = vadd.f32 %v3626_v63, %v13874_v39 }
 0x9a6   :  { %v12412_v2 = vpop.f32.mrf.mxu1  ;;  %v3672_v4 = vpop.f32.mrf.mxu0 }
 0x9a7   :  { %v3673_v61 = vadd.f32 %v3672_v4, %v13871_v33  ;;  %v3696_v62 = vsel %vm1115_vm7, %v3627_v42, -inf }
 0x9a8   :  { %v12418_v8 = vpop.f32.mrf.mxu0  ;;  %3697 = vmax.xlane.f32.xlu1 %v3696_v62  ;;  %v3629_v10 = vpop.f32.mrf.mxu1 }
 0x9a9   :  { %v3699_v25 = vsel %vm1115_vm7, %v3673_v61, -inf }
 0x9aa   :  { %3700 = vmax.xlane.f32.xlu0 %v3699_v25  ;;  %v12413_v15 = vpop.f32.mrf.mxu1  ;;  %v3675_v43 = vpop.f32.mrf.mxu0 }
 0x9ac   :  { %v12419_v9 = vpop.f32.mrf.mxu0 }
 0x9ad   :  { %v3260_v9 = vcombine.high %v14254_v44, %v14254_v44 }
 0xa19   :  { %v3680_v45 = vpop.xlane.xlu1 %3679 }
 0xa1a   :  { %v3702_v16 = vsub.f32 %v3351_v12, %v3680_v45 }
 0xa1b   :  { %v3683_v17 = vpop.xlane.xlu0 %3682 }
 0xa1c   :  { %v3710_v19 = vmul.f32 1.442695, %v3702_v16  ;;  %v3703_v20 = vsub.f32 %v3397_v7, %v3683_v17  ;;  %v3274_v16 = vrot.slane %v3260_v9, %v13701_v51 }
 0xa1e   :  { %13279 = vpow2.f32 %v3710_v19  ;;  %v3712_v11 = vmul.f32 1.442695, %v3703_v20  ;;  %v3276_v19 = vcombine.high %v3274_v16, %v3274_v16 }
 0xa20   :  { %13281 = vpow2.f32 %v3712_v11 }
 0xa21   :  { %v3686_v60 = vpop.xlane.xlu1 %3685 }
 0xa22   :  { %v3704_v22 = vsub.f32 %v3443_v13, %v3686_v60  ;;  %v3304_v60 = vpack.c.bf16 %v3274_v16, %v3274_v16 }
 0xa23   :  { %v3689_v27 = vpop.xlane.xlu0 %3688 }
 0xa24   :  { %v3714_v26 = vmul.f32 1.442695, %v3704_v22  ;;  %v3705_v30 = vsub.f32 %v3489_v24, %v3689_v27  ;;  %v3284_v27 = vrot.slane %v14247_v29, %v13701_v51 }
 0xa26   :  { %13283 = vpow2.f32 %v3714_v26  ;;  %v3716_v31 = vmul.f32 1.442695, %v3705_v30 }
 0xa28   :  { %13285 = vpow2.f32 %v3716_v31 }
 0xa29   :  { %v3692_v57 = vpop.xlane.xlu1 %3691 }
 0xa2a   :  { %v3706_v41 = vsub.f32 %v3535_v49, %v3692_v57  ;;  %v3305_v57 = vpack.c.bf16 %v3276_v19, %v3276_v19 }
 0xa2b   :  { %v13280_v47 = vpop.eup %13279  ;;  %v3695_v48 = vpop.xlane.xlu0 %3694 }
 0xa2c   :  { %v3718_v38 = vmul.f32 1.442695, %v3706_v41  ;;  %v3707_v12 = vsub.f32 %v3581_v54, %v3695_v48  ;;  %v3726_v52 = vsel %vm1115_vm7, %v13280_v47, 0.0  ;;  %v3870_v41 = vsel %vm1216_vm6, %v3304_v60, 0 }
 0xa2d   :  { %v13282_v7 = vpop.eup %13281  ;;  %3727 = vadd.xlane.f32.xlu1 %v3726_v52 }
 0xa2e   :  { %13287 = vpow2.f32 %v3718_v38  ;;  %v3720_v21 = vmul.f32 1.442695, %v3707_v12  ;;  %v3729_v13 = vsel %vm1115_vm7, %v13282_v7, 0.0  ;;  %v3292_v38 = vcombine.high %v3284_v27, %v3284_v27 }
 0xa2f   :  { %3730 = vadd.xlane.f32.xlu0 %v3729_v13  ;;  %v3916_v12 = vsel %vm1216_vm6, %v3305_v57, 0 }
 0xa30   :  { %13289 = vpow2.f32 %v3720_v21 }
 0xa31   :  { %v3698_v24 = vpop.xlane.xlu1 %3697 }
 0xa32   :  { %v3708_v28 = vsub.f32 %v3627_v42, %v3698_v24 }
 0xa33   :  { %v13284_v36 = vpop.eup %13283  ;;  %v3701_v32 = vpop.xlane.xlu0 %3700 }
 0xa34   :  { %v3722_v34 = vmul.f32 1.442695, %v3708_v28  ;;  %v3709_v49 = vsub.f32 %v3673_v61, %v3701_v32  ;;  %v3732_v59 = vsel %vm1115_vm7, %v13284_v36, 0.0  ;;  %v3307_v28 = vpack.c.bf16 %v3292_v38, %v3292_v38 }
 0xa35   :  { %v14304_v46 = vpop.eup %13285  ;;  %3733 = vadd.xlane.f32.xlu1 %v3732_v59 }
 0xa36   :  { %13291 = vpow2.f32 %v3722_v34  ;;  %v3724_v54 = vmul.f32 1.442695, %v3709_v49  ;;  %v3735_v63 = vsel %vm1115_vm7, %v14304_v46, 0.0 }
 0xa37   :  { %3736 = vadd.xlane.f32.xlu0 %v3735_v63 }
 0xa38   :  { %13293 = vpow2.f32 %v3724_v54 }
 0xa3b   :  { %v14308_v2 = vpop.eup %13287 }
 0xa3c   :  { %v3738_v42 = vsel %vm1115_vm7, %v14308_v2, 0.0 }
 0xa3d   :  { %v14312_v4 = vpop.eup %13289  ;;  %3739 = vadd.xlane.f32.xlu1 %v3738_v42 }
 0xa3e   :  { %v3741_v61 = vsel %vm1115_vm7, %v14312_v4, 0.0 }
 0xa3f   :  { %3742 = vadd.xlane.f32.xlu0 %v3741_v61 }
 0xa43   :  { %v14316_v62 = vpop.eup %13291 }
 0xa44   :  { %v3744_v8 = vsel %vm1115_vm7, %v14316_v62, 0.0 }
 0xa45   :  { %v14320_v10 = vpop.eup %13293  ;;  %3745 = vadd.xlane.f32.xlu1 %v3744_v8 }
 0xa46   :  { %v3747_v25 = vsel %vm1115_vm7, %v14320_v10, 0.0 }
 0xa47   :  { %3748 = vadd.xlane.f32.xlu0 %v3747_v25 }
 0xab6   :  { %v3728_v15 = vpop.xlane.xlu1 %3727 }
 0xab7   :  { %13295 = vrcp.f32 %v3728_v15 }
 0xab8   :  { %v3731_v43 = vpop.xlane.xlu0 %3730 }
 0xab9   :  { %13297 = vrcp.f32 %v3731_v43 }
 0xabe   :  { %v3734_v45 = vpop.xlane.xlu1 %3733 }
 0xabf   :  { %13299 = vrcp.f32 %v3734_v45 }
 0xac0   :  { %v3737_v17 = vpop.xlane.xlu0 %3736 }
 0xac1   :  { %13301 = vrcp.f32 %v3737_v17 }
 0xac4   :  { %v13296_v20 = vpop.eup %13295 }
 0xac5   :  { %v3758_v11 = vmul.f32 %v13296_v20, %v13280_v47  ;;  %v3277_v47 = vcombine.high %v14247_v29, %v14247_v29 }
 0xac6   :  { %v13298_v22 = vpop.eup %13297  ;;  %v3740_v26 = vpop.xlane.xlu1 %3739 }
 0xac7   :  { %13303 = vrcp.f32 %v3740_v26  ;;  %v3766_v30 = vpack.c.bf16 %v3758_v11, %v3758_v11  ;;  %v3759_v31 = vmul.f32 %v13298_v22, %v13282_v7  ;;  %v3306_v7 = vpack.c.bf16 %v3284_v27, %v3284_v27  ;;  %v13173_v11 = vld [vmem:[%s15644_s0 + $0x38] sm:$0xff]   ;;  %v13176_v22 = vld [vmem:[%s15618_s9 + $0x30] sm:$0xff]   ;;  %v11431_v27 = vld [vmem:[%s15620_s11 + $0x8] sm:$0xf] }
 0xac8   :  { %v3743_v44 = vpop.xlane.xlu0 %3742  ;;  %v3291_v13 = vrot.slane %v3277_v47, %v13701_v51  ;;  %v4193_v26 = vsel %vm2864_vm9, %v11431_v27, 0 }
 0xac9   :  { %13305 = vrcp.f32 %v3743_v44  ;;  %12423 = vmatmul.mubr.msk.bf16.vlgmr.msra.gmra.mxu1 %vm1212_vm8, %v3766_v30  ;;  %v3767_v48 = vpack.c.bf16 %v3759_v31, %v3759_v31  ;;  %v3962_v59 = vsel %vm1216_vm6, %v3306_v7, 0 }
 0xaca   :  { %12433 = vmatpush3.bf16.msra.mxu1 %v3870_v41  ;;  %12434 = vmatprep.mubr.msk.bf16.mxu1 %vm13511_vm3, %v13510_v6  ;;  %v3293_v63 = vcombine.high %v3291_v13, %v3291_v13  ;;  %v3308_v61 = vpack.c.bf16 %v3291_v13, %v3291_v13 }
 0xacb   :  { %12429 = vmatmul.mubr.msk.bf16.vlgmr.msra.gmra.mxu0 %vm1212_vm8, %v3767_v48  ;;  %12444 = vmatprep.subr.bf16.mxu1 %v13510_v6 }
 0xacc   :  { %v13300_v52 = vpop.eup %13299  ;;  %12439 = vmatpush3.bf16.msra.mxu0 %v3916_v12  ;;  %12440 = vmatprep.mubr.msk.bf16.mxu0 %vm13511_vm3, %v13510_v6  ;;  %v3309_v43 = vpack.c.bf16 %v3293_v63, %v3293_v63  ;;  %v4054_v9 = vsel %vm1216_vm6, %v3308_v61, 0 }
 0xacd   :  { %v3760_v21 = vmul.f32 %v13300_v52, %v13284_v36  ;;  %12450 = vmatprep.subr.bf16.mxu0 %v13510_v6  ;;  %v4008_v36 = vsel %vm1216_vm6, %v3307_v28, 0 }
 0xace   :  { %v13302_v29 = vpop.eup %13301  ;;  %v3746_v24 = vpop.xlane.xlu1 %3745 }
 0xacf   :  { %v3768_v32 = vpack.c.bf16 %v3760_v21, %v3760_v21  ;;  %13307 = vrcp.f32 %v3746_v24  ;;  %v3761_v34 = vmul.f32 %v13302_v29, %v14304_v46 }
 0xad0   :  { %v3749_v49 = vpop.xlane.xlu0 %3748 }
 0xad1   :  { %13309 = vrcp.f32 %v3749_v49  ;;  %12435 = vmatmul.mubr.msk.bf16.vlgmr.msra.gmra.mxu1 %vm1212_vm8, %v3768_v32  ;;  %v3769_v54 = vpack.c.bf16 %v3761_v34, %v3761_v34 }
 0xad2   :  { %12445 = vmatpush3.bf16.msra.mxu1 %v3962_v59  ;;  %12446 = vmatprep.mubr.msk.bf16.mxu1 %vm13511_vm3, %v13510_v6 }
 0xad3   :  { %12441 = vmatmul.mubr.msk.bf16.vlgmr.msra.gmra.mxu0 %vm1212_vm8, %v3769_v54  ;;  %12456 = vmatprep.subr.bf16.mxu1 %v13510_v6 }
 0xad4   :  { %v13304_v42 = vpop.eup %13303  ;;  %12451 = vmatpush3.bf16.msra.mxu0 %v4008_v36  ;;  %12452 = vmatprep.mubr.msk.bf16.mxu0 %vm13511_vm3, %v13510_v6 }
 0xad5   :  { %v3762_v46 = vmul.f32 %v13304_v42, %v14308_v2  ;;  %12462 = vmatprep.subr.bf16.mxu0 %v13510_v6  ;;  %v4100_v2 = vsel %vm1216_vm6, %v3309_v43, 0 }
 0xad6   :  { %v13306_v8 = vpop.eup %13305 }
 0xad7   :  { %v3770_v25 = vpack.c.bf16 %v3762_v46, %v3762_v46  ;;  %v3763_v15 = vmul.f32 %v13306_v8, %v14312_v4 }
 0xad9   :  { %12447 = vmatmul.mubr.msk.bf16.vlgmr.msra.gmra.mxu1 %vm1212_vm8, %v3770_v25  ;;  %v3771_v45 = vpack.c.bf16 %v3763_v15, %v3763_v15 }
 0xada   :  { %12457 = vmatpush3.bf16.msra.mxu1 %v4054_v9  ;;  %12458 = vmatprep.mubr.msk.bf16.mxu1 %vm13511_vm3, %v13510_v6 }
 0xadb   :  { %12453 = vmatmul.mubr.msk.bf16.vlgmr.msra.gmra.mxu0 %vm1212_vm8, %v3771_v45  ;;  %12468 = vmatprep.subr.bf16.mxu1 %v13510_v6 }
 0xadc   :  { %v13308_v16 = vpop.eup %13307  ;;  %12463 = vmatpush3.bf16.msra.mxu0 %v4100_v2  ;;  %12464 = vmatprep.mubr.msk.bf16.mxu0 %vm13511_vm3, %v13510_v6 }
 0xadd   :  { %v3764_v4 = vmul.f32 %v13308_v16, %v14316_v62  ;;  %12474 = vmatprep.subr.bf16.mxu0 %v13510_v6  ;;  %v13174_v62 = vld [vmem:[%s15644_s0 + $0x30] sm:$0xff]  }
 0xade   :  { %v13310_v17 = vpop.eup %13309 }
 0xadf   :  { %v3772_v19 = vpack.c.bf16 %v3764_v4, %v3764_v4  ;;  %v3765_v20 = vmul.f32 %v13310_v17, %v14320_v10  ;;  %v13175_v10 = vld [vmem:[%s15618_s9 + $0x38] sm:$0xff]  }
 0xae1   :  { %v3773_v60 = vpack.c.bf16 %v3765_v20, %v3765_v20  ;;  %12459 = vmatmul.mubr.msk.bf16.vlgmr.msra.gmra.mxu1 %vm1212_vm8, %v3772_v19 }
 0xae2   :  { %12470 = vmatprep.mubr.msk.bf16.mxu1 %vm13511_vm3, %v13510_v6  ;;  %12469 = vmatpush3.bf16.msra.mxu1 %v4193_v26 }
 0xae3   :  { %12465 = vmatmul.mubr.msk.bf16.vlgmr.msra.gmra.mxu0 %vm1212_vm8, %v3773_v60  ;;  %12482 = vmatprep.subr.bf16.mxu1 %v13510_v6 }
 0xae4   :  { %12475 = vmatpush3.bf16.msra.mxu0 %v13173_v11  ;;  %12478 = vmatprep.mubr.msk.bf16.mxu0 %vm13511_vm3, %v13510_v6 }
 0xae5   :  { %12476 = vmatprep.subr.bf16.mxu0 %v13510_v6 }
 0xae8   :  { %12477 = vmatpush3.bf16.msra.mxu0 %v13174_v62 }
 0xae9   :  { %12490 = vmatprep.subr.bf16.mxu0 %v13510_v6 }
 0xaeb   :  { %12479 = vmatmul.mubr.msk.bf16.vlgmr.msra.gmra.mxu0 %vm417_vm4, %v13716_v3 }
 0xaec   :  { %12491 = vmatpush3.bf16.msra.mxu0 %v13175_v10  ;;  %12494 = vmatprep.mubr.msk.bf16.mxu0 %vm13511_vm3, %v13510_v6 }
 0xaed   :  { %12492 = vmatprep.subr.bf16.mxu0 %v13510_v6 }
 0xaf0   :  { %12493 = vmatpush3.bf16.msra.mxu0 %v13176_v22  ;;  %v13177_v22 = vld [vmem:[%s15616_s7 + $0x38] sm:$0xff]  }
 0xaf1   :  { %12504 = vmatprep.subr.bf16.mxu0 %v13510_v6 }
 0xaf3   :  { %12495 = vmatmul.mubr.msk.bf16.vlgmr.msra.gmra.mxu0 %vm417_vm4, %v13716_v3 }
 0xaf4   :  { %12506 = vmatprep.mubr.msk.bf16.mxu0 %vm13511_vm3, %v13510_v6 }
 0xb89   :  { %v3814_v30 = vpop.f32.mrf.mxu1 }
 0xb8b   :  { %v12424_v31 = vpop.f32.mrf.mxu1  ;;  %v3860_v57 = vpop.f32.mrf.mxu0 }
 0xb8c   :  { %v4150_v8 = vcombine.low %v3814_v30, %v3860_v57  ;;  %v13178_v31 = vld [vmem:[%s15616_s7 + $0x30] sm:$0xff]  }
 0xb8d   :  { %v3817_v44 = vpop.f32.mrf.mxu1  ;;  %v12430_v41 = vpop.f32.mrf.mxu0 }
 0xb8e   :  { %v4158_v4 = vrot.slane %v4150_v8, %v13701_v51 }
 0xb8f   :  { %v12425_v48 = vpop.f32.mrf.mxu1  ;;  %v3863_v47 = vpop.f32.mrf.mxu0 }
 0xb91   :  { %v12431_v38 = vpop.f32.mrf.mxu0  ;;  %v3906_v12 = vpop.f32.mrf.mxu1 }
 0xb92   :  { %v14428_v38 = vld [vmem:[%s15619_s10 + $0x3] ss:$0 sm:$0xff] }
 0xb93   :  { %v12436_v52 = vpop.f32.mrf.mxu1  ;;  %v3952_v7 = vpop.f32.mrf.mxu0 }
 0xb94   :  { %v4151_v42 = vcombine.low %v3906_v12, %v3952_v7  ;;  %v2950_v7 = vadd.f32 %v14186_v5, %v14222_v50 }
 0xb95   :  { %v3909_v21 = vpop.f32.mrf.mxu1  ;;  %v12442_v29 = vpop.f32.mrf.mxu0 }
 0xb96   :  { %v4165_v9 = vrot.slane %v4151_v42, %v13701_v51 }
 0xb97   :  { %v12437_v13 = vpop.f32.mrf.mxu1  ;;  %v3955_v24 = vpop.f32.mrf.mxu0 }
 0xb98   :  { %v4166_v60 = vcombine.low %v4158_v4, %v4165_v9  ;;  %v2953_v13 = vadd.f32 %v14195_v58, %v14224_v55 }
 0xb99   :  { %v12443_v28 = vpop.f32.mrf.mxu0  ;;  %v3998_v32 = vpop.f32.mrf.mxu1 }
 0xb9b   :  { %v12448_v34 = vpop.f32.mrf.mxu1  ;;  %v4044_v49 = vpop.f32.mrf.mxu0 }
 0xb9c   :  { %v4167_v25 = vcombine.low %v3998_v32, %v4044_v49  ;;  %v11447_v34 = vld [vmem:[%s15617_s8 + $0x3] ss:$0 sm:$0xff] }
 0xb9d   :  { %v4001_v59 = vpop.f32.mrf.mxu1  ;;  %v12454_v54 = vpop.f32.mrf.mxu0  ;;  %v11438_v49 = vld [vmem:[%s15615_s6 + $0x3] ss:$0 sm:$0xff] }
 0xb9e   :  { %v4175_v17 = vrot.slane %v4167_v25, %v13701_v51 }
 0xb9f   :  { %v12449_v36 = vpop.f32.mrf.mxu1  ;;  %v4047_v63 = vpop.f32.mrf.mxu0 }
 0xba1   :  { %v12455_v46 = vpop.f32.mrf.mxu0  ;;  %v4090_v61 = vpop.f32.mrf.mxu1 }
 0xba3   :  { %v12460_v15 = vpop.f32.mrf.mxu1  ;;  %v4136_v43 = vpop.f32.mrf.mxu0 }
 0xba4   :  { %v4168_v45 = vcombine.low %v4090_v61, %v4136_v43 }
 0xba5   :  { %v4093_v2 = vpop.f32.mrf.mxu1  ;;  %v12466_v16 = vpop.f32.mrf.mxu0 }
 0xba6   :  { %v4182_v19 = vrot.slane %v4168_v45, %v13701_v51 }
 0xba7   :  { %v12461_v20 = vpop.f32.mrf.mxu1  ;;  %v4139_v11 = vpop.f32.mrf.mxu0 }
 0xba8   :  { %v4183_v62 = vcombine.low %v4175_v17, %v4182_v19 }
 0xba9   :  { %v12467_v10 = vpop.f32.mrf.mxu0 }
 0xbaa   :  { %v4186_v27 = vpack.c.bf16 %v4183_v62, %v4166_v60 }
 0xbab   :  { %v4297_v26 = vpop.f32.mrf.mxu0 }
 0xbac   :  { %12471 = vmatmul.mubr.msk.bf16.vlgmr.msra.gmra.mxu1 %vm746_vm5, %v4186_v27  ;;  %v4298_v54 = vadd.f32 %v11438_v49, %v4297_v26 }
 0xbad   :  { %v12480_v30 = vpop.f32.mrf.mxu0  ;;  %12483 = vmatpush3.bf16.msra.mxu1 %v13177_v22  ;;  %12486 = vmatprep.mubr.msk.bf16.mxu1 %vm13511_vm3, %v13510_v6 }
 0xbae   :  { %12484 = vmatprep.subr.bf16.mxu1 %v13510_v6  ;;  %v4445_v8 = vrot.slane %v4298_v54, %v13701_v51  ;;  %v4438_v2 = vcombine.high %v4298_v54, %v4298_v54 }
 0xbaf   :  { %v14416_v57 = vpop.f32.mrf.mxu0 }
 0xbb0   :  { %v4453_v16 = vcombine.high %v4445_v8, %v4445_v8  ;;  %v4480_v17 = vpack.c.bf16 %v4445_v8, %v4445_v8  ;;  %v4452_v11 = vrot.slane %v4438_v2, %v13701_v51  ;;  %v4301_v30 = vadd.f32 %v11438_v49, %v14416_v57 }
 0xbb1   :  { %v12481_v44 = vpop.f32.mrf.mxu0  ;;  %12485 = vmatpush3.bf16.msra.mxu1 %v13178_v31 }
 0xbb2   :  { %12498 = vmatprep.subr.bf16.mxu1 %v13510_v6  ;;  %v4481_v60 = vpack.c.bf16 %v4453_v16, %v4453_v16  ;;  %v4454_v26 = vcombine.high %v4452_v11, %v4452_v11  ;;  %v4482_v44 = vpack.c.bf16 %v4452_v11, %v4452_v11 }
 0xbb3   :  { %v14419_v41 = vpop.f32.mrf.mxu0 }
 0xbb4   :  { %12487 = vmatmul.mubr.msk.bf16.vlgmr.msra.gmra.mxu1 %vm417_vm4, %v13716_v3  ;;  %v14475_v57 = vadd.f32 %v14428_v38, %v14419_v41 }
 0xbb5   :  { %v12496_v48 = vpop.f32.mrf.mxu0  ;;  %12500 = vmatprep.mubr.msk.bf16.mxu1 %vm13511_vm3, %v13510_v6 }
 0xbb6   :  { %v4549_v41 = vrot.slane %v14475_v57, %v13701_v51 }
 0xbb7   :  { %v4432_v47 = vpop.f32.mrf.mxu0 }
 0xbb8   :  { %v14431_v12 = vadd.f32 %v14428_v38, %v4432_v47  ;;  %v4557_v54 = vcombine.high %v4549_v41, %v4549_v41 }
 0xbb9   :  { %v12497_v52 = vpop.f32.mrf.mxu0 }
 0xbba   :  { %v4483_v52 = vpack.c.bf16 %v4454_v26, %v4454_v26 }
 0xc6c   :  { %v4229_v21 = vpop.f32.mrf.mxu1 }
 0xc6d   :  { %v14435_v29 = vadd.f32 %v4229_v21, %v2950_v7  ;;  %v4462_v7 = vrot.slane %v4301_v30, %v13701_v51 }
 0xc6e   :  { %v12472_v3 = vpop.f32.mrf.mxu1 }
 0xc6f   :  { %v4484_v49 = vpack.c.bf16 %v4462_v7, %v4462_v7 }
 0xc70   :  { %v4232_v24 = vpop.f32.mrf.mxu1 }
 0xc71   :  { %v14439_v28 = vadd.f32 %v4232_v24, %v2953_v13  ;;  %v4455_v24 = vcombine.high %v4301_v30, %v4301_v30 }
 0xc72   :  { %v12473_v32 = vpop.f32.mrf.mxu1 }
 0xc73   :  { %v4470_v32 = vcombine.high %v4462_v7, %v4462_v7 }
 0xc74   :  { %v4363_v5 = vpop.f32.mrf.mxu1 }
 0xc75   :  { %v4364_v50 = vadd.f32 %v11447_v34, %v4363_v5  ;;  %v4469_v5 = vrot.slane %v4455_v24, %v13701_v51 }
 0xc76   :  { %v12488_v59 = vpop.f32.mrf.mxu1 }
 0xc77   :  { %v4490_v36 = vcombine.high %v4364_v50, %v4364_v50  ;;  %v4497_v63 = vrot.slane %v4364_v50, %v13701_v51  ;;  %v4485_v50 = vpack.c.bf16 %v4470_v32, %v4470_v32 }
 0xc78   :  { %v4366_v58 = vpop.f32.mrf.mxu1 }
 0xc79   :  { %v4504_v55 = vrot.slane %v4490_v36, %v13701_v51  ;;  %v4505_v42 = vcombine.high %v4497_v63, %v4497_v63  ;;  %v4532_v46 = vpack.c.bf16 %v4497_v63, %v4497_v63  ;;  %v4367_v43 = vadd.f32 %v11447_v34, %v4366_v58 }
 0xc7a   :  { %v12489_v61 = vpop.f32.mrf.mxu1  ;;  %v4471_v63 = vcombine.high %v4469_v5, %v4469_v5  ;;  %v4584_v58 = vpack.c.bf16 %v4549_v41, %v4549_v41 }
 0xc7b   :  { %v4533_v25 = vpack.c.bf16 %v4505_v42, %v4505_v42  ;;  %v4596_v15 = vsel %vm746_vm5, %v4532_v46, 0  ;;  %v4506_v45 = vcombine.high %v4504_v55, %v4504_v55  ;;  %v4534_v4 = vpack.c.bf16 %v4504_v55, %v4504_v55 }
 0xc7c   :  { %12499 = vmatpush3.bf16.xpose.msra.mxu1 %v4596_v15  ;;  %v4514_v19 = vrot.slane %v4367_v43, %v13701_v51  ;;  %v4507_v10 = vcombine.high %v4367_v43, %v4367_v43  ;;  %v4486_v55 = vpack.c.bf16 %v4469_v5, %v4469_v5  ;;  %v4585_v42 = vpack.c.bf16 %v4557_v54, %v4557_v54 }
 0xc7d   :  { %v4642_v9 = vsel %vm746_vm5, %v4533_v25, 0  ;;  %12510 = vmatprep.subr.bf16.mxu1 %v13510_v6  ;;  %v4535_v20 = vpack.c.bf16 %v4506_v45, %v4506_v45  ;;  %v4688_v62 = vsel %vm746_vm5, %v4534_v4, 0  ;;  %v4487_v46 = vpack.c.bf16 %v4471_v63, %v4471_v63 }
 0xc7e   :  { %12505 = vmatpush3.bf16.xpose.msra.mxu0 %v4642_v9  ;;  %v4522_v22 = vcombine.high %v4514_v19, %v4514_v19  ;;  %v4536_v31 = vpack.c.bf16 %v4514_v19, %v4514_v19  ;;  %v4521_v48 = vrot.slane %v4507_v10, %v13701_v51  ;;  %v5060_v61 = vsel %vm1216_vm6, %v4584_v58, 0 }
 0xc7f   :  { %12516 = vmatprep.subr.bf16.mxu0 %v13510_v6  ;;  %v4734_v27 = vsel %vm746_vm5, %v4535_v20, 0  ;;  %v5106_v8 = vsel %vm1216_vm6, %v4585_v42, 0 }
 0xc80   :  { %v4537_v47 = vpack.c.bf16 %v4522_v22, %v4522_v22  ;;  %v4780_v21 = vsel %vm746_vm5, %v4536_v31, 0  ;;  %v4523_v13 = vcombine.high %v4521_v48, %v4521_v48  ;;  %v4538_v34 = vpack.c.bf16 %v4521_v48, %v4521_v48 }
 0xc82   :  { %v4826_v3 = vsel %vm746_vm5, %v4537_v47, 0  ;;  %v4539_v38 = vpack.c.bf16 %v4523_v13, %v4523_v13  ;;  %v4872_v59 = vsel %vm746_vm5, %v4538_v34, 0 }
 0xc83   :  { %12501 = vmatmul.mubr.msk.bf16.vlgmr.msra.gmra.mxu1 %vm746_vm5, %v4480_v17 }
 0xc84   :  { %12511 = vmatpush3.bf16.xpose.msra.mxu1 %v4688_v62  ;;  %12512 = vmatprep.mubr.msk.bf16.mxu1 %vm13511_vm3, %v13510_v6  ;;  %v4918_v36 = vsel %vm746_vm5, %v4539_v38, 0 }
 0xc85   :  { %12507 = vmatmul.mubr.msk.bf16.vlgmr.msra.gmra.mxu0 %vm746_vm5, %v4481_v60  ;;  %12522 = vmatprep.subr.bf16.mxu1 %v13510_v6 }
 0xc86   :  { %12517 = vmatpush3.bf16.xpose.msra.mxu0 %v4734_v27  ;;  %12518 = vmatprep.mubr.msk.bf16.mxu0 %vm13511_vm3, %v13510_v6 }
 0xc87   :  { %12528 = vmatprep.subr.bf16.mxu0 %v13510_v6 }
 0xc8b   :  { %12513 = vmatmul.mubr.msk.bf16.vlgmr.msra.gmra.mxu1 %vm746_vm5, %v4482_v44 }
 0xc8c   :  { %12523 = vmatpush3.bf16.xpose.msra.mxu1 %v4780_v21  ;;  %12524 = vmatprep.mubr.msk.bf16.mxu1 %vm13511_vm3, %v13510_v6 }
 0xc8d   :  { %12519 = vmatmul.mubr.msk.bf16.vlgmr.msra.gmra.mxu0 %vm746_vm5, %v4483_v52  ;;  %12534 = vmatprep.subr.bf16.mxu1 %v13510_v6 }
 0xc8e   :  { %12529 = vmatpush3.bf16.xpose.msra.mxu0 %v4826_v3  ;;  %12530 = vmatprep.mubr.msk.bf16.mxu0 %vm13511_vm3, %v13510_v6 }
 0xc8f   :  { %12540 = vmatprep.subr.bf16.mxu0 %v13510_v6 }
 0xc93   :  { %12525 = vmatmul.mubr.msk.bf16.vlgmr.msra.gmra.mxu1 %vm746_vm5, %v4484_v49 }
 0xc94   :  { %12535 = vmatpush3.bf16.xpose.msra.mxu1 %v4872_v59  ;;  %12536 = vmatprep.mubr.msk.bf16.mxu1 %vm13511_vm3, %v13510_v6 }
 0xc95   :  { %12531 = vmatmul.mubr.msk.bf16.vlgmr.msra.gmra.mxu0 %vm746_vm5, %v4485_v50  ;;  %12546 = vmatprep.subr.bf16.mxu1 %v13510_v6 }
 0xc96   :  { %12541 = vmatpush3.bf16.xpose.msra.mxu0 %v4918_v36  ;;  %12542 = vmatprep.mubr.msk.bf16.mxu0 %vm13511_vm3, %v13510_v6 }
 0xc97   :  { %12552 = vmatprep.subr.bf16.mxu0 %v13510_v6 }
 0xc9b   :  { %12537 = vmatmul.mubr.msk.bf16.vlgmr.msra.gmra.mxu1 %vm746_vm5, %v4486_v55 }
 0xc9c   :  { %12547 = vmatpush3.bf16.msra.mxu1 %v5060_v61  ;;  %12548 = vmatprep.mubr.msk.bf16.mxu1 %vm13511_vm3, %v13510_v6 }
 0xc9d   :  { %12543 = vmatmul.mubr.msk.bf16.vlgmr.msra.gmra.mxu0 %vm746_vm5, %v4487_v46  ;;  %12558 = vmatprep.subr.bf16.mxu1 %v13510_v6 }
 0xc9e   :  { %12553 = vmatpush3.bf16.msra.mxu0 %v5106_v8  ;;  %12554 = vmatprep.mubr.msk.bf16.mxu0 %vm13511_vm3, %v13510_v6 }
 0xc9f   :  { %12564 = vmatprep.subr.bf16.mxu0 %v13510_v6 }
 0xd43   :  { %v4632_v25 = vpop.f32.mrf.mxu1 }
 0xd44   :  { %v4633_v15 = vadd.f32 %v4632_v25, %v13828_v40 }
 0xd45   :  { %v12502_v43 = vpop.f32.mrf.mxu1  ;;  %v4678_v9 = vpop.f32.mrf.mxu0 }
 0xd46   :  { %v4679_v45 = vadd.f32 %v4678_v9, %v13824_v35  ;;  %v4960_v2 = vsel %vm1115_vm7, %v4633_v15, -inf }
 0xd47   :  { %v12508_v16 = vpop.f32.mrf.mxu0  ;;  %4961 = vmax.xlane.f32.xlu1 %v4960_v2  ;;  %v4635_v4 = vpop.f32.mrf.mxu1 }
 0xd48   :  { %v4963_v17 = vsel %vm1115_vm7, %v4679_v45, -inf }
 0xd49   :  { %4964 = vmax.xlane.f32.xlu0 %v4963_v17  ;;  %v12503_v19 = vpop.f32.mrf.mxu1  ;;  %v4681_v20 = vpop.f32.mrf.mxu0 }
 0xd4b   :  { %v12509_v11 = vpop.f32.mrf.mxu0  ;;  %v4724_v60 = vpop.f32.mrf.mxu1 }
 0xd4c   :  { %v4725_v62 = vadd.f32 %v4724_v60, %v13841_v53 }
 0xd4d   :  { %v12514_v10 = vpop.f32.mrf.mxu1  ;;  %v4770_v22 = vpop.f32.mrf.mxu0 }
 0xd4e   :  { %v4771_v27 = vadd.f32 %v4770_v22, %v13844_v56  ;;  %v4966_v26 = vsel %vm1115_vm7, %v4725_v62, -inf }
 0xd4f   :  { %v12520_v30 = vpop.f32.mrf.mxu0  ;;  %4967 = vmax.xlane.f32.xlu1 %v4966_v26  ;;  %v4727_v31 = vpop.f32.mrf.mxu1 }
 0xd50   :  { %v4969_v44 = vsel %vm1115_vm7, %v4771_v27, -inf }
 0xd51   :  { %4970 = vmax.xlane.f32.xlu0 %v4969_v44  ;;  %v12515_v48 = vpop.f32.mrf.mxu1  ;;  %v4773_v47 = vpop.f32.mrf.mxu0 }
 0xd53   :  { %v12521_v52 = vpop.f32.mrf.mxu0  ;;  %v4816_v7 = vpop.f32.mrf.mxu1 }
 0xd54   :  { %v4817_v21 = vadd.f32 %v4816_v7, %v13863_v18 }
 0xd55   :  { %v12526_v3 = vpop.f32.mrf.mxu1  ;;  %v4862_v13 = vpop.f32.mrf.mxu0 }
 0xd56   :  { %v4863_v24 = vadd.f32 %v4862_v13, %v13860_v14  ;;  %v4972_v32 = vsel %vm1115_vm7, %v4817_v21, -inf }
 0xd57   :  { %v12532_v34 = vpop.f32.mrf.mxu0  ;;  %4973 = vmax.xlane.f32.xlu1 %v4972_v32  ;;  %v4819_v49 = vpop.f32.mrf.mxu1 }
 0xd58   :  { %v4975_v41 = vsel %vm1115_vm7, %v4863_v24, -inf }
 0xd59   :  { %4976 = vmax.xlane.f32.xlu0 %v4975_v41  ;;  %v12527_v38 = vpop.f32.mrf.mxu1  ;;  %v4865_v5 = vpop.f32.mrf.mxu0 }
 0xd5b   :  { %v12533_v50 = vpop.f32.mrf.mxu0  ;;  %v4908_v59 = vpop.f32.mrf.mxu1 }
 0xd5c   :  { %v4909_v54 = vadd.f32 %v4908_v59, %v13874_v39 }
 0xd5d   :  { %v12538_v36 = vpop.f32.mrf.mxu1  ;;  %v4954_v63 = vpop.f32.mrf.mxu0 }
 0xd5e   :  { %v4955_v58 = vadd.f32 %v4954_v63, %v13871_v33  ;;  %v4978_v55 = vsel %vm1115_vm7, %v4909_v54, -inf }
 0xd5f   :  { %v12544_v42 = vpop.f32.mrf.mxu0  ;;  %4979 = vmax.xlane.f32.xlu1 %v4978_v55  ;;  %v4911_v46 = vpop.f32.mrf.mxu1 }
 0xd60   :  { %v4981_v61 = vsel %vm1115_vm7, %v4955_v58, -inf }
 0xd61   :  { %4982 = vmax.xlane.f32.xlu0 %v4981_v61  ;;  %v12539_v8 = vpop.f32.mrf.mxu1  ;;  %v4957_v25 = vpop.f32.mrf.mxu0  ;;  %v4542_v61 = vcombine.high %v14475_v57, %v14475_v57 }
 0xd63   :  { %v12545_v43 = vpop.f32.mrf.mxu0  ;;  %v4556_v25 = vrot.slane %v4542_v61, %v13701_v51 }
 0xdd0   :  { %v4962_v9 = vpop.xlane.xlu1 %4961 }
 0xdd1   :  { %v4984_v2 = vsub.f32 %v4633_v15, %v4962_v9  ;;  %v4558_v9 = vcombine.high %v4556_v25, %v4556_v25 }
 0xdd2   :  { %v4965_v16 = vpop.xlane.xlu0 %4964 }
 0xdd3   :  { %v4992_v4 = vmul.f32 1.442695, %v4984_v2  ;;  %v4985_v17 = vsub.f32 %v4679_v45, %v4965_v16 }
 0xdd5   :  { %13311 = vpow2.f32 %v4992_v4  ;;  %v4994_v19 = vmul.f32 1.442695, %v4985_v17  ;;  %v4586_v4 = vpack.c.bf16 %v4556_v25, %v4556_v25 }
 0xdd7   :  { %13313 = vpow2.f32 %v4994_v19  ;;  %v4566_v19 = vrot.slane %v14431_v12, %v13701_v51 }
 0xdd8   :  { %v4968_v20 = vpop.xlane.xlu1 %4967 }
 0xdd9   :  { %v4986_v11 = vsub.f32 %v4725_v62, %v4968_v20 }
 0xdda   :  { %v4971_v60 = vpop.xlane.xlu0 %4970 }
 0xddb   :  { %v4996_v10 = vmul.f32 1.442695, %v4986_v11  ;;  %v4987_v22 = vsub.f32 %v4771_v27, %v4971_v60 }
 0xddd   :  { %13315 = vpow2.f32 %v4996_v10  ;;  %v4998_v26 = vmul.f32 1.442695, %v4987_v22  ;;  %v4587_v10 = vpack.c.bf16 %v4558_v9, %v4558_v9 }
 0xddf   :  { %13317 = vpow2.f32 %v4998_v26  ;;  %v5152_v26 = vsel %vm1216_vm6, %v4586_v4, 0 }
 0xde0   :  { %v4974_v30 = vpop.xlane.xlu1 %4973 }
 0xde1   :  { %v4988_v31 = vsub.f32 %v4817_v21, %v4974_v30  ;;  %v4559_v30 = vcombine.high %v14431_v12, %v14431_v12 }
 0xde2   :  { %v13312_v44 = vpop.eup %13311  ;;  %v4977_v48 = vpop.xlane.xlu0 %4976 }
 0xde3   :  { %v5000_v47 = vmul.f32 1.442695, %v4988_v31  ;;  %v4989_v15 = vsub.f32 %v4863_v24, %v4977_v48  ;;  %v5008_v52 = vsel %vm1115_vm7, %v13312_v44, 0.0  ;;  %v4574_v31 = vcombine.high %v4566_v19, %v4566_v19 }
 0xde4   :  { %v13314_v45 = vpop.eup %13313  ;;  %5009 = vadd.xlane.f32.xlu1 %v5008_v52  ;;  %v4573_v52 = vrot.slane %v4559_v30, %v13701_v51 }
 0xde5   :  { %13319 = vpow2.f32 %v5000_v47  ;;  %v5002_v7 = vmul.f32 1.442695, %v4989_v15  ;;  %v5011_v62 = vsel %vm1115_vm7, %v13314_v45, 0.0  ;;  %v4588_v47 = vpack.c.bf16 %v4566_v19, %v4566_v19 }
 0xde6   :  { %5012 = vadd.xlane.f32.xlu0 %v5011_v62 }
 0xde7   :  { %13321 = vpow2.f32 %v5002_v7  ;;  %v4589_v7 = vpack.c.bf16 %v4574_v31, %v4574_v31 }
 0xde8   :  { %v4980_v27 = vpop.xlane.xlu1 %4979 }
 0xde9   :  { %v4990_v3 = vsub.f32 %v4909_v54, %v4980_v27 }
 0xdea   :  { %v13316_v13 = vpop.eup %13315  ;;  %v4983_v32 = vpop.xlane.xlu0 %4982 }
 0xdeb   :  { %v5004_v34 = vmul.f32 1.442695, %v4990_v3  ;;  %v4991_v21 = vsub.f32 %v4955_v58, %v4983_v32  ;;  %v5014_v49 = vsel %vm1115_vm7, %v13316_v13, 0.0 }
 0xdec   :  { %v14525_v41 = vpop.eup %13317  ;;  %5015 = vadd.xlane.f32.xlu1 %v5014_v49 }
 0xded   :  { %13323 = vpow2.f32 %v5004_v34  ;;  %v5006_v24 = vmul.f32 1.442695, %v4991_v21  ;;  %v5017_v38 = vsel %vm1115_vm7, %v14525_v41, 0.0  ;;  %v5244_v34 = vsel %vm1216_vm6, %v4588_v47, 0 }
 0xdee   :  { %5018 = vadd.xlane.f32.xlu0 %v5017_v38  ;;  %v4575_v21 = vcombine.high %v4573_v52, %v4573_v52 }
 0xdef   :  { %13325 = vpow2.f32 %v5006_v24  ;;  %v4590_v24 = vpack.c.bf16 %v4573_v52, %v4573_v52 }
 0xdf2   :  { %v14529_v5 = vpop.eup %13319 }
 0xdf3   :  { %v5020_v50 = vsel %vm1115_vm7, %v14529_v5, 0.0 }
 0xdf4   :  { %v14533_v59 = vpop.eup %13321  ;;  %5021 = vadd.xlane.f32.xlu1 %v5020_v50 }
 0xdf5   :  { %v5023_v54 = vsel %vm1115_vm7, %v14533_v59, 0.0 }
 0xdf6   :  { %5024 = vadd.xlane.f32.xlu0 %v5023_v54 }
 0xdfa   :  { %v14537_v36 = vpop.eup %13323 }
 0xdfb   :  { %v5026_v63 = vsel %vm1115_vm7, %v14537_v36, 0.0 }
 0xdfc   :  { %v14541_v58 = vpop.eup %13325  ;;  %5027 = vadd.xlane.f32.xlu1 %v5026_v63  ;;  %v4591_v63 = vpack.c.bf16 %v4575_v21, %v4575_v21 }
 0xdfd   :  { %v5029_v55 = vsel %vm1115_vm7, %v14541_v58, 0.0 }
 0xdfe   :  { %5030 = vadd.xlane.f32.xlu0 %v5029_v55 }
 0xe6d   :  { %v5010_v42 = vpop.xlane.xlu1 %5009 }
 0xe6e   :  { %13327 = vrcp.f32 %v5010_v42  ;;  %v5336_v42 = vsel %vm1216_vm6, %v4590_v24, 0 }
 0xe6f   :  { %v5013_v46 = vpop.xlane.xlu0 %5012 }
 0xe70   :  { %13329 = vrcp.f32 %v5013_v46 }
 0xe75   :  { %v5016_v8 = vpop.xlane.xlu1 %5015 }
 0xe76   :  { %13331 = vrcp.f32 %v5016_v8 }
 0xe77   :  { %v5019_v43 = vpop.xlane.xlu0 %5018 }
 0xe78   :  { %13333 = vrcp.f32 %v5019_v43 }
 0xe7b   :  { %v13328_v2 = vpop.eup %13327 }
 0xe7c   :  { %v5040_v16 = vmul.f32 %v13328_v2, %v13312_v44  ;;  %v5198_v44 = vsel %vm1216_vm6, %v4587_v10, 0 }
 0xe7d   :  { %v13330_v17 = vpop.eup %13329  ;;  %v5022_v20 = vpop.xlane.xlu1 %5021 }
 0xe7e   :  { %v5048_v11 = vpack.c.bf16 %v5040_v16, %v5040_v16  ;;  %v5041_v60 = vmul.f32 %v13330_v17, %v13314_v45  ;;  %13335 = vrcp.f32 %v5022_v20 }
 0xe7f   :  { %v5025_v57 = vpop.xlane.xlu0 %5024 }
 0xe80   :  { %v5049_v22 = vpack.c.bf16 %v5041_v60, %v5041_v60  ;;  %13337 = vrcp.f32 %v5025_v57  ;;  %12549 = vmatmul.mubr.msk.bf16.vlgmr.msra.gmra.mxu1 %vm1212_vm8, %v5048_v11 }
 0xe81   :  { %12559 = vmatpush3.bf16.msra.mxu1 %v5152_v26  ;;  %12560 = vmatprep.mubr.msk.bf16.mxu1 %vm13511_vm3, %v13510_v6 }
 0xe82   :  { %12555 = vmatmul.mubr.msk.bf16.vlgmr.msra.gmra.mxu0 %vm1212_vm8, %v5049_v22  ;;  %12570 = vmatprep.subr.bf16.mxu1 %v13510_v6 }
 0xe83   :  { %v13332_v48 = vpop.eup %13331  ;;  %12565 = vmatpush3.bf16.msra.mxu0 %v5198_v44  ;;  %12566 = vmatprep.mubr.msk.bf16.mxu0 %vm13511_vm3, %v13510_v6 }
 0xe84   :  { %v5042_v15 = vmul.f32 %v13332_v48, %v13316_v13  ;;  %12576 = vmatprep.subr.bf16.mxu0 %v13510_v6  ;;  %v5290_v13 = vsel %vm1216_vm6, %v4589_v7, 0 }
 0xe85   :  { %v13334_v12 = vpop.eup %13333  ;;  %v5028_v45 = vpop.xlane.xlu1 %5027 }
 0xe86   :  { %v5050_v62 = vpack.c.bf16 %v5042_v15, %v5042_v15  ;;  %v5043_v27 = vmul.f32 %v13334_v12, %v14525_v41  ;;  %13339 = vrcp.f32 %v5028_v45 }
 0xe87   :  { %v5031_v3 = vpop.xlane.xlu0 %5030 }
 0xe88   :  { %v5051_v32 = vpack.c.bf16 %v5043_v27, %v5043_v27  ;;  %13341 = vrcp.f32 %v5031_v3  ;;  %12561 = vmatmul.mubr.msk.bf16.vlgmr.msra.gmra.mxu1 %vm1212_vm8, %v5050_v62 }
 0xe89   :  { %12571 = vmatpush3.bf16.msra.mxu1 %v5244_v34  ;;  %12572 = vmatprep.mubr.msk.bf16.mxu1 %vm13511_vm3, %v13510_v6 }
 0xe8a   :  { %12567 = vmatmul.mubr.msk.bf16.vlgmr.msra.gmra.mxu0 %vm1212_vm8, %v5051_v32  ;;  %12582 = vmatprep.subr.bf16.mxu1 %v13510_v6 }
 0xe8b   :  { %v13336_v49 = vpop.eup %13335  ;;  %12577 = vmatpush3.bf16.msra.mxu0 %v5290_v13  ;;  %12578 = vmatprep.mubr.msk.bf16.mxu0 %vm13511_vm3, %v13510_v6 }
 0xe8c   :  { %v5044_v41 = vmul.f32 %v13336_v49, %v14529_v5  ;;  %12588 = vmatprep.subr.bf16.mxu0 %v13510_v6  ;;  %v5382_v5 = vsel %vm1216_vm6, %v4591_v63, 0 }
 0xe8d   :  { %v13338_v38 = vpop.eup %13337 }
 0xe8e   :  { %v5052_v50 = vpack.c.bf16 %v5044_v41, %v5044_v41  ;;  %v5045_v54 = vmul.f32 %v13338_v38, %v14533_v59 }
 0xe90   :  { %v5053_v55 = vpack.c.bf16 %v5045_v54, %v5045_v54  ;;  %12573 = vmatmul.mubr.msk.bf16.vlgmr.msra.gmra.mxu1 %vm1212_vm8, %v5052_v50 }
 0xe91   :  { %12583 = vmatpush3.bf16.msra.mxu1 %v5336_v42  ;;  %12584 = vmatprep.mubr.msk.bf16.mxu1 %vm13511_vm3, %v13510_v6 }
 0xe92   :  { %12579 = vmatmul.mubr.msk.bf16.vlgmr.msra.gmra.mxu0 %vm1212_vm8, %v5053_v55  ;;  %12594 = vmatprep.subr.bf16.mxu1 %v13510_v6 }
 0xe93   :  { %v13340_v46 = vpop.eup %13339  ;;  %12589 = vmatpush3.bf16.msra.mxu0 %v5382_v5  ;;  %12590 = vmatprep.mubr.msk.bf16.mxu0 %vm13511_vm3, %v13510_v6 }
 0xe94   :  { %v5046_v59 = vmul.f32 %v13340_v46, %v14537_v36  ;;  %12600 = vmatprep.subr.bf16.mxu0 %v13510_v6  ;;  %v11476_v36 = vld [vmem:[%s15620_s11 + $0xc] sm:$0xf] }
 0xe95   :  { %v13342_v61 = vpop.eup %13341  ;;  %v5475_v9 = vsel %vm2864_vm9, %v11476_v36, 0 }
 0xe96   :  { %v5054_v8 = vpack.c.bf16 %v5046_v59, %v5046_v59  ;;  %v5047_v25 = vmul.f32 %v13342_v61, %v14541_v58 }
 0xe98   :  { %v5055_v43 = vpack.c.bf16 %v5047_v25, %v5047_v25  ;;  %12585 = vmatmul.mubr.msk.bf16.vlgmr.msra.gmra.mxu1 %vm1212_vm8, %v5054_v8  ;;  %v11478_v25 = vld [vmem:[%s15621_s12] ss:$0 sm:$0xff] }
 0xe99   :  { %12596 = vmatprep.mubr.msk.bf16.mxu1 %vm13511_vm3, %v13510_v6  ;;  %12595 = vmatpush3.bf16.msra.mxu1 %v5475_v9 }
 0xe9a   :  { %12591 = vmatmul.mubr.msk.bf16.vlgmr.msra.gmra.mxu0 %vm1212_vm8, %v5055_v43  ;;  %12608 = vmatprep.subr.bf16.mxu1 %v13510_v6 }
 0xe9b   :  { %12604 = vmatprep.mubr.msk.bf16.mxu0 %vm13511_vm3, %v13510_v6 }
 0xf40   :  { %v5096_v58 = vpop.f32.mrf.mxu1 }
 0xf42   :  { %v12550_v2 = vpop.f32.mrf.mxu1  ;;  %v5142_v16 = vpop.f32.mrf.mxu0 }
 0xf43   :  { %v5432_v32 = vcombine.low %v5096_v58, %v5142_v16 }
 0xf44   :  { %v5099_v4 = vpop.f32.mrf.mxu1  ;;  %v12556_v17 = vpop.f32.mrf.mxu0 }
 0xf45   :  { %v5440_v50 = vrot.slane %v5432_v32, %v13701_v51 }
 0xf46   :  { %v12551_v19 = vpop.f32.mrf.mxu1  ;;  %v5145_v20 = vpop.f32.mrf.mxu0 }
 0xf48   :  { %v12557_v11 = vpop.f32.mrf.mxu0  ;;  %v5188_v60 = vpop.f32.mrf.mxu1 }
 0xf4a   :  { %v12562_v10 = vpop.f32.mrf.mxu1  ;;  %v5234_v57 = vpop.f32.mrf.mxu0 }
 0xf4b   :  { %v5433_v62 = vcombine.low %v5188_v60, %v5234_v57 }
 0xf4c   :  { %v5191_v22 = vpop.f32.mrf.mxu1  ;;  %v12568_v26 = vpop.f32.mrf.mxu0 }
 0xf4d   :  { %v5447_v49 = vrot.slane %v5433_v62, %v13701_v51 }
 0xf4e   :  { %v12563_v30 = vpop.f32.mrf.mxu1  ;;  %v5237_v31 = vpop.f32.mrf.mxu0 }
 0xf4f   :  { %v5448_v5 = vcombine.low %v5440_v50, %v5447_v49  ;;  %v13182_v50 = vld [vmem:[%s15626_s17 + $0x10] sm:$0xff]  }
 0xf50   :  { %v12569_v44 = vpop.f32.mrf.mxu0  ;;  %v5280_v48 = vpop.f32.mrf.mxu1 }
 0xf51   :  { %v13180_v44 = vld [vmem:[%s15624_s15] sm:$0xff]  }
 0xf52   :  { %v12574_v47 = vpop.f32.mrf.mxu1  ;;  %v5326_v15 = vpop.f32.mrf.mxu0 }
 0xf53   :  { %v5449_v34 = vcombine.low %v5280_v48, %v5326_v15  ;;  %v13181_v48 = vld [vmem:[%s15626_s17 + $0x18] sm:$0xff]  }
 0xf54   :  { %v5283_v12 = vpop.f32.mrf.mxu1  ;;  %v12580_v52 = vpop.f32.mrf.mxu0 }
 0xf55   :  { %v5457_v54 = vrot.slane %v5449_v34, %v13701_v51 }
 0xf56   :  { %v12575_v45 = vpop.f32.mrf.mxu1  ;;  %v5329_v7 = vpop.f32.mrf.mxu0 }
 0xf58   :  { %v12581_v27 = vpop.f32.mrf.mxu0  ;;  %v5372_v3 = vpop.f32.mrf.mxu1 }
 0xf5a   :  { %v12586_v13 = vpop.f32.mrf.mxu1  ;;  %v5418_v21 = vpop.f32.mrf.mxu0 }
 0xf5b   :  { %v5450_v41 = vcombine.low %v5372_v3, %v5418_v21  ;;  %v11479_v3 = vld [vmem:[%s15622_s13] ss:$0 sm:$0xff] }
 0xf5c   :  { %v5375_v24 = vpop.f32.mrf.mxu1  ;;  %v12592_v38 = vpop.f32.mrf.mxu0  ;;  %v11480_v21 = vld [vmem:[%s15623_s14] ss:$0 sm:$0xff] }
 0xf5d   :  { %v5464_v63 = vrot.slane %v5450_v41, %v13701_v51 }
 0xf5e   :  { %v12587_v55 = vpop.f32.mrf.mxu1  ;;  %v5421_v42 = vpop.f32.mrf.mxu0 }
 0xf5f   :  { %v5465_v46 = vcombine.low %v5457_v54, %v5464_v63  ;;  %v13183_v54 = vld [vmem:[%s15626_s17 + $0x8] sm:$0xff]   ;;  %v13184_v63 = vld [vmem:[%s15626_s17] sm:$0xff]  }
 0xf60   :  { %v12593_v59 = vpop.f32.mrf.mxu0  ;;  %v11481_v55 = vld [vmem:[%s15648_s5] ss:$0 sm:$0xff] }
 0xf61   :  { %v5468_v61 = vpack.c.bf16 %v5465_v46, %v5448_v5 }
 0xf63   :  { %12597 = vmatmul.mubr.msk.bf16.vlgmr.msra.gmra.mxu1 %vm746_vm5, %v5468_v61 }
 0xf64   :  { %12616 = vmatprep.mubr.msk.bf16.mxu1 %vm13511_vm3, %v13510_v6  ;;  %12609 = vmatpush3.bf16.msra.mxu1 %v13181_v48  ;;  %v13185_v48 = vld [vmem:[%s15644_s0 + $0x48] sm:$0xff]  }
 0xf65   :  { %12610 = vmatprep.subr.bf16.mxu1 %v13510_v6 }
 0xf68   :  { %12611 = vmatpush3.bf16.msra.mxu1 %v13182_v50 }
 0xf69   :  { %12612 = vmatprep.subr.bf16.mxu1 %v13510_v6 }
 0xf6c   :  { %12613 = vmatpush3.bf16.msra.mxu1 %v13183_v54 }
 0xf6d   :  { %12614 = vmatprep.subr.bf16.mxu1 %v13510_v6 }
 0xf70   :  { %12615 = vmatpush3.bf16.msra.mxu1 %v13184_v63  ;;  %v13189_v63 = vld [vmem:[%s15616_s7 + $0x48] sm:$0xff]  }
 0xf71   :  { %12636 = vmatprep.subr.bf16.mxu1 %v13510_v6 }
0x1023   :  { %v5511_v8 = vpop.f32.mrf.mxu1 }
0x1024   :  { %v5518_v43 = vadd.f32 %v5511_v8, %v14435_v29 }
0x1025   :  { %v12598_v36 = vpop.f32.mrf.mxu1 }
0x1026   :  { %v5527_v9 = vadd.f32 %v11478_v25, %v5518_v43 }
0x1027   :  { %v5514_v58 = vpop.f32.mrf.mxu1 }
0x1028   :  { %v5519_v2 = vadd.f32 %v5514_v58, %v14439_v28  ;;  %v5529_v16 = vadd.f32 %v5527_v9, %v13709_v1  ;;  %v11485_v9 = vld [vmem:[%s15627_s18] ss:$0 sm:$0xff] }
0x1029   :  { %v12599_v4 = vpop.f32.mrf.mxu1 }
0x102a   :  { %v5528_v17 = vadd.f32 %v11478_v25, %v5519_v2  ;;  %v5531_v19 = vsel %vm417_vm4, %v5529_v16, 0.0 }
0x102b   :  { %5532 = vadd.xlane.f32.xlu1 %v5531_v19 }
0x102c   :  { %v5530_v20 = vadd.f32 %v5528_v17, %v13707_v0  ;;  %v13179_v0 = vld [vmem:[%s15624_s15 + $0x8] sm:$0xff]  }
0x102d   :  { %12601 = vmatpush3.bf16.msra.mxu0 %v13179_v0 }
0x102e   :  { %v5534_v11 = vsel %vm417_vm4, %v5530_v20, 0.0  ;;  %12602 = vmatprep.subr.bf16.mxu0 %v13510_v6 }
0x102f   :  { %5535 = vadd.xlane.f32.xlu0 %v5534_v11 }
0x1031   :  { %12603 = vmatpush3.bf16.msra.mxu0 %v13180_v44 }
0x1032   :  { %12620 = vmatprep.subr.bf16.mxu0 %v13510_v6 }
0x10b4   :  { %v5533_v60 = vpop.xlane.xlu1 %5532 }
0x10b5   :  { %v5538_v10 = vmul.f32 0.03125, %v5533_v60 }
0x10b7   :  { %v5540_v29 = vsub.f32 %v5529_v16, %v5538_v10 }
0x10b8   :  { %v5536_v57 = vpop.xlane.xlu0 %5535 }
0x10b9   :  { %v5539_v22 = vmul.f32 0.03125, %v5536_v57  ;;  %v5542_v26 = vmul.f32 %v5540_v29, %v5540_v29 }
0x10bb   :  { %v5541_v30 = vsub.f32 %v5530_v20, %v5539_v22  ;;  %v5544_v28 = vsel %vm417_vm4, %v5542_v26, 0.0 }
0x10bc   :  { %5545 = vadd.xlane.f32.xlu1 %v5544_v28 }
0x10bd   :  { %v5543_v1 = vmul.f32 %v5541_v30, %v5541_v30 }
0x10bf   :  { %v5547_v31 = vsel %vm417_vm4, %v5543_v1, 0.0 }
0x10c0   :  { %5548 = vadd.xlane.f32.xlu0 %v5547_v31 }
0x1145   :  { %v5546_v47 = vpop.xlane.xlu1 %5545 }
0x1146   :  { %v5550_v15 = vmul.f32 0.03125, %v5546_v47  ;;  %v13186_v47 = vld [vmem:[%s15618_s9 + $0x48] sm:$0xff]  }
0x1148   :  { %v5552_v12 = vadd.f32 1e-05, %v5550_v15  ;;  %v13187_v15 = vld [vmem:[%s15644_s0 + $0x40] sm:$0xff]  }
0x1149   :  { %v5549_v52 = vpop.xlane.xlu0 %5548 }
0x114a   :  { %13343 = vrsqrt.f32 %v5552_v12  ;;  %v5551_v45 = vmul.f32 0.03125, %v5549_v52  ;;  %v13188_v12 = vld [vmem:[%s15618_s9 + $0x40] sm:$0xff]  }
0x114c   :  { %v5553_v7 = vadd.f32 1e-05, %v5551_v45 }
0x114e   :  { %13345 = vrsqrt.f32 %v5553_v7 }
0x1157   :  { %v13344_v62 = vpop.eup %13343 }
0x1158   :  { %v5556_v27 = vmul.f32 %v13344_v62, %v5540_v29 }
0x115a   :  { %v5565_v34 = vmul.f32 %v11479_v3, %v5556_v27 }
0x115b   :  { %v13346_v32 = vpop.eup %13345 }
0x115c   :  { %v5557_v13 = vmul.f32 %v13346_v32, %v5541_v30  ;;  %v5574_v41 = vadd.f32 %v11480_v21, %v5565_v34 }
0x115e   :  { %v5566_v49 = vmul.f32 %v11479_v3, %v5557_v13  ;;  %v11491_v13 = vld [vmem:[%s15628_s19] ss:$0 sm:$0xff] }
0x1160   :  { %v5575_v24 = vadd.f32 %v11480_v21, %v5566_v49 }
0x1162   :  { %v5576_v38 = vpack.c.bf16 %v5575_v24, %v5574_v41 }
0x1164   :  { %12605 = vmatmul.mubr.msk.bf16.vlgmr.msra.gmra.mxu0 %vm417_vm4, %v5576_v38 }
0x1165   :  { %12624 = vmatprep.mubr.msk.bf16.mxu0 %vm13511_vm3, %v13510_v6  ;;  %12621 = vmatpush3.bf16.msra.mxu0 %v13185_v48 }
0x1166   :  { %12622 = vmatprep.subr.bf16.mxu0 %v13510_v6 }
0x1169   :  { %12623 = vmatpush3.bf16.msra.mxu0 %v13187_v15 }
0x116a   :  { %12628 = vmatprep.subr.bf16.mxu0 %v13510_v6 }
0x1224   :  { %v5637_v42 = vpop.f32.mrf.mxu0 }
0x1225   :  { %v5638_v46 = vadd.f32 %v11481_v55, %v5637_v42  ;;  %v13190_v42 = vld [vmem:[%s15616_s7 + $0x40] sm:$0xff]  }
0x1226   :  { %v12606_v5 = vpop.f32.mrf.mxu0 }
0x1227   :  { %v5644_v25 = vmax.f32 %v5638_v46, 0.0 }
0x1228   :  { %v5640_v59 = vpop.f32.mrf.mxu0 }
0x1229   :  { %v5641_v61 = vadd.f32 %v11481_v55, %v5640_v59 }
0x122a   :  { %v12607_v8 = vpop.f32.mrf.mxu0 }
0x122b   :  { %v5645_v43 = vmax.f32 %v5641_v61, 0.0 }
0x122d   :  { %v5646_v36 = vpack.c.bf16 %v5645_v43, %v5644_v25  ;;  %v11516_v43 = vld [vmem:[%s15619_s10 + $0x4] ss:$0 sm:$0xff] }
0x122f   :  { %12617 = vmatmul.mubr.msk.bf16.vlgmr.msra.gmra.mxu1 %vm211_vm0, %v5646_v36 }
0x1230   :  { %12640 = vmatprep.mubr.msk.bf16.mxu1 %vm13511_vm3, %v13510_v6  ;;  %12637 = vmatpush3.bf16.msra.mxu1 %v13186_v47 }
0x1231   :  { %12638 = vmatprep.subr.bf16.mxu1 %v13510_v6 }
0x1234   :  { %12639 = vmatpush3.bf16.msra.mxu1 %v13188_v12 }
0x1235   :  { %12650 = vmatprep.subr.bf16.mxu1 %v13510_v6 }
0x12ef   :  { %v5723_v58 = vpop.f32.mrf.mxu1 }
0x12f0   :  { %v5724_v2 = vadd.f32 %v11485_v9, %v5723_v58 }
0x12f1   :  { %v12618_v16 = vpop.f32.mrf.mxu1 }
0x12f2   :  { %v5730_v4 = vadd.f32 %v5724_v2, %v5574_v41  ;;  %v11507_v2 = vld [vmem:[%s15617_s8 + $0x4] ss:$0 sm:$0xff] }
0x12f3   :  { %v5726_v17 = vpop.f32.mrf.mxu1  ;;  %v11498_v16 = vld [vmem:[%s15615_s6 + $0x4] ss:$0 sm:$0xff] }
0x12f4   :  { %v5727_v19 = vadd.f32 %v11485_v9, %v5726_v17  ;;  %v5732_v20 = vsel %vm417_vm4, %v5730_v4, 0.0 }
0x12f5   :  { %5733 = vadd.xlane.f32.xlu1 %v5732_v20  ;;  %v12619_v11 = vpop.f32.mrf.mxu1 }
0x12f6   :  { %v5731_v60 = vadd.f32 %v5727_v19, %v5575_v24  ;;  %v11492_v24 = vld [vmem:[%s15629_s20] ss:$0 sm:$0xff] }
0x12f8   :  { %v5735_v10 = vsel %vm417_vm4, %v5731_v60, 0.0 }
0x12f9   :  { %5736 = vadd.xlane.f32.xlu0 %v5735_v10 }
0x137e   :  { %v5734_v29 = vpop.xlane.xlu1 %5733 }
0x137f   :  { %v5738_v57 = vmul.f32 0.03125, %v5734_v29 }
0x1381   :  { %v5740_v22 = vsub.f32 %v5730_v4, %v5738_v57 }
0x1382   :  { %v5737_v26 = vpop.xlane.xlu0 %5736 }
0x1383   :  { %v5739_v30 = vmul.f32 0.03125, %v5737_v26  ;;  %v5742_v28 = vmul.f32 %v5740_v22, %v5740_v22 }
0x1385   :  { %v5741_v1 = vsub.f32 %v5731_v60, %v5739_v30  ;;  %v5744_v31 = vsel %vm417_vm4, %v5742_v28, 0.0 }
0x1386   :  { %5745 = vadd.xlane.f32.xlu1 %v5744_v31 }
0x1387   :  { %v5743_v0 = vmul.f32 %v5741_v1, %v5741_v1 }
0x1389   :  { %v5747_v44 = vsel %vm417_vm4, %v5743_v0, 0.0 }
0x138a   :  { %5748 = vadd.xlane.f32.xlu0 %v5747_v44 }
0x140f   :  { %v5746_v52 = vpop.xlane.xlu1 %5745 }
0x1410   :  { %v5750_v45 = vmul.f32 0.03125, %v5746_v52 }
0x1412   :  { %v5752_v7 = vadd.f32 1e-05, %v5750_v45 }
0x1413   :  { %v5749_v62 = vpop.xlane.xlu0 %5748 }
0x1414   :  { %13347 = vrsqrt.f32 %v5752_v7  ;;  %v5751_v27 = vmul.f32 0.03125, %v5749_v62 }
0x1416   :  { %v5753_v3 = vadd.f32 1e-05, %v5751_v27 }
0x1418   :  { %13349 = vrsqrt.f32 %v5753_v3 }
0x1421   :  { %v13348_v32 = vpop.eup %13347 }
0x1422   :  { %v5756_v34 = vmul.f32 %v13348_v32, %v5740_v22 }
0x1424   :  { %v5765_v49 = vmul.f32 %v11491_v13, %v5756_v34 }
0x1425   :  { %v13350_v21 = vpop.eup %13349 }
0x1426   :  { %v5757_v41 = vmul.f32 %v13350_v21, %v5741_v1  ;;  %v14685_v50 = vadd.f32 %v11492_v24, %v5765_v49 }
0x1428   :  { %v5766_v38 = vmul.f32 %v11491_v13, %v5757_v41 }
0x142a   :  { %v14687_v54 = vadd.f32 %v11492_v24, %v5766_v38 }
0x142c   :  { %v14694_v55 = vpack.c.bf16 %v14687_v54, %v14685_v50 }
0x142e   :  { %12625 = vmatmul.mubr.msk.bf16.vlgmr.msra.gmra.mxu0 %vm417_vm4, %v14694_v55  ;;  %12641 = vmatmul.mubr.msk.bf16.vlgmr.msra.gmra.mxu1 %vm417_vm4, %v14694_v55 }
0x142f   :  { %12629 = vmatpush3.bf16.msra.mxu0 %v13189_v63  ;;  %12632 = vmatprep.mubr.msk.bf16.mxu0 %vm13511_vm3, %v13510_v6 }
0x1430   :  { %12630 = vmatprep.subr.bf16.mxu0 %v13510_v6  ;;  %12652 = vmatprep.mubr.msk.bf16.mxu1 %vm13511_vm3, %v13510_v6 }
0x1433   :  { %12631 = vmatpush3.bf16.msra.mxu0 %v13190_v42 }
0x1434   :  { %12644 = vmatprep.subr.bf16.mxu0 %v13510_v6 }
0x1436   :  { %12633 = vmatmul.mubr.msk.bf16.vlgmr.msra.gmra.mxu0 %vm417_vm4, %v14694_v55 }
0x1437   :  { %12646 = vmatprep.mubr.msk.bf16.mxu0 %vm13511_vm3, %v13510_v6 }
0x14ee   :  { %v5839_v5 = vpop.f32.mrf.mxu0  ;;  %v14713_v46 = vpop.f32.mrf.mxu1 }
0x14ef   :  { %v5840_v20 = vadd.f32 %v11498_v16, %v5839_v5 }
0x14f0   :  { %v12626_v59 = vpop.f32.mrf.mxu0  ;;  %v12642_v61 = vpop.f32.mrf.mxu1 }
0x14f1   :  { %v5987_v30 = vrot.slane %v5840_v20, %v13701_v51  ;;  %v5980_v48 = vcombine.high %v5840_v20, %v5840_v20  ;;  %v14752_v59 = vadd.f32 %v11516_v43, %v14713_v46 }
0x14f2   :  { %v5842_v8 = vpop.f32.mrf.mxu0  ;;  %v5974_v25 = vpop.f32.mrf.mxu1 }
0x14f3   :  { %v14718_v36 = vadd.f32 %v11516_v43, %v5974_v25  ;;  %v5995_v47 = vcombine.high %v5987_v30, %v5987_v30  ;;  %v6022_v12 = vpack.c.bf16 %v5987_v30, %v5987_v30  ;;  %v5994_v7 = vrot.slane %v5980_v48, %v13701_v51 }
0x14f4   :  { %v12627_v9 = vpop.f32.mrf.mxu0  ;;  %v12643_v58 = vpop.f32.mrf.mxu1  ;;  %v5843_v21 = vadd.f32 %v11498_v16, %v5842_v8  ;;  %v6091_v46 = vrot.slane %v14752_v59, %v13701_v51 }
0x14f5   :  { %v6023_v62 = vpack.c.bf16 %v5995_v47, %v5995_v47  ;;  %v5996_v13 = vcombine.high %v5994_v7, %v5994_v7  ;;  %v6024_v41 = vpack.c.bf16 %v5994_v7, %v5994_v7 }
0x14f6   :  { %v5905_v4 = vpop.f32.mrf.mxu0  ;;  %v6004_v42 = vrot.slane %v5843_v21, %v13701_v51  ;;  %v5997_v25 = vcombine.high %v5843_v21, %v5843_v21 }
0x14f7   :  { %v5906_v17 = vadd.f32 %v11507_v2, %v5905_v4  ;;  %v6025_v63 = vpack.c.bf16 %v5996_v13, %v5996_v13 }
0x14f8   :  { %v12634_v19 = vpop.f32.mrf.mxu0  ;;  %v6012_v9 = vcombine.high %v6004_v42, %v6004_v42  ;;  %v6026_v43 = vpack.c.bf16 %v6004_v42, %v6004_v42  ;;  %v6011_v16 = vrot.slane %v5997_v25, %v13701_v51 }
0x14f9   :  { %v6032_v11 = vcombine.high %v5906_v17, %v5906_v17  ;;  %v6039_v60 = vrot.slane %v5906_v17, %v13701_v51  ;;  %v6099_v19 = vcombine.high %v6091_v46, %v6091_v46 }
0x14fa   :  { %v5908_v10 = vpop.f32.mrf.mxu0  ;;  %v6027_v4 = vpack.c.bf16 %v6012_v9, %v6012_v9 }
0x14fb   :  { %v6046_v29 = vrot.slane %v6032_v11, %v13701_v51  ;;  %v6047_v57 = vcombine.high %v6039_v60, %v6039_v60  ;;  %v6074_v22 = vpack.c.bf16 %v6039_v60, %v6039_v60  ;;  %v5909_v31 = vadd.f32 %v11507_v2, %v5908_v10 }
0x14fc   :  { %v12635_v26 = vpop.f32.mrf.mxu0  ;;  %v6126_v11 = vpack.c.bf16 %v6091_v46, %v6091_v46  ;;  %v6013_v60 = vcombine.high %v6011_v16, %v6011_v16  ;;  %v6127_v10 = vpack.c.bf16 %v6099_v19, %v6099_v19 }
0x14fd   :  { %v6075_v28 = vpack.c.bf16 %v6047_v57, %v6047_v57  ;;  %v6138_v1 = vsel %vm746_vm5, %v6074_v22, 0  ;;  %v6048_v44 = vcombine.high %v6046_v29, %v6046_v29  ;;  %v6076_v15 = vpack.c.bf16 %v6046_v29, %v6046_v29 }
0x14fe   :  { %12645 = vmatpush3.bf16.xpose.msra.mxu0 %v6138_v1  ;;  %v6056_v52 = vrot.slane %v5909_v31, %v13701_v51  ;;  %v6049_v3 = vcombine.high %v5909_v31, %v5909_v31  ;;  %v6028_v29 = vpack.c.bf16 %v6011_v16, %v6011_v16  ;;  %v6029_v57 = vpack.c.bf16 %v6013_v60, %v6013_v60 }
0x14ff   :  { %v6184_v0 = vsel %vm746_vm5, %v6075_v28, 0  ;;  %12656 = vmatprep.subr.bf16.mxu0 %v13510_v6  ;;  %v6077_v45 = vpack.c.bf16 %v6048_v44, %v6048_v44  ;;  %v6230_v27 = vsel %vm746_vm5, %v6076_v15, 0  ;;  %v6602_v22 = vsel %vm1216_vm6, %v6126_v11, 0 }
0x1500   :  { %12651 = vmatpush3.bf16.xpose.msra.mxu1 %v6184_v0  ;;  %v6064_v32 = vcombine.high %v6056_v52, %v6056_v52  ;;  %v6078_v49 = vpack.c.bf16 %v6056_v52, %v6056_v52  ;;  %v6063_v24 = vrot.slane %v6049_v3, %v13701_v51  ;;  %v6648_v26 = vsel %vm1216_vm6, %v6127_v10, 0 }
0x1501   :  { %12662 = vmatprep.subr.bf16.mxu1 %v13510_v6  ;;  %v6276_v34 = vsel %vm746_vm5, %v6077_v45, 0 }
0x1502   :  { %v6079_v38 = vpack.c.bf16 %v6064_v32, %v6064_v32  ;;  %v6322_v5 = vsel %vm746_vm5, %v6078_v49, 0  ;;  %v6065_v8 = vcombine.high %v6063_v24, %v6063_v24  ;;  %v6080_v58 = vpack.c.bf16 %v6063_v24, %v6063_v24 }
0x1504   :  { %v6368_v61 = vsel %vm746_vm5, %v6079_v38, 0  ;;  %v6081_v2 = vpack.c.bf16 %v6065_v8, %v6065_v8  ;;  %v6414_v17 = vsel %vm746_vm5, %v6080_v58, 0 }
0x1505   :  { %12647 = vmatmul.mubr.msk.bf16.vlgmr.msra.gmra.mxu0 %vm746_vm5, %v6022_v12 }
0x1506   :  { %12657 = vmatpush3.bf16.xpose.msra.mxu0 %v6230_v27  ;;  %12658 = vmatprep.mubr.msk.bf16.mxu0 %vm13511_vm3, %v13510_v6  ;;  %v6460_v20 = vsel %vm746_vm5, %v6081_v2, 0 }
0x1507   :  { %12653 = vmatmul.mubr.msk.bf16.vlgmr.msra.gmra.mxu1 %vm746_vm5, %v6023_v62  ;;  %12668 = vmatprep.subr.bf16.mxu0 %v13510_v6 }
0x1508   :  { %12663 = vmatpush3.bf16.xpose.msra.mxu1 %v6276_v34  ;;  %12664 = vmatprep.mubr.msk.bf16.mxu1 %vm13511_vm3, %v13510_v6 }
0x1509   :  { %12674 = vmatprep.subr.bf16.mxu1 %v13510_v6 }
0x150d   :  { %12659 = vmatmul.mubr.msk.bf16.vlgmr.msra.gmra.mxu0 %vm746_vm5, %v6024_v41 }
0x150e   :  { %12669 = vmatpush3.bf16.xpose.msra.mxu0 %v6322_v5  ;;  %12670 = vmatprep.mubr.msk.bf16.mxu0 %vm13511_vm3, %v13510_v6 }
0x150f   :  { %12665 = vmatmul.mubr.msk.bf16.vlgmr.msra.gmra.mxu1 %vm746_vm5, %v6025_v63  ;;  %12680 = vmatprep.subr.bf16.mxu0 %v13510_v6 }
0x1510   :  { %12675 = vmatpush3.bf16.xpose.msra.mxu1 %v6368_v61  ;;  %12676 = vmatprep.mubr.msk.bf16.mxu1 %vm13511_vm3, %v13510_v6 }
0x1511   :  { %12686 = vmatprep.subr.bf16.mxu1 %v13510_v6 }
0x1515   :  { %12671 = vmatmul.mubr.msk.bf16.vlgmr.msra.gmra.mxu0 %vm746_vm5, %v6026_v43 }
0x1516   :  { %12681 = vmatpush3.bf16.xpose.msra.mxu0 %v6414_v17  ;;  %12682 = vmatprep.mubr.msk.bf16.mxu0 %vm13511_vm3, %v13510_v6 }
0x1517   :  { %12677 = vmatmul.mubr.msk.bf16.vlgmr.msra.gmra.mxu1 %vm746_vm5, %v6027_v4  ;;  %12692 = vmatprep.subr.bf16.mxu0 %v13510_v6 }
0x1518   :  { %12687 = vmatpush3.bf16.xpose.msra.mxu1 %v6460_v20  ;;  %12688 = vmatprep.mubr.msk.bf16.mxu1 %vm13511_vm3, %v13510_v6 }
0x1519   :  { %12698 = vmatprep.subr.bf16.mxu1 %v13510_v6 }
0x151d   :  { %12683 = vmatmul.mubr.msk.bf16.vlgmr.msra.gmra.mxu0 %vm746_vm5, %v6028_v29 }
0x151e   :  { %12693 = vmatpush3.bf16.msra.mxu0 %v6602_v22  ;;  %12694 = vmatprep.mubr.msk.bf16.mxu0 %vm13511_vm3, %v13510_v6 }
0x151f   :  { %12689 = vmatmul.mubr.msk.bf16.vlgmr.msra.gmra.mxu1 %vm746_vm5, %v6029_v57  ;;  %12704 = vmatprep.subr.bf16.mxu0 %v13510_v6 }
0x1520   :  { %12699 = vmatpush3.bf16.msra.mxu1 %v6648_v26  ;;  %12700 = vmatprep.mubr.msk.bf16.mxu1 %vm13511_vm3, %v13510_v6 }
0x1521   :  { %12710 = vmatprep.subr.bf16.mxu1 %v13510_v6 }
0x15c5   :  { %v6174_v30 = vpop.f32.mrf.mxu0 }
0x15c6   :  { %v6175_v28 = vadd.f32 %v6174_v30, %v13828_v40 }
0x15c7   :  { %v12648_v1 = vpop.f32.mrf.mxu0  ;;  %v6220_v31 = vpop.f32.mrf.mxu1 }
0x15c8   :  { %v6221_v0 = vadd.f32 %v6220_v31, %v13824_v35  ;;  %v6502_v44 = vsel %vm1115_vm7, %v6175_v28, -inf }
0x15c9   :  { %6503 = vmax.xlane.f32.xlu0 %v6502_v44  ;;  %v6177_v48 = vpop.f32.mrf.mxu0  ;;  %v12654_v47 = vpop.f32.mrf.mxu1 }
0x15ca   :  { %v6505_v15 = vsel %vm1115_vm7, %v6221_v0, -inf }
0x15cb   :  { %v12649_v12 = vpop.f32.mrf.mxu0  ;;  %6506 = vmax.xlane.f32.xlu1 %v6505_v15  ;;  %v6223_v52 = vpop.f32.mrf.mxu1 }
0x15cd   :  { %v12655_v45 = vpop.f32.mrf.mxu1  ;;  %v6266_v7 = vpop.f32.mrf.mxu0 }
0x15ce   :  { %v6267_v62 = vadd.f32 %v6266_v7, %v13841_v53 }
0x15cf   :  { %v12660_v27 = vpop.f32.mrf.mxu0  ;;  %v6312_v3 = vpop.f32.mrf.mxu1 }
0x15d0   :  { %v6313_v32 = vadd.f32 %v6312_v3, %v13844_v56  ;;  %v6508_v34 = vsel %vm1115_vm7, %v6267_v62, -inf }
0x15d1   :  { %6509 = vmax.xlane.f32.xlu0 %v6508_v34  ;;  %v6269_v13 = vpop.f32.mrf.mxu0  ;;  %v12666_v21 = vpop.f32.mrf.mxu1 }
0x15d2   :  { %v6511_v49 = vsel %vm1115_vm7, %v6313_v32, -inf }
0x15d3   :  { %v12661_v41 = vpop.f32.mrf.mxu0  ;;  %6512 = vmax.xlane.f32.xlu1 %v6511_v49  ;;  %v6315_v24 = vpop.f32.mrf.mxu1 }
0x15d5   :  { %v12667_v38 = vpop.f32.mrf.mxu1  ;;  %v6358_v63 = vpop.f32.mrf.mxu0 }
0x15d6   :  { %v6359_v42 = vadd.f32 %v6358_v63, %v13863_v18 }
0x15d7   :  { %v12672_v5 = vpop.f32.mrf.mxu0  ;;  %v6404_v61 = vpop.f32.mrf.mxu1 }
0x15d8   :  { %v6405_v8 = vadd.f32 %v6404_v61, %v13860_v14  ;;  %v6514_v25 = vsel %vm1115_vm7, %v6359_v42, -inf }
0x15d9   :  { %6515 = vmax.xlane.f32.xlu0 %v6514_v25  ;;  %v6361_v9 = vpop.f32.mrf.mxu0  ;;  %v12678_v58 = vpop.f32.mrf.mxu1 }
0x15da   :  { %v6517_v46 = vsel %vm1115_vm7, %v6405_v8, -inf }
0x15db   :  { %v12673_v43 = vpop.f32.mrf.mxu0  ;;  %6518 = vmax.xlane.f32.xlu1 %v6517_v46  ;;  %v6407_v2 = vpop.f32.mrf.mxu1 }
0x15dd   :  { %v12679_v16 = vpop.f32.mrf.mxu1  ;;  %v6450_v4 = vpop.f32.mrf.mxu0 }
0x15de   :  { %v6451_v17 = vadd.f32 %v6450_v4, %v13874_v39 }
0x15df   :  { %v12684_v19 = vpop.f32.mrf.mxu0  ;;  %v6496_v20 = vpop.f32.mrf.mxu1 }
0x15e0   :  { %v6497_v11 = vadd.f32 %v6496_v20, %v13871_v33  ;;  %v6520_v60 = vsel %vm1115_vm7, %v6451_v17, -inf }
0x15e1   :  { %6521 = vmax.xlane.f32.xlu0 %v6520_v60  ;;  %v6453_v10 = vpop.f32.mrf.mxu0  ;;  %v12690_v29 = vpop.f32.mrf.mxu1 }
0x15e2   :  { %v6523_v57 = vsel %vm1115_vm7, %v6497_v11, -inf  ;;  %v6084_v29 = vcombine.high %v14752_v59, %v14752_v59 }
0x15e3   :  { %v12685_v22 = vpop.f32.mrf.mxu0  ;;  %6524 = vmax.xlane.f32.xlu1 %v6523_v57  ;;  %v6499_v26 = vpop.f32.mrf.mxu1 }
0x15e4   :  { %v6098_v22 = vrot.slane %v6084_v29, %v13701_v51  ;;  %v13191_v29 = vld [vmem:[%s15644_s0 + $0x58] sm:$0xff]  }
0x15e5   :  { %v12691_v30 = vpop.f32.mrf.mxu1 }
0x15e6   :  { %v6100_v30 = vcombine.high %v6098_v22, %v6098_v22 }
0x1652   :  { %v6504_v1 = vpop.xlane.xlu0 %6503 }
0x1653   :  { %v6526_v31 = vsub.f32 %v6175_v28, %v6504_v1 }
0x1654   :  { %v6507_v44 = vpop.xlane.xlu1 %6506 }
0x1655   :  { %v6534_v48 = vmul.f32 1.442695, %v6526_v31  ;;  %v6527_v47 = vsub.f32 %v6221_v0, %v6507_v44  ;;  %v6128_v44 = vpack.c.bf16 %v6098_v22, %v6098_v22 }
0x1657   :  { %13351 = vpow2.f32 %v6534_v48  ;;  %v6536_v15 = vmul.f32 1.442695, %v6527_v47  ;;  %v6108_v47 = vrot.slane %v14718_v36, %v13701_v51 }
0x1659   :  { %13353 = vpow2.f32 %v6536_v15 }
0x165a   :  { %v6510_v12 = vpop.xlane.xlu0 %6509 }
0x165b   :  { %v6528_v52 = vsub.f32 %v6267_v62, %v6510_v12 }
0x165c   :  { %v6513_v45 = vpop.xlane.xlu1 %6512 }
0x165d   :  { %v6538_v7 = vmul.f32 1.442695, %v6528_v52  ;;  %v6529_v27 = vsub.f32 %v6313_v32, %v6513_v45  ;;  %v6129_v45 = vpack.c.bf16 %v6100_v30, %v6100_v30 }
0x165f   :  { %13355 = vpow2.f32 %v6538_v7  ;;  %v6540_v3 = vmul.f32 1.442695, %v6529_v27  ;;  %v6694_v27 = vsel %vm1216_vm6, %v6128_v44, 0 }
0x1661   :  { %13357 = vpow2.f32 %v6540_v3  ;;  %v6101_v3 = vcombine.high %v14718_v36, %v14718_v36 }
0x1662   :  { %v6516_v34 = vpop.xlane.xlu0 %6515 }
0x1663   :  { %v6530_v13 = vsub.f32 %v6359_v42, %v6516_v34  ;;  %v6116_v34 = vcombine.high %v6108_v47, %v6108_v47 }
0x1664   :  { %v13352_v21 = vpop.eup %13351  ;;  %v6519_v49 = vpop.xlane.xlu1 %6518 }
0x1665   :  { %v6542_v41 = vmul.f32 1.442695, %v6530_v13  ;;  %v6531_v28 = vsub.f32 %v6405_v8, %v6519_v49  ;;  %v6550_v24 = vsel %vm1115_vm7, %v13352_v21, 0.0  ;;  %v6740_v13 = vsel %vm1216_vm6, %v6129_v45, 0 }
0x1666   :  { %v13354_v0 = vpop.eup %13353  ;;  %6551 = vadd.xlane.f32.xlu0 %v6550_v24  ;;  %v6130_v49 = vpack.c.bf16 %v6108_v47, %v6108_v47 }
0x1667   :  { %13359 = vpow2.f32 %v6542_v41  ;;  %v6544_v38 = vmul.f32 1.442695, %v6531_v28  ;;  %v6553_v62 = vsel %vm1115_vm7, %v13354_v0, 0.0  ;;  %v6115_v28 = vrot.slane %v6101_v3, %v13701_v51 }
0x1668   :  { %6554 = vadd.xlane.f32.xlu1 %v6553_v62 }
0x1669   :  { %13361 = vpow2.f32 %v6544_v38 }
0x166a   :  { %v6522_v32 = vpop.xlane.xlu0 %6521 }
0x166b   :  { %v6532_v63 = vsub.f32 %v6451_v17, %v6522_v32 }
0x166c   :  { %v13356_v5 = vpop.eup %13355  ;;  %v6525_v61 = vpop.xlane.xlu1 %6524 }
0x166d   :  { %v6546_v25 = vmul.f32 1.442695, %v6532_v63  ;;  %v6533_v42 = vsub.f32 %v6497_v11, %v6525_v61  ;;  %v6556_v9 = vsel %vm1115_vm7, %v13356_v5, 0.0  ;;  %v6786_v61 = vsel %vm1216_vm6, %v6130_v49, 0 }
0x166e   :  { %v14802_v58 = vpop.eup %13357  ;;  %6557 = vadd.xlane.f32.xlu0 %v6556_v9 }
0x166f   :  { %13363 = vpow2.f32 %v6546_v25  ;;  %v6548_v8 = vmul.f32 1.442695, %v6533_v42  ;;  %v6559_v46 = vsel %vm1115_vm7, %v14802_v58, 0.0  ;;  %v6117_v25 = vcombine.high %v6115_v28, %v6115_v28 }
0x1670   :  { %6560 = vadd.xlane.f32.xlu1 %v6559_v46 }
0x1671   :  { %13365 = vpow2.f32 %v6548_v8 }
0x1674   :  { %v14806_v43 = vpop.eup %13359 }
0x1675   :  { %v6562_v2 = vsel %vm1115_vm7, %v14806_v43, 0.0 }
0x1676   :  { %v14810_v16 = vpop.eup %13361  ;;  %6563 = vadd.xlane.f32.xlu0 %v6562_v2 }
0x1677   :  { %v6565_v4 = vsel %vm1115_vm7, %v14810_v16, 0.0 }
0x1678   :  { %6566 = vadd.xlane.f32.xlu1 %v6565_v4  ;;  %v6133_v4 = vpack.c.bf16 %v6117_v25, %v6117_v25 }
0x167c   :  { %v14814_v17 = vpop.eup %13363 }
0x167d   :  { %v6568_v19 = vsel %vm1115_vm7, %v14814_v17, 0.0 }
0x167e   :  { %v14818_v20 = vpop.eup %13365  ;;  %6569 = vadd.xlane.f32.xlu0 %v6568_v19 }
0x167f   :  { %v6571_v11 = vsel %vm1115_vm7, %v14818_v20, 0.0 }
0x1680   :  { %6572 = vadd.xlane.f32.xlu1 %v6571_v11 }
0x16ef   :  { %v6552_v60 = vpop.xlane.xlu0 %6551 }
0x16f0   :  { %13367 = vrcp.f32 %v6552_v60 }
0x16f1   :  { %v6555_v10 = vpop.xlane.xlu1 %6554 }
0x16f2   :  { %13369 = vrcp.f32 %v6555_v10 }
0x16f7   :  { %v6558_v57 = vpop.xlane.xlu0 %6557 }
0x16f8   :  { %13371 = vrcp.f32 %v6558_v57 }
0x16f9   :  { %v6561_v26 = vpop.xlane.xlu1 %6560 }
0x16fa   :  { %13373 = vrcp.f32 %v6561_v26  ;;  %v13192_v26 = vld [vmem:[%s15616_s7 + $0x58] sm:$0xff]  }
0x16fd   :  { %v13368_v1 = vpop.eup %13367 }
0x16fe   :  { %v6582_v31 = vmul.f32 %v13368_v1, %v13352_v21  ;;  %v13195_v1 = vld [vmem:[%s15618_s9 + $0x58] sm:$0xff]  }
0x16ff   :  { %v13370_v48 = vpop.eup %13369  ;;  %v6564_v15 = vpop.xlane.xlu0 %6563 }
0x1700   :  { %v6590_v12 = vpack.c.bf16 %v6582_v31, %v6582_v31  ;;  %v6583_v52 = vmul.f32 %v13370_v48, %v13354_v0  ;;  %13375 = vrcp.f32 %v6564_v15  ;;  %v6131_v0 = vpack.c.bf16 %v6116_v34, %v6116_v34  ;;  %v13196_v31 = vld [vmem:[%s15618_s9 + $0x50] sm:$0xff]  }
0x1701   :  { %v6567_v59 = vpop.xlane.xlu1 %6566 }
0x1702   :  { %v6591_v7 = vpack.c.bf16 %v6583_v52, %v6583_v52  ;;  %13377 = vrcp.f32 %v6567_v59  ;;  %12695 = vmatmul.mubr.msk.bf16.vlgmr.msra.gmra.mxu0 %vm1212_vm8, %v6590_v12 }
0x1703   :  { %12705 = vmatpush3.bf16.msra.mxu0 %v6694_v27  ;;  %12706 = vmatprep.mubr.msk.bf16.mxu0 %vm13511_vm3, %v13510_v6 }
0x1704   :  { %12701 = vmatmul.mubr.msk.bf16.vlgmr.msra.gmra.mxu1 %vm1212_vm8, %v6591_v7  ;;  %12716 = vmatprep.subr.bf16.mxu0 %v13510_v6 }
0x1705   :  { %v13372_v21 = vpop.eup %13371  ;;  %12711 = vmatpush3.bf16.msra.mxu1 %v6740_v13  ;;  %12712 = vmatprep.mubr.msk.bf16.mxu1 %vm13511_vm3, %v13510_v6 }
0x1706   :  { %v6584_v41 = vmul.f32 %v13372_v21, %v13356_v5  ;;  %12722 = vmatprep.subr.bf16.mxu1 %v13510_v6  ;;  %v6832_v5 = vsel %vm1216_vm6, %v6131_v0, 0 }
0x1707   :  { %v13374_v36 = vpop.eup %13373  ;;  %v6570_v24 = vpop.xlane.xlu0 %6569 }
0x1708   :  { %v6592_v38 = vpack.c.bf16 %v6584_v41, %v6584_v41  ;;  %v6585_v62 = vmul.f32 %v13374_v36, %v14802_v58  ;;  %13379 = vrcp.f32 %v6570_v24  ;;  %v6132_v58 = vpack.c.bf16 %v6115_v28, %v6115_v28 }
0x1709   :  { %v6573_v32 = vpop.xlane.xlu1 %6572 }
0x170a   :  { %v6593_v63 = vpack.c.bf16 %v6585_v62, %v6585_v62  ;;  %13381 = vrcp.f32 %v6573_v32  ;;  %12707 = vmatmul.mubr.msk.bf16.vlgmr.msra.gmra.mxu0 %vm1212_vm8, %v6592_v38  ;;  %v6878_v11 = vsel %vm1216_vm6, %v6132_v58, 0 }
0x170b   :  { %12717 = vmatpush3.bf16.msra.mxu0 %v6786_v61  ;;  %12718 = vmatprep.mubr.msk.bf16.mxu0 %vm13511_vm3, %v13510_v6 }
0x170c   :  { %12713 = vmatmul.mubr.msk.bf16.vlgmr.msra.gmra.mxu1 %vm1212_vm8, %v6593_v63  ;;  %12728 = vmatprep.subr.bf16.mxu0 %v13510_v6 }
0x170d   :  { %v13376_v42 = vpop.eup %13375  ;;  %12723 = vmatpush3.bf16.msra.mxu1 %v6832_v5  ;;  %12724 = vmatprep.mubr.msk.bf16.mxu1 %vm13511_vm3, %v13510_v6 }
0x170e   :  { %v6586_v9 = vmul.f32 %v13376_v42, %v14806_v43  ;;  %12734 = vmatprep.subr.bf16.mxu1 %v13510_v6  ;;  %v6924_v43 = vsel %vm1216_vm6, %v6133_v4, 0 }
0x170f   :  { %v13378_v8 = vpop.eup %13377 }
0x1710   :  { %v6594_v46 = vpack.c.bf16 %v6586_v9, %v6586_v9  ;;  %v6587_v2 = vmul.f32 %v13378_v8, %v14810_v16 }
0x1712   :  { %v6595_v19 = vpack.c.bf16 %v6587_v2, %v6587_v2  ;;  %12719 = vmatmul.mubr.msk.bf16.vlgmr.msra.gmra.mxu0 %vm1212_vm8, %v6594_v46 }
0x1713   :  { %12729 = vmatpush3.bf16.msra.mxu0 %v6878_v11  ;;  %12730 = vmatprep.mubr.msk.bf16.mxu0 %vm13511_vm3, %v13510_v6 }
0x1714   :  { %12725 = vmatmul.mubr.msk.bf16.vlgmr.msra.gmra.mxu1 %vm1212_vm8, %v6595_v19  ;;  %12740 = vmatprep.subr.bf16.mxu0 %v13510_v6 }
0x1715   :  { %v13380_v60 = vpop.eup %13379  ;;  %12735 = vmatpush3.bf16.msra.mxu1 %v6924_v43  ;;  %12736 = vmatprep.mubr.msk.bf16.mxu1 %vm13511_vm3, %v13510_v6 }
0x1716   :  { %v6588_v16 = vmul.f32 %v13380_v60, %v14814_v17  ;;  %12748 = vmatprep.subr.bf16.mxu1 %v13510_v6  ;;  %v13193_v17 = vld [vmem:[%s15644_s0 + $0x50] sm:$0xff]  }
0x1717   :  { %v13382_v10 = vpop.eup %13381 }
0x1718   :  { %v6596_v57 = vpack.c.bf16 %v6588_v16, %v6588_v16  ;;  %v6589_v22 = vmul.f32 %v13382_v10, %v14818_v20  ;;  %v13194_v20 = vld [vmem:[%s15616_s7 + $0x50] sm:$0xff]  }
0x171a   :  { %v6597_v30 = vpack.c.bf16 %v6589_v22, %v6589_v22  ;;  %12731 = vmatmul.mubr.msk.bf16.vlgmr.msra.gmra.mxu0 %vm1212_vm8, %v6596_v57 }
0x171b   :  { %12741 = vmatpush3.bf16.msra.mxu0 %v13191_v29  ;;  %12744 = vmatprep.mubr.msk.bf16.mxu0 %vm13511_vm3, %v13510_v6 }
0x171c   :  { %12737 = vmatmul.mubr.msk.bf16.vlgmr.msra.gmra.mxu1 %vm1212_vm8, %v6597_v30  ;;  %12742 = vmatprep.subr.bf16.mxu0 %v13510_v6 }
0x171d   :  { %12749 = vmatpush3.bf16.msra.mxu1 %v13192_v26  ;;  %12752 = vmatprep.mubr.msk.bf16.mxu1 %vm13511_vm3, %v13510_v6  ;;  %v11551_v26 = vld [vmem:[%s15617_s8 + $0x5] ss:$0 sm:$0xff] }
0x171e   :  { %12750 = vmatprep.subr.bf16.mxu1 %v13510_v6 }
0x171f   :  { %12743 = vmatpush3.bf16.msra.mxu0 %v13193_v17 }
0x1720   :  { %12756 = vmatprep.subr.bf16.mxu0 %v13510_v6 }
0x1721   :  { %12751 = vmatpush3.bf16.msra.mxu1 %v13194_v20 }
0x1722   :  { %12745 = vmatmul.mubr.msk.bf16.vlgmr.msra.gmra.mxu0 %vm417_vm4, %v14694_v55  ;;  %12764 = vmatprep.subr.bf16.mxu1 %v13510_v6 }
0x1723   :  { %12757 = vmatpush3.bf16.msra.mxu0 %v13195_v1  ;;  %12760 = vmatprep.mubr.msk.bf16.mxu0 %vm13511_vm3, %v13510_v6 }
0x1724   :  { %12753 = vmatmul.mubr.msk.bf16.vlgmr.msra.gmra.mxu1 %vm417_vm4, %v14694_v55  ;;  %12758 = vmatprep.subr.bf16.mxu0 %v13510_v6 }
0x1725   :  { %12766 = vmatprep.mubr.msk.bf16.mxu1 %vm13511_vm3, %v13510_v6 }
0x1727   :  { %12759 = vmatpush3.bf16.msra.mxu0 %v13196_v31 }
0x1728   :  { %12770 = vmatprep.subr.bf16.mxu0 %v13510_v6 }
0x172a   :  { %12761 = vmatmul.mubr.msk.bf16.vlgmr.msra.gmra.mxu0 %vm417_vm4, %v14694_v55 }
0x172b   :  { %12772 = vmatprep.mubr.msk.bf16.mxu0 %vm13511_vm3, %v13510_v6 }
0x17c2   :  { %v6638_v44 = vpop.f32.mrf.mxu0 }
0x17c4   :  { %v12696_v48 = vpop.f32.mrf.mxu0  ;;  %v6684_v47 = vpop.f32.mrf.mxu1 }
0x17c5   :  { %v6974_v15 = vcombine.low %v6638_v44, %v6684_v47  ;;  %v11542_v48 = vld [vmem:[%s15615_s6 + $0x5] ss:$0 sm:$0xff] }
0x17c6   :  { %v6641_v12 = vpop.f32.mrf.mxu0  ;;  %v12702_v52 = vpop.f32.mrf.mxu1 }
0x17c7   :  { %v6982_v41 = vrot.slane %v6974_v15, %v13701_v51 }
0x17c8   :  { %v12697_v45 = vpop.f32.mrf.mxu0  ;;  %v6687_v59 = vpop.f32.mrf.mxu1 }
0x17ca   :  { %v12703_v7 = vpop.f32.mrf.mxu1  ;;  %v6730_v27 = vpop.f32.mrf.mxu0 }
0x17cc   :  { %v12708_v3 = vpop.f32.mrf.mxu0  ;;  %v6776_v34 = vpop.f32.mrf.mxu1 }
0x17cd   :  { %v6975_v13 = vcombine.low %v6730_v27, %v6776_v34 }
0x17ce   :  { %v6733_v21 = vpop.f32.mrf.mxu0  ;;  %v12714_v49 = vpop.f32.mrf.mxu1 }
0x17cf   :  { %v6989_v36 = vrot.slane %v6975_v13, %v13701_v51 }
0x17d0   :  { %v12709_v28 = vpop.f32.mrf.mxu0  ;;  %v6779_v24 = vpop.f32.mrf.mxu1 }
0x17d1   :  { %v6990_v0 = vcombine.low %v6982_v41, %v6989_v36  ;;  %v11560_v28 = vld [vmem:[%s15619_s10 + $0x5] ss:$0 sm:$0xff] }
0x17d2   :  { %v12715_v38 = vpop.f32.mrf.mxu1  ;;  %v6822_v62 = vpop.f32.mrf.mxu0 }
0x17d4   :  { %v12720_v32 = vpop.f32.mrf.mxu0  ;;  %v6868_v63 = vpop.f32.mrf.mxu1 }
0x17d5   :  { %v6991_v61 = vcombine.low %v6822_v62, %v6868_v63 }
0x17d6   :  { %v6825_v5 = vpop.f32.mrf.mxu0  ;;  %v12726_v25 = vpop.f32.mrf.mxu1 }
0x17d7   :  { %v6999_v43 = vrot.slane %v6991_v61, %v13701_v51 }
0x17d8   :  { %v12721_v42 = vpop.f32.mrf.mxu0  ;;  %v6871_v9 = vpop.f32.mrf.mxu1 }
0x17da   :  { %v12727_v58 = vpop.f32.mrf.mxu1  ;;  %v6914_v8 = vpop.f32.mrf.mxu0 }
0x17dc   :  { %v12732_v46 = vpop.f32.mrf.mxu0  ;;  %v6960_v2 = vpop.f32.mrf.mxu1 }
0x17dd   :  { %v6992_v4 = vcombine.low %v6914_v8, %v6960_v2 }
0x17de   :  { %v6917_v19 = vpop.f32.mrf.mxu0  ;;  %v12738_v11 = vpop.f32.mrf.mxu1 }
0x17df   :  { %v7006_v60 = vrot.slane %v6992_v4, %v13701_v51 }
0x17e0   :  { %v12733_v16 = vpop.f32.mrf.mxu0  ;;  %v6963_v10 = vpop.f32.mrf.mxu1 }
0x17e1   :  { %v7007_v29 = vcombine.low %v6999_v43, %v7006_v60 }
0x17e2   :  { %v12739_v57 = vpop.f32.mrf.mxu1  ;;  %v7072_v22 = vpop.f32.mrf.mxu0 }
0x17e3   :  { %v14914_v30 = vpack.c.bf16 %v7007_v29, %v6990_v0  ;;  %v7073_v3 = vadd.f32 %v11542_v48, %v7072_v22 }
0x17e4   :  { %v12746_v17 = vpop.f32.mrf.mxu0  ;;  %v7138_v20 = vpop.f32.mrf.mxu1 }
0x17e5   :  { %v7139_v1 = vadd.f32 %v11551_v26, %v7138_v20  ;;  %v7220_v36 = vrot.slane %v7073_v3, %v13701_v51  ;;  %v7213_v61 = vcombine.high %v7073_v3, %v7073_v3 }
0x17e6   :  { %v7075_v31 = vpop.f32.mrf.mxu0  ;;  %v12754_v44 = vpop.f32.mrf.mxu1 }
0x17e7   :  { %v7272_v47 = vrot.slane %v7139_v1, %v13701_v51  ;;  %v7265_v52 = vcombine.high %v7139_v1, %v7139_v1  ;;  %v7228_v5 = vcombine.high %v7220_v36, %v7220_v36  ;;  %v7255_v25 = vpack.c.bf16 %v7220_v36, %v7220_v36 }
0x17e8   :  { %v12747_v15 = vpop.f32.mrf.mxu0  ;;  %v7141_v12 = vpop.f32.mrf.mxu1  ;;  %v7227_v8 = vrot.slane %v7213_v61, %v13701_v51  ;;  %v7076_v60 = vadd.f32 %v11542_v48, %v7075_v31 }
0x17e9   :  { %v7280_v45 = vcombine.high %v7272_v47, %v7272_v47  ;;  %v7307_v59 = vpack.c.bf16 %v7272_v47, %v7272_v47  ;;  %v7279_v13 = vrot.slane %v7265_v52, %v13701_v51  ;;  %v7142_v38 = vadd.f32 %v11551_v26, %v7141_v12 }
0x17ea   :  { %v12755_v7 = vpop.f32.mrf.mxu1  ;;  %v7204_v27 = vpop.f32.mrf.mxu0  ;;  %v7256_v46 = vpack.c.bf16 %v7228_v5, %v7228_v5  ;;  %v7229_v43 = vcombine.high %v7227_v8, %v7227_v8  ;;  %v7257_v16 = vpack.c.bf16 %v7227_v8, %v7227_v8  ;;  %v7237_v26 = vrot.slane %v7076_v60, %v13701_v51 }
0x17eb   :  { %v7308_v21 = vpack.c.bf16 %v7280_v45, %v7280_v45  ;;  %v7371_v49 = vsel %vm746_vm5, %v7307_v59, 0  ;;  %v7281_v32 = vcombine.high %v7279_v13, %v7279_v13  ;;  %v7309_v63 = vpack.c.bf16 %v7279_v13, %v7279_v13 }
0x17ec   :  { %v12762_v34 = vpop.f32.mrf.mxu0  ;;  %12765 = vmatpush3.bf16.xpose.msra.mxu1 %v7371_v49  ;;  %v7289_v42 = vrot.slane %v7142_v38, %v13701_v51  ;;  %v7282_v2 = vcombine.high %v7142_v38, %v7142_v38  ;;  %v7258_v22 = vpack.c.bf16 %v7229_v43, %v7229_v43  ;;  %v14950_v17 = vadd.f32 %v11560_v28, %v7204_v27 }
0x17ed   :  { %12776 = vmatprep.subr.bf16.mxu1 %v13510_v6  ;;  %v7417_v62 = vsel %vm746_vm5, %v7308_v21, 0  ;;  %v7310_v9 = vpack.c.bf16 %v7281_v32, %v7281_v32  ;;  %v7463_v58 = vsel %vm746_vm5, %v7309_v63, 0  ;;  %v7230_v44 = vcombine.high %v7076_v60, %v7076_v60 }
0x17ee   :  { %v7207_v41 = vpop.f32.mrf.mxu0  ;;  %12771 = vmatpush3.bf16.xpose.msra.mxu0 %v7417_v62  ;;  %v7297_v4 = vcombine.high %v7289_v42, %v7289_v42  ;;  %v7311_v11 = vpack.c.bf16 %v7289_v42, %v7289_v42  ;;  %v7296_v10 = vrot.slane %v7282_v2, %v13701_v51  ;;  %v7245_v48 = vcombine.high %v7237_v26, %v7237_v26 }
0x17ef   :  { %v14926_v24 = vadd.f32 %v11560_v28, %v7207_v41  ;;  %12782 = vmatprep.subr.bf16.mxu0 %v13510_v6  ;;  %v7509_v19 = vsel %vm746_vm5, %v7310_v9, 0  ;;  %v7259_v47 = vpack.c.bf16 %v7237_v26, %v7237_v26  ;;  %v7324_v15 = vrot.slane %v14950_v17, %v13701_v51 }
0x17f0   :  { %v12763_v0 = vpop.f32.mrf.mxu0  ;;  %v7312_v29 = vpack.c.bf16 %v7297_v4, %v7297_v4  ;;  %v7555_v57 = vsel %vm746_vm5, %v7311_v11, 0  ;;  %v7298_v1 = vcombine.high %v7296_v10, %v7296_v10  ;;  %v7313_v31 = vpack.c.bf16 %v7296_v10, %v7296_v10 }
0x17f1   :  { %v7244_v45 = vrot.slane %v7230_v44, %v13701_v51  ;;  %v7260_v59 = vpack.c.bf16 %v7245_v48, %v7245_v48  ;;  %v7332_v7 = vcombine.high %v7324_v15, %v7324_v15  ;;  %v7359_v3 = vpack.c.bf16 %v7324_v15, %v7324_v15 }
0x17f2   :  { %v7601_v20 = vsel %vm746_vm5, %v7312_v29, 0  ;;  %v7314_v12 = vpack.c.bf16 %v7298_v1, %v7298_v1  ;;  %v7647_v52 = vsel %vm746_vm5, %v7313_v31, 0 }
0x17f3   :  { %12767 = vmatmul.mubr.msk.bf16.vlgmr.msra.gmra.mxu1 %vm746_vm5, %v7255_v25  ;;  %v7246_v34 = vcombine.high %v7244_v45, %v7244_v45  ;;  %v7261_v13 = vpack.c.bf16 %v7244_v45, %v7244_v45  ;;  %v7360_v21 = vpack.c.bf16 %v7332_v7, %v7332_v7  ;;  %v7835_v49 = vsel %vm1216_vm6, %v7359_v3, 0 }
0x17f4   :  { %12777 = vmatpush3.bf16.xpose.msra.mxu1 %v7463_v58  ;;  %12778 = vmatprep.mubr.msk.bf16.mxu1 %vm13511_vm3, %v13510_v6  ;;  %v7693_v27 = vsel %vm746_vm5, %v7314_v12, 0 }
0x17f5   :  { %12788 = vmatprep.subr.bf16.mxu1 %v13510_v6  ;;  %12773 = vmatmul.mubr.msk.bf16.vlgmr.msra.gmra.mxu0 %vm746_vm5, %v7256_v46  ;;  %v7262_v41 = vpack.c.bf16 %v7246_v34, %v7246_v34  ;;  %v7881_v36 = vsel %vm1216_vm6, %v7360_v21, 0 }
0x17f6   :  { %12783 = vmatpush3.bf16.xpose.msra.mxu0 %v7509_v19  ;;  %12784 = vmatprep.mubr.msk.bf16.mxu0 %vm13511_vm3, %v13510_v6 }
0x17f7   :  { %12794 = vmatprep.subr.bf16.mxu0 %v13510_v6 }
0x17fb   :  { %12779 = vmatmul.mubr.msk.bf16.vlgmr.msra.gmra.mxu1 %vm746_vm5, %v7257_v16 }
0x17fc   :  { %12789 = vmatpush3.bf16.xpose.msra.mxu1 %v7555_v57  ;;  %12790 = vmatprep.mubr.msk.bf16.mxu1 %vm13511_vm3, %v13510_v6 }
0x17fd   :  { %12800 = vmatprep.subr.bf16.mxu1 %v13510_v6  ;;  %12785 = vmatmul.mubr.msk.bf16.vlgmr.msra.gmra.mxu0 %vm746_vm5, %v7258_v22 }
0x17fe   :  { %12795 = vmatpush3.bf16.xpose.msra.mxu0 %v7601_v20  ;;  %12796 = vmatprep.mubr.msk.bf16.mxu0 %vm13511_vm3, %v13510_v6 }
0x17ff   :  { %12806 = vmatprep.subr.bf16.mxu0 %v13510_v6 }
0x1803   :  { %12791 = vmatmul.mubr.msk.bf16.vlgmr.msra.gmra.mxu1 %vm746_vm5, %v7259_v47 }
0x1804   :  { %12801 = vmatpush3.bf16.xpose.msra.mxu1 %v7647_v52  ;;  %12802 = vmatprep.mubr.msk.bf16.mxu1 %vm13511_vm3, %v13510_v6 }
0x1805   :  { %12812 = vmatprep.subr.bf16.mxu1 %v13510_v6  ;;  %12797 = vmatmul.mubr.msk.bf16.vlgmr.msra.gmra.mxu0 %vm746_vm5, %v7260_v59 }
0x1806   :  { %12807 = vmatpush3.bf16.xpose.msra.mxu0 %v7693_v27  ;;  %12808 = vmatprep.mubr.msk.bf16.mxu0 %vm13511_vm3, %v13510_v6 }
0x1807   :  { %12818 = vmatprep.subr.bf16.mxu0 %v13510_v6 }
0x180b   :  { %12803 = vmatmul.mubr.msk.bf16.vlgmr.msra.gmra.mxu1 %vm746_vm5, %v7261_v13 }
0x180c   :  { %12813 = vmatpush3.bf16.msra.mxu1 %v7835_v49  ;;  %12814 = vmatprep.mubr.msk.bf16.mxu1 %vm13511_vm3, %v13510_v6 }
0x180d   :  { %12824 = vmatprep.subr.bf16.mxu1 %v13510_v6  ;;  %12809 = vmatmul.mubr.msk.bf16.vlgmr.msra.gmra.mxu0 %vm746_vm5, %v7262_v41 }
0x180e   :  { %12819 = vmatpush3.bf16.msra.mxu0 %v7881_v36  ;;  %12820 = vmatprep.mubr.msk.bf16.mxu0 %vm13511_vm3, %v13510_v6 }
0x180f   :  { %12830 = vmatprep.subr.bf16.mxu0 %v13510_v6 }
0x18b3   :  { %v7407_v28 = vpop.f32.mrf.mxu1 }
0x18b4   :  { %v7408_v0 = vadd.f32 %v7407_v28, %v13828_v40 }
0x18b5   :  { %v12768_v38 = vpop.f32.mrf.mxu1  ;;  %v7453_v62 = vpop.f32.mrf.mxu0 }
0x18b6   :  { %v7735_v32 = vsel %vm1115_vm7, %v7408_v0, -inf  ;;  %v7454_v63 = vadd.f32 %v7453_v62, %v13824_v35 }
0x18b7   :  { %7736 = vmax.xlane.f32.xlu1 %v7735_v32  ;;  %v7410_v61 = vpop.f32.mrf.mxu1  ;;  %v12774_v5 = vpop.f32.mrf.mxu0 }
0x18b8   :  { %v7738_v25 = vsel %vm1115_vm7, %v7454_v63, -inf }
0x18b9   :  { %v12769_v42 = vpop.f32.mrf.mxu1  ;;  %7739 = vmax.xlane.f32.xlu0 %v7738_v25  ;;  %v7456_v9 = vpop.f32.mrf.mxu0 }
0x18bb   :  { %v7499_v58 = vpop.f32.mrf.mxu1  ;;  %v12775_v8 = vpop.f32.mrf.mxu0 }
0x18bc   :  { %v7500_v46 = vadd.f32 %v7499_v58, %v13841_v53 }
0x18bd   :  { %v12780_v2 = vpop.f32.mrf.mxu1  ;;  %v7545_v4 = vpop.f32.mrf.mxu0 }
0x18be   :  { %v7741_v19 = vsel %vm1115_vm7, %v7500_v46, -inf  ;;  %v7546_v11 = vadd.f32 %v7545_v4, %v13844_v56 }
0x18bf   :  { %7742 = vmax.xlane.f32.xlu1 %v7741_v19  ;;  %v7502_v43 = vpop.f32.mrf.mxu1  ;;  %v12786_v60 = vpop.f32.mrf.mxu0 }
0x18c0   :  { %v7744_v16 = vsel %vm1115_vm7, %v7546_v11, -inf }
0x18c1   :  { %v12781_v10 = vpop.f32.mrf.mxu1  ;;  %7745 = vmax.xlane.f32.xlu0 %v7744_v16  ;;  %v7548_v29 = vpop.f32.mrf.mxu0 }
0x18c3   :  { %v7591_v57 = vpop.f32.mrf.mxu1  ;;  %v12787_v22 = vpop.f32.mrf.mxu0 }
0x18c4   :  { %v7592_v26 = vadd.f32 %v7591_v57, %v13863_v18 }
0x18c5   :  { %v12792_v20 = vpop.f32.mrf.mxu1  ;;  %v7637_v1 = vpop.f32.mrf.mxu0 }
0x18c6   :  { %v7747_v31 = vsel %vm1115_vm7, %v7592_v26, -inf  ;;  %v7638_v44 = vadd.f32 %v7637_v1, %v13860_v14 }
0x18c7   :  { %7748 = vmax.xlane.f32.xlu1 %v7747_v31  ;;  %v7594_v48 = vpop.f32.mrf.mxu1  ;;  %v12798_v47 = vpop.f32.mrf.mxu0 }
0x18c8   :  { %v7750_v15 = vsel %vm1115_vm7, %v7638_v44, -inf }
0x18c9   :  { %v12793_v12 = vpop.f32.mrf.mxu1  ;;  %7751 = vmax.xlane.f32.xlu0 %v7750_v15  ;;  %v7640_v52 = vpop.f32.mrf.mxu0 }
0x18cb   :  { %v7683_v45 = vpop.f32.mrf.mxu1  ;;  %v12799_v59 = vpop.f32.mrf.mxu0 }
0x18cc   :  { %v7684_v7 = vadd.f32 %v7683_v45, %v13874_v39 }
0x18cd   :  { %v12804_v27 = vpop.f32.mrf.mxu1  ;;  %v7729_v3 = vpop.f32.mrf.mxu0 }
0x18ce   :  { %v7753_v34 = vsel %vm1115_vm7, %v7684_v7, -inf  ;;  %v7730_v13 = vadd.f32 %v7729_v3, %v13871_v33 }
0x18cf   :  { %7754 = vmax.xlane.f32.xlu1 %v7753_v34  ;;  %v7686_v21 = vpop.f32.mrf.mxu1  ;;  %v12810_v49 = vpop.f32.mrf.mxu0 }
0x18d0   :  { %v7756_v41 = vsel %vm1115_vm7, %v7730_v13, -inf }
0x18d1   :  { %v12805_v36 = vpop.f32.mrf.mxu1  ;;  %7757 = vmax.xlane.f32.xlu0 %v7756_v41  ;;  %v7732_v28 = vpop.f32.mrf.mxu0  ;;  %v7317_v41 = vcombine.high %v14950_v17, %v14950_v17 }
0x18d3   :  { %v12811_v38 = vpop.f32.mrf.mxu0  ;;  %v7331_v28 = vrot.slane %v7317_v41, %v13701_v51 }
0x1940   :  { %v7737_v62 = vpop.xlane.xlu1 %7736 }
0x1941   :  { %v7759_v32 = vsub.f32 %v7408_v0, %v7737_v62 }
0x1942   :  { %v7740_v5 = vpop.xlane.xlu0 %7739 }
0x1943   :  { %v7767_v61 = vmul.f32 1.442695, %v7759_v32  ;;  %v7760_v25 = vsub.f32 %v7454_v63, %v7740_v5  ;;  %v7333_v32 = vcombine.high %v7331_v28, %v7331_v28  ;;  %v7361_v5 = vpack.c.bf16 %v7331_v28, %v7331_v28  ;;  %v11536_v28 = vld [vmem:[%s15620_s11 + $0x10] sm:$0xf] }
0x1945   :  { %13383 = vpow2.f32 %v7767_v61  ;;  %v7769_v42 = vmul.f32 1.442695, %v7760_v25 }
0x1947   :  { %13385 = vpow2.f32 %v7769_v42 }
0x1948   :  { %v7743_v9 = vpop.xlane.xlu1 %7742 }
0x1949   :  { %v7761_v58 = vsub.f32 %v7500_v46, %v7743_v9 }
0x194a   :  { %v7746_v2 = vpop.xlane.xlu0 %7745 }
0x194b   :  { %v7771_v8 = vmul.f32 1.442695, %v7761_v58  ;;  %v7762_v4 = vsub.f32 %v7546_v11, %v7746_v2  ;;  %v7341_v58 = vrot.slane %v14926_v24, %v13701_v51  ;;  %v7362_v2 = vpack.c.bf16 %v7333_v32, %v7333_v32 }
0x194c   :  { %v8297_v32 = vsel %vm2864_vm9, %v11536_v28, 0 }
0x194d   :  { %13387 = vpow2.f32 %v7771_v8  ;;  %v7773_v19 = vmul.f32 1.442695, %v7762_v4  ;;  %v7927_v4 = vsel %vm1216_vm6, %v7361_v5, 0 }
0x194f   :  { %13389 = vpow2.f32 %v7773_v19 }
0x1950   :  { %v7749_v43 = vpop.xlane.xlu1 %7748 }
0x1951   :  { %v7763_v60 = vsub.f32 %v7592_v26, %v7749_v43 }
0x1952   :  { %v13384_v16 = vpop.eup %13383  ;;  %v7752_v29 = vpop.xlane.xlu0 %7751 }
0x1953   :  { %v7775_v10 = vmul.f32 1.442695, %v7763_v60  ;;  %v7783_v0 = vsel %vm1115_vm7, %v13384_v16, 0.0  ;;  %v7764_v57 = vsub.f32 %v7638_v44, %v7752_v29  ;;  %v7334_v60 = vcombine.high %v14926_v24, %v14926_v24 }
0x1954   :  { %7784 = vadd.xlane.f32.xlu1 %v7783_v0  ;;  %v13386_v63 = vpop.eup %13385  ;;  %v7363_v29 = vpack.c.bf16 %v7341_v58, %v7341_v58 }
0x1955   :  { %13391 = vpow2.f32 %v7775_v10  ;;  %v7777_v22 = vmul.f32 1.442695, %v7764_v57  ;;  %v7786_v46 = vsel %vm1115_vm7, %v13386_v63, 0.0  ;;  %v7973_v10 = vsel %vm1216_vm6, %v7362_v2, 0 }
0x1956   :  { %7787 = vadd.xlane.f32.xlu0 %v7786_v46  ;;  %v7348_v46 = vrot.slane %v7334_v60, %v13701_v51 }
0x1957   :  { %13393 = vpow2.f32 %v7777_v22 }
0x1958   :  { %v7755_v11 = vpop.xlane.xlu1 %7754 }
0x1959   :  { %v7765_v20 = vsub.f32 %v7684_v7, %v7755_v11 }
0x195a   :  { %v13388_v1 = vpop.eup %13387  ;;  %v7758_v48 = vpop.xlane.xlu0 %7757 }
0x195b   :  { %v7779_v31 = vmul.f32 1.442695, %v7765_v20  ;;  %v7789_v26 = vsel %vm1115_vm7, %v13388_v1, 0.0  ;;  %v7766_v47 = vsub.f32 %v7730_v13, %v7758_v48 }
0x195c   :  { %7790 = vadd.xlane.f32.xlu1 %v7789_v26  ;;  %v14999_v15 = vpop.eup %13389 }
0x195d   :  { %13395 = vpow2.f32 %v7779_v31  ;;  %v7781_v44 = vmul.f32 1.442695, %v7766_v47  ;;  %v7792_v12 = vsel %vm1115_vm7, %v14999_v15, 0.0  ;;  %v7350_v47 = vcombine.high %v7348_v46, %v7348_v46 }
0x195e   :  { %7793 = vadd.xlane.f32.xlu0 %v7792_v12 }
0x195f   :  { %13397 = vpow2.f32 %v7781_v44  ;;  %v7365_v44 = vpack.c.bf16 %v7348_v46, %v7348_v46 }
0x1962   :  { %v15003_v52 = vpop.eup %13391 }
0x1963   :  { %v7795_v45 = vsel %vm1115_vm7, %v15003_v52, 0.0 }
0x1964   :  { %7796 = vadd.xlane.f32.xlu1 %v7795_v45  ;;  %v15007_v59 = vpop.eup %13393 }
0x1965   :  { %v7798_v7 = vsel %vm1115_vm7, %v15007_v59, 0.0 }
0x1966   :  { %7799 = vadd.xlane.f32.xlu0 %v7798_v7 }
0x196a   :  { %v15011_v27 = vpop.eup %13395 }
0x196b   :  { %v7801_v3 = vsel %vm1115_vm7, %v15011_v27, 0.0 }
0x196c   :  { %7802 = vadd.xlane.f32.xlu1 %v7801_v3  ;;  %v15015_v34 = vpop.eup %13397  ;;  %v7366_v3 = vpack.c.bf16 %v7350_v47, %v7350_v47 }
0x196d   :  { %v7804_v13 = vsel %vm1115_vm7, %v15015_v34, 0.0 }
0x196e   :  { %7805 = vadd.xlane.f32.xlu0 %v7804_v13  ;;  %v8111_v13 = vsel %vm1216_vm6, %v7365_v44, 0 }
0x19dd   :  { %v7785_v21 = vpop.xlane.xlu1 %7784 }
0x19de   :  { %13399 = vrcp.f32 %v7785_v21 }
0x19df   :  { %v7788_v49 = vpop.xlane.xlu0 %7787 }
0x19e0   :  { %13401 = vrcp.f32 %v7788_v49  ;;  %v8157_v49 = vsel %vm1216_vm6, %v7366_v3, 0 }
0x19e5   :  { %v7791_v36 = vpop.xlane.xlu1 %7790 }
0x19e6   :  { %13403 = vrcp.f32 %v7791_v36 }
0x19e7   :  { %v7794_v38 = vpop.xlane.xlu0 %7793 }
0x19e8   :  { %13405 = vrcp.f32 %v7794_v38 }
0x19eb   :  { %v13400_v62 = vpop.eup %13399 }
0x19ec   :  { %v7815_v61 = vmul.f32 %v13400_v62, %v13384_v16  ;;  %v7349_v16 = vcombine.high %v7341_v58, %v7341_v58 }
0x19ed   :  { %v7797_v25 = vpop.xlane.xlu1 %7796  ;;  %v13402_v42 = vpop.eup %13401 }
0x19ee   :  { %v7823_v9 = vpack.c.bf16 %v7815_v61, %v7815_v61  ;;  %13407 = vrcp.f32 %v7797_v25  ;;  %v7816_v8 = vmul.f32 %v13402_v42, %v13386_v63  ;;  %v7364_v24 = vpack.c.bf16 %v7349_v16, %v7349_v16 }
0x19ef   :  { %v7800_v17 = vpop.xlane.xlu0 %7799 }
0x19f0   :  { %12815 = vmatmul.mubr.msk.bf16.vlgmr.msra.gmra.mxu1 %vm1212_vm8, %v7823_v9  ;;  %v7824_v19 = vpack.c.bf16 %v7816_v8, %v7816_v8  ;;  %13409 = vrcp.f32 %v7800_v17  ;;  %v8065_v26 = vsel %vm1216_vm6, %v7364_v24, 0 }
0x19f1   :  { %12825 = vmatpush3.bf16.msra.mxu1 %v7927_v4  ;;  %12826 = vmatprep.mubr.msk.bf16.mxu1 %vm13511_vm3, %v13510_v6 }
0x19f2   :  { %12836 = vmatprep.subr.bf16.mxu1 %v13510_v6  ;;  %12821 = vmatmul.mubr.msk.bf16.vlgmr.msra.gmra.mxu0 %vm1212_vm8, %v7824_v19 }
0x19f3   :  { %v13404_v43 = vpop.eup %13403  ;;  %12831 = vmatpush3.bf16.msra.mxu0 %v7973_v10  ;;  %12832 = vmatprep.mubr.msk.bf16.mxu0 %vm13511_vm3, %v13510_v6 }
0x19f4   :  { %v7817_v0 = vmul.f32 %v13404_v43, %v13388_v1  ;;  %12842 = vmatprep.subr.bf16.mxu0 %v13510_v6  ;;  %v8019_v1 = vsel %vm1216_vm6, %v7363_v29, 0 }
0x19f5   :  { %v7803_v57 = vpop.xlane.xlu1 %7802  ;;  %v13406_v63 = vpop.eup %13405 }
0x19f6   :  { %v7825_v22 = vpack.c.bf16 %v7817_v0, %v7817_v0  ;;  %13411 = vrcp.f32 %v7803_v57  ;;  %v7818_v11 = vmul.f32 %v13406_v63, %v14999_v15 }
0x19f7   :  { %v7806_v20 = vpop.xlane.xlu0 %7805 }
0x19f8   :  { %12827 = vmatmul.mubr.msk.bf16.vlgmr.msra.gmra.mxu1 %vm1212_vm8, %v7825_v22  ;;  %v7826_v31 = vpack.c.bf16 %v7818_v11, %v7818_v11  ;;  %13413 = vrcp.f32 %v7806_v20 }
0x19f9   :  { %12837 = vmatpush3.bf16.msra.mxu1 %v8019_v1  ;;  %12838 = vmatprep.mubr.msk.bf16.mxu1 %vm13511_vm3, %v13510_v6 }
0x19fa   :  { %12848 = vmatprep.subr.bf16.mxu1 %v13510_v6  ;;  %12833 = vmatmul.mubr.msk.bf16.vlgmr.msra.gmra.mxu0 %vm1212_vm8, %v7826_v31 }
0x19fb   :  { %v13408_v48 = vpop.eup %13407  ;;  %12843 = vmatpush3.bf16.msra.mxu0 %v8065_v26  ;;  %12844 = vmatprep.mubr.msk.bf16.mxu0 %vm13511_vm3, %v13510_v6 }
0x19fc   :  { %v7819_v15 = vmul.f32 %v13408_v48, %v15003_v52  ;;  %12854 = vmatprep.subr.bf16.mxu0 %v13510_v6 }
0x19fd   :  { %v13410_v12 = vpop.eup %13409 }
0x19fe   :  { %v7827_v45 = vpack.c.bf16 %v7819_v15, %v7819_v15  ;;  %v7820_v7 = vmul.f32 %v13410_v12, %v15007_v59 }
0x1a00   :  { %12839 = vmatmul.mubr.msk.bf16.vlgmr.msra.gmra.mxu1 %vm1212_vm8, %v7827_v45  ;;  %v7828_v21 = vpack.c.bf16 %v7820_v7, %v7820_v7 }
0x1a01   :  { %12849 = vmatpush3.bf16.msra.mxu1 %v8111_v13  ;;  %12850 = vmatprep.mubr.msk.bf16.mxu1 %vm13511_vm3, %v13510_v6 }
0x1a02   :  { %12860 = vmatprep.subr.bf16.mxu1 %v13510_v6  ;;  %12845 = vmatmul.mubr.msk.bf16.vlgmr.msra.gmra.mxu0 %vm1212_vm8, %v7828_v21 }
0x1a03   :  { %v13412_v52 = vpop.eup %13411  ;;  %12855 = vmatpush3.bf16.msra.mxu0 %v8157_v49  ;;  %12856 = vmatprep.mubr.msk.bf16.mxu0 %vm13511_vm3, %v13510_v6 }
0x1a04   :  { %v7821_v41 = vmul.f32 %v13412_v52, %v15011_v27  ;;  %12866 = vmatprep.subr.bf16.mxu0 %v13510_v6  ;;  %v13197_v27 = vld [vmem:[%s15616_s7 + $0x68] sm:$0xff]  }
0x1a05   :  { %v13414_v59 = vpop.eup %13413 }
0x1a06   :  { %v7829_v36 = vpack.c.bf16 %v7821_v41, %v7821_v41  ;;  %v7822_v38 = vmul.f32 %v13414_v59, %v15015_v34  ;;  %v13198_v34 = vld [vmem:[%s15616_s7 + $0x60] sm:$0xff]  }
0x1a08   :  { %12851 = vmatmul.mubr.msk.bf16.vlgmr.msra.gmra.mxu1 %vm1212_vm8, %v7829_v36  ;;  %v7830_v62 = vpack.c.bf16 %v7822_v38, %v7822_v38  ;;  %v13199_v38 = vld [vmem:[%s15644_s0 + $0x68] sm:$0xff]  }
0x1a09   :  { %12862 = vmatprep.mubr.msk.bf16.mxu1 %vm13511_vm3, %v13510_v6 }
0x1a0a   :  { %12857 = vmatmul.mubr.msk.bf16.vlgmr.msra.gmra.mxu0 %vm1212_vm8, %v7830_v62 }
0x1a0b   :  { %12867 = vmatpush3.bf16.msra.mxu0 %v8297_v32  ;;  %12868 = vmatprep.mubr.msk.bf16.mxu0 %vm13511_vm3, %v13510_v6 }
0x1a0c   :  { %12880 = vmatprep.subr.bf16.mxu0 %v13510_v6 }
0x1a12   :  { %12869 = vmatmul.mubr.msk.bf16.vlgmr.msra.gmra.mxu0 %vm746_vm5, %v14914_v30  ;;  %v11580_v30 = vld [vmem:[%s15620_s11 + $0x14] sm:$0xf] }
0x1a13   :  { %12881 = vmatpush3.bf16.msra.mxu0 %v13197_v27  ;;  %12884 = vmatprep.mubr.msk.bf16.mxu0 %vm13511_vm3, %v13510_v6  ;;  %v8250_v61 = vsel %vm2864_vm9, %v11580_v30, 0 }
0x1a14   :  { %12882 = vmatprep.subr.bf16.mxu0 %v13510_v6  ;;  %12861 = vmatpush3.bf16.msra.mxu1 %v8250_v61 }
0x1a15   :  { %12872 = vmatprep.subr.bf16.mxu1 %v13510_v6 }
0x1a17   :  { %12883 = vmatpush3.bf16.msra.mxu0 %v13198_v34  ;;  %v13200_v34 = vld [vmem:[%s15644_s0 + $0x60] sm:$0xff]  }
0x1a18   :  { %12896 = vmatprep.subr.bf16.mxu0 %v13510_v6 }
0x1a1a   :  { %12885 = vmatmul.mubr.msk.bf16.vlgmr.msra.gmra.mxu0 %vm417_vm4, %v14694_v55 }
0x1a1b   :  { %12898 = vmatprep.mubr.msk.bf16.mxu0 %vm13511_vm3, %v13510_v6 }
0x1ab0   :  { %v7871_v5 = vpop.f32.mrf.mxu1 }
0x1ab2   :  { %v12816_v25 = vpop.f32.mrf.mxu1  ;;  %v7917_v42 = vpop.f32.mrf.mxu0 }
0x1ab3   :  { %v8207_v26 = vcombine.low %v7871_v5, %v7917_v42  ;;  %v11597_v5 = vld [vmem:[%s15617_s8 + $0x6] ss:$0 sm:$0xff]  ;;  %v13201_v25 = vld [vmem:[%s15618_s9 + $0x68] sm:$0xff]  }
0x1ab4   :  { %v7874_v9 = vpop.f32.mrf.mxu1  ;;  %v12822_v58 = vpop.f32.mrf.mxu0 }
0x1ab5   :  { %v8215_v13 = vrot.slane %v8207_v26, %v13701_v51 }
0x1ab6   :  { %v12817_v8 = vpop.f32.mrf.mxu1  ;;  %v7920_v2 = vpop.f32.mrf.mxu0 }
0x1ab7   :  { %v13202_v8 = vld [vmem:[%s15618_s9 + $0x60] sm:$0xff]  }
0x1ab8   :  { %v7963_v17 = vpop.f32.mrf.mxu1  ;;  %v12823_v4 = vpop.f32.mrf.mxu0 }
0x1aba   :  { %v12828_v19 = vpop.f32.mrf.mxu1  ;;  %v8009_v43 = vpop.f32.mrf.mxu0 }
0x1abb   :  { %v8208_v1 = vcombine.low %v7963_v17, %v8009_v43 }
0x1abc   :  { %v7966_v60 = vpop.f32.mrf.mxu1  ;;  %v12834_v16 = vpop.f32.mrf.mxu0 }
0x1abd   :  { %v8222_v12 = vrot.slane %v8208_v1, %v13701_v51 }
0x1abe   :  { %v12829_v10 = vpop.f32.mrf.mxu1  ;;  %v8012_v29 = vpop.f32.mrf.mxu0 }
0x1abf   :  { %v8223_v59 = vcombine.low %v8215_v13, %v8222_v12 }
0x1ac0   :  { %v8055_v0 = vpop.f32.mrf.mxu1  ;;  %v12835_v57 = vpop.f32.mrf.mxu0 }
0x1ac2   :  { %v12840_v63 = vpop.f32.mrf.mxu1  ;;  %v8101_v22 = vpop.f32.mrf.mxu0 }
0x1ac3   :  { %v8224_v47 = vcombine.low %v8055_v0, %v8101_v22 }
0x1ac4   :  { %v8058_v46 = vpop.f32.mrf.mxu1  ;;  %v12846_v24 = vpop.f32.mrf.mxu0 }
0x1ac5   :  { %v8232_v21 = vrot.slane %v8224_v47, %v13701_v51 }
0x1ac6   :  { %v12841_v11 = vpop.f32.mrf.mxu1  ;;  %v8104_v20 = vpop.f32.mrf.mxu0 }
0x1ac7   :  { %v11588_v11 = vld [vmem:[%s15615_s6 + $0x6] ss:$0 sm:$0xff] }
0x1ac8   :  { %v8147_v31 = vpop.f32.mrf.mxu1  ;;  %v12847_v48 = vpop.f32.mrf.mxu0 }
0x1aca   :  { %v12852_v15 = vpop.f32.mrf.mxu1  ;;  %v8193_v44 = vpop.f32.mrf.mxu0 }
0x1acb   :  { %v8225_v45 = vcombine.low %v8147_v31, %v8193_v44 }
0x1acc   :  { %v8150_v7 = vpop.f32.mrf.mxu1  ;;  %v12858_v3 = vpop.f32.mrf.mxu0 }
0x1acd   :  { %v8239_v52 = vrot.slane %v8225_v45, %v13701_v51 }
0x1ace   :  { %v12853_v49 = vpop.f32.mrf.mxu1  ;;  %v8196_v41 = vpop.f32.mrf.mxu0 }
0x1acf   :  { %v8240_v36 = vcombine.low %v8232_v21, %v8239_v52 }
0x1ad0   :  { %v12859_v28 = vpop.f32.mrf.mxu0 }
0x1ad1   :  { %v8243_v62 = vpack.c.bf16 %v8240_v36, %v8223_v59 }
0x1ad2   :  { %v15101_v32 = vpop.f32.mrf.mxu0 }
0x1ad3   :  { %12863 = vmatmul.mubr.msk.bf16.vlgmr.msra.gmra.mxu1 %vm746_vm5, %v8243_v62 }
0x1ad4   :  { %v12870_v27 = vpop.f32.mrf.mxu0  ;;  %12873 = vmatpush3.bf16.msra.mxu1 %v13199_v38  ;;  %12876 = vmatprep.mubr.msk.bf16.mxu1 %vm13511_vm3, %v13510_v6 }
0x1ad5   :  { %12874 = vmatprep.subr.bf16.mxu1 %v13510_v6 }
0x1ad6   :  { %v15110_v30 = vpop.f32.mrf.mxu0 }
0x1ad8   :  { %v12871_v61 = vpop.f32.mrf.mxu0  ;;  %12875 = vmatpush3.bf16.msra.mxu1 %v13200_v34 }
0x1ad9   :  { %12888 = vmatprep.subr.bf16.mxu1 %v13510_v6 }
0x1ada   :  { %v8465_v42 = vpop.f32.mrf.mxu0 }
0x1adb   :  { %v8466_v9 = vadd.f32 %v11597_v5, %v8465_v42  ;;  %12877 = vmatmul.mubr.msk.bf16.vlgmr.msra.gmra.mxu1 %vm417_vm4, %v14694_v55 }
0x1adc   :  { %v12886_v58 = vpop.f32.mrf.mxu0  ;;  %12889 = vmatpush3.bf16.msra.mxu1 %v13201_v25  ;;  %12892 = vmatprep.mubr.msk.bf16.mxu1 %vm13511_vm3, %v13510_v6 }
0x1add   :  { %v8599_v2 = vrot.slane %v8466_v9, %v13701_v51  ;;  %12890 = vmatprep.subr.bf16.mxu1 %v13510_v6  ;;  %v8592_v57 = vcombine.high %v8466_v9, %v8466_v9  ;;  %v11606_v9 = vld [vmem:[%s15619_s10 + $0x6] ss:$0 sm:$0xff] }
0x1ade   :  { %v8468_v17 = vpop.f32.mrf.mxu0 }
0x1adf   :  { %v8607_v4 = vcombine.high %v8599_v2, %v8599_v2  ;;  %v8634_v19 = vpack.c.bf16 %v8599_v2, %v8599_v2  ;;  %v8469_v43 = vadd.f32 %v11597_v5, %v8468_v17  ;;  %v8606_v46 = vrot.slane %v8592_v57, %v13701_v51 }
0x1ae0   :  { %v12887_v60 = vpop.f32.mrf.mxu0  ;;  %12891 = vmatpush3.bf16.msra.mxu1 %v13202_v8 }
0x1ae1   :  { %v8635_v16 = vpack.c.bf16 %v8607_v4, %v8607_v4  ;;  %v8698_v10 = vsel %vm746_vm5, %v8634_v19, 0  ;;  %12902 = vmatprep.subr.bf16.mxu1 %v13510_v6  ;;  %v8608_v31 = vcombine.high %v8606_v46, %v8606_v46  ;;  %v8636_v15 = vpack.c.bf16 %v8606_v46, %v8606_v46 }
0x1ae2   :  { %12897 = vmatpush3.bf16.xpose.msra.mxu0 %v8698_v10  ;;  %v8616_v12 = vrot.slane %v8469_v43, %v13701_v51  ;;  %v8609_v59 = vcombine.high %v8469_v43, %v8469_v43 }
0x1ae3   :  { %12893 = vmatmul.mubr.msk.bf16.vlgmr.msra.gmra.mxu1 %vm417_vm4, %v14694_v55  ;;  %v8744_v29 = vsel %vm746_vm5, %v8635_v16, 0  ;;  %12908 = vmatprep.subr.bf16.mxu0 %v13510_v6  ;;  %v8637_v3 = vpack.c.bf16 %v8608_v31, %v8608_v31  ;;  %v8790_v49 = vsel %vm746_vm5, %v8636_v15, 0 }
0x1ae4   :  { %12903 = vmatpush3.bf16.xpose.msra.mxu1 %v8744_v29  ;;  %12904 = vmatprep.mubr.msk.bf16.mxu1 %vm13511_vm3, %v13510_v6  ;;  %v8624_v36 = vcombine.high %v8616_v12, %v8616_v12  ;;  %v8638_v62 = vpack.c.bf16 %v8616_v12, %v8616_v12  ;;  %v8623_v5 = vrot.slane %v8609_v59, %v13701_v51 }
0x1ae5   :  { %12914 = vmatprep.subr.bf16.mxu1 %v13510_v6  ;;  %v8836_v28 = vsel %vm746_vm5, %v8637_v3, 0 }
0x1ae6   :  { %v8639_v25 = vpack.c.bf16 %v8624_v36, %v8624_v36  ;;  %v8882_v4 = vsel %vm746_vm5, %v8638_v62, 0  ;;  %v8625_v60 = vcombine.high %v8623_v5, %v8623_v5  ;;  %v8640_v29 = vpack.c.bf16 %v8623_v5, %v8623_v5 }
0x1ae8   :  { %v8928_v43 = vsel %vm746_vm5, %v8639_v25, 0  ;;  %v8641_v46 = vpack.c.bf16 %v8625_v60, %v8625_v60 }
0x1aea   :  { %v9020_v31 = vsel %vm746_vm5, %v8641_v46, 0 }
0x1b93   :  { %v15137_v0 = vpop.f32.mrf.mxu1 }
0x1b95   :  { %v12864_v63 = vpop.f32.mrf.mxu1 }
0x1b97   :  { %v15139_v22 = vpop.f32.mrf.mxu1 }
0x1b99   :  { %v12865_v24 = vpop.f32.mrf.mxu1 }
0x1b9b   :  { %v8399_v20 = vpop.f32.mrf.mxu1 }
0x1b9c   :  { %v8400_v1 = vadd.f32 %v11588_v11, %v8399_v20  ;;  %v8974_v20 = vsel %vm746_vm5, %v8640_v29, 0 }
0x1b9d   :  { %v12878_v48 = vpop.f32.mrf.mxu1 }
0x1b9e   :  { %v8540_v26 = vcombine.high %v8400_v1, %v8400_v1  ;;  %v8547_v47 = vrot.slane %v8400_v1, %v13701_v51 }
0x1b9f   :  { %v8402_v44 = vpop.f32.mrf.mxu1 }
0x1ba0   :  { %v8555_v45 = vcombine.high %v8547_v47, %v8547_v47  ;;  %v8582_v7 = vpack.c.bf16 %v8547_v47, %v8547_v47  ;;  %v8554_v21 = vrot.slane %v8540_v26, %v13701_v51  ;;  %v8403_v34 = vadd.f32 %v11588_v11, %v8402_v44 }
0x1ba1   :  { %v12879_v13 = vpop.f32.mrf.mxu1 }
0x1ba2   :  { %v8583_v52 = vpack.c.bf16 %v8555_v45, %v8555_v45  ;;  %12899 = vmatmul.mubr.msk.bf16.vlgmr.msra.gmra.mxu0 %vm746_vm5, %v8582_v7  ;;  %v8556_v27 = vcombine.high %v8554_v21, %v8554_v21  ;;  %v8584_v42 = vpack.c.bf16 %v8554_v21, %v8554_v21  ;;  %v8564_v17 = vrot.slane %v8403_v34, %v13701_v51 }
0x1ba3   :  { %12909 = vmatpush3.bf16.xpose.msra.mxu0 %v8790_v49  ;;  %v8531_v41 = vpop.f32.mrf.mxu1  ;;  %12910 = vmatprep.mubr.msk.bf16.mxu0 %vm13511_vm3, %v13510_v6  ;;  %v8557_v16 = vcombine.high %v8403_v34, %v8403_v34 }
0x1ba4   :  { %12905 = vmatmul.mubr.msk.bf16.vlgmr.msra.gmra.mxu1 %vm746_vm5, %v8583_v52  ;;  %12920 = vmatprep.subr.bf16.mxu0 %v13510_v6  ;;  %v8585_v2 = vpack.c.bf16 %v8556_v27, %v8556_v27  ;;  %v15169_v19 = vadd.f32 %v11606_v9, %v8531_v41  ;;  %v8572_v10 = vcombine.high %v8564_v17, %v8564_v17 }
0x1ba5   :  { %12915 = vmatpush3.bf16.xpose.msra.mxu1 %v8836_v28  ;;  %v12894_v38 = vpop.f32.mrf.mxu1  ;;  %12916 = vmatprep.mubr.msk.bf16.mxu1 %vm13511_vm3, %v13510_v6  ;;  %v8586_v57 = vpack.c.bf16 %v8564_v17, %v8564_v17  ;;  %v8571_v24 = vrot.slane %v8557_v16, %v13701_v51 }
0x1ba6   :  { %12926 = vmatprep.subr.bf16.mxu1 %v13510_v6  ;;  %v8651_v63 = vrot.slane %v15169_v19, %v13701_v51  ;;  %v8587_v11 = vpack.c.bf16 %v8572_v10, %v8572_v10 }
0x1ba7   :  { %v8534_v61 = vpop.f32.mrf.mxu1  ;;  %v8573_v48 = vcombine.high %v8571_v24, %v8571_v24  ;;  %v8588_v47 = vpack.c.bf16 %v8571_v24, %v8571_v24 }
0x1ba8   :  { %v15162_v58 = vadd.f32 %v11606_v9, %v8534_v61  ;;  %v8659_v1 = vcombine.high %v8651_v63, %v8651_v63  ;;  %v8686_v26 = vpack.c.bf16 %v8651_v63, %v8651_v63 }
0x1ba9   :  { %v12895_v8 = vpop.f32.mrf.mxu1  ;;  %v8589_v44 = vpack.c.bf16 %v8573_v48, %v8573_v48 }
0x1baa   :  { %12911 = vmatmul.mubr.msk.bf16.vlgmr.msra.gmra.mxu0 %vm746_vm5, %v8584_v42  ;;  %v8687_v15 = vpack.c.bf16 %v8659_v1, %v8659_v1  ;;  %v9162_v12 = vsel %vm1216_vm6, %v8686_v26, 0 }
0x1bab   :  { %12921 = vmatpush3.bf16.xpose.msra.mxu0 %v8882_v4  ;;  %12922 = vmatprep.mubr.msk.bf16.mxu0 %vm13511_vm3, %v13510_v6 }
0x1bac   :  { %12917 = vmatmul.mubr.msk.bf16.vlgmr.msra.gmra.mxu1 %vm746_vm5, %v8585_v2  ;;  %12932 = vmatprep.subr.bf16.mxu0 %v13510_v6  ;;  %v9208_v45 = vsel %vm1216_vm6, %v8687_v15, 0 }
0x1bad   :  { %12927 = vmatpush3.bf16.xpose.msra.mxu1 %v8928_v43  ;;  %12928 = vmatprep.mubr.msk.bf16.mxu1 %vm13511_vm3, %v13510_v6 }
0x1bae   :  { %12938 = vmatprep.subr.bf16.mxu1 %v13510_v6 }
0x1bb2   :  { %12923 = vmatmul.mubr.msk.bf16.vlgmr.msra.gmra.mxu0 %vm746_vm5, %v8586_v57 }
0x1bb3   :  { %12933 = vmatpush3.bf16.xpose.msra.mxu0 %v8974_v20  ;;  %12934 = vmatprep.mubr.msk.bf16.mxu0 %vm13511_vm3, %v13510_v6 }
0x1bb4   :  { %12929 = vmatmul.mubr.msk.bf16.vlgmr.msra.gmra.mxu1 %vm746_vm5, %v8587_v11  ;;  %12944 = vmatprep.subr.bf16.mxu0 %v13510_v6 }
0x1bb5   :  { %12939 = vmatpush3.bf16.xpose.msra.mxu1 %v9020_v31  ;;  %12940 = vmatprep.mubr.msk.bf16.mxu1 %vm13511_vm3, %v13510_v6 }
0x1bb6   :  { %12950 = vmatprep.subr.bf16.mxu1 %v13510_v6 }
0x1bba   :  { %12935 = vmatmul.mubr.msk.bf16.vlgmr.msra.gmra.mxu0 %vm746_vm5, %v8588_v47 }
0x1bbb   :  { %12945 = vmatpush3.bf16.msra.mxu0 %v9162_v12  ;;  %12946 = vmatprep.mubr.msk.bf16.mxu0 %vm13511_vm3, %v13510_v6 }
0x1bbc   :  { %12941 = vmatmul.mubr.msk.bf16.vlgmr.msra.gmra.mxu1 %vm746_vm5, %v8589_v44  ;;  %12956 = vmatprep.subr.bf16.mxu0 %v13510_v6 }
0x1bbd   :  { %12951 = vmatpush3.bf16.msra.mxu1 %v9208_v45  ;;  %12952 = vmatprep.mubr.msk.bf16.mxu1 %vm13511_vm3, %v13510_v6 }
0x1bbe   :  { %12962 = vmatprep.subr.bf16.mxu1 %v13510_v6 }
0x1c62   :  { %v8734_v7 = vpop.f32.mrf.mxu0 }
0x1c63   :  { %v8735_v3 = vadd.f32 %v8734_v7, %v13828_v40 }
0x1c64   :  { %v12900_v13 = vpop.f32.mrf.mxu0  ;;  %v8780_v21 = vpop.f32.mrf.mxu1 }
0x1c65   :  { %v8781_v52 = vadd.f32 %v8780_v21, %v13824_v35  ;;  %v9062_v49 = vsel %vm1115_vm7, %v8735_v3, -inf }
0x1c66   :  { %9063 = vmax.xlane.f32.xlu1 %v9062_v49  ;;  %v8737_v41 = vpop.f32.mrf.mxu0  ;;  %v12906_v59 = vpop.f32.mrf.mxu1 }
0x1c67   :  { %v9065_v36 = vsel %vm1115_vm7, %v8781_v52, -inf }
0x1c68   :  { %v12901_v28 = vpop.f32.mrf.mxu0  ;;  %9066 = vmax.xlane.f32.xlu0 %v9065_v36  ;;  %v8783_v38 = vpop.f32.mrf.mxu1 }
0x1c6a   :  { %v12907_v62 = vpop.f32.mrf.mxu1  ;;  %v8826_v27 = vpop.f32.mrf.mxu0 }
0x1c6b   :  { %v8827_v34 = vadd.f32 %v8826_v27, %v13841_v53 }
0x1c6c   :  { %v12912_v61 = vpop.f32.mrf.mxu0  ;;  %v8872_v5 = vpop.f32.mrf.mxu1 }
0x1c6d   :  { %v8873_v25 = vadd.f32 %v8872_v5, %v13844_v56  ;;  %v9068_v42 = vsel %vm1115_vm7, %v8827_v34, -inf }
0x1c6e   :  { %9069 = vmax.xlane.f32.xlu1 %v9068_v42  ;;  %v8829_v9 = vpop.f32.mrf.mxu0  ;;  %v12918_v8 = vpop.f32.mrf.mxu1 }
0x1c6f   :  { %v9071_v2 = vsel %vm1115_vm7, %v8873_v25, -inf }
0x1c70   :  { %v12913_v17 = vpop.f32.mrf.mxu0  ;;  %9072 = vmax.xlane.f32.xlu0 %v9071_v2  ;;  %v8875_v4 = vpop.f32.mrf.mxu1 }
0x1c72   :  { %v12919_v43 = vpop.f32.mrf.mxu1  ;;  %v8918_v60 = vpop.f32.mrf.mxu0 }
0x1c73   :  { %v8919_v16 = vadd.f32 %v8918_v60, %v13863_v18 }
0x1c74   :  { %v12924_v10 = vpop.f32.mrf.mxu0  ;;  %v8964_v29 = vpop.f32.mrf.mxu1 }
0x1c75   :  { %v8965_v57 = vadd.f32 %v8964_v29, %v13860_v14  ;;  %v9074_v63 = vsel %vm1115_vm7, %v8919_v16, -inf }
0x1c76   :  { %9075 = vmax.xlane.f32.xlu1 %v9074_v63  ;;  %v8921_v46 = vpop.f32.mrf.mxu0  ;;  %v12930_v24 = vpop.f32.mrf.mxu1 }
0x1c77   :  { %v9077_v11 = vsel %vm1115_vm7, %v8965_v57, -inf }
0x1c78   :  { %v12925_v20 = vpop.f32.mrf.mxu0  ;;  %9078 = vmax.xlane.f32.xlu0 %v9077_v11  ;;  %v8967_v1 = vpop.f32.mrf.mxu1 }
0x1c7a   :  { %v12931_v31 = vpop.f32.mrf.mxu1  ;;  %v9010_v48 = vpop.f32.mrf.mxu0 }
0x1c7b   :  { %v9011_v26 = vadd.f32 %v9010_v48, %v13874_v39 }
0x1c7c   :  { %v12936_v47 = vpop.f32.mrf.mxu0  ;;  %v9056_v15 = vpop.f32.mrf.mxu1 }
0x1c7d   :  { %v9057_v44 = vadd.f32 %v9056_v15, %v13871_v33  ;;  %v9080_v12 = vsel %vm1115_vm7, %v9011_v26, -inf }
0x1c7e   :  { %9081 = vmax.xlane.f32.xlu1 %v9080_v12  ;;  %v9013_v45 = vpop.f32.mrf.mxu0  ;;  %v12942_v7 = vpop.f32.mrf.mxu1 }
0x1c7f   :  { %v9083_v13 = vsel %vm1115_vm7, %v9057_v44, -inf }
0x1c80   :  { %v12937_v21 = vpop.f32.mrf.mxu0  ;;  %9084 = vmax.xlane.f32.xlu0 %v9083_v13  ;;  %v9059_v49 = vpop.f32.mrf.mxu1 }
0x1c82   :  { %v12943_v41 = vpop.f32.mrf.mxu1 }
0x1c83   :  { %v8644_v41 = vcombine.high %v15169_v19, %v15169_v19 }
0x1cef   :  { %v9064_v59 = vpop.xlane.xlu1 %9063 }
0x1cf0   :  { %v9086_v36 = vsub.f32 %v8735_v3, %v9064_v59 }
0x1cf1   :  { %v9067_v28 = vpop.xlane.xlu0 %9066 }
0x1cf2   :  { %v9094_v38 = vmul.f32 1.442695, %v9086_v36  ;;  %v9087_v62 = vsub.f32 %v8781_v52, %v9067_v28  ;;  %v8658_v36 = vrot.slane %v8644_v41, %v13701_v51 }
0x1cf4   :  { %13415 = vpow2.f32 %v9094_v38  ;;  %v9096_v27 = vmul.f32 1.442695, %v9087_v62  ;;  %v8660_v38 = vcombine.high %v8658_v36, %v8658_v36 }
0x1cf6   :  { %13417 = vpow2.f32 %v9096_v27 }
0x1cf7   :  { %v9070_v61 = vpop.xlane.xlu1 %9069 }
0x1cf8   :  { %v9088_v5 = vsub.f32 %v8827_v34, %v9070_v61  ;;  %v8688_v61 = vpack.c.bf16 %v8658_v36, %v8658_v36 }
0x1cf9   :  { %v9073_v42 = vpop.xlane.xlu0 %9072 }
0x1cfa   :  { %v9098_v9 = vmul.f32 1.442695, %v9088_v5  ;;  %v9089_v8 = vsub.f32 %v8873_v25, %v9073_v42  ;;  %v8668_v42 = vrot.slane %v15162_v58, %v13701_v51 }
0x1cfc   :  { %13419 = vpow2.f32 %v9098_v9  ;;  %v9100_v2 = vmul.f32 1.442695, %v9089_v8 }
0x1cfe   :  { %13421 = vpow2.f32 %v9100_v2 }
0x1cff   :  { %v9076_v17 = vpop.xlane.xlu1 %9075 }
0x1d00   :  { %v9090_v4 = vsub.f32 %v8919_v16, %v9076_v17  ;;  %v8689_v17 = vpack.c.bf16 %v8660_v38, %v8660_v38 }
0x1d01   :  { %v13416_v43 = vpop.eup %13415  ;;  %v9079_v60 = vpop.xlane.xlu0 %9078 }
0x1d02   :  { %v9102_v10 = vmul.f32 1.442695, %v9090_v4  ;;  %v9091_v3 = vsub.f32 %v8965_v57, %v9079_v60  ;;  %v9110_v29 = vsel %vm1115_vm7, %v13416_v43, 0.0  ;;  %v9254_v60 = vsel %vm1216_vm6, %v8688_v61, 0 }
0x1d03   :  { %v13418_v52 = vpop.eup %13417  ;;  %9111 = vadd.xlane.f32.xlu1 %v9110_v29 }
0x1d04   :  { %13423 = vpow2.f32 %v9102_v10  ;;  %v9104_v63 = vmul.f32 1.442695, %v9091_v3  ;;  %v9113_v34 = vsel %vm1115_vm7, %v13418_v52, 0.0  ;;  %v8676_v10 = vcombine.high %v8668_v42, %v8668_v42 }
0x1d05   :  { %9114 = vadd.xlane.f32.xlu0 %v9113_v34  ;;  %v9300_v3 = vsel %vm1216_vm6, %v8689_v17, 0 }
0x1d06   :  { %13425 = vpow2.f32 %v9104_v63 }
0x1d07   :  { %v9082_v25 = vpop.xlane.xlu1 %9081 }
0x1d08   :  { %v9092_v46 = vsub.f32 %v9011_v26, %v9082_v25 }
0x1d09   :  { %v13420_v24 = vpop.eup %13419  ;;  %v9085_v11 = vpop.xlane.xlu0 %9084 }
0x1d0a   :  { %v9106_v20 = vmul.f32 1.442695, %v9092_v46  ;;  %v9093_v16 = vsub.f32 %v9057_v44, %v9085_v11  ;;  %v9116_v1 = vsel %vm1115_vm7, %v13420_v24, 0.0  ;;  %v8691_v46 = vpack.c.bf16 %v8676_v10, %v8676_v10 }
0x1d0b   :  { %v15219_v31 = vpop.eup %13421  ;;  %9117 = vadd.xlane.f32.xlu1 %v9116_v1 }
0x1d0c   :  { %13427 = vpow2.f32 %v9106_v20  ;;  %v9108_v57 = vmul.f32 1.442695, %v9093_v16  ;;  %v9119_v48 = vsel %vm1115_vm7, %v15219_v31, 0.0 }
0x1d0d   :  { %9120 = vadd.xlane.f32.xlu0 %v9119_v48 }
0x1d0e   :  { %13429 = vpow2.f32 %v9108_v57 }
0x1d11   :  { %v15223_v47 = vpop.eup %13423 }
0x1d12   :  { %v9122_v26 = vsel %vm1115_vm7, %v15223_v47, 0.0 }
0x1d13   :  { %v15227_v15 = vpop.eup %13425  ;;  %9123 = vadd.xlane.f32.xlu1 %v9122_v26 }
0x1d14   :  { %v9125_v44 = vsel %vm1115_vm7, %v15227_v15, 0.0 }
0x1d15   :  { %9126 = vadd.xlane.f32.xlu0 %v9125_v44 }
0x1d19   :  { %v15231_v12 = vpop.eup %13427 }
0x1d1a   :  { %v9128_v45 = vsel %vm1115_vm7, %v15231_v12, 0.0 }
0x1d1b   :  { %v15235_v7 = vpop.eup %13429  ;;  %9129 = vadd.xlane.f32.xlu1 %v9128_v45 }
0x1d1c   :  { %v9131_v13 = vsel %vm1115_vm7, %v15235_v7, 0.0 }
0x1d1d   :  { %9132 = vadd.xlane.f32.xlu0 %v9131_v13 }
0x1d8c   :  { %v9112_v21 = vpop.xlane.xlu1 %9111 }
0x1d8d   :  { %13431 = vrcp.f32 %v9112_v21 }
0x1d8e   :  { %v9115_v49 = vpop.xlane.xlu0 %9114 }
0x1d8f   :  { %13433 = vrcp.f32 %v9115_v49 }
0x1d94   :  { %v9118_v59 = vpop.xlane.xlu1 %9117 }
0x1d95   :  { %13435 = vrcp.f32 %v9118_v59 }
0x1d96   :  { %v9121_v28 = vpop.xlane.xlu0 %9120 }
0x1d97   :  { %13437 = vrcp.f32 %v9121_v28 }
0x1d9a   :  { %v13432_v62 = vpop.eup %13431 }
0x1d9b   :  { %v9142_v27 = vmul.f32 %v13432_v62, %v13416_v43  ;;  %v8661_v43 = vcombine.high %v15162_v58, %v15162_v58 }
0x1d9c   :  { %v13434_v5 = vpop.eup %13433  ;;  %v9124_v9 = vpop.xlane.xlu1 %9123 }
0x1d9d   :  { %v9150_v8 = vpack.c.bf16 %v9142_v27, %v9142_v27  ;;  %v9143_v2 = vmul.f32 %v13434_v5, %v13418_v52  ;;  %13439 = vrcp.f32 %v9124_v9  ;;  %v8690_v52 = vpack.c.bf16 %v8668_v42, %v8668_v42  ;;  %v13203_v27 = vld [vmem:[%s15644_s0 + $0x78] sm:$0xff]   ;;  %v13206_v5 = vld [vmem:[%s15618_s9 + $0x70] sm:$0xff]  }
0x1d9e   :  { %v9127_v19 = vpop.xlane.xlu0 %9126  ;;  %v8675_v34 = vrot.slane %v8661_v43, %v13701_v51  ;;  %v11626_v42 = vld [vmem:[%s15620_s11 + $0x18] sm:$0xf] }
0x1d9f   :  { %v9151_v4 = vpack.c.bf16 %v9143_v2, %v9143_v2  ;;  %13441 = vrcp.f32 %v9127_v19  ;;  %12947 = vmatmul.mubr.msk.bf16.vlgmr.msra.gmra.mxu0 %vm1212_vm8, %v9150_v8  ;;  %v9346_v57 = vsel %vm1216_vm6, %v8690_v52, 0  ;;  %v9577_v9 = vsel %vm2864_vm9, %v11626_v42, 0 }
0x1da0   :  { %12957 = vmatpush3.bf16.msra.mxu0 %v9254_v60  ;;  %12958 = vmatprep.mubr.msk.bf16.mxu0 %vm13511_vm3, %v13510_v6  ;;  %v8677_v48 = vcombine.high %v8675_v34, %v8675_v34  ;;  %v8692_v44 = vpack.c.bf16 %v8675_v34, %v8675_v34 }
0x1da1   :  { %12953 = vmatmul.mubr.msk.bf16.vlgmr.msra.gmra.mxu1 %vm1212_vm8, %v9151_v4  ;;  %12968 = vmatprep.subr.bf16.mxu0 %v13510_v6 }
0x1da2   :  { %v13436_v29 = vpop.eup %13435  ;;  %12963 = vmatpush3.bf16.msra.mxu1 %v9300_v3  ;;  %12964 = vmatprep.mubr.msk.bf16.mxu1 %vm13511_vm3, %v13510_v6  ;;  %v8693_v49 = vpack.c.bf16 %v8677_v48, %v8677_v48  ;;  %v9438_v59 = vsel %vm1216_vm6, %v8692_v44, 0 }
0x1da3   :  { %v9144_v63 = vmul.f32 %v13436_v29, %v13420_v24  ;;  %12974 = vmatprep.subr.bf16.mxu1 %v13510_v6  ;;  %v9392_v24 = vsel %vm1216_vm6, %v8691_v46, 0 }
0x1da4   :  { %v13438_v58 = vpop.eup %13437  ;;  %v9130_v25 = vpop.xlane.xlu1 %9129 }
0x1da5   :  { %v9152_v11 = vpack.c.bf16 %v9144_v63, %v9144_v63  ;;  %v9145_v20 = vmul.f32 %v13438_v58, %v15219_v31  ;;  %13443 = vrcp.f32 %v9130_v25 }
0x1da6   :  { %v9133_v16 = vpop.xlane.xlu0 %9132 }
0x1da7   :  { %v9153_v1 = vpack.c.bf16 %v9145_v20, %v9145_v20  ;;  %13445 = vrcp.f32 %v9133_v16  ;;  %12959 = vmatmul.mubr.msk.bf16.vlgmr.msra.gmra.mxu0 %vm1212_vm8, %v9152_v11 }
0x1da8   :  { %12969 = vmatpush3.bf16.msra.mxu0 %v9346_v57  ;;  %12970 = vmatprep.mubr.msk.bf16.mxu0 %vm13511_vm3, %v13510_v6 }
0x1da9   :  { %12965 = vmatmul.mubr.msk.bf16.vlgmr.msra.gmra.mxu1 %vm1212_vm8, %v9153_v1  ;;  %12980 = vmatprep.subr.bf16.mxu0 %v13510_v6 }
0x1daa   :  { %v13440_v31 = vpop.eup %13439  ;;  %12975 = vmatpush3.bf16.msra.mxu1 %v9392_v24  ;;  %12976 = vmatprep.mubr.msk.bf16.mxu1 %vm13511_vm3, %v13510_v6 }
0x1dab   :  { %v9146_v26 = vmul.f32 %v13440_v31, %v15223_v47  ;;  %12986 = vmatprep.subr.bf16.mxu1 %v13510_v6  ;;  %v9484_v47 = vsel %vm1216_vm6, %v8693_v49, 0 }
0x1dac   :  { %v13442_v45 = vpop.eup %13441 }
0x1dad   :  { %v9154_v13 = vpack.c.bf16 %v9146_v26, %v9146_v26  ;;  %v9147_v21 = vmul.f32 %v13442_v45, %v15227_v15 }
0x1daf   :  { %v9155_v41 = vpack.c.bf16 %v9147_v21, %v9147_v21  ;;  %12971 = vmatmul.mubr.msk.bf16.vlgmr.msra.gmra.mxu0 %vm1212_vm8, %v9154_v13 }
0x1db0   :  { %12981 = vmatpush3.bf16.msra.mxu0 %v9438_v59  ;;  %12982 = vmatprep.mubr.msk.bf16.mxu0 %vm13511_vm3, %v13510_v6 }
0x1db1   :  { %12977 = vmatmul.mubr.msk.bf16.vlgmr.msra.gmra.mxu1 %vm1212_vm8, %v9155_v41  ;;  %12992 = vmatprep.subr.bf16.mxu0 %v13510_v6 }
0x1db2   :  { %v13444_v36 = vpop.eup %13443  ;;  %12987 = vmatpush3.bf16.msra.mxu1 %v9484_v47  ;;  %12988 = vmatprep.mubr.msk.bf16.mxu1 %vm13511_vm3, %v13510_v6 }
0x1db3   :  { %v9148_v15 = vmul.f32 %v13444_v36, %v15231_v12  ;;  %12998 = vmatprep.subr.bf16.mxu1 %v13510_v6  ;;  %v13204_v12 = vld [vmem:[%s15644_s0 + $0x70] sm:$0xff]  }
0x1db4   :  { %v13446_v28 = vpop.eup %13445 }
0x1db5   :  { %v9156_v38 = vpack.c.bf16 %v9148_v15, %v9148_v15  ;;  %v9149_v62 = vmul.f32 %v13446_v28, %v15235_v7  ;;  %v13205_v7 = vld [vmem:[%s15618_s9 + $0x78] sm:$0xff]  }
0x1db7   :  { %v9157_v61 = vpack.c.bf16 %v9149_v62, %v9149_v62  ;;  %12983 = vmatmul.mubr.msk.bf16.vlgmr.msra.gmra.mxu0 %vm1212_vm8, %v9156_v38 }
0x1db8   :  { %12994 = vmatprep.mubr.msk.bf16.mxu0 %vm13511_vm3, %v13510_v6  ;;  %12993 = vmatpush3.bf16.msra.mxu0 %v9577_v9 }
0x1db9   :  { %12989 = vmatmul.mubr.msk.bf16.vlgmr.msra.gmra.mxu1 %vm1212_vm8, %v9157_v61  ;;  %13006 = vmatprep.subr.bf16.mxu0 %v13510_v6 }
0x1dba   :  { %12999 = vmatpush3.bf16.msra.mxu1 %v13203_v27  ;;  %13002 = vmatprep.mubr.msk.bf16.mxu1 %vm13511_vm3, %v13510_v6 }
0x1dbb   :  { %13000 = vmatprep.subr.bf16.mxu1 %v13510_v6 }
0x1dbe   :  { %13001 = vmatpush3.bf16.msra.mxu1 %v13204_v12 }
0x1dbf   :  { %13014 = vmatprep.subr.bf16.mxu1 %v13510_v6 }
0x1dc1   :  { %13003 = vmatmul.mubr.msk.bf16.vlgmr.msra.gmra.mxu1 %vm417_vm4, %v14694_v55 }
0x1dc2   :  { %13015 = vmatpush3.bf16.msra.mxu1 %v13205_v7  ;;  %13018 = vmatprep.mubr.msk.bf16.mxu1 %vm13511_vm3, %v13510_v6 }
0x1dc3   :  { %13016 = vmatprep.subr.bf16.mxu1 %v13510_v6 }
0x1dc6   :  { %13017 = vmatpush3.bf16.msra.mxu1 %v13206_v5  ;;  %v13207_v5 = vld [vmem:[%s15616_s7 + $0x78] sm:$0xff]  }
0x1dc7   :  { %13028 = vmatprep.subr.bf16.mxu1 %v13510_v6 }
0x1dc9   :  { %13019 = vmatmul.mubr.msk.bf16.vlgmr.msra.gmra.mxu1 %vm417_vm4, %v14694_v55 }
0x1dca   :  { %13030 = vmatprep.mubr.msk.bf16.mxu1 %vm13511_vm3, %v13510_v6 }
0x1e5f   :  { %v9198_v8 = vpop.f32.mrf.mxu0 }
0x1e61   :  { %v12948_v2 = vpop.f32.mrf.mxu0  ;;  %v9244_v17 = vpop.f32.mrf.mxu1 }
0x1e62   :  { %v9534_v45 = vcombine.low %v9198_v8, %v9244_v17  ;;  %v13208_v2 = vld [vmem:[%s15616_s7 + $0x70] sm:$0xff]  }
0x1e63   :  { %v9201_v19 = vpop.f32.mrf.mxu0  ;;  %v12954_v4 = vpop.f32.mrf.mxu1 }
0x1e64   :  { %v9542_v15 = vrot.slane %v9534_v45, %v13701_v51 }
0x1e65   :  { %v12949_v60 = vpop.f32.mrf.mxu0  ;;  %v9247_v43 = vpop.f32.mrf.mxu1 }
0x1e67   :  { %v12955_v10 = vpop.f32.mrf.mxu1  ;;  %v9290_v3 = vpop.f32.mrf.mxu0 }
0x1e68   :  { %v15343_v10 = vld [vmem:[%s15619_s10 + $0x7] ss:$0 sm:$0xff] }
0x1e69   :  { %v12960_v29 = vpop.f32.mrf.mxu0  ;;  %v9336_v52 = vpop.f32.mrf.mxu1 }
0x1e6a   :  { %v9535_v31 = vcombine.low %v9290_v3, %v9336_v52  ;;  %v8334_v52 = vadd.f32 %v15101_v32, %v15137_v0 }
0x1e6b   :  { %v9293_v63 = vpop.f32.mrf.mxu0  ;;  %v12966_v58 = vpop.f32.mrf.mxu1 }
0x1e6c   :  { %v9549_v41 = vrot.slane %v9535_v31, %v13701_v51 }
0x1e6d   :  { %v12961_v34 = vpop.f32.mrf.mxu0  ;;  %v9339_v25 = vpop.f32.mrf.mxu1 }
0x1e6e   :  { %v9550_v61 = vcombine.low %v9542_v15, %v9549_v41  ;;  %v8337_v34 = vadd.f32 %v15110_v30, %v15139_v22 }
0x1e6f   :  { %v12967_v46 = vpop.f32.mrf.mxu1  ;;  %v9382_v11 = vpop.f32.mrf.mxu0 }
0x1e71   :  { %v12972_v20 = vpop.f32.mrf.mxu0  ;;  %v9428_v16 = vpop.f32.mrf.mxu1 }
0x1e72   :  { %v9551_v13 = vcombine.low %v9382_v11, %v9428_v16  ;;  %v11642_v20 = vld [vmem:[%s15617_s8 + $0x7] ss:$0 sm:$0xff] }
0x1e73   :  { %v9385_v1 = vpop.f32.mrf.mxu0  ;;  %v12978_v57 = vpop.f32.mrf.mxu1  ;;  %v11633_v16 = vld [vmem:[%s15615_s6 + $0x7] ss:$0 sm:$0xff] }
0x1e74   :  { %v9559_v28 = vrot.slane %v9551_v13, %v13701_v51 }
0x1e75   :  { %v12973_v24 = vpop.f32.mrf.mxu0  ;;  %v9431_v48 = vpop.f32.mrf.mxu1 }
0x1e77   :  { %v12979_v26 = vpop.f32.mrf.mxu1  ;;  %v9474_v44 = vpop.f32.mrf.mxu0 }
0x1e79   :  { %v12984_v21 = vpop.f32.mrf.mxu0  ;;  %v9520_v49 = vpop.f32.mrf.mxu1 }
0x1e7a   :  { %v9552_v59 = vcombine.low %v9474_v44, %v9520_v49 }
0x1e7b   :  { %v9477_v47 = vpop.f32.mrf.mxu0  ;;  %v12990_v36 = vpop.f32.mrf.mxu1 }
0x1e7c   :  { %v9566_v38 = vrot.slane %v9552_v59, %v13701_v51 }
0x1e7d   :  { %v12985_v62 = vpop.f32.mrf.mxu0  ;;  %v9523_v27 = vpop.f32.mrf.mxu1 }
0x1e7e   :  { %v9567_v12 = vcombine.low %v9559_v28, %v9566_v38 }
0x1e7f   :  { %v12991_v7 = vpop.f32.mrf.mxu1 }
0x1e80   :  { %v9570_v42 = vpack.c.bf16 %v9567_v12, %v9550_v61 }
0x1e81   :  { %v9681_v9 = vpop.f32.mrf.mxu1 }
0x1e82   :  { %12995 = vmatmul.mubr.msk.bf16.vlgmr.msra.gmra.mxu0 %vm746_vm5, %v9570_v42  ;;  %v9682_v57 = vadd.f32 %v11633_v16, %v9681_v9 }
0x1e83   :  { %v13004_v8 = vpop.f32.mrf.mxu1  ;;  %13007 = vmatpush3.bf16.msra.mxu0 %v13207_v5  ;;  %13010 = vmatprep.mubr.msk.bf16.mxu0 %vm13511_vm3, %v13510_v6 }
0x1e84   :  { %13008 = vmatprep.subr.bf16.mxu0 %v13510_v6  ;;  %v9829_v45 = vrot.slane %v9682_v57, %v13701_v51  ;;  %v9822_v47 = vcombine.high %v9682_v57, %v9682_v57 }
0x1e85   :  { %v15331_v17 = vpop.f32.mrf.mxu1 }
0x1e86   :  { %v9837_v36 = vcombine.high %v9829_v45, %v9829_v45  ;;  %v9864_v28 = vpack.c.bf16 %v9829_v45, %v9829_v45  ;;  %v9836_v27 = vrot.slane %v9822_v47, %v13701_v51  ;;  %v9685_v8 = vadd.f32 %v11633_v16, %v15331_v17 }
0x1e87   :  { %v13005_v19 = vpop.f32.mrf.mxu1  ;;  %13009 = vmatpush3.bf16.msra.mxu0 %v13208_v2 }
0x1e88   :  { %13022 = vmatprep.subr.bf16.mxu0 %v13510_v6  ;;  %v9865_v61 = vpack.c.bf16 %v9837_v36, %v9837_v36  ;;  %v9838_v9 = vcombine.high %v9836_v27, %v9836_v27  ;;  %v9866_v19 = vpack.c.bf16 %v9836_v27, %v9836_v27 }
0x1e89   :  { %v15334_v4 = vpop.f32.mrf.mxu1 }
0x1e8a   :  { %13011 = vmatmul.mubr.msk.bf16.vlgmr.msra.gmra.mxu0 %vm417_vm4, %v14694_v55  ;;  %v15390_v17 = vadd.f32 %v15343_v10, %v15334_v4 }
0x1e8b   :  { %v13020_v60 = vpop.f32.mrf.mxu1  ;;  %13024 = vmatprep.mubr.msk.bf16.mxu0 %vm13511_vm3, %v13510_v6 }
0x1e8c   :  { %v9933_v4 = vrot.slane %v15390_v17, %v13701_v51 }
0x1e8d   :  { %v9816_v43 = vpop.f32.mrf.mxu1 }
0x1e8e   :  { %v15346_v3 = vadd.f32 %v15343_v10, %v9816_v43  ;;  %v9941_v57 = vcombine.high %v9933_v4, %v9933_v4 }
0x1e8f   :  { %v13021_v29 = vpop.f32.mrf.mxu1 }
0x1e90   :  { %v9867_v29 = vpack.c.bf16 %v9838_v9, %v9838_v9 }
0x1f42   :  { %v9613_v63 = vpop.f32.mrf.mxu0 }
0x1f43   :  { %v15350_v58 = vadd.f32 %v9613_v63, %v8334_v52  ;;  %v9846_v52 = vrot.slane %v9685_v8, %v13701_v51 }
0x1f44   :  { %v12996_v55 = vpop.f32.mrf.mxu0 }
0x1f45   :  { %v9868_v16 = vpack.c.bf16 %v9846_v52, %v9846_v52 }
0x1f46   :  { %v9616_v25 = vpop.f32.mrf.mxu0 }
0x1f47   :  { %v15354_v46 = vadd.f32 %v9616_v25, %v8337_v34  ;;  %v9839_v25 = vcombine.high %v9685_v8, %v9685_v8 }
0x1f48   :  { %v12997_v11 = vpop.f32.mrf.mxu0 }
0x1f49   :  { %v9854_v11 = vcombine.high %v9846_v52, %v9846_v52 }
0x1f4a   :  { %v9747_v32 = vpop.f32.mrf.mxu0 }
0x1f4b   :  { %v9748_v0 = vadd.f32 %v11642_v20, %v9747_v32  ;;  %v9853_v32 = vrot.slane %v9839_v25, %v13701_v51 }
0x1f4c   :  { %v13012_v1 = vpop.f32.mrf.mxu0 }
0x1f4d   :  { %v9874_v24 = vcombine.high %v9748_v0, %v9748_v0  ;;  %v9881_v48 = vrot.slane %v9748_v0, %v13701_v51  ;;  %v9869_v0 = vpack.c.bf16 %v9854_v11, %v9854_v11 }
0x1f4e   :  { %v9750_v30 = vpop.f32.mrf.mxu0 }
0x1f4f   :  { %v9888_v22 = vrot.slane %v9874_v24, %v13701_v51  ;;  %v9889_v31 = vcombine.high %v9881_v48, %v9881_v48  ;;  %v9916_v26 = vpack.c.bf16 %v9881_v48, %v9881_v48  ;;  %v9751_v49 = vadd.f32 %v11642_v20, %v9750_v30 }
0x1f50   :  { %v13013_v44 = vpop.f32.mrf.mxu0  ;;  %v9855_v48 = vcombine.high %v9853_v32, %v9853_v32  ;;  %v9968_v30 = vpack.c.bf16 %v9933_v4, %v9933_v4 }
0x1f51   :  { %v9917_v13 = vpack.c.bf16 %v9889_v31, %v9889_v31  ;;  %v9980_v21 = vsel %vm746_vm5, %v9916_v26, 0  ;;  %v9890_v59 = vcombine.high %v9888_v22, %v9888_v22  ;;  %v9918_v15 = vpack.c.bf16 %v9888_v22, %v9888_v22 }
0x1f52   :  { %13023 = vmatpush3.bf16.xpose.msra.mxu0 %v9980_v21  ;;  %v9898_v38 = vrot.slane %v9751_v49, %v13701_v51  ;;  %v9891_v7 = vcombine.high %v9751_v49, %v9751_v49  ;;  %v9870_v22 = vpack.c.bf16 %v9853_v32, %v9853_v32  ;;  %v9969_v31 = vpack.c.bf16 %v9941_v57, %v9941_v57 }
0x1f53   :  { %v10026_v41 = vsel %vm746_vm5, %v9917_v13, 0  ;;  %13034 = vmatprep.subr.bf16.mxu0 %v13510_v6  ;;  %v9919_v62 = vpack.c.bf16 %v9890_v59, %v9890_v59  ;;  %v10072_v12 = vsel %vm746_vm5, %v9918_v15, 0  ;;  %v9871_v26 = vpack.c.bf16 %v9855_v48, %v9855_v48 }
0x1f54   :  { %13029 = vmatpush3.bf16.xpose.msra.mxu1 %v10026_v41  ;;  %v9906_v5 = vcombine.high %v9898_v38, %v9898_v38  ;;  %v9920_v2 = vpack.c.bf16 %v9898_v38, %v9898_v38  ;;  %v9905_v60 = vrot.slane %v9891_v7, %v13701_v51  ;;  %v10444_v44 = vsel %vm1216_vm6, %v9968_v30, 0 }
0x1f55   :  { %13040 = vmatprep.subr.bf16.mxu1 %v13510_v6  ;;  %v10118_v42 = vsel %vm746_vm5, %v9919_v62, 0  ;;  %v10490_v45 = vsel %vm1216_vm6, %v9969_v31, 0 }
0x1f56   :  { %v9921_v43 = vpack.c.bf16 %v9906_v5, %v9906_v5  ;;  %v10164_v63 = vsel %vm746_vm5, %v9920_v2, 0  ;;  %v9907_v34 = vcombine.high %v9905_v60, %v9905_v60  ;;  %v9922_v20 = vpack.c.bf16 %v9905_v60, %v9905_v60 }
0x1f58   :  { %v10210_v55 = vsel %vm746_vm5, %v9921_v43, 0  ;;  %v9923_v10 = vpack.c.bf16 %v9907_v34, %v9907_v34  ;;  %v10256_v1 = vsel %vm746_vm5, %v9922_v20, 0 }
0x1f59   :  { %13025 = vmatmul.mubr.msk.bf16.vlgmr.msra.gmra.mxu0 %vm746_vm5, %v9864_v28 }
0x1f5a   :  { %13035 = vmatpush3.bf16.xpose.msra.mxu0 %v10072_v12  ;;  %13036 = vmatprep.mubr.msk.bf16.mxu0 %vm13511_vm3, %v13510_v6  ;;  %v10302_v24 = vsel %vm746_vm5, %v9923_v10, 0 }
0x1f5b   :  { %13031 = vmatmul.mubr.msk.bf16.vlgmr.msra.gmra.mxu1 %vm746_vm5, %v9865_v61  ;;  %13046 = vmatprep.subr.bf16.mxu0 %v13510_v6 }
0x1f5c   :  { %13041 = vmatpush3.bf16.xpose.msra.mxu1 %v10118_v42  ;;  %13042 = vmatprep.mubr.msk.bf16.mxu1 %vm13511_vm3, %v13510_v6 }
0x1f5d   :  { %13052 = vmatprep.subr.bf16.mxu1 %v13510_v6 }
0x1f61   :  { %13037 = vmatmul.mubr.msk.bf16.vlgmr.msra.gmra.mxu0 %vm746_vm5, %v9866_v19 }
0x1f62   :  { %13047 = vmatpush3.bf16.xpose.msra.mxu0 %v10164_v63  ;;  %13048 = vmatprep.mubr.msk.bf16.mxu0 %vm13511_vm3, %v13510_v6 }
0x1f63   :  { %13043 = vmatmul.mubr.msk.bf16.vlgmr.msra.gmra.mxu1 %vm746_vm5, %v9867_v29  ;;  %13058 = vmatprep.subr.bf16.mxu0 %v13510_v6 }
0x1f64   :  { %13053 = vmatpush3.bf16.xpose.msra.mxu1 %v10210_v55  ;;  %13054 = vmatprep.mubr.msk.bf16.mxu1 %vm13511_vm3, %v13510_v6 }
0x1f65   :  { %13064 = vmatprep.subr.bf16.mxu1 %v13510_v6 }
0x1f69   :  { %13049 = vmatmul.mubr.msk.bf16.vlgmr.msra.gmra.mxu0 %vm746_vm5, %v9868_v16 }
0x1f6a   :  { %13059 = vmatpush3.bf16.xpose.msra.mxu0 %v10256_v1  ;;  %13060 = vmatprep.mubr.msk.bf16.mxu0 %vm13511_vm3, %v13510_v6 }
0x1f6b   :  { %13055 = vmatmul.mubr.msk.bf16.vlgmr.msra.gmra.mxu1 %vm746_vm5, %v9869_v0  ;;  %13070 = vmatprep.subr.bf16.mxu0 %v13510_v6 }
0x1f6c   :  { %13065 = vmatpush3.bf16.xpose.msra.mxu1 %v10302_v24  ;;  %13066 = vmatprep.mubr.msk.bf16.mxu1 %vm13511_vm3, %v13510_v6 }
0x1f6d   :  { %13076 = vmatprep.subr.bf16.mxu1 %v13510_v6 }
0x1f71   :  { %13061 = vmatmul.mubr.msk.bf16.vlgmr.msra.gmra.mxu0 %vm746_vm5, %v9870_v22 }
0x1f72   :  { %13071 = vmatpush3.bf16.msra.mxu0 %v10444_v44  ;;  %13072 = vmatprep.mubr.msk.bf16.mxu0 %vm13511_vm3, %v13510_v6 }
0x1f73   :  { %13067 = vmatmul.mubr.msk.bf16.vlgmr.msra.gmra.mxu1 %vm746_vm5, %v9871_v26  ;;  %13082 = vmatprep.subr.bf16.mxu0 %v13510_v6 }
0x1f74   :  { %13077 = vmatpush3.bf16.msra.mxu1 %v10490_v45  ;;  %13078 = vmatprep.mubr.msk.bf16.mxu1 %vm13511_vm3, %v13510_v6 }
0x1f75   :  { %13088 = vmatprep.subr.bf16.mxu1 %v13510_v6 }
0x2019   :  { %v10016_v13 = vpop.f32.mrf.mxu0 }
0x201a   :  { %v10017_v21 = vadd.f32 %v10016_v13, %v13828_v40 }
0x201b   :  { %v13026_v49 = vpop.f32.mrf.mxu0  ;;  %v10062_v41 = vpop.f32.mrf.mxu1 }
0x201c   :  { %v10063_v59 = vadd.f32 %v10062_v41, %v13824_v35  ;;  %v10344_v47 = vsel %vm1115_vm7, %v10017_v21, -inf }
0x201d   :  { %10345 = vmax.xlane.f32.xlu1 %v10344_v47  ;;  %v10019_v36 = vpop.f32.mrf.mxu0  ;;  %v13032_v15 = vpop.f32.mrf.mxu1 }
0x201e   :  { %v10347_v28 = vsel %vm1115_vm7, %v10063_v59, -inf }
0x201f   :  { %v13027_v38 = vpop.f32.mrf.mxu0  ;;  %10348 = vmax.xlane.f32.xlu0 %v10347_v28  ;;  %v10065_v62 = vpop.f32.mrf.mxu1 }
0x2021   :  { %v13033_v27 = vpop.f32.mrf.mxu1  ;;  %v10108_v61 = vpop.f32.mrf.mxu0 }
0x2022   :  { %v10109_v12 = vadd.f32 %v10108_v61, %v13841_v53 }
0x2023   :  { %v13038_v7 = vpop.f32.mrf.mxu0  ;;  %v10154_v40 = vpop.f32.mrf.mxu1 }
0x2024   :  { %v10155_v5 = vadd.f32 %v10154_v40, %v13844_v56  ;;  %v10350_v35 = vsel %vm1115_vm7, %v10109_v12, -inf }
0x2025   :  { %10351 = vmax.xlane.f32.xlu1 %v10350_v35  ;;  %v10111_v42 = vpop.f32.mrf.mxu0  ;;  %v13044_v9 = vpop.f32.mrf.mxu1 }
0x2026   :  { %v10353_v8 = vsel %vm1115_vm7, %v10155_v5, -inf }
0x2027   :  { %v13039_v2 = vpop.f32.mrf.mxu0  ;;  %10354 = vmax.xlane.f32.xlu0 %v10353_v8  ;;  %v10157_v19 = vpop.f32.mrf.mxu1 }
0x2029   :  { %v13045_v60 = vpop.f32.mrf.mxu1  ;;  %v10200_v43 = vpop.f32.mrf.mxu0 }
0x202a   :  { %v10201_v29 = vadd.f32 %v10200_v43, %v13863_v18 }
0x202b   :  { %v13050_v52 = vpop.f32.mrf.mxu0  ;;  %v10246_v53 = vpop.f32.mrf.mxu1 }
0x202c   :  { %v10247_v63 = vadd.f32 %v10246_v53, %v13860_v14  ;;  %v10356_v56 = vsel %vm1115_vm7, %v10201_v29, -inf }
0x202d   :  { %10357 = vmax.xlane.f32.xlu1 %v10356_v56  ;;  %v10203_v55 = vpop.f32.mrf.mxu0  ;;  %v13056_v34 = vpop.f32.mrf.mxu1 }
0x202e   :  { %v10359_v25 = vsel %vm1115_vm7, %v10247_v63, -inf }
0x202f   :  { %v13051_v11 = vpop.f32.mrf.mxu0  ;;  %10360 = vmax.xlane.f32.xlu0 %v10359_v25  ;;  %v10249_v20 = vpop.f32.mrf.mxu1 }
0x2031   :  { %v13057_v16 = vpop.f32.mrf.mxu1  ;;  %v10292_v4 = vpop.f32.mrf.mxu0 }
0x2032   :  { %v10293_v10 = vadd.f32 %v10292_v4, %v13874_v39  ;;  %v9926_v4 = vcombine.high %v15390_v17, %v15390_v17 }
0x2033   :  { %v13062_v32 = vpop.f32.mrf.mxu0  ;;  %v10338_v18 = vpop.f32.mrf.mxu1 }
0x2034   :  { %v10339_v0 = vadd.f32 %v10338_v18, %v13871_v33  ;;  %v10362_v14 = vsel %vm1115_vm7, %v10293_v10, -inf  ;;  %v9940_v32 = vrot.slane %v9926_v4, %v13701_v51 }
0x2035   :  { %10363 = vmax.xlane.f32.xlu1 %v10362_v14  ;;  %v10295_v1 = vpop.f32.mrf.mxu0  ;;  %v13068_v57 = vpop.f32.mrf.mxu1 }
0x2036   :  { %v10365_v24 = vsel %vm1115_vm7, %v10339_v0, -inf  ;;  %v9970_v57 = vpack.c.bf16 %v9940_v32, %v9940_v32 }
0x2037   :  { %v13063_v48 = vpop.f32.mrf.mxu0  ;;  %10366 = vmax.xlane.f32.xlu0 %v10365_v24  ;;  %v10341_v30 = vpop.f32.mrf.mxu1 }
0x2038   :  { %v9950_v48 = vrot.slane %v15346_v3, %v13701_v51 }
0x2039   :  { %v13069_v22 = vpop.f32.mrf.mxu1 }
0x20a6   :  { %v10346_v31 = vpop.xlane.xlu1 %10345 }
0x20a7   :  { %v10368_v26 = vsub.f32 %v10017_v21, %v10346_v31 }
0x20a8   :  { %v10349_v44 = vpop.xlane.xlu0 %10348 }
0x20a9   :  { %v10376_v45 = vmul.f32 1.442695, %v10368_v26  ;;  %v10369_v39 = vsub.f32 %v10063_v59, %v10349_v44 }
0x20ab   :  { %13447 = vpow2.f32 %v10376_v45  ;;  %v10378_v13 = vmul.f32 1.442695, %v10369_v39  ;;  %v10536_v45 = vsel %vm1216_vm6, %v9970_v57, 0  ;;  %v9943_v39 = vcombine.high %v15346_v3, %v15346_v3 }
0x20ad   :  { %13449 = vpow2.f32 %v10378_v13  ;;  %v9958_v13 = vcombine.high %v9950_v48, %v9950_v48 }
0x20ae   :  { %v10352_v33 = vpop.xlane.xlu1 %10351 }
0x20af   :  { %v10370_v49 = vsub.f32 %v10109_v12, %v10352_v33 }
0x20b0   :  { %v10355_v41 = vpop.xlane.xlu0 %10354 }
0x20b1   :  { %v10380_v47 = vmul.f32 1.442695, %v10370_v49  ;;  %v10371_v36 = vsub.f32 %v10155_v5, %v10355_v41  ;;  %v9972_v41 = vpack.c.bf16 %v9950_v48, %v9950_v48 }
0x20b3   :  { %13451 = vpow2.f32 %v10380_v47  ;;  %v10382_v15 = vmul.f32 1.442695, %v10371_v36  ;;  %v9957_v36 = vrot.slane %v9943_v39, %v13701_v51 }
0x20b5   :  { %13453 = vpow2.f32 %v10382_v15 }
0x20b6   :  { %v10358_v28 = vpop.xlane.xlu1 %10357 }
0x20b7   :  { %v10372_v38 = vsub.f32 %v10201_v29, %v10358_v28  ;;  %v9973_v28 = vpack.c.bf16 %v9958_v13, %v9958_v13 }
0x20b8   :  { %v13448_v62 = vpop.eup %13447  ;;  %v10361_v27 = vpop.xlane.xlu0 %10360 }
0x20b9   :  { %v10384_v61 = vmul.f32 1.442695, %v10372_v38  ;;  %v10373_v21 = vsub.f32 %v10247_v63, %v10361_v27  ;;  %v10392_v7 = vsel %vm1115_vm7, %v13448_v62, 0.0 }
0x20ba   :  { %v13450_v59 = vpop.eup %13449  ;;  %10393 = vadd.xlane.f32.xlu1 %v10392_v7  ;;  %v10674_v7 = vsel %vm1216_vm6, %v9973_v28, 0 }
0x20bb   :  { %13455 = vpow2.f32 %v10384_v61  ;;  %v10386_v40 = vmul.f32 1.442695, %v10373_v21  ;;  %v10395_v12 = vsel %vm1115_vm7, %v13450_v59, 0.0  ;;  %v10628_v21 = vsel %vm1216_vm6, %v9972_v41, 0 }
0x20bc   :  { %10396 = vadd.xlane.f32.xlu0 %v10395_v12 }
0x20bd   :  { %13457 = vpow2.f32 %v10386_v40 }
0x20be   :  { %v10364_v5 = vpop.xlane.xlu1 %10363 }
0x20bf   :  { %v10374_v35 = vsub.f32 %v10293_v10, %v10364_v5  ;;  %v9974_v5 = vpack.c.bf16 %v9957_v36, %v9957_v36 }
0x20c0   :  { %v13452_v42 = vpop.eup %13451  ;;  %v10367_v9 = vpop.xlane.xlu0 %10366 }
0x20c1   :  { %v10388_v8 = vmul.f32 1.442695, %v10374_v35  ;;  %v10375_v2 = vsub.f32 %v10339_v0, %v10367_v9  ;;  %v10398_v19 = vsel %vm1115_vm7, %v13452_v42, 0.0  ;;  %v9942_v0 = vcombine.high %v9940_v32, %v9940_v32 }
0x20c2   :  { %v15440_v60 = vpop.eup %13453  ;;  %10399 = vadd.xlane.f32.xlu1 %v10398_v19  ;;  %v10720_v19 = vsel %vm1216_vm6, %v9974_v5, 0 }
0x20c3   :  { %13459 = vpow2.f32 %v10388_v8  ;;  %v10390_v43 = vmul.f32 1.442695, %v10375_v2  ;;  %v10401_v29 = vsel %vm1115_vm7, %v15440_v60, 0.0  ;;  %v9971_v26 = vpack.c.bf16 %v9942_v0, %v9942_v0 }
0x20c4   :  { %10402 = vadd.xlane.f32.xlu0 %v10401_v29 }
0x20c5   :  { %13461 = vpow2.f32 %v10390_v43  ;;  %v10582_v33 = vsel %vm1216_vm6, %v9971_v26, 0 }
0x20c8   :  { %v15444_v52 = vpop.eup %13455 }
0x20c9   :  { %v10404_v53 = vsel %vm1115_vm7, %v15444_v52, 0.0 }
0x20ca   :  { %v15448_v63 = vpop.eup %13457  ;;  %10405 = vadd.xlane.f32.xlu1 %v10404_v53 }
0x20cb   :  { %v10407_v56 = vsel %vm1115_vm7, %v15448_v63, 0.0 }
0x20cc   :  { %10408 = vadd.xlane.f32.xlu0 %v10407_v56 }
0x20d0   :  { %v15452_v55 = vpop.eup %13459 }
0x20d1   :  { %v10410_v34 = vsel %vm1115_vm7, %v15452_v55, 0.0 }
0x20d2   :  { %v15456_v25 = vpop.eup %13461  ;;  %10411 = vadd.xlane.f32.xlu1 %v10410_v34 }
0x20d3   :  { %v10413_v11 = vsel %vm1115_vm7, %v15456_v25, 0.0 }
0x20d4   :  { %10414 = vadd.xlane.f32.xlu0 %v10413_v11 }
0x2143   :  { %v10394_v20 = vpop.xlane.xlu1 %10393 }
0x2144   :  { %13463 = vrcp.f32 %v10394_v20 }
0x2145   :  { %v10397_v16 = vpop.xlane.xlu0 %10396 }
0x2146   :  { %13465 = vrcp.f32 %v10397_v16 }
0x214b   :  { %v10400_v10 = vpop.xlane.xlu1 %10399 }
0x214c   :  { %13467 = vrcp.f32 %v10400_v10 }
0x214d   :  { %v10403_v18 = vpop.xlane.xlu0 %10402 }
0x214e   :  { %13469 = vrcp.f32 %v10403_v18 }
0x2151   :  { %v13464_v14 = vpop.eup %13463 }
0x2152   :  { %v10424_v1 = vmul.f32 %v13464_v14, %v13448_v62 }
0x2153   :  { %v13466_v24 = vpop.eup %13465  ;;  %v10406_v30 = vpop.xlane.xlu1 %10405 }
0x2154   :  { %v10432_v22 = vpack.c.bf16 %v10424_v1, %v10424_v1  ;;  %v10425_v31 = vmul.f32 %v13466_v24, %v13450_v59  ;;  %13471 = vrcp.f32 %v10406_v30  ;;  %v9959_v59 = vcombine.high %v9957_v36, %v9957_v36 }
0x2155   :  { %v10409_v17 = vpop.xlane.xlu0 %10408 }
0x2156   :  { %v10433_v44 = vpack.c.bf16 %v10425_v31, %v10425_v31  ;;  %13473 = vrcp.f32 %v10409_v17  ;;  %13073 = vmatmul.mubr.msk.bf16.vlgmr.msra.gmra.mxu0 %vm1212_vm8, %v10432_v22  ;;  %v9975_v8 = vpack.c.bf16 %v9959_v59, %v9959_v59 }
0x2157   :  { %13083 = vmatpush3.bf16.msra.mxu0 %v10536_v45  ;;  %13084 = vmatprep.mubr.msk.bf16.mxu0 %vm13511_vm3, %v13510_v6 }
0x2158   :  { %13079 = vmatmul.mubr.msk.bf16.vlgmr.msra.gmra.mxu1 %vm1212_vm8, %v10433_v44  ;;  %13094 = vmatprep.subr.bf16.mxu0 %v13510_v6 }
0x2159   :  { %v13468_v49 = vpop.eup %13467  ;;  %13089 = vmatpush3.bf16.msra.mxu1 %v10582_v33  ;;  %13090 = vmatprep.mubr.msk.bf16.mxu1 %vm13511_vm3, %v13510_v6 }
0x215a   :  { %v10426_v47 = vmul.f32 %v13468_v49, %v13452_v42  ;;  %13100 = vmatprep.subr.bf16.mxu1 %v13510_v6 }
0x215b   :  { %v13470_v3 = vpop.eup %13469  ;;  %v10412_v15 = vpop.xlane.xlu1 %10411 }
0x215c   :  { %v10434_v38 = vpack.c.bf16 %v10426_v47, %v10426_v47  ;;  %v10427_v62 = vmul.f32 %v13470_v3, %v15440_v60  ;;  %13475 = vrcp.f32 %v10412_v15  ;;  %v10766_v60 = vsel %vm1216_vm6, %v9975_v8, 0  ;;  %v11674_v8 = vld [vmem:[%s15621_s12 + $0x1] ss:$0 sm:$0xff] }
0x215d   :  { %v10415_v27 = vpop.xlane.xlu0 %10414 }
0x215e   :  { %v10435_v61 = vpack.c.bf16 %v10427_v62, %v10427_v62  ;;  %13477 = vrcp.f32 %v10415_v27  ;;  %13085 = vmatmul.mubr.msk.bf16.vlgmr.msra.gmra.mxu0 %vm1212_vm8, %v10434_v38 }
0x215f   :  { %13095 = vmatpush3.bf16.msra.mxu0 %v10628_v21  ;;  %13096 = vmatprep.mubr.msk.bf16.mxu0 %vm13511_vm3, %v13510_v6 }
0x2160   :  { %13091 = vmatmul.mubr.msk.bf16.vlgmr.msra.gmra.mxu1 %vm1212_vm8, %v10435_v61  ;;  %13106 = vmatprep.subr.bf16.mxu0 %v13510_v6 }
0x2161   :  { %v13472_v40 = vpop.eup %13471  ;;  %13101 = vmatpush3.bf16.msra.mxu1 %v10674_v7  ;;  %13102 = vmatprep.mubr.msk.bf16.mxu1 %vm13511_vm3, %v13510_v6 }
0x2162   :  { %v10428_v12 = vmul.f32 %v13472_v40, %v15444_v52  ;;  %13112 = vmatprep.subr.bf16.mxu1 %v13510_v6 }
0x2163   :  { %v13474_v35 = vpop.eup %13473 }
0x2164   :  { %v10436_v42 = vpack.c.bf16 %v10428_v12, %v10428_v12  ;;  %v10429_v9 = vmul.f32 %v13474_v35, %v15448_v63 }
0x2166   :  { %v10437_v2 = vpack.c.bf16 %v10429_v9, %v10429_v9  ;;  %13097 = vmatmul.mubr.msk.bf16.vlgmr.msra.gmra.mxu0 %vm1212_vm8, %v10436_v42 }
0x2167   :  { %13107 = vmatpush3.bf16.msra.mxu0 %v10720_v19  ;;  %13108 = vmatprep.mubr.msk.bf16.mxu0 %vm13511_vm3, %v13510_v6 }
0x2168   :  { %13103 = vmatmul.mubr.msk.bf16.vlgmr.msra.gmra.mxu1 %vm1212_vm8, %v10437_v2  ;;  %13118 = vmatprep.subr.bf16.mxu0 %v13510_v6 }
0x2169   :  { %v13476_v43 = vpop.eup %13475  ;;  %13113 = vmatpush3.bf16.msra.mxu1 %v10766_v60  ;;  %13114 = vmatprep.mubr.msk.bf16.mxu1 %vm13511_vm3, %v13510_v6 }
0x216a   :  { %v10430_v29 = vmul.f32 %v13476_v43, %v15452_v55  ;;  %13124 = vmatprep.subr.bf16.mxu1 %v13510_v6  ;;  %v11671_v55 = vld [vmem:[%s15620_s11 + $0x1c] sm:$0xf] }
0x216b   :  { %v13478_v52 = vpop.eup %13477  ;;  %v10859_v34 = vsel %vm2864_vm9, %v11671_v55, 0 }
0x216c   :  { %v10438_v53 = vpack.c.bf16 %v10430_v29, %v10430_v29  ;;  %v10431_v63 = vmul.f32 %v13478_v52, %v15456_v25 }
0x216e   :  { %v10439_v56 = vpack.c.bf16 %v10431_v63, %v10431_v63  ;;  %13109 = vmatmul.mubr.msk.bf16.vlgmr.msra.gmra.mxu0 %vm1212_vm8, %v10438_v53 }
0x216f   :  { %13120 = vmatprep.mubr.msk.bf16.mxu0 %vm13511_vm3, %v13510_v6  ;;  %13119 = vmatpush3.bf16.msra.mxu0 %v10859_v34 }
0x2170   :  { %13115 = vmatmul.mubr.msk.bf16.vlgmr.msra.gmra.mxu1 %vm1212_vm8, %v10439_v56  ;;  %13132 = vmatprep.subr.bf16.mxu0 %v13510_v6 }
0x2171   :  { %13128 = vmatprep.mubr.msk.bf16.mxu1 %vm13511_vm3, %v13510_v6 }
0x2216   :  { %v10480_v25 = vpop.f32.mrf.mxu0 }
0x2218   :  { %v13074_v11 = vpop.f32.mrf.mxu0  ;;  %v10526_v20 = vpop.f32.mrf.mxu1 }
0x2219   :  { %v10816_v47 = vcombine.low %v10480_v25, %v10526_v20 }
0x221a   :  { %v10483_v16 = vpop.f32.mrf.mxu0  ;;  %v13080_v4 = vpop.f32.mrf.mxu1 }
0x221b   :  { %v10824_v61 = vrot.slane %v10816_v47, %v13701_v51  ;;  %v13212_v47 = vld [vmem:[%s15626_s17 + $0x30] sm:$0xff]  }
0x221c   :  { %v13075_v10 = vpop.f32.mrf.mxu0  ;;  %v10529_v32 = vpop.f32.mrf.mxu1 }
0x221e   :  { %v13081_v18 = vpop.f32.mrf.mxu1  ;;  %v10572_v0 = vpop.f32.mrf.mxu0 }
0x221f   :  { %v13210_v18 = vld [vmem:[%s15624_s15 + $0x10] sm:$0xff]  }
0x2220   :  { %v13086_v14 = vpop.f32.mrf.mxu0  ;;  %v10618_v1 = vpop.f32.mrf.mxu1 }
0x2221   :  { %v10817_v33 = vcombine.low %v10572_v0, %v10618_v1  ;;  %v13211_v0 = vld [vmem:[%s15626_s17 + $0x38] sm:$0xff]  }
0x2222   :  { %v10575_v57 = vpop.f32.mrf.mxu0  ;;  %v13092_v24 = vpop.f32.mrf.mxu1 }
0x2223   :  { %v10831_v28 = vrot.slane %v10817_v33, %v13701_v51 }
0x2224   :  { %v13087_v48 = vpop.f32.mrf.mxu0  ;;  %v10621_v30 = vpop.f32.mrf.mxu1 }
0x2225   :  { %v10832_v12 = vcombine.low %v10824_v61, %v10831_v28 }
0x2226   :  { %v13093_v22 = vpop.f32.mrf.mxu1  ;;  %v10664_v31 = vpop.f32.mrf.mxu0 }
0x2228   :  { %v13098_v26 = vpop.f32.mrf.mxu0  ;;  %v10710_v17 = vpop.f32.mrf.mxu1 }
0x2229   :  { %v10833_v3 = vcombine.low %v10664_v31, %v10710_v17  ;;  %v11676_v26 = vld [vmem:[%s15622_s13 + $0x1] ss:$0 sm:$0xff] }
0x222a   :  { %v10667_v44 = vpop.f32.mrf.mxu0  ;;  %v13104_v45 = vpop.f32.mrf.mxu1 }
0x222b   :  { %v10841_v21 = vrot.slane %v10833_v3, %v13701_v51  ;;  %v13213_v3 = vld [vmem:[%s15626_s17 + $0x28] sm:$0xff]  }
0x222c   :  { %v13099_v39 = vpop.f32.mrf.mxu0  ;;  %v10713_v13 = vpop.f32.mrf.mxu1 }
0x222d   :  { %v11678_v39 = vld [vmem:[%s15623_s14 + $0x1] ss:$0 sm:$0xff] }
0x222e   :  { %v13105_v49 = vpop.f32.mrf.mxu1  ;;  %v10756_v41 = vpop.f32.mrf.mxu0 }
0x2230   :  { %v13110_v36 = vpop.f32.mrf.mxu0  ;;  %v10802_v15 = vpop.f32.mrf.mxu1 }
0x2231   :  { %v10834_v38 = vcombine.low %v10756_v41, %v10802_v15  ;;  %v13214_v36 = vld [vmem:[%s15626_s17 + $0x20] sm:$0xff]  }
0x2232   :  { %v10759_v62 = vpop.f32.mrf.mxu0  ;;  %v13116_v27 = vpop.f32.mrf.mxu1  ;;  %v11684_v15 = vld [vmem:[%s15648_s5 + $0x1] ss:$0 sm:$0xff] }
0x2233   :  { %v10848_v7 = vrot.slane %v10834_v38, %v13701_v51 }
0x2234   :  { %v13111_v59 = vpop.f32.mrf.mxu0  ;;  %v10805_v40 = vpop.f32.mrf.mxu1 }
0x2235   :  { %v10849_v5 = vcombine.low %v10841_v21, %v10848_v7 }
0x2236   :  { %v13117_v35 = vpop.f32.mrf.mxu1 }
0x2237   :  { %v10852_v42 = vpack.c.bf16 %v10849_v5, %v10832_v12 }
0x2239   :  { %13121 = vmatmul.mubr.msk.bf16.vlgmr.msra.gmra.mxu0 %vm746_vm5, %v10852_v42 }
0x223a   :  { %13140 = vmatprep.mubr.msk.bf16.mxu0 %vm13511_vm3, %v13510_v6  ;;  %13133 = vmatpush3.bf16.msra.mxu0 %v13211_v0  ;;  %v11706_v0 = vld [vmem:[%s15629_s20 + $0x1] ss:$0 sm:$0xff] }
0x223b   :  { %13134 = vmatprep.subr.bf16.mxu0 %v13510_v6 }
0x223e   :  { %13135 = vmatpush3.bf16.msra.mxu0 %v13212_v47 }
0x223f   :  { %13136 = vmatprep.subr.bf16.mxu0 %v13510_v6 }
0x2242   :  { %13137 = vmatpush3.bf16.msra.mxu0 %v13213_v3 }
0x2243   :  { %13138 = vmatprep.subr.bf16.mxu0 %v13510_v6 }
0x2246   :  { %13139 = vmatpush3.bf16.msra.mxu0 %v13214_v36 }
0x22f9   :  { %v10895_v9 = vpop.f32.mrf.mxu0 }
0x22fa   :  { %v10902_v2 = vadd.f32 %v10895_v9, %v15350_v58 }
0x22fb   :  { %v13122_v19 = vpop.f32.mrf.mxu0 }
0x22fc   :  { %v10912_v60 = vadd.f32 %v11674_v8, %v10902_v2 }
0x22fd   :  { %v10898_v43 = vpop.f32.mrf.mxu0 }
0x22fe   :  { %v10903_v29 = vadd.f32 %v10898_v43, %v15354_v46  ;;  %v10914_v52 = vadd.f32 %v10912_v60, %v14685_v50 }
0x22ff   :  { %v13123_v53 = vpop.f32.mrf.mxu0 }
0x2300   :  { %v10913_v63 = vadd.f32 %v11674_v8, %v10903_v29  ;;  %v10916_v56 = vsel %vm417_vm4, %v10914_v52, 0.0 }
0x2301   :  { %10917 = vadd.xlane.f32.xlu1 %v10916_v56 }
0x2302   :  { %v10915_v55 = vadd.f32 %v10913_v63, %v14687_v54  ;;  %v13209_v54 = vld [vmem:[%s15624_s15 + $0x18] sm:$0xff]  }
0x2303   :  { %13125 = vmatpush3.bf16.msra.mxu1 %v13209_v54  ;;  %v11704_v54 = vld [vmem:[%s15628_s19 + $0x1] ss:$0 sm:$0xff]  ;;  %s13514_s19 = smov [#allocation2]  }
0x2304   :  { %v10919_v34 = vsel %vm417_vm4, %v10915_v55, 0.0  ;;  %13126 = vmatprep.subr.bf16.mxu1 %v13510_v6  ;;  %v11697_v6 = vld [vmem:[%s15627_s18 + $0x1] ss:$0 sm:$0xff]  ;;  %s11301_s20 = sshll.u32 %s13514_s19, 4  ;;  %s11302_s20 = int_to_ptr.vmem [resolvable:$true] %s11301_s20 }
0x2305   :  { %10920 = vadd.xlane.f32.xlu0 %v10919_v34  ;;  %s13487_s6 = scalar_lea.vmem %s11302_s20, 256  ;;  %p13492_p1 = scmp.lt.s32.totalorder %s11302_s20, %s11302_s20 }
0x2306   :  { %p13488_p0 = scmp.ne.s32.totalorder %s11302_s20, %s13487_s6  ;;  %p13493_p2 = scmp.lt.s32.totalorder %s13487_s6, %s13487_s6 }
0x2307   :  { %13127 = vmatpush3.bf16.msra.mxu1 %v13210_v18 }
0x2308   :  { %p13494_p3 = por %p13493_p2, %p13492_p1 }
0x230a   :  { %p13495_p4 = pnand %p13494_p3, %p13488_p0 }
0x238a   :  { %v10918_v25 = vpop.xlane.xlu1 %10917 }
0x238b   :  { %v10922_v11 = vmul.f32 0.03125, %v10918_v25 }
0x238d   :  { %v10924_v58 = vsub.f32 %v10914_v52, %v10922_v11 }
0x238e   :  { %v10921_v20 = vpop.xlane.xlu0 %10920 }
0x238f   :  { %v10923_v16 = vmul.f32 0.03125, %v10921_v20  ;;  %v10926_v4 = vmul.f32 %v10924_v58, %v10924_v58 }
0x2391   :  { %v10925_v10 = vsub.f32 %v10915_v55, %v10923_v16  ;;  %v10928_v46 = vsel %vm417_vm4, %v10926_v4, 0.0 }
0x2392   :  { %10929 = vadd.xlane.f32.xlu1 %v10928_v46 }
0x2393   :  { %v10927_v50 = vmul.f32 %v10925_v10, %v10925_v10 }
0x2395   :  { %v10931_v32 = vsel %vm417_vm4, %v10927_v50, 0.0 }
0x2396   :  { %10932 = vadd.xlane.f32.xlu0 %v10931_v32 }
0x241b   :  { %v10930_v14 = vpop.xlane.xlu1 %10929 }
0x241c   :  { %v10934_v1 = vmul.f32 0.03125, %v10930_v14 }
0x241e   :  { %v10936_v57 = vadd.f32 1e-05, %v10934_v1 }
0x241f   :  { %v10933_v24 = vpop.xlane.xlu0 %10932 }
0x2420   :  { %13479 = vrsqrt.f32 %v10936_v57  ;;  %v10935_v48 = vmul.f32 0.03125, %v10933_v24 }
0x2422   :  { %v10937_v30 = vadd.f32 1e-05, %v10935_v48  ;;  %v11254_v48 = vsub.s32 1, %v13675_v23 }
0x2424   :  { %13481 = vrsqrt.f32 %v10937_v30 }
0x242d   :  { %v13480_v22 = vpop.eup %13479 }
0x242e   :  { %v10940_v31 = vmul.f32 %v13480_v22, %v10924_v58 }
0x2430   :  { %v10950_v44 = vmul.f32 %v11676_v26, %v10940_v31 }
0x2431   :  { %v13482_v17 = vpop.eup %13481 }
0x2432   :  { %v10941_v45 = vmul.f32 %v13482_v17, %v10925_v10  ;;  %v10960_v33 = vadd.f32 %v11678_v39, %v10950_v44 }
0x2434   :  { %v10951_v13 = vmul.f32 %v11676_v26, %v10941_v45 }
0x2436   :  { %v10961_v49 = vadd.f32 %v11678_v39, %v10951_v13 }
0x2438   :  { %v10962_v41 = vpack.c.bf16 %v10961_v49, %v10960_v33 }
0x243a   :  { %13129 = vmatmul.mubr.msk.bf16.vlgmr.msra.gmra.mxu1 %vm417_vm4, %v10962_v41 }
0x24fa   :  { %v11025_v28 = vpop.f32.mrf.mxu1 }
0x24fb   :  { %v11026_v62 = vadd.f32 %v11684_v15, %v11025_v28 }
0x24fc   :  { %v13130_v38 = vpop.f32.mrf.mxu1 }
0x24fd   :  { %v11032_v7 = vmax.f32 %v11026_v62, 0.0 }
0x24fe   :  { %v11028_v27 = vpop.f32.mrf.mxu1 }
0x24ff   :  { %v11029_v61 = vadd.f32 %v11684_v15, %v11028_v27 }
0x2500   :  { %v13131_v21 = vpop.f32.mrf.mxu1 }
0x2501   :  { %v11033_v59 = vmax.f32 %v11029_v61, 0.0 }
0x2503   :  { %v11034_v40 = vpack.c.bf16 %v11033_v59, %v11032_v7 }
0x2505   :  { %13141 = vmatmul.mubr.msk.bf16.vlgmr.msra.gmra.mxu0 %vm211_vm0, %v11034_v40  ;;  %vm11248_vm0 = vcmask 1047559  }
0x25c5   :  { %v11113_v12 = vpop.f32.mrf.mxu0 }
0x25c6   :  { %v11114_v5 = vadd.f32 %v11697_v6, %v11113_v12 }
0x25c7   :  { %v13142_v35 = vpop.f32.mrf.mxu0 }
0x25c8   :  { %v11120_v42 = vadd.f32 %v11114_v5, %v10960_v33 }
0x25c9   :  { %v11116_v9 = vpop.f32.mrf.mxu0 }
0x25ca   :  { %v11117_v8 = vadd.f32 %v11697_v6, %v11116_v9  ;;  %v11122_v2 = vsel %vm417_vm4, %v11120_v42, 0.0 }
0x25cb   :  { %11123 = vadd.xlane.f32.xlu1 %v11122_v2  ;;  %v13143_v19 = vpop.f32.mrf.mxu0 }
0x25cc   :  { %v11121_v60 = vadd.f32 %v11117_v8, %v10961_v49 }
0x25ce   :  { %v11125_v43 = vsel %vm417_vm4, %v11121_v60, 0.0 }
0x25cf   :  { %11126 = vadd.xlane.f32.xlu0 %v11125_v43 }
0x2654   :  { %v11124_v29 = vpop.xlane.xlu1 %11123 }
0x2655   :  { %v11128_v52 = vmul.f32 0.03125, %v11124_v29 }
0x2657   :  { %v11130_v53 = vsub.f32 %v11120_v42, %v11128_v52 }
0x2658   :  { %v11127_v63 = vpop.xlane.xlu0 %11126 }
0x2659   :  { %v11129_v56 = vmul.f32 0.03125, %v11127_v63  ;;  %v11132_v55 = vmul.f32 %v11130_v53, %v11130_v53 }
0x265b   :  { %v11131_v34 = vsub.f32 %v11121_v60, %v11129_v56  ;;  %v11134_v25 = vsel %vm417_vm4, %v11132_v55, 0.0 }
0x265c   :  { %11135 = vadd.xlane.f32.xlu1 %v11134_v25 }
0x265d   :  { %v11133_v11 = vmul.f32 %v11131_v34, %v11131_v34 }
0x265f   :  { %v11137_v58 = vsel %vm417_vm4, %v11133_v11, 0.0 }
0x2660   :  { %11138 = vadd.xlane.f32.xlu0 %v11137_v58 }
0x26e5   :  { %v11136_v20 = vpop.xlane.xlu1 %11135 }
0x26e6   :  { %v11140_v16 = vmul.f32 0.03125, %v11136_v20 }
0x26e8   :  { %v11142_v4 = vadd.f32 1e-05, %v11140_v16 }
0x26e9   :  { %v11139_v10 = vpop.xlane.xlu0 %11138 }
0x26ea   :  { %13483 = vrsqrt.f32 %v11142_v4  ;;  %v11141_v46 = vmul.f32 0.03125, %v11139_v10 }
0x26ec   :  { %v11143_v50 = vadd.f32 1e-05, %v11141_v46 }
0x26ee   :  { %13485 = vrsqrt.f32 %v11143_v50 }
0x26f7   :  { %v13484_v32 = vpop.eup %13483 }
0x26f8   :  { %v11146_v18 = vmul.f32 %v13484_v32, %v11130_v53 }
0x26fa   :  { %v11156_v14 = vmul.f32 %v11704_v54, %v11146_v18 }
0x26fb   :  { %v13486_v1 = vpop.eup %13485 }
0x26fc   :  { %v11166_v57 = vadd.f32 %v11706_v0, %v11156_v14  ;;  %v11147_v24 = vmul.f32 %v13486_v1, %v11131_v34 }
0x26fe   :  { %v11170_v30 = vcombine.high %v11166_v57, %v11166_v57  ;;  %v11177_v22 = vrot.slane %v11166_v57, %v13701_v51  ;;  %v11157_v31 = vmul.f32 %v11704_v54, %v11147_v24 }
0x2700   :  { %v11184_v26 = vrot.slane %v11170_v30, %v13701_v51  ;;  %v11185_v17 = vcombine.high %v11177_v22, %v11177_v22  ;;  %v11207_v44 = vrot.slane %v11177_v22, %v13690_v37  ;;  %v11255_v45 = vrot.slane %v11177_v22, %v11254_v48 }
0x2701   :  { %v11167_v39 = vadd.f32 %v11706_v0, %v11157_v31 }
0x2702   :  { %v11211_v13 = vrot.slane %v11185_v17, %v13690_v37  ;;  %v11215_v23 = vrot.slane %v11184_v26, %v13690_v37  ;;  %v11259_v33 = vrot.slane %v11185_v17, %v11254_v48  ;;  %v11186_v49 = vcombine.high %v11184_v26, %v11184_v26 }
0x2703   :  { %v11187_v41 = vcombine.high %v11167_v39, %v11167_v39  ;;  %v11194_v47 = vrot.slane %v11167_v39, %v13701_v51  ;;  %v11263_v3 = vrot.slane %v11184_v26, %v11254_v48 }
0x2704   :  { %v11219_v36 = vrot.slane %v11186_v49, %v13690_v37  ;;  %v11237_v15 = vsel %vm11236_vm10, %v11211_v13, %v11207_v44  ;;  %v11267_v28 = vrot.slane %v11186_v49, %v11254_v48  ;;  %v11284_v38 = vsel %vm11238_vm11, %v11259_v33, %v11255_v45 }
0x2705   :  { %v11201_v62 = vrot.slane %v11187_v41, %v13701_v51  ;;  %v11202_v27 = vcombine.high %v11194_v47, %v11194_v47  ;;  %v11223_v61 = vrot.slane %v11194_v47, %v13690_v37  ;;  %v11239_v21 = vsel %vm11238_vm11, %v11215_v23, %v11237_v15 }
0x2706   :  { %v11241_v7 = vsel %vm11240_vm12, %v11219_v36, %v11239_v21  ;;  %v11271_v59 = vrot.slane %v11194_v47, %v11254_v48  ;;  %v11285_v40 = vsel %vm11240_vm12, %v11263_v3, %v11284_v38 }
0x2707   :  { %v11203_v6 = vcombine.high %v11201_v62, %v11201_v62  ;;  %v11227_v12 = vrot.slane %v11202_v27, %v13690_v37  ;;  %v11231_v5 = vrot.slane %v11201_v62, %v13690_v37  ;;  %v11243_v35 = vsel %vm11242_vm13, %v11223_v61, %v11241_v7 }
0x2708   :  { %v11275_v51 = vrot.slane %v11202_v27, %v11254_v48  ;;  %v11279_v42 = vrot.slane %v11201_v62, %v11254_v48  ;;  %v11286_v9 = vsel %vm11242_vm13, %v11267_v28, %v11285_v40 }
0x2709   :  { %v11235_v8 = vrot.slane %v11203_v6, %v13690_v37  ;;  %v11245_v2 = vsel %vm11244_vm14, %v11227_v12, %v11243_v35  ;;  %v11283_v19 = vrot.slane %v11203_v6, %v11254_v48  ;;  %v11287_v60 = vsel %vm11244_vm14, %v11271_v59, %v11286_v9 }
0x270a   :  { %v11247_v43 = vsel %vm11246_vm15, %v11231_v5, %v11245_v2  ;;  %v11288_v29 = vsel %vm11246_vm15, %v11275_v51, %v11287_v60 }
0x270b   :  { %v11249_v52 = vsel %vm11248_vm0, %v11235_v8, %v11247_v43  ;;  %v11289_v53 = vsel %vm11248_vm0, %v11279_v42, %v11288_v29  ;;  %11295 = vst.msk [vmem:[#allocation2 + $0xf] sm:$0x1] %vm11294_vm2, %v11283_v19 }
0x270c   :  { %11251 = vst.msk [vmem:[#allocation2] sm:$0xff] %vm417_vm4, %v11249_v52 }
0x270d   :  { %11293 = vst.msk [vmem:[#allocation2 + $0x7] sm:$0xfe] %vm11292_vm1, %v11289_v53 }
0x270e   :  { %13498 = shalt.err (!%p13495_p4)
}
0x270f   :  { %s13515_s8 = smov 128   ;;  %s13516_s11 = smov 8  }
0x2710   :  { %11307 = dma.vmem_to_hbm [thread:$0]  %s11302_s20, 256, %s15630_s21, [#allocation3], %s13515_s8, %s13515_s8, %s13516_s11  }
0x2711   :  { %13507 = dma.done.wait [#allocation3], 256  }
0x2712   :  { %13508 = vsyncadd [#allocation3], 4294967040 }
0x2713   :  { %11311 = vsyncpa [#allocation3], 1 }

</bundles_post_ra>
